<compile_context>
chip_gen: v6e
topology: v6e:2x2x1
jax: 0.10.0
libtpu: 0.0.40
codegen_flags: <defaults>
</compile_context>

<pallas_src>
import jax
import jax.numpy as jnp
from jax import lax
from jax.experimental import pallas as pl
from jax.experimental.pallas import tpu as pltpu


# ----------------------------- kernel ---------------------------------------


def _make_kernel(block_b, n_tokens, channels, row_chunk):
    N, C = n_tokens, channels
    n_chunks = N // row_chunk

    def kernel(x_ref, wct_ref, bc_ref, wqkvt_ref, bqkv_ref, o_ref,
               a_scr, rank_scr):
        # ---- fused 1x1 conv + ReLU over all images of the block ------------
        x2d = x_ref[...].reshape(block_b * N, C)          # leading-dim merge (no relayout)
        xc = jnp.maximum(
            jnp.dot(x2d, wct_ref[...], preferred_element_type=jnp.float32)
            + bc_ref[...], 0.0)

        # ---- folded + fused q/k/v projection: one (M, C) @ (C, 3C) matmul --
        qkv = (jnp.dot(xc, wqkvt_ref[...], preferred_element_type=jnp.float32)
               + bqkv_ref[...])

        xc3 = xc.reshape(block_b, N, C)
        qkv3 = qkv.reshape(block_b, N, 3 * C)
        scale = 1.0 / jnp.sqrt(jnp.float32(C))

        # per-image attention + rank mask (small static unroll over the block)
        for bi in range(block_b):
            q = qkv3[bi, :, 0:C]
            k = qkv3[bi, :, C:2 * C]
            v = qkv3[bi, :, 2 * C:3 * C]

            # scores: contract channel dims directly (no materialized k^T), f32.
            a = lax.dot_general(q, k, (((1,), (1,)), ((), ())),
                                preferred_element_type=jnp.float32) * scale
            a_scr[...] = a                                  # stash for chunked rank pass

            # row-wise softmax (f32); denominator via EUP approximate reciprocal.
            m = jnp.max(a, axis=-1, keepdims=True)
            e = jnp.exp(a - m)
            attn = e * pl.reciprocal(jnp.sum(e, axis=-1, keepdims=True), approx=True)

            pos = (a >= 0.0).astype(jnp.float32)            # att_pos_mask

            # rank[i, j] = #{k : a[i,k] > a[i,j]}  (descending rank, 0 = largest),
            # computed in row chunks so the compare intermediate is
            # (row_chunk, N, N) instead of (N, N, N).
            # TODO(synk): exactly-tied scores get equal ranks here, while torch's
            # double sort assigns distinct stable ranks to ties.
            @pl.loop(0, n_chunks)
            def _(ci):
                start = pl.multiple_of(ci * row_chunk, row_chunk)
                rows = a_scr[pl.ds(start, row_chunk), :]                   # (rc, N)
                gt = (rows[:, None, :] > rows[:, :, None]).astype(jnp.float32)
                rank_scr[pl.ds(start, row_chunk), :] = jnp.sum(gt, axis=-1)

            # For the strictly-greater rank: rank > cnt-1  <=>  a < 0, so torch's
            # cnt reduction + masked select folds into:
            mask = pos * (rank_scr[...] + 1.0) ** 3 + (1.0 - pos)

            # attention-weighted values: bf16 operands, f32 accumulation. The
            # discrete pos/rank decisions above were taken on f32 scores, so this
            # cast cannot change the mask.
            w = (attn * mask).astype(jnp.bfloat16)
            out = jnp.dot(w, v.astype(jnp.bfloat16),
                          preferred_element_type=jnp.float32)

            # residual with the conv output (PyTorch returns out + conv(x)).
            o_ref[bi] = (out + xc3[bi]).astype(o_ref.dtype)
            # TODO(synk): for C not a multiple of 128, flatten the per-image result
            # to (N*C,) and use a (B, N*C) out_shape to keep HBM stores lane-dense.

    return kernel


# --------------------------- host-side helpers -------------------------------


def prepare_params(params):
    """Fold each two-conv branch, pre-transpose, and fuse q/k/v into one matrix."""
    (wc, bc, wq1, bq1, wq2, bq2, wk1, bk1, wk2, bk2, wv1, bv1, wv2, bv2) = params

    def fold(w1, b1, w2, b2):
        # y = (x W1^T + b1) W2^T + b2 = x (W2 W1)^T + (b1 W2^T + b2)   (exact)
        return (w2 @ w1).T, b1 @ w2.T + b2   # pre-transposed weight, folded bias

    wq_t, bq = fold(wq1, bq1, wq2, bq2)
    wk_t, bk = fold(wk1, bk1, wk2, bk2)
    wv_t, bv = fold(wv1, bv1, wv2, bv2)
    wqkv_t = jnp.concatenate([wq_t, wk_t, wv_t], axis=1)     # (C, 3C)
    bqkv = jnp.concatenate([bq, bk, bv], axis=1)             # (1, 3C)
    return wc.T, bc, wqkv_t, bqkv


def _pick_block_b(batch, n_tokens, target_rows=256):
    """Largest divisor of batch keeping block rows <= max(target, N) (fills MXU M-dim)."""
    cap = max(target_rows, n_tokens)
    best = 1
    for bb in range(1, batch + 1):
        if batch % bb == 0 and bb * n_tokens <= cap:
            best = bb
    return best


def _pick_row_chunk(n_tokens, budget_bytes=2 * 1024 * 1024):
    """Row-chunk for the pairwise rank pass: (chunk, N, N) f32 stays under budget."""
    per_row = n_tokens * n_tokens * 4
    for c in (32, 16, 8, 4, 2, 1):
        if n_tokens % c == 0 and c * per_row <= budget_bytes:
            return c
    return 1


def aug_attention(x_nchw, params):
    B, C, H, W = x_nchw.shape
    N = H * W
    wct, bc, wqkvt, bqkv = prepare_params(params)
    x_tok = jnp.transpose(x_nchw, (0, 2, 3, 1)).reshape(B, N, C)   # (B, N, C)

    block_b = _pick_block_b(B, N)
    row_chunk = _pick_row_chunk(N)
    kernel = _make_kernel(block_b, N, C, row_chunk)

    out = pl.pallas_call(
        kernel,
        out_shape=jax.ShapeDtypeStruct((B, N, C), jnp.float32),
        grid_spec=pltpu.PrefetchScalarGridSpec(
            num_scalar_prefetch=0,
            grid=(B // block_b,),
            in_specs=[
                pl.BlockSpec((block_b, N, C), lambda b: (b, 0, 0)),   # x tokens
                pl.BlockSpec((C, C), lambda b: (0, 0)),               # conv W^T
                pl.BlockSpec((1, C), lambda b: (0, 0)),               # conv bias
                pl.BlockSpec((C, 3 * C), lambda b: (0, 0)),           # fused qkv W^T
                pl.BlockSpec((1, 3 * C), lambda b: (0, 0)),           # fused qkv bias
            ],
            out_specs=pl.BlockSpec((block_b, N, C), lambda b: (b, 0, 0)),
            scratch_shapes=[
                pltpu.VMEM((N, N), jnp.float32),   # scores (for chunked rank pass)
                pltpu.VMEM((N, N), jnp.float32),   # rank accumulator
            ],
        ),
        # batch axis is independent -> megacore-shardable on v7x; default scoped
        # VMEM limits are enough thanks to the chunked rank pass.
        compiler_params=pltpu.CompilerParams(dimension_semantics=("parallel",)),
    )(x_tok, wct, bc, wqkvt, bqkv)

    return jnp.transpose(out.reshape(B, H, W, C), (0, 3, 1, 2))     # back to NCHW


# ----------------------------- references ------------------------------------


def reference(x_nchw, params):
    """Pure-JAX reference of the PyTorch forward (softmax, double-argsort rank,
    positive-count gating, cubic mask, residual). Uses the same exactly-folded
    weights as the kernel so the discrete sign/rank decisions see identical scores."""
    wct, bc, wqkvt, bqkv = prepare_params(params)
    B, C, H, W = x_nchw.shape
    N = H * W
    x = jnp.transpose(x_nchw, (0, 2, 3, 1)).reshape(B, N, C)
    xc = jnp.maximum(x @ wct + bc, 0.0)
    qkv = xc @ wqkvt + bqkv
    q, k, v = qkv[..., :C], qkv[..., C:2 * C], qkv[..., 2 * C:]
    a = jnp.einsum('bnc,bmc->bnm', q, k) / jnp.sqrt(jnp.float32(C))
    attn = jax.nn.softmax(a, axis=-1)
    desc_idx = jnp.argsort(-a, axis=-1)                         # torch.sort(desc)[1]
    rank = jnp.argsort(desc_idx, axis=-1).astype(jnp.float32)   # torch.sort(idx)[1]
    pos = (a >= 0.0).astype(jnp.float32)
    cnt = jnp.sum(pos, axis=-1, keepdims=True)
    sort_pos = jnp.where(rank > cnt - 1.0, 0.0, rank)
    mask = (sort_pos + 1.0) ** 3 * pos + (1.0 - pos)
    out = jnp.einsum('bnm,bmc->bnc', attn * mask, v) + xc
    return jnp.transpose(out.reshape(B, H, W, C), (0, 3, 1, 2))


def _check_fold(x_tok, params):
    """Continuous check that the host-side fold exactly reproduces the two-conv branches."""
    (wc, bc, wq1, bq1, wq2, bq2, wk1, bk1, wk2, bk2, wv1, bv1, wv2, bv2) = params
    wct, bcp, wqkvt, bqkv = prepare_params(params)
    C = x_tok.shape[-1]
    xc = jnp.maximum(x_tok @ wc.T + bc, 0.0)

    def two(inp, w1, b1, w2, b2):
        return (inp @ w1.T + b1) @ w2.T + b2

    qkv = jnp.maximum(x_tok @ wct + bcp, 0.0) @ wqkvt + bqkv
    checks = (("q", two(xc, wq1, bq1, wq2, bq2), qkv[..., :C]),
              ("k", two(xc, wk1, bk1, wk2, bk2), qkv[..., C:2 * C]),
              ("v", two(xc, wv1, bv1, wv2, bv2), qkv[..., 2 * C:]))
    for name, u, f in checks:
        if not jnp.allclose(u, f, rtol=1e-3, atol=1e-3):
            raise AssertionError(f"host-side weight fold mismatch for {name}")


def init_params(key, C):
    """Deterministic synthetic weights for the 7 1x1 convs (weight (C,C), bias (1,C))."""
    keys = jax.random.split(key, 14)
    params = []
    std = 1.0 / jnp.sqrt(jnp.float32(C))
    for i in range(7):
        w = jax.random.normal(keys[2 * i], (C, C), jnp.float32) * std
        b = jax.random.normal(keys[2 * i + 1], (1, C), jnp.float32) * 0.1
        params += [w, b]
    return tuple(params)


# ------------------------------- demo ----------------------------------------


if __name__ == "__main__":
    key = jax.random.PRNGKey(0)
    # (B, C, H, W): second config exercises the multi-chunk rank loop (N=256).
    configs = [(2, 128, 8, 8), (2, 128, 16, 16)]

    for (B, C, H, W) in configs:
        key, kx, kp = jax.random.split(key, 3)
        x = jax.random.normal(kx, (B, C, H, W), jnp.float32)
        params = init_params(kp, C)

        x_tok = jnp.transpose(x, (0, 2, 3, 1)).reshape(B, H * W, C)
        _check_fold(x_tok, params)

        y = jax.block_until_ready(aug_attention(x, params))
        y_ref = jax.block_until_ready(reference(x, params))
        assert y.shape == (B, C, H, W)
        assert bool(jnp.all(jnp.isfinite(y)))

        # bf16 value-path + approx reciprocal give <~1% continuous error; discrete
        # rank decisions on *near-equal* f32 scores may legitimately differ between
        # two correct implementations (affects at most a couple of rows), so require
        # >=99.5% of elements within 2% of the output scale instead of a strict max.
        scale = jnp.max(jnp.abs(y_ref)) + 1e-6
        rel_err = jnp.abs(y - y_ref) / scale
        frac_bad = float(jnp.mean((rel_err > 2e-2).astype(jnp.float32)))
        if frac_bad > 0.005:
            raise AssertionError(
                f"Pallas kernel does not match reference at {(B, C, H, W)}: "
                f"{frac_bad * 100:.2f}% of elements exceed tolerance")

    print("KERNEL_OK")
</pallas_src>

<mosaic_0001>
module attributes {stable_mosaic.version = 11 : i64} {
  func.func @kernel(%arg0: i32, %arg1: memref<2x64x128xf32, #tpu.memory_space<vmem>>, %arg2: memref<128x128xf32, #tpu.memory_space<vmem>>, %arg3: memref<1x128xf32, #tpu.memory_space<vmem>>, %arg4: memref<128x384xf32, #tpu.memory_space<vmem>>, %arg5: memref<1x384xf32, #tpu.memory_space<vmem>>, %arg6: memref<2x64x128xf32, #tpu.memory_space<vmem>>, %arg7: memref<64x64xf32, #tpu.memory_space<vmem>>, %arg8: memref<64x64xf32, #tpu.memory_space<vmem>>) attributes {dimension_semantics = [#tpu.dimension_semantics<parallel>], iteration_bounds = array<i64: 1>, scalar_prefetch = 0 : i64, scratch_operands = 2 : i64, tpu.core_type = #tpu.core_type<tc>, window_params = [{transform_indices = @transform_0, window_bounds = array<i64: 2, 64, 128>}, {pipeline_mode = #tpu.pipeline_mode<synchronous>, transform_indices = @transform_1, window_bounds = array<i64: 128, 128>}, {pipeline_mode = #tpu.pipeline_mode<synchronous>, transform_indices = @transform_2, window_bounds = array<i64: 1, 128>}, {pipeline_mode = #tpu.pipeline_mode<synchronous>, transform_indices = @transform_3, window_bounds = array<i64: 128, 384>}, {pipeline_mode = #tpu.pipeline_mode<synchronous>, transform_indices = @transform_4, window_bounds = array<i64: 1, 384>}, {transform_indices = @transform_5, window_bounds = array<i64: 2, 64, 128>}]} {
    %c0 = arith.constant 0 : index
    %c0_0 = arith.constant 0 : index
    %c0_1 = arith.constant 0 : index
    %0 = vector.load %arg1[%c0, %c0_0, %c0_1] : memref<2x64x128xf32, #tpu.memory_space<vmem>>, vector<2x64x128xf32>
    %1 = vector.shape_cast %0 : vector<2x64x128xf32> to vector<128x128xf32>
    %c0_2 = arith.constant 0 : index
    %c0_3 = arith.constant 0 : index
    %2 = vector.load %arg2[%c0_2, %c0_3] : memref<128x128xf32, #tpu.memory_space<vmem>>, vector<128x128xf32>
    %cst = arith.constant dense<0.000000e+00> : vector<128x128xf32>
    %3 = tpu.matmul %1, %2, %cst {dimension_numbers = #tpu.dot_dimension_numbers<[1], [0], [0], [1], [0, 0, 1, 1], [], []>} : vector<128x128xf32>, vector<128x128xf32>, vector<128x128xf32> -> vector<128x128xf32>
    %c0_4 = arith.constant 0 : index
    %c0_5 = arith.constant 0 : index
    %4 = vector.load %arg3[%c0_4, %c0_5] : memref<1x128xf32, #tpu.memory_space<vmem>>, vector<1x128xf32>
    %5 = vector.broadcast %4 : vector<1x128xf32> to vector<128x128xf32>
    %6 = arith.addf %3, %5 : vector<128x128xf32>
    %cst_6 = arith.constant 0.000000e+00 : f32
    %7 = vector.broadcast %cst_6 : f32 to vector<128x128xf32>
    %8 = arith.maximumf %6, %7 : vector<128x128xf32>
    %c0_7 = arith.constant 0 : index
    %c0_8 = arith.constant 0 : index
    %9 = vector.load %arg4[%c0_7, %c0_8] : memref<128x384xf32, #tpu.memory_space<vmem>>, vector<128x384xf32>
    %cst_9 = arith.constant dense<0.000000e+00> : vector<128x384xf32>
    %10 = tpu.matmul %8, %9, %cst_9 {dimension_numbers = #tpu.dot_dimension_numbers<[1], [0], [0], [1], [0, 0, 1, 1], [], []>} : vector<128x128xf32>, vector<128x384xf32>, vector<128x384xf32> -> vector<128x384xf32>
    %c0_10 = arith.constant 0 : index
    %c0_11 = arith.constant 0 : index
    %11 = vector.load %arg5[%c0_10, %c0_11] : memref<1x384xf32, #tpu.memory_space<vmem>>, vector<1x384xf32>
    %12 = vector.broadcast %11 : vector<1x384xf32> to vector<128x384xf32>
    %13 = arith.addf %10, %12 : vector<128x384xf32>
    %14 = vector.shape_cast %8 : vector<128x128xf32> to vector<2x64x128xf32>
    %15 = vector.shape_cast %13 : vector<128x384xf32> to vector<2x64x384xf32>
    %cst_12 = arith.constant 1.280000e+02 : f32
    %16 = math.sqrt %cst_12 : f32
    %cst_13 = arith.constant 1.000000e+00 : f32
    %17 = arith.divf %cst_13, %16 : f32
    %18 = vector.extract_strided_slice %15 {offsets = [0, 0, 0], sizes = [1, 64, 128], strides = [1, 1, 1]} : vector<2x64x384xf32> to vector<1x64x128xf32>
    %19 = vector.shape_cast %18 : vector<1x64x128xf32> to vector<64x128xf32>
    %20 = vector.extract_strided_slice %15 {offsets = [0, 0, 128], sizes = [1, 64, 128], strides = [1, 1, 1]} : vector<2x64x384xf32> to vector<1x64x128xf32>
    %21 = vector.shape_cast %20 : vector<1x64x128xf32> to vector<64x128xf32>
    %22 = vector.extract_strided_slice %15 {offsets = [0, 0, 256], sizes = [1, 64, 128], strides = [1, 1, 1]} : vector<2x64x384xf32> to vector<1x64x128xf32>
    %23 = vector.shape_cast %22 : vector<1x64x128xf32> to vector<64x128xf32>
    %cst_14 = arith.constant dense<0.000000e+00> : vector<64x64xf32>
    %24 = tpu.matmul %19, %21, %cst_14 {dimension_numbers = #tpu.dot_dimension_numbers<[1], [1], [0], [0], [0, 0, 1, 0], [], []>} : vector<64x128xf32>, vector<64x128xf32>, vector<64x64xf32> -> vector<64x64xf32>
    %25 = vector.broadcast %17 : f32 to vector<64x64xf32>
    %26 = arith.mulf %24, %25 : vector<64x64xf32>
    %c0_15 = arith.constant 0 : index
    %c0_16 = arith.constant 0 : index
    %27 = vector.load %arg7[%c0_15, %c0_16] : memref<64x64xf32, #tpu.memory_space<vmem>>, vector<64x64xf32>
    tpu.vector_store %arg7[%c0_15, %c0_16], %26 {strides = array<i32>} : memref<64x64xf32, #tpu.memory_space<vmem>>, vector<64x64xf32>,
    %cst_17 = arith.constant dense<0xFF800000> : vector<64xf32>
    %28 = vector.multi_reduction <maximumf>, %26, %cst_17 [1] : vector<64x64xf32> to vector<64xf32>
    %29 = vector.shape_cast %28 : vector<64xf32> to vector<64x1xf32>
    %30 = vector.broadcast %29 : vector<64x1xf32> to vector<64x64xf32>
    %31 = arith.subf %26, %30 : vector<64x64xf32>
    %32 = math.exp %31 : vector<64x64xf32>
    %cst_18 = arith.constant dense<0.000000e+00> : vector<64xf32>
    %33 = vector.multi_reduction <add>, %32, %cst_18 [1] : vector<64x64xf32> to vector<64xf32>
    %34 = vector.shape_cast %33 : vector<64xf32> to vector<64x1xf32>
    %35 = tpu.reciprocal %34 {approx = true} : vector<64x1xf32> -> vector<64x1xf32>
    %36 = vector.broadcast %35 : vector<64x1xf32> to vector<64x64xf32>
    %37 = arith.mulf %32, %36 : vector<64x64xf32>
    %cst_19 = arith.constant 0.000000e+00 : f32
    %38 = vector.broadcast %cst_19 : f32 to vector<64x64xf32>
    %39 = arith.cmpf oge, %26, %38 : vector<64x64xf32>
    %40 = arith.extui %39 : vector<64x64xi1> to vector<64x64xi32>
    %41 = arith.sitofp %40 : vector<64x64xi32> to vector<64x64xf32>
    %c0_i32 = arith.constant 0 : i32
    %c2_i32 = arith.constant 2 : i32
    %42 = arith.addi %c0_i32, %c2_i32 : i32
    %c1_i32 = arith.constant 1 : i32
    scf.for %arg9 = %c0_i32 to %42 step %c1_i32  : i32 {
      %c1_i32_46 = arith.constant 1 : i32
      %106 = arith.muli %arg9, %c1_i32_46 : i32
      %c0_i32_47 = arith.constant 0 : i32
      %107 = arith.addi %c0_i32_47, %106 : i32
      %c32_i32 = arith.constant 32 : i32
      %108 = arith.muli %107, %c32_i32 : i32
      %109 = tpu.assume_multiple %108, 32 : i32
      %110 = arith.index_cast %109 : i32 to index
      %c0_48 = arith.constant 0 : index
      %111 = vector.load %arg7[%110, %c0_48] : memref<64x64xf32, #tpu.memory_space<vmem>>, vector<32x64xf32>
      %112 = vector.shape_cast %111 : vector<32x64xf32> to vector<32x1x64xf32>
      %113 = vector.shape_cast %111 : vector<32x64xf32> to vector<32x64x1xf32>
      %114 = vector.broadcast %112 : vector<32x1x64xf32> to vector<32x64x64xf32>
      %115 = vector.broadcast %113 : vector<32x64x1xf32> to vector<32x64x64xf32>
      %116 = arith.cmpf ogt, %114, %115 : vector<32x64x64xf32>
      %117 = arith.extui %116 : vector<32x64x64xi1> to vector<32x64x64xi32>
      %118 = arith.sitofp %117 : vector<32x64x64xi32> to vector<32x64x64xf32>
      %cst_49 = arith.constant dense<0.000000e+00> : vector<32x64xf32>
      %119 = vector.multi_reduction <add>, %118, %cst_49 [2] : vector<32x64x64xf32> to vector<32x64xf32>
      %120 = arith.index_cast %109 : i32 to index
      %c0_50 = arith.constant 0 : index
      %121 = vector.load %arg8[%120, %c0_50] : memref<64x64xf32, #tpu.memory_space<vmem>>, vector<32x64xf32>
      tpu.vector_store %arg8[%120, %c0_50], %119 {strides = array<i32>} : memref<64x64xf32, #tpu.memory_space<vmem>>, vector<32x64xf32>,
    }
    %c2_i32_20 = arith.constant 2 : i32
    %c0_21 = arith.constant 0 : index
    %c0_22 = arith.constant 0 : index
    %43 = vector.load %arg8[%c0_21, %c0_22] : memref<64x64xf32, #tpu.memory_space<vmem>>, vector<64x64xf32>
    %cst_23 = arith.constant 1.000000e+00 : f32
    %44 = vector.broadcast %cst_23 : f32 to vector<64x64xf32>
    %45 = arith.addf %43, %44 : vector<64x64xf32>
    %46 = arith.mulf %45, %45 : vector<64x64xf32>
    %47 = arith.mulf %45, %46 : vector<64x64xf32>
    %48 = arith.mulf %41, %47 : vector<64x64xf32>
    %cst_24 = arith.constant 1.000000e+00 : f32
    %49 = vector.broadcast %cst_24 : f32 to vector<64x64xf32>
    %50 = arith.subf %49, %41 : vector<64x64xf32>
    %51 = arith.addf %48, %50 : vector<64x64xf32>
    %52 = arith.mulf %37, %51 : vector<64x64xf32>
    %53 = arith.truncf %52 : vector<64x64xf32> to vector<64x64xbf16>
    %54 = arith.truncf %23 : vector<64x128xf32> to vector<64x128xbf16>
    %cst_25 = arith.constant dense<0.000000e+00> : vector<64x128xf32>
    %55 = tpu.matmul %53, %54, %cst_25 {dimension_numbers = #tpu.dot_dimension_numbers<[1], [0], [0], [1], [0, 0, 1, 1], [], []>} : vector<64x64xbf16>, vector<64x128xbf16>, vector<64x128xf32> -> vector<64x128xf32>
    %56 = vector.extract_strided_slice %14 {offsets = [0, 0, 0], sizes = [1, 64, 128], strides = [1, 1, 1]} : vector<2x64x128xf32> to vector<1x64x128xf32>
    %57 = vector.shape_cast %56 : vector<1x64x128xf32> to vector<64x128xf32>
    %58 = arith.addf %55, %57 : vector<64x128xf32>
    %c0_26 = arith.constant 0 : index
    %c0_27 = arith.constant 0 : index
    %c0_28 = arith.constant 0 : index
    %59 = vector.load %arg6[%c0_26, %c0_27, %c0_28] : memref<2x64x128xf32, #tpu.memory_space<vmem>>, vector<1x64x128xf32>
    %60 = vector.shape_cast %59 : vector<1x64x128xf32> to vector<64x128xf32>
    %61 = vector.shape_cast %58 : vector<64x128xf32> to vector<1x64x128xf32>
    tpu.vector_store %arg6[%c0_26, %c0_27, %c0_28], %61 {strides = array<i32>} : memref<2x64x128xf32, #tpu.memory_space<vmem>>, vector<1x64x128xf32>,
    %62 = vector.extract_strided_slice %15 {offsets = [1, 0, 0], sizes = [1, 64, 128], strides = [1, 1, 1]} : vector<2x64x384xf32> to vector<1x64x128xf32>
    %63 = vector.shape_cast %62 : vector<1x64x128xf32> to vector<64x128xf32>
    %64 = vector.extract_strided_slice %15 {offsets = [1, 0, 128], sizes = [1, 64, 128], strides = [1, 1, 1]} : vector<2x64x384xf32> to vector<1x64x128xf32>
    %65 = vector.shape_cast %64 : vector<1x64x128xf32> to vector<64x128xf32>
    %66 = vector.extract_strided_slice %15 {offsets = [1, 0, 256], sizes = [1, 64, 128], strides = [1, 1, 1]} : vector<2x64x384xf32> to vector<1x64x128xf32>
    %67 = vector.shape_cast %66 : vector<1x64x128xf32> to vector<64x128xf32>
    %cst_29 = arith.constant dense<0.000000e+00> : vector<64x64xf32>
    %68 = tpu.matmul %63, %65, %cst_29 {dimension_numbers = #tpu.dot_dimension_numbers<[1], [1], [0], [0], [0, 0, 1, 0], [], []>} : vector<64x128xf32>, vector<64x128xf32>, vector<64x64xf32> -> vector<64x64xf32>
    %69 = vector.broadcast %17 : f32 to vector<64x64xf32>
    %70 = arith.mulf %68, %69 : vector<64x64xf32>
    %c0_30 = arith.constant 0 : index
    %c0_31 = arith.constant 0 : index
    %71 = vector.load %arg7[%c0_30, %c0_31] : memref<64x64xf32, #tpu.memory_space<vmem>>, vector<64x64xf32>
    tpu.vector_store %arg7[%c0_30, %c0_31], %70 {strides = array<i32>} : memref<64x64xf32, #tpu.memory_space<vmem>>, vector<64x64xf32>,
    %cst_32 = arith.constant dense<0xFF800000> : vector<64xf32>
    %72 = vector.multi_reduction <maximumf>, %70, %cst_32 [1] : vector<64x64xf32> to vector<64xf32>
    %73 = vector.shape_cast %72 : vector<64xf32> to vector<64x1xf32>
    %74 = vector.broadcast %73 : vector<64x1xf32> to vector<64x64xf32>
    %75 = arith.subf %70, %74 : vector<64x64xf32>
    %76 = math.exp %75 : vector<64x64xf32>
    %cst_33 = arith.constant dense<0.000000e+00> : vector<64xf32>
    %77 = vector.multi_reduction <add>, %76, %cst_33 [1] : vector<64x64xf32> to vector<64xf32>
    %78 = vector.shape_cast %77 : vector<64xf32> to vector<64x1xf32>
    %79 = tpu.reciprocal %78 {approx = true} : vector<64x1xf32> -> vector<64x1xf32>
    %80 = vector.broadcast %79 : vector<64x1xf32> to vector<64x64xf32>
    %81 = arith.mulf %76, %80 : vector<64x64xf32>
    %cst_34 = arith.constant 0.000000e+00 : f32
    %82 = vector.broadcast %cst_34 : f32 to vector<64x64xf32>
    %83 = arith.cmpf oge, %70, %82 : vector<64x64xf32>
    %84 = arith.extui %83 : vector<64x64xi1> to vector<64x64xi32>
    %85 = arith.sitofp %84 : vector<64x64xi32> to vector<64x64xf32>
    %c0_i32_35 = arith.constant 0 : i32
    %c2_i32_36 = arith.constant 2 : i32
    %86 = arith.addi %c0_i32_35, %c2_i32_36 : i32
    %c1_i32_37 = arith.constant 1 : i32
    scf.for %arg9 = %c0_i32_35 to %86 step %c1_i32_37  : i32 {
      %c1_i32_46 = arith.constant 1 : i32
      %106 = arith.muli %arg9, %c1_i32_46 : i32
      %c0_i32_47 = arith.constant 0 : i32
      %107 = arith.addi %c0_i32_47, %106 : i32
      %c32_i32 = arith.constant 32 : i32
      %108 = arith.muli %107, %c32_i32 : i32
      %109 = tpu.assume_multiple %108, 32 : i32
      %110 = arith.index_cast %109 : i32 to index
      %c0_48 = arith.constant 0 : index
      %111 = vector.load %arg7[%110, %c0_48] : memref<64x64xf32, #tpu.memory_space<vmem>>, vector<32x64xf32>
      %112 = vector.shape_cast %111 : vector<32x64xf32> to vector<32x1x64xf32>
      %113 = vector.shape_cast %111 : vector<32x64xf32> to vector<32x64x1xf32>
      %114 = vector.broadcast %112 : vector<32x1x64xf32> to vector<32x64x64xf32>
      %115 = vector.broadcast %113 : vector<32x64x1xf32> to vector<32x64x64xf32>
      %116 = arith.cmpf ogt, %114, %115 : vector<32x64x64xf32>
      %117 = arith.extui %116 : vector<32x64x64xi1> to vector<32x64x64xi32>
      %118 = arith.sitofp %117 : vector<32x64x64xi32> to vector<32x64x64xf32>
      %cst_49 = arith.constant dense<0.000000e+00> : vector<32x64xf32>
      %119 = vector.multi_reduction <add>, %118, %cst_49 [2] : vector<32x64x64xf32> to vector<32x64xf32>
      %120 = arith.index_cast %109 : i32 to index
      %c0_50 = arith.constant 0 : index
      %121 = vector.load %arg8[%120, %c0_50] : memref<64x64xf32, #tpu.memory_space<vmem>>, vector<32x64xf32>
      tpu.vector_store %arg8[%120, %c0_50], %119 {strides = array<i32>} : memref<64x64xf32, #tpu.memory_space<vmem>>, vector<32x64xf32>,
    }
    %c2_i32_38 = arith.constant 2 : i32
    %c0_39 = arith.constant 0 : index
    %c0_40 = arith.constant 0 : index
    %87 = vector.load %arg8[%c0_39, %c0_40] : memref<64x64xf32, #tpu.memory_space<vmem>>, vector<64x64xf32>
    %cst_41 = arith.constant 1.000000e+00 : f32
    %88 = vector.broadcast %cst_41 : f32 to vector<64x64xf32>
    %89 = arith.addf %87, %88 : vector<64x64xf32>
    %90 = arith.mulf %89, %89 : vector<64x64xf32>
    %91 = arith.mulf %89, %90 : vector<64x64xf32>
    %92 = arith.mulf %85, %91 : vector<64x64xf32>
    %cst_42 = arith.constant 1.000000e+00 : f32
    %93 = vector.broadcast %cst_42 : f32 to vector<64x64xf32>
    %94 = arith.subf %93, %85 : vector<64x64xf32>
    %95 = arith.addf %92, %94 : vector<64x64xf32>
    %96 = arith.mulf %81, %95 : vector<64x64xf32>
    %97 = arith.truncf %96 : vector<64x64xf32> to vector<64x64xbf16>
    %98 = arith.truncf %67 : vector<64x128xf32> to vector<64x128xbf16>
    %cst_43 = arith.constant dense<0.000000e+00> : vector<64x128xf32>
    %99 = tpu.matmul %97, %98, %cst_43 {dimension_numbers = #tpu.dot_dimension_numbers<[1], [0], [0], [1], [0, 0, 1, 1], [], []>} : vector<64x64xbf16>, vector<64x128xbf16>, vector<64x128xf32> -> vector<64x128xf32>
    %100 = vector.extract_strided_slice %14 {offsets = [1, 0, 0], sizes = [1, 64, 128], strides = [1, 1, 1]} : vector<2x64x128xf32> to vector<1x64x128xf32>
    %101 = vector.shape_cast %100 : vector<1x64x128xf32> to vector<64x128xf32>
    %102 = arith.addf %99, %101 : vector<64x128xf32>
    %c1 = arith.constant 1 : index
    %c0_44 = arith.constant 0 : index
    %c0_45 = arith.constant 0 : index
    %103 = vector.load %arg6[%c1, %c0_44, %c0_45] : memref<2x64x128xf32, #tpu.memory_space<vmem>>, vector<1x64x128xf32>
    %104 = vector.shape_cast %103 : vector<1x64x128xf32> to vector<64x128xf32>
    %105 = vector.shape_cast %102 : vector<64x128xf32> to vector<1x64x128xf32>
    tpu.vector_store %arg6[%c1, %c0_44, %c0_45], %105 {strides = array<i32>} : memref<2x64x128xf32, #tpu.memory_space<vmem>>, vector<1x64x128xf32>,
    return
  }
  func.func @transform_0(%arg0: i32) -> (i32, i32, i32) {
    %c0_i32 = arith.constant 0 : i32
    %c0_i32_0 = arith.constant 0 : i32
    %c0_i32_1 = arith.constant 0 : i32
    return %arg0, %c0_i32, %c0_i32_0 : i32, i32, i32
  }
  func.func @transform_1(%arg0: i32) -> (i32, i32) {
    %c0_i32 = arith.constant 0 : i32
    %c0_i32_0 = arith.constant 0 : i32
    %c0_i32_1 = arith.constant 0 : i32
    return %c0_i32, %c0_i32_0 : i32, i32
  }
  func.func @transform_2(%arg0: i32) -> (i32, i32) {
    %c0_i32 = arith.constant 0 : i32
    %c0_i32_0 = arith.constant 0 : i32
    %c0_i32_1 = arith.constant 0 : i32
    return %c0_i32, %c0_i32_0 : i32, i32
  }
  func.func @transform_3(%arg0: i32) -> (i32, i32) {
    %c0_i32 = arith.constant 0 : i32
    %c0_i32_0 = arith.constant 0 : i32
    %c0_i32_1 = arith.constant 0 : i32
    return %c0_i32, %c0_i32_0 : i32, i32
  }
  func.func @transform_4(%arg0: i32) -> (i32, i32) {
    %c0_i32 = arith.constant 0 : i32
    %c0_i32_0 = arith.constant 0 : i32
    %c0_i32_1 = arith.constant 0 : i32
    return %c0_i32, %c0_i32_0 : i32, i32
  }
  func.func @transform_5(%arg0: i32) -> (i32, i32, i32) {
    %c0_i32 = arith.constant 0 : i32
    %c0_i32_0 = arith.constant 0 : i32
    %c0_i32_1 = arith.constant 0 : i32
    return %arg0, %c0_i32, %c0_i32_0 : i32, i32, i32
  }
}

</mosaic_0001>

<bundles_post_ra>
// kernel: tpu_custom_call.1
= control target key start
LH: loop header
LB: loop body
LE: loop exit
PB: predicated region body
PF: predicated region fallthrough
CT: control target
= control target key end

     0   :  { %10 = vsyncpa [#allocation5], 0  ;;  %s17547_s0 = inlined_call_operand.hbm [shape: f32[2,64,128], index: 0, kind: input, shape index: {}]   ;;  %s17548_s1 = inlined_call_operand.hbm [shape: f32[128,128], index: 1, kind: input, shape index: {}]   ;;  %s17549_s2 = inlined_call_operand.vmem [shape: f32[1,128], index: 2, kind: input, shape index: {}]   ;;  %s17550_s3 = inlined_call_operand.hbm [shape: f32[128,384], index: 3, kind: input, shape index: {}]   ;;  %s17551_s4 = inlined_call_operand.vmem [shape: f32[1,384], index: 4, kind: input, shape index: {}]   ;;  %s17552_s5 = inlined_call_operand.hbm [shape: f32[2,64,128], index: 5, kind: output, shape index: {}]  }
   0x1   :  { %11 = vsyncpa [#allocation8], 0 }
   0x2   :  { %12 = vsyncpa [#allocation6], 0  ;;  %s11697_s18 = smov [#allocation7]   ;;  %s11698_s20 = smov [#allocation4]  }
   0x3   :  { %s30_s19 = sshll.u32 %s11697_s18, 4  ;;  %s18_s21 = sshll.u32 %s11698_s20, 4  ;;  %s31_s19 = int_to_ptr.vmem [resolvable:$true] %s30_s19  ;;  %s19_s21 = int_to_ptr.vmem [resolvable:$true] %s18_s21 }
   0x4   :  { %s11603_s22 = scalar_lea.vmem %s31_s19, 2048  ;;  %p11608_p1 = scmp.lt.s32.totalorder %s31_s19, %s31_s19 }
   0x5   :  { %p11604_p0 = scmp.ne.s32.totalorder %s31_s19, %s11603_s22  ;;  %p11609_p2 = scmp.lt.s32.totalorder %s11603_s22, %s11603_s22 }
   0x7   :  { %p11610_p3 = por %p11609_p2, %p11608_p1 }
   0x9   :  { %p11611_p4 = pnand %p11610_p3, %p11604_p0 }
   0xb   :  { %11614 = shalt.err (!%p11611_p4)
}
   0xc   :  { %s11699_s23 = smov 128   ;;  %s11700_s24 = smov 8  }
   0xd   :  { %36 = dma.hbm_to_vmem [thread:$0]  %s17548_s1, 2048, %s31_s19, [#allocation8], %s11699_s23, %s11699_s23, %s11700_s24  }
   0xe   :  { %s11623_s27 = scalar_lea.vmem %s19_s21, 2048  ;;  %p11628_p6 = scmp.lt.s32.totalorder %s19_s21, %s19_s21 }
   0xf   :  { %p11624_p5 = scmp.ne.s32.totalorder %s19_s21, %s11623_s27  ;;  %p11629_p7 = scmp.lt.s32.totalorder %s11623_s27, %s11623_s27 }
  0x11   :  { %p11630_p8 = por %p11629_p7, %p11628_p6 }
  0x13   :  { %p11631_p9 = pnand %p11630_p8, %p11624_p5 }
  0x15   :  { %11634 = shalt.err (!%p11631_p9)
}
  0x16   :  { %24 = dma.hbm_to_vmem [thread:$0]  %s17547_s0, 2048, %s19_s21, [#allocation5], %s11699_s23, %s11699_s23, %s11700_s24  }
  0x17   :  { %s11701_s30 = smov [#allocation9]  }
  0x18   :  { %s44_s6 = sshll.u32 %s11701_s30, 4  ;;  %s45_s6 = int_to_ptr.vmem [resolvable:$true] %s44_s6 }
  0x19   :  { %s11643_s7 = scalar_lea.vmem %s45_s6, 6144  ;;  %p11648_p11 = scmp.lt.s32.totalorder %s45_s6, %s45_s6 }
  0x1a   :  { %p11644_p10 = scmp.ne.s32.totalorder %s45_s6, %s11643_s7  ;;  %p11649_p12 = scmp.lt.s32.totalorder %s11643_s7, %s11643_s7 }
  0x1c   :  { %p11650_p13 = por %p11649_p12, %p11648_p11 }
  0x1e   :  { %p11651_p0 = pnand %p11650_p13, %p11644_p10 }
  0x20   :  { %11654 = shalt.err (!%p11651_p0)
}
  0x21   :  { %s11702_s1 = smov 384   ;;  %s11703_s8 = smov 24  }
  0x22   :  { %50 = dma.hbm_to_vmem [thread:$0]  %s17550_s3, 6144, %s45_s6, [#allocation8], %s11702_s1, %s11702_s1, %s11703_s8  }
  0x23   :  { %11683 = dma.done.wait [#allocation5], 2048  }
  0x24   :  { %11684 = vsyncadd [#allocation5], 4294965248 }
  0x25   :  { %11685 = dma.done.wait [#allocation8], 8192  }
  0x26   :  { %11686 = vsyncadd [#allocation8], 4294959104  ;;  %v94_v0 = vld [vmem:[#allocation7 + $0x78] sm:$0xff]  ;;  %v93_v1 = vld [vmem:[#allocation7 + $0x70] sm:$0xff]  ;;  %vm747_vm0 = vcmask 523264  }
  0x27   :  { %11287 = vmatprep.subr.mxu0 %v94_v0  ;;  %v92_v2 = vld [vmem:[#allocation7 + $0x68] sm:$0xff]  ;;  %v91_v3 = vld [vmem:[#allocation7 + $0x60] sm:$0xff]  ;;  %v90_v5 = vld [vmem:[#allocation7 + $0x58] sm:$0xff] }
  0x28   :  { %11288 = vmatpush3.msra.mxu0 %v94_v0  ;;  %v63_v4 = vld [vmem:[#allocation4] sm:$0xff]  ;;  %v89_v6 = vld [vmem:[#allocation7 + $0x50] sm:$0xff]  ;;  %v308_v8 = vld [vmem:[#allocation9 + $0x168] sm:$0xff] }
  0x29   :  { %11289 = vmatprep.subr.mxu0 %v93_v1  ;;  %11319 = vmatprep.mubr.f32.mxu0 %v63_v4  ;;  %v309_v7 = vld [vmem:[#allocation9 + $0x170] sm:$0xff]  ;;  %v306_v9 = vld [vmem:[#allocation9 + $0x158] sm:$0xff]  ;;  %v88_v11 = vld [vmem:[#allocation7 + $0x48] sm:$0xff] }
  0x2a   :  { %11290 = vmatpush3.msra.mxu0 %v93_v1  ;;  %328 = vmatprep.subr.mxu1 %v309_v7  ;;  %v305_v10 = vld [vmem:[#allocation9 + $0x150] sm:$0xff]  ;;  %v303_v12 = vld [vmem:[#allocation9 + $0x140] sm:$0xff]  ;;  %v302_v13 = vld [vmem:[#allocation9 + $0x138] sm:$0xff] }
  0x2b   :  { %11291 = vmatprep.subr.mxu0 %v92_v2  ;;  %329 = vmatpush1.msra.mxu1 %v308_v8  ;;  %v87_v14 = vld [vmem:[#allocation7 + $0x40] sm:$0xff]  ;;  %v300_v15 = vld [vmem:[#allocation9 + $0x128] sm:$0xff]  ;;  %v86_v17 = vld [vmem:[#allocation7 + $0x38] sm:$0xff] }
  0x2c   :  { %11292 = vmatpush3.msra.mxu0 %v92_v2  ;;  %330 = vmatprep.subr.mxu1 %v306_v9  ;;  %v299_v16 = vld [vmem:[#allocation9 + $0x120] sm:$0xff]  ;;  %v297_v18 = vld [vmem:[#allocation9 + $0x110] sm:$0xff]  ;;  %v296_v19 = vld [vmem:[#allocation9 + $0x108] sm:$0xff] }
  0x2d   :  { %11293 = vmatprep.subr.mxu0 %v91_v3  ;;  %331 = vmatpush1.msra.mxu1 %v305_v10  ;;  %v85_v20 = vld [vmem:[#allocation7 + $0x30] sm:$0xff]  ;;  %v294_v21 = vld [vmem:[#allocation9 + $0xf8] sm:$0xff]  ;;  %v84_v23 = vld [vmem:[#allocation7 + $0x28] sm:$0xff] }
  0x2e   :  { %11294 = vmatpush3.msra.mxu0 %v91_v3  ;;  %332 = vmatprep.subr.mxu1 %v303_v12  ;;  %v293_v22 = vld [vmem:[#allocation9 + $0xf0] sm:$0xff]  ;;  %v291_v24 = vld [vmem:[#allocation9 + $0xe0] sm:$0xff]  ;;  %v290_v25 = vld [vmem:[#allocation9 + $0xd8] sm:$0xff] }
  0x2f   :  { %11295 = vmatprep.subr.mxu0 %v90_v5  ;;  %333 = vmatpush1.msra.mxu1 %v302_v13  ;;  %v83_v26 = vld [vmem:[#allocation7 + $0x20] sm:$0xff]  ;;  %v288_v27 = vld [vmem:[#allocation9 + $0xc8] sm:$0xff]  ;;  %v82_v29 = vld [vmem:[#allocation7 + $0x18] sm:$0xff] }
  0x30   :  { %11296 = vmatpush3.msra.mxu0 %v90_v5  ;;  %334 = vmatprep.subr.mxu1 %v300_v15  ;;  %v287_v28 = vld [vmem:[#allocation9 + $0xc0] sm:$0xff]  ;;  %v285_v30 = vld [vmem:[#allocation9 + $0xb0] sm:$0xff]  ;;  %v284_v31 = vld [vmem:[#allocation9 + $0xa8] sm:$0xff] }
  0x31   :  { %11297 = vmatprep.subr.mxu0 %v89_v6  ;;  %335 = vmatpush1.msra.mxu1 %v299_v16  ;;  %v81_v32 = vld [vmem:[#allocation7 + $0x10] sm:$0xff]  ;;  %v282_v33 = vld [vmem:[#allocation9 + $0x98] sm:$0xff]  ;;  %v80_v35 = vld [vmem:[#allocation7 + $0x8] sm:$0xff]  ;;  %v17554_v16 = vmov 0.0  }
  0x32   :  { %11298 = vmatpush3.msra.mxu0 %v89_v6  ;;  %336 = vmatprep.subr.mxu1 %v297_v18  ;;  %v281_v34 = vld [vmem:[#allocation9 + $0x90] sm:$0xff]  ;;  %v279_v36 = vld [vmem:[#allocation9 + $0x80] sm:$0xff]  ;;  %v278_v37 = vld [vmem:[#allocation9 + $0x78] sm:$0xff] }
  0x33   :  { %11299 = vmatprep.subr.mxu0 %v88_v11  ;;  %337 = vmatpush1.msra.mxu1 %v296_v19  ;;  %v79_v38 = vld [vmem:[#allocation7] sm:$0xff]  ;;  %v276_v39 = vld [vmem:[#allocation9 + $0x68] sm:$0xff]  ;;  %v310_v42 = vld [vmem:[#allocation9 + $0x178] sm:$0xff] }
  0x34   :  { %11300 = vmatpush3.msra.mxu0 %v88_v11  ;;  %338 = vmatprep.subr.mxu1 %v294_v21  ;;  %v275_v40 = vld [vmem:[#allocation9 + $0x60] sm:$0xff]  ;;  %v64_v41 = vld [vmem:[#allocation4 + $0x8] sm:$0xff]  ;;  %v65_v43 = vld [vmem:[#allocation4 + $0x10] sm:$0xff] }
  0x35   :  { %11301 = vmatprep.subr.mxu0 %v87_v14  ;;  %339 = vmatpush1.msra.mxu1 %v293_v22  ;;  %v307_v44 = vld [vmem:[#allocation9 + $0x160] sm:$0xff]  ;;  %v273_v45 = vld [vmem:[#allocation9 + $0x50] sm:$0xff]  ;;  %v66_v46 = vld [vmem:[#allocation4 + $0x18] sm:$0xff] }
  0x36   :  { %11302 = vmatpush3.msra.mxu0 %v87_v14  ;;  %340 = vmatprep.subr.mxu1 %v291_v24  ;;  %v304_v47 = vld [vmem:[#allocation9 + $0x148] sm:$0xff]  ;;  %v67_v48 = vld [vmem:[#allocation4 + $0x20] sm:$0xff]  ;;  %v301_v49 = vld [vmem:[#allocation9 + $0x130] sm:$0xff] }
  0x37   :  { %11303 = vmatprep.subr.mxu0 %v86_v17  ;;  %341 = vmatpush1.msra.mxu1 %v290_v25  ;;  %v68_v50 = vld [vmem:[#allocation4 + $0x28] sm:$0xff]  ;;  %v298_v51 = vld [vmem:[#allocation9 + $0x118] sm:$0xff]  ;;  %v69_v52 = vld [vmem:[#allocation4 + $0x30] sm:$0xff] }
  0x38   :  { %11304 = vmatpush3.msra.mxu0 %v86_v17  ;;  %342 = vmatprep.subr.mxu1 %v288_v27  ;;  %v295_v53 = vld [vmem:[#allocation9 + $0x100] sm:$0xff]  ;;  %v70_v54 = vld [vmem:[#allocation4 + $0x38] sm:$0xff]  ;;  %v292_v55 = vld [vmem:[#allocation9 + $0xe8] sm:$0xff] }
  0x39   :  { %11305 = vmatprep.subr.mxu0 %v85_v20  ;;  %343 = vmatpush1.msra.mxu1 %v287_v28  ;;  %v71_v56 = vld [vmem:[#allocation4 + $0x40] sm:$0xff]  ;;  %v289_v57 = vld [vmem:[#allocation9 + $0xd0] sm:$0xff]  ;;  %v72_v58 = vld [vmem:[#allocation4 + $0x48] sm:$0xff] }
  0x3a   :  { %11306 = vmatpush3.msra.mxu0 %v85_v20  ;;  %344 = vmatprep.subr.mxu1 %v285_v30  ;;  %v286_v59 = vld [vmem:[#allocation9 + $0xb8] sm:$0xff]  ;;  %v73_v60 = vld [vmem:[#allocation4 + $0x50] sm:$0xff]  ;;  %v283_v61 = vld [vmem:[#allocation9 + $0xa0] sm:$0xff] }
  0x3b   :  { %11307 = vmatprep.subr.mxu0 %v84_v23  ;;  %345 = vmatpush1.msra.mxu1 %v284_v31  ;;  %v74_v62 = vld [vmem:[#allocation4 + $0x58] sm:$0xff]  ;;  %v280_v63 = vld [vmem:[#allocation9 + $0x88] sm:$0xff]  ;;  %v75_v0 = vld [vmem:[#allocation4 + $0x60] sm:$0xff] }
  0x3c   :  { %11308 = vmatpush3.msra.mxu0 %v84_v23  ;;  %346 = vmatprep.subr.mxu1 %v282_v33  ;;  %v277_v1 = vld [vmem:[#allocation9 + $0x70] sm:$0xff]  ;;  %v76_v2 = vld [vmem:[#allocation4 + $0x68] sm:$0xff]  ;;  %v274_v5 = vld [vmem:[#allocation9 + $0x58] sm:$0xff] }
  0x3d   :  { %11309 = vmatprep.subr.mxu0 %v83_v26  ;;  %347 = vmatpush1.msra.mxu1 %v281_v34  ;;  %v77_v3 = vld [vmem:[#allocation4 + $0x70] sm:$0xff]  ;;  %v272_v4 = vld [vmem:[#allocation9 + $0x48] sm:$0xff]  ;;  %v78_v6 = vld [vmem:[#allocation4 + $0x78] sm:$0xff] }
  0x3e   :  { %11310 = vmatpush3.msra.mxu0 %v83_v26  ;;  %348 = vmatprep.subr.mxu1 %v279_v36  ;;  %v270_v7 = vld [vmem:[#allocation9 + $0x38] sm:$0xff]  ;;  %v269_v8 = vld [vmem:[#allocation9 + $0x30] sm:$0xff]  ;;  %v271_v9 = vld [vmem:[#allocation9 + $0x40] sm:$0xff] }
  0x3f   :  { %11311 = vmatprep.subr.mxu0 %v82_v29  ;;  %349 = vmatpush1.msra.mxu1 %v278_v37  ;;  %v267_v10 = vld [vmem:[#allocation9 + $0x20] sm:$0xff]  ;;  %v266_v11 = vld [vmem:[#allocation9 + $0x18] sm:$0xff]  ;;  %v268_v12 = vld [vmem:[#allocation9 + $0x28] sm:$0xff] }
  0x40   :  { %11312 = vmatpush3.msra.mxu0 %v82_v29  ;;  %350 = vmatprep.subr.mxu1 %v276_v39  ;;  %v264_v13 = vld [vmem:[#allocation9 + $0x8] sm:$0xff]  ;;  %v263_v14 = vld [vmem:[#allocation9] sm:$0xff]  ;;  %v265_v15 = vld [vmem:[#allocation9 + $0x10] sm:$0xff] }
  0x41   :  { %11313 = vmatprep.subr.mxu0 %v81_v32  ;;  %351 = vmatpush1.msra.mxu1 %v275_v40  ;;  %v11758_v17 = vld [vmem:[%s17549_s2] ss:$0 sm:$0xff] }
  0x42   :  { %11314 = vmatpush3.msra.mxu0 %v81_v32  ;;  %352 = vmatprep.subr.mxu1 %v273_v45 }
  0x43   :  { %11315 = vmatprep.subr.mxu0 %v80_v35  ;;  %353 = vmatpush1.msra.mxu1 %v272_v4 }
  0x44   :  { %11316 = vmatpush3.msra.mxu0 %v80_v35  ;;  %354 = vmatprep.subr.mxu1 %v270_v7 }
  0x45   :  { %11317 = vmatprep.subr.mxu0 %v79_v38  ;;  %355 = vmatpush1.msra.mxu1 %v269_v8 }
  0x46   :  { %11318 = vmatpush3.msra.mxu0 %v79_v38  ;;  %356 = vmatprep.subr.mxu1 %v267_v10 }
  0x47   :  { %11320 = vmatmul.mubr.f32.vlgmr.msra.gmra.mxu0 %v64_v41  ;;  %11343 = vmatprep.subr.mxu0 %v310_v42 }
  0x48   :  { %11322 = vmatprep.mubr.f32.mxu0 %v65_v43  ;;  %11344 = vmatpush3.msra.mxu0 %v310_v42 }
  0x49   :  { %11345 = vmatprep.subr.mxu0 %v307_v44  ;;  %357 = vmatpush1.msra.mxu1 %v266_v11 }
  0x4a   :  { %11346 = vmatpush3.msra.mxu0 %v307_v44  ;;  %358 = vmatprep.subr.mxu1 %v264_v13 }
  0x4b   :  { %11323 = vmatmul.mubr.f32.gmra.mxu0 %v66_v46  ;;  %11347 = vmatprep.subr.mxu0 %v304_v47 }
  0x4c   :  { %11325 = vmatprep.mubr.f32.mxu0 %v67_v48  ;;  %11348 = vmatpush3.msra.mxu0 %v304_v47 }
  0x4d   :  { %11349 = vmatprep.subr.mxu0 %v301_v49  ;;  %359 = vmatpush1.msra.mxu1 %v263_v14 }
  0x4e   :  { %11350 = vmatpush3.msra.mxu0 %v301_v49  ;;  %392 = vmatprep.mubr.f32.mxu1 %v17554_v16 }
  0x4f   :  { %11326 = vmatmul.mubr.f32.gmra.mxu0 %v68_v50  ;;  %11351 = vmatprep.subr.mxu0 %v298_v51 }
  0x50   :  { %11328 = vmatprep.mubr.f32.mxu0 %v69_v52  ;;  %11352 = vmatpush3.msra.mxu0 %v298_v51 }
  0x51   :  { %11353 = vmatprep.subr.mxu0 %v295_v53 }
  0x52   :  { %11354 = vmatpush3.msra.mxu0 %v295_v53 }
  0x53   :  { %11329 = vmatmul.mubr.f32.gmra.mxu0 %v70_v54  ;;  %11355 = vmatprep.subr.mxu0 %v292_v55 }
  0x54   :  { %11331 = vmatprep.mubr.f32.mxu0 %v71_v56  ;;  %11356 = vmatpush3.msra.mxu0 %v292_v55 }
  0x55   :  { %11357 = vmatprep.subr.mxu0 %v289_v57 }
  0x56   :  { %11358 = vmatpush3.msra.mxu0 %v289_v57 }
  0x57   :  { %11332 = vmatmul.mubr.f32.gmra.mxu0 %v72_v58  ;;  %11359 = vmatprep.subr.mxu0 %v286_v59 }
  0x58   :  { %11334 = vmatprep.mubr.f32.mxu0 %v73_v60  ;;  %11360 = vmatpush3.msra.mxu0 %v286_v59 }
  0x59   :  { %11361 = vmatprep.subr.mxu0 %v283_v61 }
  0x5a   :  { %11362 = vmatpush3.msra.mxu0 %v283_v61 }
  0x5b   :  { %11335 = vmatmul.mubr.f32.gmra.mxu0 %v74_v62  ;;  %11363 = vmatprep.subr.mxu0 %v280_v63 }
  0x5c   :  { %11337 = vmatprep.mubr.f32.mxu0 %v75_v0  ;;  %11364 = vmatpush3.msra.mxu0 %v280_v63 }
  0x5d   :  { %11365 = vmatprep.subr.mxu0 %v277_v1 }
  0x5e   :  { %11366 = vmatpush3.msra.mxu0 %v277_v1 }
  0x5f   :  { %11338 = vmatmul.mubr.f32.gmra.mxu0 %v76_v2  ;;  %11367 = vmatprep.subr.mxu0 %v274_v5  ;;  %v17553_v2 = vlaneseq }
  0x60   :  { %11340 = vmatprep.mubr.f32.mxu0 %v77_v3  ;;  %11368 = vmatpush3.msra.mxu0 %v274_v5  ;;  %v311_v5 = vld [vmem:[%s17551_s4] sm:$0x7]  ;;  %s12085_s4 = smov 0  }
  0x61   :  { %11369 = vmatprep.subr.mxu0 %v271_v9  ;;  %v11856_v3 = vshrl.u32 %v17553_v2, 7 }
  0x62   :  { %11370 = vmatpush3.msra.mxu0 %v271_v9 }
  0x63   :  { %11341 = vmatmul.mubr.f32.gmra.mxu0 %v78_v6  ;;  %11371 = vmatprep.subr.mxu0 %v268_v12  ;;  %17719 = vst [vmem:[#allocation30_spill] sm:$0xff] %v11856_v3  ;;  %v11859_v4 = vsub.s32 0, %v11856_v3  ;;  %v11865_v6 = vsub.s32 2, %v11856_v3 }
  0x64   :  { %11372 = vmatpush3.msra.mxu0 %v268_v12 }
  0x65   :  { %11373 = vmatprep.subr.mxu0 %v265_v15  ;;  %17720 = vst [vmem:[#allocation31_spill] sm:$0xff] %v11865_v6  ;;  %v11868_v7 = vrot.slane %v311_v5, %v11859_v4  ;;  %v11871_v8 = vrot.slane %v311_v5, %v11865_v6 }
  0x66   :  { %11374 = vmatpush3.msra.mxu0 %v265_v15 }
 0x107   :  { %v11321_v18 = vpop.f32.mrf.mxu0 }
 0x108   :  { %v174_v19 = vadd.f32 %v11321_v18, %v11758_v17 }
 0x109   :  { %v168_v20 = vpop.f32.mrf.mxu0 }
 0x10a   :  { %v169_v21 = vadd.f32 %v11758_v17, %v168_v20  ;;  %v11765_v25 = vmax.f32 %v174_v19, 0.0 }
 0x10b   :  { %v11324_v22 = vpop.f32.mrf.mxu0 }
 0x10c   :  { %v11762_v23 = vmax.f32 %v169_v21, 0.0  ;;  %v184_v24 = vadd.f32 %v11324_v22, %v11758_v17  ;;  %17704 = vst [vmem:[#allocation15_spill] sm:$0xff] %v11765_v25 }
 0x10d   :  { %v178_v26 = vpop.f32.mrf.mxu0 }
 0x10e   :  { %17703 = vst [vmem:[#allocation14_spill] sm:$0xff] %v11762_v23  ;;  %v179_v27 = vadd.f32 %v11758_v17, %v178_v26  ;;  %393 = vmatmul.mubr.f32.vlgmr.msra.gmra.mxu1 %v11762_v23  ;;  %11375 = vmatprep.mubr.f32.mxu0 %v11762_v23  ;;  %v11770_v28 = vmax.f32 %v184_v24, 0.0 }
 0x10f   :  { %11376 = vmatmul.mubr.f32.vlgmr.msra.gmra.mxu0 %v11765_v25  ;;  %398 = vmatprep.mubr.f32.mxu1 %v17554_v16  ;;  %v11327_v29 = vpop.f32.mrf.mxu0 }
 0x110   :  { %17705 = vst [vmem:[#allocation16_spill] sm:$0xff] %v11770_v28  ;;  %v11774_v30 = vmax.f32 %v179_v27, 0.0  ;;  %v194_v31 = vadd.f32 %v11327_v29, %v11758_v17 }
 0x111   :  { %v188_v32 = vpop.f32.mrf.mxu0 }
 0x112   :  { %17706 = vst [vmem:[#allocation17_spill] sm:$0xff] %v11774_v30  ;;  %399 = vmatmul.mubr.f32.gmra.mxu1 %v11765_v25  ;;  %11378 = vmatprep.mubr.f32.mxu0 %v11774_v30  ;;  %v189_v33 = vadd.f32 %v11758_v17, %v188_v32  ;;  %v11780_v34 = vmax.f32 %v194_v31, 0.0 }
 0x113   :  { %11379 = vmatmul.mubr.f32.gmra.mxu0 %v11770_v28  ;;  %404 = vmatprep.mubr.f32.mxu1 %v17554_v16  ;;  %v11330_v35 = vpop.f32.mrf.mxu0 }
 0x114   :  { %17707 = vst [vmem:[#allocation18_spill] sm:$0xff] %v11780_v34  ;;  %v11784_v36 = vmax.f32 %v189_v33, 0.0  ;;  %v204_v37 = vadd.f32 %v11330_v35, %v11758_v17 }
 0x115   :  { %v198_v38 = vpop.f32.mrf.mxu0 }
 0x116   :  { %17708 = vst [vmem:[#allocation19_spill] sm:$0xff] %v11784_v36  ;;  %405 = vmatmul.mubr.f32.gmra.mxu1 %v11774_v30  ;;  %11381 = vmatprep.mubr.f32.mxu0 %v11784_v36  ;;  %v199_v39 = vadd.f32 %v11758_v17, %v198_v38  ;;  %v11791_v40 = vmax.f32 %v204_v37, 0.0 }
 0x117   :  { %410 = vmatprep.mubr.f32.mxu1 %v17554_v16  ;;  %11382 = vmatmul.mubr.f32.gmra.mxu0 %v11780_v34  ;;  %v11333_v41 = vpop.f32.mrf.mxu0 }
 0x118   :  { %17709 = vst [vmem:[#allocation20_spill] sm:$0xff] %v11791_v40  ;;  %v11794_v42 = vmax.f32 %v199_v39, 0.0  ;;  %v214_v43 = vadd.f32 %v11333_v41, %v11758_v17 }
 0x119   :  { %v208_v44 = vpop.f32.mrf.mxu0 }
 0x11a   :  { %17710 = vst [vmem:[#allocation21_spill] sm:$0xff] %v11794_v42  ;;  %411 = vmatmul.mubr.f32.gmra.mxu1 %v11770_v28  ;;  %11384 = vmatprep.mubr.f32.mxu0 %v11794_v42  ;;  %v209_v45 = vadd.f32 %v11758_v17, %v208_v44  ;;  %v11802_v46 = vmax.f32 %v214_v43, 0.0 }
 0x11b   :  { %416 = vmatprep.mubr.f32.mxu1 %v17554_v16  ;;  %11385 = vmatmul.mubr.f32.gmra.mxu0 %v11791_v40  ;;  %v11336_v47 = vpop.f32.mrf.mxu0 }
 0x11c   :  { %17711 = vst [vmem:[#allocation22_spill] sm:$0xff] %v11802_v46  ;;  %v11804_v48 = vmax.f32 %v209_v45, 0.0  ;;  %v224_v49 = vadd.f32 %v11336_v47, %v11758_v17 }
 0x11d   :  { %v218_v50 = vpop.f32.mrf.mxu0 }
 0x11e   :  { %17712 = vst [vmem:[#allocation23_spill] sm:$0xff] %v11804_v48  ;;  %417 = vmatmul.mubr.f32.gmra.mxu1 %v11784_v36  ;;  %v219_v51 = vadd.f32 %v11758_v17, %v218_v50  ;;  %11387 = vmatprep.mubr.f32.mxu0 %v11804_v48  ;;  %v11811_v52 = vmax.f32 %v224_v49, 0.0 }
 0x11f   :  { %422 = vmatprep.mubr.f32.mxu1 %v17554_v16  ;;  %v11339_v53 = vpop.f32.mrf.mxu0  ;;  %11388 = vmatmul.mubr.f32.gmra.mxu0 %v11802_v46 }
 0x120   :  { %17713 = vst [vmem:[#allocation24_spill] sm:$0xff] %v11811_v52  ;;  %v11814_v54 = vmax.f32 %v219_v51, 0.0  ;;  %v234_v55 = vadd.f32 %v11339_v53, %v11758_v17 }
 0x121   :  { %v228_v56 = vpop.f32.mrf.mxu0 }
 0x122   :  { %17714 = vst [vmem:[#allocation25_spill] sm:$0xff] %v11814_v54  ;;  %423 = vmatmul.mubr.f32.gmra.mxu1 %v11780_v34  ;;  %v229_v57 = vadd.f32 %v11758_v17, %v228_v56  ;;  %11390 = vmatprep.mubr.f32.mxu0 %v11814_v54  ;;  %v11821_v58 = vmax.f32 %v234_v55, 0.0 }
 0x123   :  { %428 = vmatprep.mubr.f32.mxu1 %v17554_v16  ;;  %11391 = vmatmul.mubr.f32.gmra.mxu0 %v11811_v52  ;;  %v11342_v60 = vpop.f32.mrf.mxu0 }
 0x124   :  { %17715 = vst [vmem:[#allocation26_spill] sm:$0xff] %v11821_v58  ;;  %v11824_v59 = vmax.f32 %v229_v57, 0.0  ;;  %v244_v61 = vadd.f32 %v11342_v60, %v11758_v17 }
 0x125   :  { %v238_v62 = vpop.f32.mrf.mxu0 }
 0x126   :  { %17716 = vst [vmem:[#allocation27_spill] sm:$0xff] %v11824_v59  ;;  %429 = vmatmul.mubr.f32.gmra.mxu1 %v11794_v42  ;;  %11393 = vmatprep.mubr.f32.mxu0 %v11824_v59  ;;  %v239_v63 = vadd.f32 %v11758_v17, %v238_v62  ;;  %v11846_v0 = vmax.f32 %v244_v61, 0.0  ;;  %v11929_v62 = vsub.s32 1, %v11856_v3 }
 0x127   :  { %434 = vmatprep.mubr.f32.mxu1 %v17554_v16  ;;  %11394 = vmatmul.mubr.f32.gmra.mxu0 %v11821_v58 }
 0x128   :  { %17717 = vst [vmem:[#allocation28_spill] sm:$0xff] %v11846_v0  ;;  %v11848_v1 = vmax.f32 %v239_v63, 0.0  ;;  %17733 = vst [vmem:[#allocation44_spill] sm:$0xff] %v11929_v62 }
 0x12a   :  { %435 = vmatmul.mubr.f32.gmra.mxu1 %v11791_v40  ;;  %17718 = vst [vmem:[#allocation29_spill] sm:$0xff] %v11848_v1  ;;  %11396 = vmatprep.mubr.f32.mxu0 %v11848_v1 }
 0x12b   :  { %440 = vmatprep.mubr.f32.mxu1 %v17554_v16  ;;  %11397 = vmatmul.mubr.f32.gmra.mxu0 %v11846_v0 }
 0x12e   :  { %441 = vmatmul.mubr.f32.gmra.mxu1 %v11804_v48 }
 0x12f   :  { %446 = vmatprep.mubr.f32.mxu1 %v17554_v16 }
 0x132   :  { %447 = vmatmul.mubr.f32.gmra.mxu1 %v11802_v46 }
 0x133   :  { %452 = vmatprep.mubr.f32.mxu1 %v17554_v16 }
 0x136   :  { %453 = vmatmul.mubr.f32.gmra.mxu1 %v11814_v54 }
 0x137   :  { %458 = vmatprep.mubr.f32.mxu1 %v17554_v16 }
 0x13a   :  { %459 = vmatmul.mubr.f32.gmra.mxu1 %v11811_v52 }
 0x13b   :  { %464 = vmatprep.mubr.f32.mxu1 %v17554_v16 }
 0x13e   :  { %465 = vmatmul.mubr.f32.gmra.mxu1 %v11824_v59 }
 0x13f   :  { %470 = vmatprep.mubr.f32.mxu1 %v17554_v16 }
 0x142   :  { %471 = vmatmul.mubr.f32.gmra.mxu1 %v11821_v58 }
 0x143   :  { %476 = vmatprep.mubr.f32.mxu1 %v17554_v16 }
 0x146   :  { %477 = vmatmul.mubr.f32.gmra.mxu1 %v11848_v1 }
 0x147   :  { %482 = vmatprep.mubr.f32.mxu1 %v17554_v16 }
 0x14a   :  { %483 = vmatmul.mubr.f32.gmra.mxu1 %v11846_v0 }
 0x1ce   :  { %v394_v9 = vpop.f32.mrf.mxu1 }
 0x1cf   :  { %v395_v10 = vadd.f32 %v394_v9, %v11868_v7  ;;  %v11377_v11 = vpop.f32.mrf.mxu0 }
 0x1d0   :  { %v11875_v12 = vadd.f32 %v11377_v11, %v11871_v8  ;;  %v11877_v13 = vpop.f32.mrf.mxu1 }
 0x1d1   :  { %v555_v14 = vpop.f32.mrf.mxu0  ;;  %11415 = vmatprep.mubr.f32.mxu0 %v395_v10 }
 0x1d2   :  { %17721 = vst [vmem:[#allocation32_spill] sm:$0xff] %v11875_v12  ;;  %v11880_v15 = vadd.f32 %v555_v14, %v11871_v8  ;;  %v11882_v17 = vpop.f32.mrf.mxu1 }
 0x1d3   :  { %v11380_v18 = vpop.f32.mrf.mxu0 }
 0x1d4   :  { %17722 = vst [vmem:[#allocation33_spill] sm:$0xff] %v11880_v15  ;;  %v11885_v19 = vadd.f32 %v11380_v18, %v11871_v8  ;;  %v11887_v20 = vpop.f32.mrf.mxu1 }
 0x1d5   :  { %v565_v21 = vpop.f32.mrf.mxu0 }
 0x1d6   :  { %17723 = vst [vmem:[#allocation34_spill] sm:$0xff] %v11885_v19  ;;  %v11890_v22 = vadd.f32 %v565_v21, %v11871_v8  ;;  %v11892_v24 = vpop.f32.mrf.mxu1  ;;  %v11940_v21 = vrot.slane %v311_v5, %v11929_v62 }
 0x1d7   :  { %v11383_v26 = vpop.f32.mrf.mxu0 }
 0x1d8   :  { %17724 = vst [vmem:[#allocation35_spill] sm:$0xff] %v11890_v22  ;;  %v11894_v27 = vpop.f32.mrf.mxu1  ;;  %v11897_v29 = vadd.f32 %v11383_v26, %v11871_v8 }
 0x1d9   :  { %v575_v31 = vpop.f32.mrf.mxu0 }
 0x1da   :  { %17725 = vst [vmem:[#allocation36_spill] sm:$0xff] %v11897_v29  ;;  %v11899_v32 = vpop.f32.mrf.mxu1  ;;  %v11902_v33 = vadd.f32 %v575_v31, %v11871_v8 }
 0x1db   :  { %v11386_v35 = vpop.f32.mrf.mxu0 }
 0x1dc   :  { %17726 = vst [vmem:[#allocation37_spill] sm:$0xff] %v11902_v33  ;;  %v414_v37 = vpop.f32.mrf.mxu1  ;;  %v11905_v38 = vadd.f32 %v11386_v35, %v11871_v8 }
 0x1dd   :  { %v585_v39 = vpop.f32.mrf.mxu0 }
 0x1de   :  { %17727 = vst [vmem:[#allocation38_spill] sm:$0xff] %v11905_v38  ;;  %v11907_v41 = vpop.f32.mrf.mxu1  ;;  %v11910_v43 = vadd.f32 %v585_v39, %v11871_v8 }
 0x1df   :  { %v11389_v44 = vpop.f32.mrf.mxu0 }
 0x1e0   :  { %17728 = vst [vmem:[#allocation39_spill] sm:$0xff] %v11910_v43  ;;  %v420_v45 = vpop.f32.mrf.mxu1  ;;  %v11913_v47 = vadd.f32 %v11389_v44, %v11871_v8 }
 0x1e1   :  { %v595_v49 = vpop.f32.mrf.mxu0 }
 0x1e2   :  { %17729 = vst [vmem:[#allocation40_spill] sm:$0xff] %v11913_v47  ;;  %v11915_v50 = vpop.f32.mrf.mxu1  ;;  %v11918_v51 = vadd.f32 %v595_v49, %v11871_v8 }
 0x1e3   :  { %v11392_v53 = vpop.f32.mrf.mxu0 }
 0x1e4   :  { %17730 = vst [vmem:[#allocation41_spill] sm:$0xff] %v11918_v51  ;;  %v426_v55 = vpop.f32.mrf.mxu1  ;;  %v11921_v56 = vadd.f32 %v11392_v53, %v11871_v8 }
 0x1e5   :  { %v605_v57 = vpop.f32.mrf.mxu0  ;;  %v427_v5 = vadd.f32 %v426_v55, %v11940_v21 }
 0x1e6   :  { %17731 = vst [vmem:[#allocation42_spill] sm:$0xff] %v11921_v56  ;;  %v11923_v60 = vpop.f32.mrf.mxu1  ;;  %v11926_v61 = vadd.f32 %v605_v57, %v11871_v8 }
 0x1e7   :  { %v11395_v63 = vpop.f32.mrf.mxu0 }
 0x1e8   :  { %17732 = vst [vmem:[#allocation43_spill] sm:$0xff] %v11926_v61  ;;  %v432_v9 = vpop.f32.mrf.mxu1  ;;  %v11932_v10 = vadd.f32 %v11395_v63, %v11871_v8 }
 0x1e9   :  { %v615_v11 = vpop.f32.mrf.mxu0  ;;  %v433_v39 = vadd.f32 %v432_v9, %v11940_v21 }
 0x1ea   :  { %17734 = vst [vmem:[#allocation45_spill] sm:$0xff] %v11932_v10  ;;  %v11934_v14 = vpop.f32.mrf.mxu1  ;;  %v11937_v18 = vadd.f32 %v615_v11, %v11871_v8 }
 0x1ec   :  { %17735 = vst [vmem:[#allocation46_spill] sm:$0xff] %v11937_v18  ;;  %v438_v26 = vpop.f32.mrf.mxu1 }
 0x1ed   :  { %v439_v31 = vadd.f32 %v438_v26, %v11940_v21 }
 0x1ee   :  { %v442_v35 = vpop.f32.mrf.mxu1 }
 0x1ef   :  { %11399 = vmatprep.subr.mxu0 %v439_v31  ;;  %v11945_v44 = vadd.f32 %v442_v35, %v11868_v7 }
 0x1f0   :  { %11400 = vmatpush3.xpose.msra.mxu0 %v439_v31  ;;  %v444_v49 = vpop.f32.mrf.mxu1  ;;  %v421_v31 = vadd.f32 %v420_v45, %v11940_v21 }
 0x1f1   :  { %17736 = vst [vmem:[#allocation47_spill] sm:$0xff] %v11945_v44  ;;  %11401 = vmatprep.subr.mxu0 %v433_v39  ;;  %v11948_v53 = vadd.f32 %v444_v49, %v11940_v21 }
 0x1f2   :  { %v448_v57 = vpop.f32.mrf.mxu1 }
 0x1f3   :  { %17737 = vst [vmem:[#allocation48_spill] sm:$0xff] %v11948_v53  ;;  %v11952_v63 = vadd.f32 %v448_v57, %v11868_v7 }
 0x1f4   :  { %11402 = vmatpush3.xpose.msra.mxu0 %v433_v39  ;;  %v450_v11 = vpop.f32.mrf.mxu1  ;;  %v415_v39 = vadd.f32 %v414_v37, %v11940_v21 }
 0x1f5   :  { %17738 = vst [vmem:[#allocation49_spill] sm:$0xff] %v11952_v63  ;;  %11403 = vmatprep.subr.mxu0 %v427_v5  ;;  %v11955_v9 = vadd.f32 %v450_v11, %v11940_v21 }
 0x1f6   :  { %v454_v26 = vpop.f32.mrf.mxu1 }
 0x1f7   :  { %17739 = vst [vmem:[#allocation50_spill] sm:$0xff] %v11955_v9  ;;  %v11959_v35 = vadd.f32 %v454_v26, %v11868_v7 }
 0x1f8   :  { %11404 = vmatpush3.xpose.msra.mxu0 %v427_v5  ;;  %v456_v49 = vpop.f32.mrf.mxu1  ;;  %v409_v5 = vadd.f32 %v11894_v27, %v11940_v21 }
 0x1f9   :  { %17740 = vst [vmem:[#allocation51_spill] sm:$0xff] %v11959_v35  ;;  %11405 = vmatprep.subr.mxu0 %v421_v31  ;;  %v11962_v55 = vadd.f32 %v456_v49, %v11940_v21 }
 0x1fa   :  { %v460_v57 = vpop.f32.mrf.mxu1 }
 0x1fb   :  { %17741 = vst [vmem:[#allocation52_spill] sm:$0xff] %v11962_v55  ;;  %v11966_v2 = vadd.f32 %v460_v57, %v11868_v7 }
 0x1fc   :  { %11406 = vmatpush3.xpose.msra.mxu0 %v421_v31  ;;  %v462_v11 = vpop.f32.mrf.mxu1  ;;  %v403_v31 = vadd.f32 %v11887_v20, %v11940_v21  ;;  %v407_v20 = vadd.f32 %v11892_v24, %v11868_v7 }
 0x1fd   :  { %17742 = vst [vmem:[#allocation53_spill] sm:$0xff] %v11966_v2  ;;  %11407 = vmatprep.subr.mxu0 %v415_v39  ;;  %v11969_v45 = vadd.f32 %v462_v11, %v11940_v21 }
 0x1fe   :  { %v466_v26 = vpop.f32.mrf.mxu1 }
 0x1ff   :  { %17743 = vst [vmem:[#allocation54_spill] sm:$0xff] %v11969_v45  ;;  %v11974_v16 = vadd.f32 %v466_v26, %v11868_v7  ;;  %v401_v26 = vadd.f32 %v11882_v17, %v11868_v7  ;;  %v419_v17 = vadd.f32 %v11907_v41, %v11868_v7  ;;  %v431_v41 = vadd.f32 %v11923_v60, %v11868_v7 }
 0x200   :  { %11408 = vmatpush3.xpose.msra.mxu0 %v415_v39  ;;  %v468_v49 = vpop.f32.mrf.mxu1  ;;  %v397_v39 = vadd.f32 %v11877_v13, %v11940_v21  ;;  %v17754_v60 = vmov 0.0  }
 0x201   :  { %17744 = vst [vmem:[#allocation55_spill] sm:$0xff] %v11974_v16  ;;  %11409 = vmatprep.subr.mxu0 %v409_v5  ;;  %v11977_v37 = vadd.f32 %v468_v49, %v11940_v21 }
 0x202   :  { %v472_v57 = vpop.f32.mrf.mxu1 }
 0x203   :  { %17745 = vst [vmem:[#allocation56_spill] sm:$0xff] %v11977_v37  ;;  %v11982_v11 = vadd.f32 %v472_v57, %v11868_v7  ;;  %v413_v57 = vadd.f32 %v11899_v32, %v11868_v7  ;;  %v425_v32 = vadd.f32 %v11915_v50, %v11868_v7 }
 0x204   :  { %11410 = vmatpush3.xpose.msra.mxu0 %v409_v5  ;;  %v474_v58 = vpop.f32.mrf.mxu1 }
 0x205   :  { %17746 = vst [vmem:[#allocation57_spill] sm:$0xff] %v11982_v11  ;;  %11411 = vmatprep.subr.mxu0 %v403_v31  ;;  %v11985_v27 = vadd.f32 %v474_v58, %v11940_v21  ;;  %v11398_v58 = vpop.f32.mrf.mxu0 }
 0x206   :  { %v478_v49 = vpop.f32.mrf.mxu1 }
 0x207   :  { %17747 = vst [vmem:[#allocation58_spill] sm:$0xff] %v11985_v27  ;;  %v11994_v5 = vadd.f32 %v478_v49, %v11868_v7  ;;  %v625_v24 = vpop.f32.mrf.mxu0 }
 0x208   :  { %11412 = vmatpush3.xpose.msra.mxu0 %v403_v31  ;;  %v480_v13 = vpop.f32.mrf.mxu1  ;;  %v11999_v31 = vadd.f32 %v11398_v58, %v11871_v8 }
 0x209   :  { %11413 = vmatprep.subr.mxu0 %v397_v39  ;;  %17748 = vst [vmem:[#allocation59_spill] sm:$0xff] %v11994_v5 }
 0x20a   :  { %17749 = vst [vmem:[#allocation60_spill] sm:$0xff] %v11999_v31 }
 0x20c   :  { %11414 = vmatpush3.xpose.msra.mxu0 %v397_v39  ;;  %v12004_v39 = vadd.f32 %v480_v13, %v11940_v21 }
 0x20e   :  { %17750 = vst [vmem:[#allocation61_spill] sm:$0xff] %v12004_v39 }
 0x20f   :  { %11416 = vmatmul.mubr.f32.vlgmr.msra.gmra.mxu0 %v401_v26  ;;  %v484_v26 = vpop.f32.mrf.mxu1 }
 0x210   :  { %11418 = vmatprep.mubr.f32.mxu0 %v407_v20  ;;  %v12007_v20 = vadd.f32 %v625_v24, %v11871_v8  ;;  %v12010_v49 = vadd.f32 %v484_v26, %v11868_v7  ;;  %v437_v8 = vadd.f32 %v11934_v14, %v11868_v7 }
 0x211   :  { %v486_v58 = vpop.f32.mrf.mxu1 }
 0x212   :  { %17751 = vst [vmem:[#allocation62_spill] sm:$0xff] %v12007_v20  ;;  %17752 = vst [vmem:[#allocation63_spill] sm:$0xff] %v12010_v49  ;;  %v12017_v13 = vadd.f32 %v486_v58, %v11940_v21 }
 0x213   :  { %11419 = vmatmul.mubr.f32.gmra.mxu0 %v413_v57 }
 0x214   :  { %11421 = vmatprep.mubr.f32.mxu0 %v419_v17  ;;  %17753 = vst [vmem:[#allocation64_spill] sm:$0xff] %v12017_v13 }
 0x217   :  { %11422 = vmatmul.mubr.f32.gmra.mxu0 %v425_v32 }
 0x218   :  { %11424 = vmatprep.mubr.f32.mxu0 %v431_v41 }
 0x21b   :  { %11425 = vmatmul.mubr.f32.gmra.mxu0 %v437_v8 }
 0x2cf   :  { %v11417_v57 = vpop.f32.mrf.mxu0 }
 0x2d0   :  { %v740_v17 = vmul.f32 0.088388346, %v11417_v57 }
 0x2d1   :  { %v700_v24 = vpop.f32.mrf.mxu0 }
 0x2d2   :  { %749 = vst.msk [vmem:[#allocation2 + $0x8] sm:$0xff] %vm747_vm0, %v740_v17  ;;  %vm845_vm1 = vcmp.ge.f32.partialorder %v740_v17, 0.0  ;;  %v739_v50 = vmul.f32 0.088388346, %v700_v24  ;;  %v759_v26 = vsel %vm747_vm0, %v740_v17, -inf }
 0x2d3   :  { %v12024_v0 = vsel %vm845_vm1, 1.0, %v17754_v60  ;;  %760 = vmax.xlane.f32.xlu0 %v759_v26  ;;  %v11420_v21 = vpop.f32.mrf.mxu0 }
 0x2d4   :  { %17755 = vst [vmem:[#allocation65_spill] sm:$0xff] %v12024_v0  ;;  %748 = vst.msk [vmem:[#allocation2] sm:$0xff] %vm747_vm0, %v739_v50  ;;  %vm844_vm2 = vcmp.ge.f32.partialorder %v739_v50, 0.0  ;;  %v742_v7 = vmul.f32 0.088388346, %v11420_v21  ;;  %v756_v41 = vsel %vm747_vm0, %v739_v50, -inf }
 0x2d5   :  { %v12028_v14 = vsel %vm844_vm2, 1.0, %v17754_v60  ;;  %v710_v32 = vpop.f32.mrf.mxu0 }
 0x2d6   :  { %17756 = vst [vmem:[#allocation66_spill] sm:$0xff] %v12028_v14  ;;  %751 = vst.msk [vmem:[#allocation2 + $0x18] sm:$0xff] %vm747_vm0, %v742_v7  ;;  %vm847_vm3 = vcmp.ge.f32.partialorder %v742_v7, 0.0  ;;  %v741_v58 = vmul.f32 0.088388346, %v710_v32  ;;  %v765_v8 = vsel %vm747_vm0, %v742_v7, -inf }
 0x2d7   :  { %v12034_v57 = vsel %vm847_vm3, 1.0, %v17754_v60  ;;  %757 = vmax.xlane.f32.xlu0 %v756_v41  ;;  %766 = vmax.xlane.f32.xlu1 %v765_v8  ;;  %v11423_v24 = vpop.f32.mrf.mxu0 }
 0x2d8   :  { %17757 = vst [vmem:[#allocation67_spill] sm:$0xff] %v12034_v57  ;;  %750 = vst.msk [vmem:[#allocation2 + $0x10] sm:$0xff] %vm747_vm0, %v741_v58  ;;  %vm846_vm4 = vcmp.ge.f32.partialorder %v741_v58, 0.0  ;;  %v744_v26 = vmul.f32 0.088388346, %v11423_v24  ;;  %v762_v1 = vsel %vm747_vm0, %v741_v58, -inf }
 0x2d9   :  { %v12038_v21 = vsel %vm846_vm4, 1.0, %v17754_v60  ;;  %v720_v59 = vpop.f32.mrf.mxu0 }
 0x2da   :  { %17758 = vst [vmem:[#allocation68_spill] sm:$0xff] %v12038_v21  ;;  %753 = vst.msk [vmem:[#allocation2 + $0x28] sm:$0xff] %vm747_vm0, %v744_v26  ;;  %vm849_vm5 = vcmp.ge.f32.partialorder %v744_v26, 0.0  ;;  %v743_v32 = vmul.f32 0.088388346, %v720_v59  ;;  %v771_v54 = vsel %vm747_vm0, %v744_v26, -inf }
 0x2db   :  { %v12043_v46 = vsel %vm849_vm5, 1.0, %v17754_v60  ;;  %763 = vmax.xlane.f32.xlu1 %v762_v1  ;;  %v11426_v41 = vpop.f32.mrf.mxu0 }
 0x2dc   :  { %17759 = vst [vmem:[#allocation69_spill] sm:$0xff] %v12043_v46  ;;  %752 = vst.msk [vmem:[#allocation2 + $0x20] sm:$0xff] %vm747_vm0, %v743_v32  ;;  %vm848_vm6 = vcmp.ge.f32.partialorder %v743_v32, 0.0  ;;  %v746_v8 = vmul.f32 0.088388346, %v11426_v41  ;;  %v768_v24 = vsel %vm747_vm0, %v743_v32, -inf }
 0x2dd   :  { %v12048_v52 = vsel %vm848_vm6, 1.0, %v17754_v60  ;;  %769 = vmax.xlane.f32.xlu0 %v768_v24  ;;  %v730_v48 = vpop.f32.mrf.mxu0 }
 0x2de   :  { %17760 = vst [vmem:[#allocation70_spill] sm:$0xff] %v12048_v52  ;;  %755 = vst.msk [vmem:[#allocation2 + $0x38] sm:$0xff] %vm747_vm0, %v746_v8  ;;  %vm851_vm7 = vcmp.ge.f32.partialorder %v746_v8, 0.0  ;;  %v745_v59 = vmul.f32 0.088388346, %v730_v48  ;;  %v777_v24 = vsel %vm747_vm0, %v746_v8, -inf }
 0x2df   :  { %v12053_v1 = vsel %vm851_vm7, 1.0, %v17754_v60  ;;  %772 = vmax.xlane.f32.xlu1 %v771_v54 }
 0x2e0   :  { %17761 = vst [vmem:[#allocation71_spill] sm:$0xff] %v12053_v1  ;;  %754 = vst.msk [vmem:[#allocation2 + $0x30] sm:$0xff] %vm747_vm0, %v745_v59  ;;  %vm850_vm8 = vcmp.ge.f32.partialorder %v745_v59, 0.0  ;;  %v774_v41 = vsel %vm747_vm0, %v745_v59, -inf }
 0x2e1   :  { %v12058_v47 = vsel %vm850_vm8, 1.0, %v17754_v60  ;;  %775 = vmax.xlane.f32.xlu0 %v774_v41 }
 0x2e2   :  { %17762 = vst [vmem:[#allocation72_spill] sm:$0xff] %v12058_v47 }
 0x2e3   :  { %778 = vmax.xlane.f32.xlu1 %v777_v24 }
 0x35c   :  { %v761_v51 = vpop.xlane.xlu0 %760 }
 0x35d   :  { %v781_v48 = vsub.f32 %v740_v17, %v761_v51 }
 0x35f   :  { %v790_v56 = vmul.f32 1.442695, %v781_v48 }
 0x360   :  { %v758_v61 = vpop.xlane.xlu0 %757  ;;  %v767_v10 = vpop.xlane.xlu1 %766 }
 0x361   :  { %11515 = vpow2.f32 %v790_v56  ;;  %v780_v18 = vsub.f32 %v739_v50, %v758_v61  ;;  %v783_v54 = vsub.f32 %v742_v7, %v767_v10 }
 0x363   :  { %v788_v31 = vmul.f32 1.442695, %v780_v18  ;;  %v794_v20 = vmul.f32 1.442695, %v783_v54 }
 0x364   :  { %v764_v34 = vpop.xlane.xlu1 %763 }
 0x365   :  { %11517 = vpow2.f32 %v788_v31  ;;  %v782_v40 = vsub.f32 %v741_v58, %v764_v34 }
 0x366   :  { %11519 = vpow2.f32 %v794_v20  ;;  %v770_v60 = vpop.xlane.xlu0 %769 }
 0x367   :  { %v792_v36 = vmul.f32 1.442695, %v782_v40  ;;  %v784_v41 = vsub.f32 %v743_v32, %v770_v60 }
 0x368   :  { %v773_v42 = vpop.xlane.xlu1 %772 }
 0x369   :  { %11521 = vpow2.f32 %v792_v36  ;;  %v796_v24 = vmul.f32 1.442695, %v784_v41  ;;  %v785_v25 = vsub.f32 %v744_v26, %v773_v42 }
 0x36a   :  { %v776_v51 = vpop.xlane.xlu0 %775 }
 0x36b   :  { %11523 = vpow2.f32 %v796_v24  ;;  %v798_v17 = vmul.f32 1.442695, %v785_v25  ;;  %v786_v48 = vsub.f32 %v745_v59, %v776_v51 }
 0x36c   :  { %v779_v56 = vpop.xlane.xlu1 %778 }
 0x36d   :  { %11525 = vpow2.f32 %v798_v17  ;;  %v800_v61 = vmul.f32 1.442695, %v786_v48  ;;  %v787_v10 = vsub.f32 %v746_v8, %v779_v56 }
 0x36e   :  { %v11516_v18 = vpop.eup %11515 }
 0x36f   :  { %11527 = vpow2.f32 %v800_v61  ;;  %v802_v31 = vmul.f32 1.442695, %v787_v10  ;;  %v807_v34 = vsel %vm747_vm0, %v11516_v18, 0.0 }
 0x370   :  { %808 = vadd.xlane.f32.xlu1 %v807_v34 }
 0x371   :  { %11529 = vpow2.f32 %v802_v31 }
 0x372   :  { %v11518_v40 = vpop.eup %11517 }
 0x373   :  { %v11520_v20 = vpop.eup %11519  ;;  %v804_v36 = vsel %vm747_vm0, %v11518_v40, 0.0 }
 0x374   :  { %v813_v42 = vsel %vm747_vm0, %v11520_v20, 0.0  ;;  %805 = vadd.xlane.f32.xlu0 %v804_v36 }
 0x375   :  { %814 = vadd.xlane.f32.xlu1 %v813_v42 }
 0x376   :  { %v11522_v25 = vpop.eup %11521 }
 0x377   :  { %v810_v50 = vsel %vm747_vm0, %v11522_v25, 0.0 }
 0x378   :  { %v11524_v7 = vpop.eup %11523  ;;  %811 = vadd.xlane.f32.xlu0 %v810_v50 }
 0x379   :  { %v816_v32 = vsel %vm747_vm0, %v11524_v7, 0.0 }
 0x37a   :  { %v11526_v58 = vpop.eup %11525 }
 0x37b   :  { %v819_v26 = vsel %vm747_vm0, %v11526_v58, 0.0 }
 0x37c   :  { %v11528_v8 = vpop.eup %11527  ;;  %820 = vadd.xlane.f32.xlu1 %v819_v26  ;;  %817 = vadd.xlane.f32.xlu0 %v816_v32 }
 0x37d   :  { %v822_v60 = vsel %vm747_vm0, %v11528_v8, 0.0 }
 0x37e   :  { %v11530_v59 = vpop.eup %11529 }
 0x37f   :  { %v825_v54 = vsel %vm747_vm0, %v11530_v59, 0.0 }
 0x380   :  { %826 = vadd.xlane.f32.xlu1 %v825_v54  ;;  %823 = vadd.xlane.f32.xlu0 %v822_v60 }
 0x3f9   :  { %v809_v41 = vpop.xlane.xlu1 %808 }
 0x3fa   :  { %11531 = vrcp.f32 %v809_v41 }
 0x3fd   :  { %v806_v24 = vpop.xlane.xlu0 %805 }
 0x3fe   :  { %v815_v51 = vpop.xlane.xlu1 %814  ;;  %11533 = vrcp.f32 %v806_v24 }
 0x3ff   :  { %11535 = vrcp.f32 %v815_v51 }
 0x401   :  { %v812_v17 = vpop.xlane.xlu0 %811 }
 0x402   :  { %11537 = vrcp.f32 %v812_v17 }
 0x405   :  { %v821_v48 = vpop.xlane.xlu1 %820  ;;  %v818_v56 = vpop.xlane.xlu0 %817 }
 0x406   :  { %11539 = vrcp.f32 %v821_v48 }
 0x407   :  { %v11532_v61 = vpop.eup %11531  ;;  %11541 = vrcp.f32 %v818_v56 }
 0x408   :  { %v12069_v10 = vmul.f32 %v11532_v61, %v11516_v18 }
 0x409   :  { %v827_v31 = vpop.xlane.xlu1 %826  ;;  %v824_v34 = vpop.xlane.xlu0 %823 }
 0x40a   :  { %17763 = vst [vmem:[#allocation73_spill] sm:$0xff] %v12069_v10  ;;  %11543 = vrcp.f32 %v827_v31 }
 0x40b   :  { %v11534_v36 = vpop.eup %11533  ;;  %11545 = vrcp.f32 %v824_v34 }
 0x40c   :  { %v11536_v42 = vpop.eup %11535  ;;  %v12071_v50 = vmul.f32 %v11534_v36, %v11518_v40 }
 0x40d   :  { %v12073_v26 = vmul.f32 %v11536_v42, %v11520_v20 }
 0x40e   :  { %17764 = vst [vmem:[#allocation74_spill] sm:$0xff] %v12071_v50 }
 0x40f   :  { %17765 = vst [vmem:[#allocation75_spill] sm:$0xff] %v12073_v26  ;;  %v11538_v32 = vpop.eup %11537 }
 0x410   :  { %v12075_v54 = vmul.f32 %v11538_v32, %v11522_v25 }
 0x412   :  { %17766 = vst [vmem:[#allocation76_spill] sm:$0xff] %v12075_v54 }
 0x413   :  { %v11540_v60 = vpop.eup %11539 }
 0x414   :  { %v11542_v41 = vpop.eup %11541  ;;  %v12077_v24 = vmul.f32 %v11540_v60, %v11526_v58 }
 0x415   :  { %v12079_v51 = vmul.f32 %v11542_v41, %v11524_v7 }
 0x416   :  { %17767 = vst [vmem:[#allocation77_spill] sm:$0xff] %v12077_v24 }
 0x417   :  { %17768 = vst [vmem:[#allocation78_spill] sm:$0xff] %v12079_v51  ;;  %v11544_v18 = vpop.eup %11543 }
 0x418   :  { %v11546_v17 = vpop.eup %11545  ;;  %v12081_v48 = vmul.f32 %v11544_v18, %v11530_v59 }
 0x419   :  { %v12083_v56 = vmul.f32 %v11546_v17, %v11528_v8 }
 0x41a   :  { %17769 = vst [vmem:[#allocation79_spill] sm:$0xff] %v12081_v48 }
 0x41b   :  { %17770 = vst [vmem:[#allocation80_spill] sm:$0xff] %v12083_v56 }
 0x41c LB: > { %v17771_v3 = vld [vmem:[#allocation30_spill] sm:$0xff]  ;;  %v17772_v6 = vld [vmem:[#allocation31_spill] sm:$0xff]  ;;  %v17773_v62 = vld [vmem:[#allocation44_spill] sm:$0xff]  ;;  %s10645_s12 = sshll.u32 %s11691_s4, 5  ;;  %s873_s4 = sadd.s32 1, %s11691_s4   ;;  %s11691_s4 = sphi %s12085_s4, %s873_s4  }
 0x41d   : > { %s12093_s13 = scalar_lea.vmem [#allocation2], %s10645_s12  ;;  %v12105_v58 = vsub.s32 3, %v17771_v3  ;;  %v12110_v59 = vsub.s32 4, %v17771_v3  ;;  %v12115_v31 = vsub.s32 5, %v17771_v3  ;;  %v12120_v36 = vsub.s32 6, %v17771_v3  ;;  %s13570_s14 = scalar_lea.vmem [#allocation3], %s10645_s12 }
 0x41e   : > { %v12096_v40 = vld [vmem:[%s12093_s13] sm:$0xff]  ;;  %v12125_v32 = vsub.s32 7, %v17771_v3  ;;  %p870_p1 = scmp.ge.s32.totalorder %s873_s4, 2  }
 0x41f   : > { %v1083_v20 = vrot.slane %v12096_v40, %v11859_v4  ;;  %v1118_v25 = vrot.slane %v12096_v40, %v17773_v62  ;;  %v1153_v7 = vrot.slane %v12096_v40, %v17772_v6  ;;  %17774 = vst [vmem:[#allocation81_spill] sm:$0xff] %v12105_v58  ;;  %v1188_v8 = vrot.slane %v12096_v40, %v12105_v58  ;;  %s14904_s15 = smov (%p870_p1), 0  }
 0x420   : > { %17775 = vst [vmem:[#allocation82_spill] sm:$0xff] %v12110_v59  ;;  %v1223_v61 = vrot.slane %v12096_v40, %v12110_v59  ;;  %17776 = vst [vmem:[#allocation83_spill] sm:$0xff] %v12115_v31  ;;  %v1258_v34 = vrot.slane %v12096_v40, %v12115_v31  ;;  %v1293_v42 = vrot.slane %v12096_v40, %v12120_v36 }
 0x421   : > { %1093 = vbcast.lane.b32.xlu1 %v1083_v20, 272  ;;  %1085 = vbcast.lane.b32.xlu0 %v1083_v20, 256  ;;  %17777 = vst [vmem:[#allocation84_spill] sm:$0xff] %v12120_v36  ;;  %17778 = vst [vmem:[#allocation85_spill] sm:$0xff] %v12125_v32  ;;  %v1328_v60 = vrot.slane %v12096_v40, %v12125_v32 }
 0x425   : > { %1097 = vbcast.lane.b32.xlu1 %v1083_v20, 280  ;;  %1089 = vbcast.lane.b32.xlu0 %v1083_v20, 264 }
 0x429   : > { %1105 = vbcast.lane.b32.xlu1 %v1083_v20, 296  ;;  %1101 = vbcast.lane.b32.xlu0 %v1083_v20, 288 }
 0x42d   : > { %1113 = vbcast.lane.b32.xlu1 %v1083_v20, 312  ;;  %1109 = vbcast.lane.b32.xlu0 %v1083_v20, 304 }
 0x431   : > { %1124 = vbcast.lane.b32.xlu1 %v1118_v25, 264  ;;  %1120 = vbcast.lane.b32.xlu0 %v1118_v25, 256 }
 0x435   : > { %1132 = vbcast.lane.b32.xlu1 %v1118_v25, 280  ;;  %1128 = vbcast.lane.b32.xlu0 %v1118_v25, 272 }
 0x439   : > { %1140 = vbcast.lane.b32.xlu1 %v1118_v25, 296  ;;  %1136 = vbcast.lane.b32.xlu0 %v1118_v25, 288 }
 0x43d   : > { %1148 = vbcast.lane.b32.xlu1 %v1118_v25, 312  ;;  %1144 = vbcast.lane.b32.xlu0 %v1118_v25, 304  ;;  %v12138_v25 = vld [vmem:[%s12093_s13 + $0x8] sm:$0xff] }
 0x43e   : > { %v1398_v24 = vrot.slane %v12138_v25, %v17773_v62  ;;  %v1433_v46 = vrot.slane %v12138_v25, %v17772_v6  ;;  %v1468_v19 = vrot.slane %v12138_v25, %v12105_v58  ;;  %v1503_v11 = vrot.slane %v12138_v25, %v12110_v59 }
 0x43f   : > { %v1538_v45 = vrot.slane %v12138_v25, %v12115_v31 }
 0x441   : > { %1159 = vbcast.lane.b32.xlu1 %v1153_v7, 264  ;;  %1155 = vbcast.lane.b32.xlu0 %v1153_v7, 256 }
 0x445   : > { %1167 = vbcast.lane.b32.xlu1 %v1153_v7, 280  ;;  %1163 = vbcast.lane.b32.xlu0 %v1153_v7, 272 }
 0x449   : > { %1175 = vbcast.lane.b32.xlu1 %v1153_v7, 296  ;;  %1171 = vbcast.lane.b32.xlu0 %v1153_v7, 288 }
 0x44d   : > { %1183 = vbcast.lane.b32.xlu1 %v1153_v7, 312  ;;  %1179 = vbcast.lane.b32.xlu0 %v1153_v7, 304 }
 0x451   : > { %1194 = vbcast.lane.b32.xlu1 %v1188_v8, 264  ;;  %1190 = vbcast.lane.b32.xlu0 %v1188_v8, 256 }
 0x455   : > { %1202 = vbcast.lane.b32.xlu1 %v1188_v8, 280  ;;  %1198 = vbcast.lane.b32.xlu0 %v1188_v8, 272 }
 0x459   : > { %1210 = vbcast.lane.b32.xlu1 %v1188_v8, 296  ;;  %1206 = vbcast.lane.b32.xlu0 %v1188_v8, 288 }
 0x45d   : > { %1218 = vbcast.lane.b32.xlu1 %v1188_v8, 312  ;;  %1214 = vbcast.lane.b32.xlu0 %v1188_v8, 304 }
 0x461   : > { %1229 = vbcast.lane.b32.xlu1 %v1223_v61, 264  ;;  %1225 = vbcast.lane.b32.xlu0 %v1223_v61, 256 }
 0x465   : > { %1237 = vbcast.lane.b32.xlu1 %v1223_v61, 280  ;;  %1233 = vbcast.lane.b32.xlu0 %v1223_v61, 272 }
 0x469   : > { %1245 = vbcast.lane.b32.xlu1 %v1223_v61, 296  ;;  %1241 = vbcast.lane.b32.xlu0 %v1223_v61, 288 }
 0x46d   : > { %1253 = vbcast.lane.b32.xlu1 %v1223_v61, 312  ;;  %1249 = vbcast.lane.b32.xlu0 %v1223_v61, 304  ;;  %v1363_v61 = vrot.slane %v12138_v25, %v11859_v4 }
 0x471   : > { %1264 = vbcast.lane.b32.xlu1 %v1258_v34, 264  ;;  %1260 = vbcast.lane.b32.xlu0 %v1258_v34, 256 }
 0x475   : > { %1272 = vbcast.lane.b32.xlu1 %v1258_v34, 280  ;;  %1268 = vbcast.lane.b32.xlu0 %v1258_v34, 272 }
 0x479   : > { %1280 = vbcast.lane.b32.xlu1 %v1258_v34, 296  ;;  %1276 = vbcast.lane.b32.xlu0 %v1258_v34, 288 }
 0x47d   : > { %1288 = vbcast.lane.b32.xlu1 %v1258_v34, 312  ;;  %1284 = vbcast.lane.b32.xlu0 %v1258_v34, 304 }
 0x481   : > { %1299 = vbcast.lane.b32.xlu1 %v1293_v42, 264  ;;  %1295 = vbcast.lane.b32.xlu0 %v1293_v42, 256 }
 0x485   : > { %1307 = vbcast.lane.b32.xlu1 %v1293_v42, 280  ;;  %1303 = vbcast.lane.b32.xlu0 %v1293_v42, 272 }
 0x489   : > { %1315 = vbcast.lane.b32.xlu1 %v1293_v42, 296  ;;  %1311 = vbcast.lane.b32.xlu0 %v1293_v42, 288 }
 0x48d   : > { %1323 = vbcast.lane.b32.xlu1 %v1293_v42, 312  ;;  %1319 = vbcast.lane.b32.xlu0 %v1293_v42, 304 }
 0x491   : > { %1334 = vbcast.lane.b32.xlu1 %v1328_v60, 264  ;;  %1330 = vbcast.lane.b32.xlu0 %v1328_v60, 256 }
 0x493   : > { %v12129_v41 = vpop.permute.xlu0 %1085  ;;  %v12131_v18 = vpop.permute.xlu1 %1093 }
 0x495   : > { %1342 = vbcast.lane.b32.xlu1 %v1328_v60, 280  ;;  %1338 = vbcast.lane.b32.xlu0 %v1328_v60, 272 }
 0x497   : > { %v12133_v17 = vpop.permute.xlu0 %1089  ;;  %v12135_v20 = vpop.permute.xlu1 %1097 }
 0x499   : > { %1350 = vbcast.lane.b32.xlu1 %v1328_v60, 296  ;;  %1346 = vbcast.lane.b32.xlu0 %v1328_v60, 288 }
 0x49b   : > { %v12140_v7 = vpop.permute.xlu0 %1101  ;;  %v12142_v8 = vpop.permute.xlu1 %1105 }
 0x49d   : > { %1358 = vbcast.lane.b32.xlu1 %v1328_v60, 312  ;;  %1354 = vbcast.lane.b32.xlu0 %v1328_v60, 304 }
 0x49f   : > { %v12146_v34 = vpop.permute.xlu0 %1109  ;;  %v12148_v42 = vpop.permute.xlu1 %1113 }
 0x4a1   : > { %1369 = vbcast.lane.b32.xlu1 %v1363_v61, 264  ;;  %1365 = vbcast.lane.b32.xlu0 %v1363_v61, 256 }
 0x4a3   : > { %v12150_v28 = vpop.permute.xlu0 %1120  ;;  %v12152_v23 = vpop.permute.xlu1 %1124 }
 0x4a5   : > { %1377 = vbcast.lane.b32.xlu1 %v1363_v61, 280  ;;  %1373 = vbcast.lane.b32.xlu0 %v1363_v61, 272 }
 0x4a7   : > { %v12154_v30 = vpop.permute.xlu0 %1128  ;;  %v12156_v48 = vpop.permute.xlu1 %1132 }
 0x4a9   : > { %1385 = vbcast.lane.b32.xlu1 %v1363_v61, 296  ;;  %1381 = vbcast.lane.b32.xlu0 %v1363_v61, 288 }
 0x4ab   : > { %v12158_v60 = vpop.permute.xlu0 %1136  ;;  %v12160_v56 = vpop.permute.xlu1 %1140 }
 0x4ad   : > { %1393 = vbcast.lane.b32.xlu1 %v1363_v61, 312  ;;  %1389 = vbcast.lane.b32.xlu0 %v1363_v61, 304 }
 0x4af   : > { %v12164_v51 = vpop.permute.xlu0 %1144  ;;  %v12166_v1 = vpop.permute.xlu1 %1148 }
 0x4b1   : > { %1404 = vbcast.lane.b32.xlu1 %v1398_v24, 264  ;;  %1400 = vbcast.lane.b32.xlu0 %v1398_v24, 256 }
 0x4b3   : > { %v12168_v47 = vpop.permute.xlu0 %1155  ;;  %v12170_v26 = vpop.permute.xlu1 %1159 }
 0x4b5   : > { %1412 = vbcast.lane.b32.xlu1 %v1398_v24, 280  ;;  %1408 = vbcast.lane.b32.xlu0 %v1398_v24, 272 }
 0x4b7   : > { %v12172_v54 = vpop.permute.xlu0 %1163  ;;  %v12174_v10 = vpop.permute.xlu1 %1167 }
 0x4b9   : > { %1420 = vbcast.lane.b32.xlu1 %v1398_v24, 296  ;;  %1416 = vbcast.lane.b32.xlu0 %v1398_v24, 288 }
 0x4bb   : > { %v12176_v61 = vpop.permute.xlu0 %1171  ;;  %v12178_v50 = vpop.permute.xlu1 %1175 }
 0x4bd   : > { %1428 = vbcast.lane.b32.xlu1 %v1398_v24, 312  ;;  %1424 = vbcast.lane.b32.xlu0 %v1398_v24, 304 }
 0x4bf   : > { %v12182_v52 = vpop.permute.xlu0 %1179  ;;  %v12184_v57 = vpop.permute.xlu1 %1183 }
 0x4c1   : > { %1439 = vbcast.lane.b32.xlu1 %v1433_v46, 264  ;;  %1435 = vbcast.lane.b32.xlu0 %v1433_v46, 256 }
 0x4c3   : > { %v12186_v21 = vpop.permute.xlu0 %1190  ;;  %v12188_v0 = vpop.permute.xlu1 %1194 }
 0x4c5   : > { %1447 = vbcast.lane.b32.xlu1 %v1433_v46, 280  ;;  %1443 = vbcast.lane.b32.xlu0 %v1433_v46, 272 }
 0x4c7   : > { %v12190_v14 = vpop.permute.xlu0 %1198  ;;  %v12192_v12 = vpop.permute.xlu1 %1202 }
 0x4c9   : > { %1455 = vbcast.lane.b32.xlu1 %v1433_v46, 296  ;;  %1451 = vbcast.lane.b32.xlu0 %v1433_v46, 288 }
 0x4cb   : > { %v12194_v24 = vpop.permute.xlu0 %1206  ;;  %v12196_v15 = vpop.permute.xlu1 %1210 }
 0x4cd   : > { %1463 = vbcast.lane.b32.xlu1 %v1433_v46, 312  ;;  %1459 = vbcast.lane.b32.xlu0 %v1433_v46, 304 }
 0x4cf   : > { %v12200_v22 = vpop.permute.xlu0 %1214  ;;  %v12202_v29 = vpop.permute.xlu1 %1218 }
 0x4d1   : > { %1474 = vbcast.lane.b32.xlu1 %v1468_v19, 264  ;;  %1470 = vbcast.lane.b32.xlu0 %v1468_v19, 256 }
 0x4d3   : > { %v12204_v33 = vpop.permute.xlu0 %1225  ;;  %v12206_v38 = vpop.permute.xlu1 %1229 }
 0x4d5   : > { %1482 = vbcast.lane.b32.xlu1 %v1468_v19, 280  ;;  %1478 = vbcast.lane.b32.xlu0 %v1468_v19, 272 }
 0x4d7   : > { %v12208_v43 = vpop.permute.xlu0 %1233  ;;  %v12210_v49 = vpop.permute.xlu1 %1237 }
 0x4d9   : > { %1490 = vbcast.lane.b32.xlu1 %v1468_v19, 296  ;;  %1486 = vbcast.lane.b32.xlu0 %v1468_v19, 288 }
 0x4db   : > { %v12212_v46 = vpop.permute.xlu0 %1241  ;;  %v12214_v5 = vpop.permute.xlu1 %1245 }
 0x4dd   : > { %1498 = vbcast.lane.b32.xlu1 %v1468_v19, 312  ;;  %1494 = vbcast.lane.b32.xlu0 %v1468_v19, 304 }
 0x4df   : > { %v12218_v16 = vpop.permute.xlu0 %1249  ;;  %v12220_v2 = vpop.permute.xlu1 %1253 }
 0x4e1   : > { %1509 = vbcast.lane.b32.xlu1 %v1503_v11, 264  ;;  %1505 = vbcast.lane.b32.xlu0 %v1503_v11, 256 }
 0x4e3   : > { %v12222_v35 = vpop.permute.xlu0 %1260  ;;  %v12224_v63 = vpop.permute.xlu1 %1264 }
 0x4e5   : > { %1517 = vbcast.lane.b32.xlu1 %v1503_v11, 280  ;;  %1513 = vbcast.lane.b32.xlu0 %v1503_v11, 272 }
 0x4e7   : > { %v12226_v53 = vpop.permute.xlu0 %1268  ;;  %v12228_v9 = vpop.permute.xlu1 %1272 }
 0x4e9   : > { %1525 = vbcast.lane.b32.xlu1 %v1503_v11, 296  ;;  %1521 = vbcast.lane.b32.xlu0 %v1503_v11, 288 }
 0x4eb   : > { %v12230_v19 = vpop.permute.xlu0 %1276  ;;  %v12232_v55 = vpop.permute.xlu1 %1280 }
 0x4ec   : > { %17779 = vst [vmem:[#allocation86_spill] sm:$0xff] %v12230_v19  ;;  %17780 = vst [vmem:[#allocation87_spill] sm:$0xff] %v12232_v55 }
 0x4ed   : > { %1533 = vbcast.lane.b32.xlu1 %v1503_v11, 312  ;;  %1529 = vbcast.lane.b32.xlu0 %v1503_v11, 304 }
 0x4ef   : > { %v12236_v37 = vpop.permute.xlu0 %1284  ;;  %v12238_v27 = vpop.permute.xlu1 %1288 }
 0x4f0   : > { %17781 = vst [vmem:[#allocation88_spill] sm:$0xff] %v12236_v37  ;;  %17782 = vst [vmem:[#allocation89_spill] sm:$0xff] %v12238_v27  ;;  %v1573_v27 = vrot.slane %v12138_v25, %v12120_v36 }
 0x4f1   : > { %1544 = vbcast.lane.b32.xlu1 %v1538_v45, 264  ;;  %1540 = vbcast.lane.b32.xlu0 %v1538_v45, 256 }
 0x4f3   : > { %v12240_v39 = vpop.permute.xlu0 %1295  ;;  %v12242_v44 = vpop.permute.xlu1 %1299 }
 0x4f4   : > { %17783 = vst [vmem:[#allocation90_spill] sm:$0xff] %v12240_v39  ;;  %17784 = vst [vmem:[#allocation91_spill] sm:$0xff] %v12242_v44 }
 0x4f5   : > { %1552 = vbcast.lane.b32.xlu1 %v1538_v45, 280  ;;  %1548 = vbcast.lane.b32.xlu0 %v1538_v45, 272 }
 0x4f7   : > { %v12244_v13 = vpop.permute.xlu0 %1303  ;;  %v12246_v55 = vpop.permute.xlu1 %1307 }
 0x4f8   : > { %17785 = vst [vmem:[#allocation92_spill] sm:$0xff] %v12244_v13  ;;  %17786 = vst [vmem:[#allocation93_spill] sm:$0xff] %v12246_v55 }
 0x4f9   : > { %1560 = vbcast.lane.b32.xlu1 %v1538_v45, 296  ;;  %1556 = vbcast.lane.b32.xlu0 %v1538_v45, 288 }
 0x4fb   : > { %v12248_v11 = vpop.permute.xlu0 %1311  ;;  %v12250_v19 = vpop.permute.xlu1 %1315 }
 0x4fc   : > { %17787 = vst [vmem:[#allocation94_spill] sm:$0xff] %v12248_v11  ;;  %17788 = vst [vmem:[#allocation95_spill] sm:$0xff] %v12250_v19 }
 0x4fd   : > { %1568 = vbcast.lane.b32.xlu1 %v1538_v45, 312  ;;  %1564 = vbcast.lane.b32.xlu0 %v1538_v45, 304 }
 0x4ff   : > { %v12254_v39 = vpop.permute.xlu0 %1319  ;;  %v12256_v44 = vpop.permute.xlu1 %1323 }
 0x500   : > { %17789 = vst [vmem:[#allocation96_spill] sm:$0xff] %v12254_v39  ;;  %17790 = vst [vmem:[#allocation97_spill] sm:$0xff] %v12256_v44 }
 0x501   : > { %1579 = vbcast.lane.b32.xlu1 %v1573_v27, 264  ;;  %1575 = vbcast.lane.b32.xlu0 %v1573_v27, 256 }
 0x503   : > { %v12258_v13 = vpop.permute.xlu0 %1330  ;;  %v12260_v55 = vpop.permute.xlu1 %1334 }
 0x504   : > { %17791 = vst [vmem:[#allocation98_spill] sm:$0xff] %v12258_v13  ;;  %17792 = vst [vmem:[#allocation99_spill] sm:$0xff] %v12260_v55  ;;  %v1608_v13 = vrot.slane %v12138_v25, %v12125_v32 }
 0x505   : > { %1587 = vbcast.lane.b32.xlu1 %v1573_v27, 280  ;;  %1583 = vbcast.lane.b32.xlu0 %v1573_v27, 272 }
 0x507   : > { %v12262_v11 = vpop.permute.xlu0 %1338  ;;  %v12264_v19 = vpop.permute.xlu1 %1342 }
 0x508   : > { %17793 = vst [vmem:[#allocation100_spill] sm:$0xff] %v12262_v11  ;;  %17794 = vst [vmem:[#allocation101_spill] sm:$0xff] %v12264_v19 }
 0x509   : > { %1595 = vbcast.lane.b32.xlu1 %v1573_v27, 296  ;;  %1591 = vbcast.lane.b32.xlu0 %v1573_v27, 288 }
 0x50b   : > { %v12266_v45 = vpop.permute.xlu0 %1346  ;;  %v12268_v37 = vpop.permute.xlu1 %1350 }
 0x50c   : > { %17795 = vst [vmem:[#allocation102_spill] sm:$0xff] %v12266_v45  ;;  %17796 = vst [vmem:[#allocation103_spill] sm:$0xff] %v12268_v37 }
 0x50d   : > { %1603 = vbcast.lane.b32.xlu1 %v1573_v27, 312  ;;  %1599 = vbcast.lane.b32.xlu0 %v1573_v27, 304  ;;  %v12285_v27 = vld [vmem:[%s12093_s13 + $0x10] sm:$0xff] }
 0x50f   : > { %v12272_v44 = vpop.permute.xlu0 %1354  ;;  %v12274_v55 = vpop.permute.xlu1 %1358 }
 0x510   : > { %17797 = vst [vmem:[#allocation104_spill] sm:$0xff] %v12272_v44  ;;  %17798 = vst [vmem:[#allocation105_spill] sm:$0xff] %v12274_v55 }
 0x511   : > { %1614 = vbcast.lane.b32.xlu1 %v1608_v13, 264  ;;  %1610 = vbcast.lane.b32.xlu0 %v1608_v13, 256 }
 0x513   : > { %v12276_v11 = vpop.permute.xlu0 %1365  ;;  %v12278_v19 = vpop.permute.xlu1 %1369 }
 0x514   : > { %17799 = vst [vmem:[#allocation106_spill] sm:$0xff] %v12276_v11  ;;  %17800 = vst [vmem:[#allocation107_spill] sm:$0xff] %v12278_v19  ;;  %v1643_v11 = vrot.slane %v12285_v27, %v11859_v4 }
 0x515   : > { %1622 = vbcast.lane.b32.xlu1 %v1608_v13, 280  ;;  %1618 = vbcast.lane.b32.xlu0 %v1608_v13, 272 }
 0x517   : > { %v12280_v45 = vpop.permute.xlu0 %1373  ;;  %v12282_v37 = vpop.permute.xlu1 %1377 }
 0x518   : > { %17801 = vst [vmem:[#allocation108_spill] sm:$0xff] %v12280_v45  ;;  %17802 = vst [vmem:[#allocation109_spill] sm:$0xff] %v12282_v37 }
 0x519   : > { %1630 = vbcast.lane.b32.xlu1 %v1608_v13, 296  ;;  %1626 = vbcast.lane.b32.xlu0 %v1608_v13, 288 }
 0x51b   : > { %v12287_v25 = vpop.permute.xlu0 %1381  ;;  %v12289_v44 = vpop.permute.xlu1 %1385 }
 0x51c   : > { %17803 = vst [vmem:[#allocation110_spill] sm:$0xff] %v12287_v25  ;;  %17804 = vst [vmem:[#allocation111_spill] sm:$0xff] %v12289_v44 }
 0x51d   : > { %1638 = vbcast.lane.b32.xlu1 %v1608_v13, 312  ;;  %1634 = vbcast.lane.b32.xlu0 %v1608_v13, 304 }
 0x51f   : > { %v12293_v19 = vpop.permute.xlu0 %1389  ;;  %v12295_v55 = vpop.permute.xlu1 %1393 }
 0x520   : > { %17805 = vst [vmem:[#allocation112_spill] sm:$0xff] %v12293_v19  ;;  %17806 = vst [vmem:[#allocation113_spill] sm:$0xff] %v12295_v55  ;;  %v1678_v55 = vrot.slane %v12285_v27, %v17773_v62 }
 0x521   : > { %1649 = vbcast.lane.b32.xlu1 %v1643_v11, 264  ;;  %1645 = vbcast.lane.b32.xlu0 %v1643_v11, 256 }
 0x523   : > { %v12297_v37 = vpop.permute.xlu0 %1400  ;;  %v12299_v45 = vpop.permute.xlu1 %1404 }
 0x524   : > { %17807 = vst [vmem:[#allocation114_spill] sm:$0xff] %v12297_v37  ;;  %17808 = vst [vmem:[#allocation115_spill] sm:$0xff] %v12299_v45 }
 0x525   : > { %1657 = vbcast.lane.b32.xlu1 %v1643_v11, 280  ;;  %1653 = vbcast.lane.b32.xlu0 %v1643_v11, 272 }
 0x527   : > { %v12301_v25 = vpop.permute.xlu0 %1408  ;;  %v12303_v44 = vpop.permute.xlu1 %1412 }
 0x528   : > { %17809 = vst [vmem:[#allocation116_spill] sm:$0xff] %v12301_v25  ;;  %17810 = vst [vmem:[#allocation117_spill] sm:$0xff] %v12303_v44 }
 0x529   : > { %1665 = vbcast.lane.b32.xlu1 %v1643_v11, 296  ;;  %1661 = vbcast.lane.b32.xlu0 %v1643_v11, 288 }
 0x52b   : > { %v12305_v13 = vpop.permute.xlu0 %1416  ;;  %v12307_v39 = vpop.permute.xlu1 %1420 }
 0x52c   : > { %17811 = vst [vmem:[#allocation118_spill] sm:$0xff] %v12305_v13  ;;  %17812 = vst [vmem:[#allocation119_spill] sm:$0xff] %v12307_v39 }
 0x52d   : > { %1673 = vbcast.lane.b32.xlu1 %v1643_v11, 312  ;;  %1669 = vbcast.lane.b32.xlu0 %v1643_v11, 304 }
 0x52f   : > { %v12311_v37 = vpop.permute.xlu0 %1424  ;;  %v12313_v45 = vpop.permute.xlu1 %1428 }
 0x530   : > { %17813 = vst [vmem:[#allocation120_spill] sm:$0xff] %v12311_v37  ;;  %17814 = vst [vmem:[#allocation121_spill] sm:$0xff] %v12313_v45  ;;  %v1713_v45 = vrot.slane %v12285_v27, %v17772_v6 }
 0x531   : > { %1684 = vbcast.lane.b32.xlu1 %v1678_v55, 264  ;;  %1680 = vbcast.lane.b32.xlu0 %v1678_v55, 256 }
 0x533   : > { %v12315_v25 = vpop.permute.xlu0 %1435  ;;  %v12317_v44 = vpop.permute.xlu1 %1439 }
 0x534   : > { %17815 = vst [vmem:[#allocation122_spill] sm:$0xff] %v12315_v25  ;;  %17816 = vst [vmem:[#allocation123_spill] sm:$0xff] %v12317_v44 }
 0x535   : > { %1692 = vbcast.lane.b32.xlu1 %v1678_v55, 280  ;;  %1688 = vbcast.lane.b32.xlu0 %v1678_v55, 272 }
 0x537   : > { %v12319_v13 = vpop.permute.xlu0 %1443  ;;  %v12321_v39 = vpop.permute.xlu1 %1447 }
 0x538   : > { %17817 = vst [vmem:[#allocation124_spill] sm:$0xff] %v12319_v13  ;;  %17818 = vst [vmem:[#allocation125_spill] sm:$0xff] %v12321_v39 }
 0x539   : > { %1700 = vbcast.lane.b32.xlu1 %v1678_v55, 296  ;;  %1696 = vbcast.lane.b32.xlu0 %v1678_v55, 288 }
 0x53b   : > { %v12323_v11 = vpop.permute.xlu0 %1451  ;;  %v12325_v19 = vpop.permute.xlu1 %1455 }
 0x53c   : > { %17819 = vst [vmem:[#allocation126_spill] sm:$0xff] %v12323_v11  ;;  %17820 = vst [vmem:[#allocation127_spill] sm:$0xff] %v12325_v19 }
 0x53d   : > { %1708 = vbcast.lane.b32.xlu1 %v1678_v55, 312  ;;  %1704 = vbcast.lane.b32.xlu0 %v1678_v55, 304 }
 0x53f   : > { %v12329_v25 = vpop.permute.xlu0 %1459  ;;  %v12331_v44 = vpop.permute.xlu1 %1463 }
 0x540   : > { %17821 = vst [vmem:[#allocation128_spill] sm:$0xff] %v12329_v25  ;;  %17822 = vst [vmem:[#allocation129_spill] sm:$0xff] %v12331_v44  ;;  %v1748_v44 = vrot.slane %v12285_v27, %v12105_v58 }
 0x541   : > { %1719 = vbcast.lane.b32.xlu1 %v1713_v45, 264  ;;  %1715 = vbcast.lane.b32.xlu0 %v1713_v45, 256 }
 0x543   : > { %v12333_v13 = vpop.permute.xlu0 %1470  ;;  %v12335_v39 = vpop.permute.xlu1 %1474 }
 0x544   : > { %17823 = vst [vmem:[#allocation130_spill] sm:$0xff] %v12333_v13  ;;  %17824 = vst [vmem:[#allocation131_spill] sm:$0xff] %v12335_v39 }
 0x545   : > { %1727 = vbcast.lane.b32.xlu1 %v1713_v45, 280  ;;  %1723 = vbcast.lane.b32.xlu0 %v1713_v45, 272 }
 0x547   : > { %v12337_v11 = vpop.permute.xlu0 %1478  ;;  %v12339_v19 = vpop.permute.xlu1 %1482 }
 0x548   : > { %17825 = vst [vmem:[#allocation132_spill] sm:$0xff] %v12337_v11  ;;  %17826 = vst [vmem:[#allocation133_spill] sm:$0xff] %v12339_v19 }
 0x549   : > { %1735 = vbcast.lane.b32.xlu1 %v1713_v45, 296  ;;  %1731 = vbcast.lane.b32.xlu0 %v1713_v45, 288 }
 0x54b   : > { %v12341_v55 = vpop.permute.xlu0 %1486  ;;  %v12343_v37 = vpop.permute.xlu1 %1490 }
 0x54c   : > { %17827 = vst [vmem:[#allocation134_spill] sm:$0xff] %v12341_v55  ;;  %17828 = vst [vmem:[#allocation135_spill] sm:$0xff] %v12343_v37 }
 0x54d   : > { %1743 = vbcast.lane.b32.xlu1 %v1713_v45, 312  ;;  %1739 = vbcast.lane.b32.xlu0 %v1713_v45, 304 }
 0x54f   : > { %v12347_v13 = vpop.permute.xlu0 %1494  ;;  %v12349_v39 = vpop.permute.xlu1 %1498 }
 0x550   : > { %17829 = vst [vmem:[#allocation136_spill] sm:$0xff] %v12347_v13  ;;  %17830 = vst [vmem:[#allocation137_spill] sm:$0xff] %v12349_v39  ;;  %v1783_v39 = vrot.slane %v12285_v27, %v12110_v59 }
 0x551   : > { %1754 = vbcast.lane.b32.xlu1 %v1748_v44, 264  ;;  %1750 = vbcast.lane.b32.xlu0 %v1748_v44, 256 }
 0x553   : > { %v12351_v11 = vpop.permute.xlu0 %1505  ;;  %v12353_v19 = vpop.permute.xlu1 %1509 }
 0x554   : > { %17831 = vst [vmem:[#allocation138_spill] sm:$0xff] %v12351_v11  ;;  %17832 = vst [vmem:[#allocation139_spill] sm:$0xff] %v12353_v19 }
 0x555   : > { %1762 = vbcast.lane.b32.xlu1 %v1748_v44, 280  ;;  %1758 = vbcast.lane.b32.xlu0 %v1748_v44, 272 }
 0x557   : > { %v12355_v55 = vpop.permute.xlu0 %1513  ;;  %v12357_v37 = vpop.permute.xlu1 %1517 }
 0x558   : > { %17833 = vst [vmem:[#allocation140_spill] sm:$0xff] %v12355_v55  ;;  %17834 = vst [vmem:[#allocation141_spill] sm:$0xff] %v12357_v37 }
 0x559   : > { %1770 = vbcast.lane.b32.xlu1 %v1748_v44, 296  ;;  %1766 = vbcast.lane.b32.xlu0 %v1748_v44, 288 }
 0x55b   : > { %v12359_v45 = vpop.permute.xlu0 %1521  ;;  %v12361_v25 = vpop.permute.xlu1 %1525 }
 0x55c   : > { %17835 = vst [vmem:[#allocation142_spill] sm:$0xff] %v12359_v45  ;;  %17836 = vst [vmem:[#allocation143_spill] sm:$0xff] %v12361_v25 }
 0x55d   : > { %1778 = vbcast.lane.b32.xlu1 %v1748_v44, 312  ;;  %1774 = vbcast.lane.b32.xlu0 %v1748_v44, 304 }
 0x55f   : > { %v12365_v11 = vpop.permute.xlu0 %1529  ;;  %v12367_v19 = vpop.permute.xlu1 %1533 }
 0x560   : > { %17837 = vst [vmem:[#allocation144_spill] sm:$0xff] %v12365_v11  ;;  %17838 = vst [vmem:[#allocation145_spill] sm:$0xff] %v12367_v19  ;;  %v1818_v19 = vrot.slane %v12285_v27, %v12115_v31 }
 0x561   : > { %1789 = vbcast.lane.b32.xlu1 %v1783_v39, 264  ;;  %1785 = vbcast.lane.b32.xlu0 %v1783_v39, 256 }
 0x563   : > { %v12369_v55 = vpop.permute.xlu0 %1540  ;;  %v12371_v37 = vpop.permute.xlu1 %1544 }
 0x564   : > { %17839 = vst [vmem:[#allocation146_spill] sm:$0xff] %v12369_v55  ;;  %17840 = vst [vmem:[#allocation147_spill] sm:$0xff] %v12371_v37 }
 0x565   : > { %1797 = vbcast.lane.b32.xlu1 %v1783_v39, 280  ;;  %1793 = vbcast.lane.b32.xlu0 %v1783_v39, 272 }
 0x567   : > { %v12373_v45 = vpop.permute.xlu0 %1548  ;;  %v12375_v25 = vpop.permute.xlu1 %1552 }
 0x568   : > { %17841 = vst [vmem:[#allocation148_spill] sm:$0xff] %v12373_v45  ;;  %17842 = vst [vmem:[#allocation149_spill] sm:$0xff] %v12375_v25 }
 0x569   : > { %1805 = vbcast.lane.b32.xlu1 %v1783_v39, 296  ;;  %1801 = vbcast.lane.b32.xlu0 %v1783_v39, 288 }
 0x56b   : > { %v12377_v44 = vpop.permute.xlu0 %1556  ;;  %v12379_v13 = vpop.permute.xlu1 %1560 }
 0x56c   : > { %17843 = vst [vmem:[#allocation150_spill] sm:$0xff] %v12377_v44  ;;  %17844 = vst [vmem:[#allocation151_spill] sm:$0xff] %v12379_v13 }
 0x56d   : > { %1813 = vbcast.lane.b32.xlu1 %v1783_v39, 312  ;;  %1809 = vbcast.lane.b32.xlu0 %v1783_v39, 304 }
 0x56f   : > { %v12383_v55 = vpop.permute.xlu0 %1564  ;;  %v12385_v37 = vpop.permute.xlu1 %1568 }
 0x570   : > { %17845 = vst [vmem:[#allocation152_spill] sm:$0xff] %v12383_v55  ;;  %17846 = vst [vmem:[#allocation153_spill] sm:$0xff] %v12385_v37  ;;  %v1853_v37 = vrot.slane %v12285_v27, %v12120_v36 }
 0x571   : > { %1824 = vbcast.lane.b32.xlu1 %v1818_v19, 264  ;;  %1820 = vbcast.lane.b32.xlu0 %v1818_v19, 256 }
 0x573   : > { %v12387_v45 = vpop.permute.xlu0 %1575  ;;  %v12389_v25 = vpop.permute.xlu1 %1579 }
 0x574   : > { %17847 = vst [vmem:[#allocation154_spill] sm:$0xff] %v12387_v45  ;;  %17848 = vst [vmem:[#allocation155_spill] sm:$0xff] %v12389_v25 }
 0x575   : > { %1832 = vbcast.lane.b32.xlu1 %v1818_v19, 280  ;;  %1828 = vbcast.lane.b32.xlu0 %v1818_v19, 272 }
 0x577   : > { %v12391_v44 = vpop.permute.xlu0 %1583  ;;  %v12393_v13 = vpop.permute.xlu1 %1587 }
 0x578   : > { %17849 = vst [vmem:[#allocation156_spill] sm:$0xff] %v12391_v44  ;;  %17850 = vst [vmem:[#allocation157_spill] sm:$0xff] %v12393_v13 }
 0x579   : > { %1840 = vbcast.lane.b32.xlu1 %v1818_v19, 296  ;;  %1836 = vbcast.lane.b32.xlu0 %v1818_v19, 288 }
 0x57b   : > { %v12395_v39 = vpop.permute.xlu0 %1591  ;;  %v12397_v11 = vpop.permute.xlu1 %1595 }
 0x57c   : > { %17851 = vst [vmem:[#allocation158_spill] sm:$0xff] %v12395_v39  ;;  %17852 = vst [vmem:[#allocation159_spill] sm:$0xff] %v12397_v11 }
 0x57d   : > { %1848 = vbcast.lane.b32.xlu1 %v1818_v19, 312  ;;  %1844 = vbcast.lane.b32.xlu0 %v1818_v19, 304 }
 0x57f   : > { %v12401_v45 = vpop.permute.xlu0 %1599  ;;  %v12403_v25 = vpop.permute.xlu1 %1603 }
 0x580   : > { %17853 = vst [vmem:[#allocation160_spill] sm:$0xff] %v12401_v45  ;;  %17854 = vst [vmem:[#allocation161_spill] sm:$0xff] %v12403_v25 }
 0x581   : > { %1859 = vbcast.lane.b32.xlu1 %v1853_v37, 264  ;;  %1855 = vbcast.lane.b32.xlu0 %v1853_v37, 256 }
 0x583   : > { %v12405_v44 = vpop.permute.xlu0 %1610  ;;  %v12407_v13 = vpop.permute.xlu1 %1614 }
 0x584   : > { %17855 = vst [vmem:[#allocation162_spill] sm:$0xff] %v12405_v44  ;;  %17856 = vst [vmem:[#allocation163_spill] sm:$0xff] %v12407_v13  ;;  %v1888_v44 = vrot.slane %v12285_v27, %v12125_v32 }
 0x585   : > { %1867 = vbcast.lane.b32.xlu1 %v1853_v37, 280  ;;  %1863 = vbcast.lane.b32.xlu0 %v1853_v37, 272 }
 0x587   : > { %v12409_v39 = vpop.permute.xlu0 %1618  ;;  %v12411_v11 = vpop.permute.xlu1 %1622 }
 0x588   : > { %17857 = vst [vmem:[#allocation164_spill] sm:$0xff] %v12409_v39  ;;  %17858 = vst [vmem:[#allocation165_spill] sm:$0xff] %v12411_v11 }
 0x589   : > { %1875 = vbcast.lane.b32.xlu1 %v1853_v37, 296  ;;  %1871 = vbcast.lane.b32.xlu0 %v1853_v37, 288 }
 0x58b   : > { %v12413_v19 = vpop.permute.xlu0 %1626  ;;  %v12415_v55 = vpop.permute.xlu1 %1630 }
 0x58c   : > { %17859 = vst [vmem:[#allocation166_spill] sm:$0xff] %v12413_v19  ;;  %17860 = vst [vmem:[#allocation167_spill] sm:$0xff] %v12415_v55 }
 0x58d   : > { %1883 = vbcast.lane.b32.xlu1 %v1853_v37, 312  ;;  %1879 = vbcast.lane.b32.xlu0 %v1853_v37, 304  ;;  %v12432_v37 = vld [vmem:[%s12093_s13 + $0x18] sm:$0xff] }
 0x58f   : > { %v12419_v25 = vpop.permute.xlu0 %1634  ;;  %v12421_v13 = vpop.permute.xlu1 %1638 }
 0x590   : > { %17861 = vst [vmem:[#allocation168_spill] sm:$0xff] %v12419_v25  ;;  %17862 = vst [vmem:[#allocation169_spill] sm:$0xff] %v12421_v13 }
 0x591   : > { %1894 = vbcast.lane.b32.xlu1 %v1888_v44, 264  ;;  %1890 = vbcast.lane.b32.xlu0 %v1888_v44, 256 }
 0x593   : > { %v12423_v39 = vpop.permute.xlu0 %1645  ;;  %v12425_v11 = vpop.permute.xlu1 %1649 }
 0x594   : > { %17863 = vst [vmem:[#allocation170_spill] sm:$0xff] %v12423_v39  ;;  %17864 = vst [vmem:[#allocation171_spill] sm:$0xff] %v12425_v11  ;;  %v1923_v39 = vrot.slane %v12432_v37, %v11859_v4 }
 0x595   : > { %1902 = vbcast.lane.b32.xlu1 %v1888_v44, 280  ;;  %1898 = vbcast.lane.b32.xlu0 %v1888_v44, 272 }
 0x597   : > { %v12427_v19 = vpop.permute.xlu0 %1653  ;;  %v12429_v55 = vpop.permute.xlu1 %1657 }
 0x598   : > { %17865 = vst [vmem:[#allocation172_spill] sm:$0xff] %v12427_v19  ;;  %17866 = vst [vmem:[#allocation173_spill] sm:$0xff] %v12429_v55 }
 0x599   : > { %1910 = vbcast.lane.b32.xlu1 %v1888_v44, 296  ;;  %1906 = vbcast.lane.b32.xlu0 %v1888_v44, 288 }
 0x59b   : > { %v12434_v27 = vpop.permute.xlu0 %1661  ;;  %v12436_v25 = vpop.permute.xlu1 %1665 }
 0x59c   : > { %17867 = vst [vmem:[#allocation174_spill] sm:$0xff] %v12434_v27  ;;  %17868 = vst [vmem:[#allocation175_spill] sm:$0xff] %v12436_v25 }
 0x59d   : > { %1918 = vbcast.lane.b32.xlu1 %v1888_v44, 312  ;;  %1914 = vbcast.lane.b32.xlu0 %v1888_v44, 304 }
 0x59f   : > { %v12440_v11 = vpop.permute.xlu0 %1669  ;;  %v12442_v13 = vpop.permute.xlu1 %1673 }
 0x5a0   : > { %17869 = vst [vmem:[#allocation176_spill] sm:$0xff] %v12442_v13  ;;  %v1958_v13 = vrot.slane %v12432_v37, %v17773_v62 }
 0x5a1   : > { %1929 = vbcast.lane.b32.xlu1 %v1923_v39, 264  ;;  %1925 = vbcast.lane.b32.xlu0 %v1923_v39, 256 }
 0x5a3   : > { %v12444_v55 = vpop.permute.xlu0 %1680  ;;  %v12446_v19 = vpop.permute.xlu1 %1684 }
 0x5a4   : > { %17870 = vst [vmem:[#allocation177_spill] sm:$0xff] %v12444_v55  ;;  %17871 = vst [vmem:[#allocation178_spill] sm:$0xff] %v12446_v19 }
 0x5a5   : > { %1937 = vbcast.lane.b32.xlu1 %v1923_v39, 280  ;;  %1933 = vbcast.lane.b32.xlu0 %v1923_v39, 272 }
 0x5a7   : > { %v12448_v27 = vpop.permute.xlu0 %1688  ;;  %v12450_v25 = vpop.permute.xlu1 %1692 }
 0x5a8   : > { %17872 = vst [vmem:[#allocation179_spill] sm:$0xff] %v12448_v27  ;;  %17873 = vst [vmem:[#allocation180_spill] sm:$0xff] %v12450_v25 }
 0x5a9   : > { %1945 = vbcast.lane.b32.xlu1 %v1923_v39, 296  ;;  %1941 = vbcast.lane.b32.xlu0 %v1923_v39, 288 }
 0x5ab   : > { %v12452_v44 = vpop.permute.xlu0 %1696  ;;  %v12454_v45 = vpop.permute.xlu1 %1700 }
 0x5ac   : > { %17874 = vst [vmem:[#allocation181_spill] sm:$0xff] %v12452_v44  ;;  %17875 = vst [vmem:[#allocation182_spill] sm:$0xff] %v12454_v45 }
 0x5ad   : > { %1953 = vbcast.lane.b32.xlu1 %v1923_v39, 312  ;;  %1949 = vbcast.lane.b32.xlu0 %v1923_v39, 304 }
 0x5af   : > { %v12458_v55 = vpop.permute.xlu0 %1704  ;;  %v12460_v19 = vpop.permute.xlu1 %1708 }
 0x5b0   : > { %17876 = vst [vmem:[#allocation183_spill] sm:$0xff] %v12460_v19  ;;  %v1993_v19 = vrot.slane %v12432_v37, %v17772_v6 }
 0x5b1   : > { %1964 = vbcast.lane.b32.xlu1 %v1958_v13, 264  ;;  %1960 = vbcast.lane.b32.xlu0 %v1958_v13, 256 }
 0x5b3   : > { %v12462_v27 = vpop.permute.xlu0 %1715  ;;  %v12464_v25 = vpop.permute.xlu1 %1719 }
 0x5b4   : > { %17877 = vst [vmem:[#allocation184_spill] sm:$0xff] %v12462_v27  ;;  %17878 = vst [vmem:[#allocation185_spill] sm:$0xff] %v12464_v25 }
 0x5b5   : > { %1972 = vbcast.lane.b32.xlu1 %v1958_v13, 280  ;;  %1968 = vbcast.lane.b32.xlu0 %v1958_v13, 272 }
 0x5b7   : > { %v12466_v44 = vpop.permute.xlu0 %1723  ;;  %v12468_v45 = vpop.permute.xlu1 %1727 }
 0x5b8   : > { %17879 = vst [vmem:[#allocation186_spill] sm:$0xff] %v12466_v44  ;;  %17880 = vst [vmem:[#allocation187_spill] sm:$0xff] %v12468_v45 }
 0x5b9   : > { %1980 = vbcast.lane.b32.xlu1 %v1958_v13, 296  ;;  %1976 = vbcast.lane.b32.xlu0 %v1958_v13, 288 }
 0x5bb   : > { %v12470_v39 = vpop.permute.xlu0 %1731  ;;  %v12472_v62 = vpop.permute.xlu1 %1735 }
 0x5bc   : > { %17881 = vst [vmem:[#allocation188_spill] sm:$0xff] %v12470_v39  ;;  %17882 = vst [vmem:[#allocation189_spill] sm:$0xff] %v12472_v62 }
 0x5bd   : > { %1988 = vbcast.lane.b32.xlu1 %v1958_v13, 312  ;;  %1984 = vbcast.lane.b32.xlu0 %v1958_v13, 304 }
 0x5bf   : > { %v12476_v27 = vpop.permute.xlu0 %1739  ;;  %v12478_v25 = vpop.permute.xlu1 %1743 }
 0x5c0   : > { %17883 = vst [vmem:[#allocation190_spill] sm:$0xff] %v12478_v25  ;;  %v2028_v25 = vrot.slane %v12432_v37, %v12105_v58 }
 0x5c1   : > { %1999 = vbcast.lane.b32.xlu1 %v1993_v19, 264  ;;  %1995 = vbcast.lane.b32.xlu0 %v1993_v19, 256 }
 0x5c3   : > { %v12480_v44 = vpop.permute.xlu0 %1750  ;;  %v12482_v45 = vpop.permute.xlu1 %1754 }
 0x5c4   : > { %17884 = vst [vmem:[#allocation191_spill] sm:$0xff] %v12480_v44  ;;  %17885 = vst [vmem:[#allocation192_spill] sm:$0xff] %v12482_v45 }
 0x5c5   : > { %2007 = vbcast.lane.b32.xlu1 %v1993_v19, 280  ;;  %2003 = vbcast.lane.b32.xlu0 %v1993_v19, 272 }
 0x5c7   : > { %v12484_v39 = vpop.permute.xlu0 %1758  ;;  %v12486_v62 = vpop.permute.xlu1 %1762 }
 0x5c8   : > { %17886 = vst [vmem:[#allocation193_spill] sm:$0xff] %v12484_v39  ;;  %17887 = vst [vmem:[#allocation194_spill] sm:$0xff] %v12486_v62 }
 0x5c9   : > { %2015 = vbcast.lane.b32.xlu1 %v1993_v19, 296  ;;  %2011 = vbcast.lane.b32.xlu0 %v1993_v19, 288 }
 0x5cb   : > { %v12488_v13 = vpop.permute.xlu0 %1766  ;;  %v12490_v6 = vpop.permute.xlu1 %1770 }
 0x5cc   : > { %17888 = vst [vmem:[#allocation195_spill] sm:$0xff] %v12488_v13  ;;  %17889 = vst [vmem:[#allocation196_spill] sm:$0xff] %v12490_v6 }
 0x5cd   : > { %2023 = vbcast.lane.b32.xlu1 %v1993_v19, 312  ;;  %2019 = vbcast.lane.b32.xlu0 %v1993_v19, 304 }
 0x5cf   : > { %v12494_v44 = vpop.permute.xlu0 %1774  ;;  %v12496_v45 = vpop.permute.xlu1 %1778 }
 0x5d0   : > { %17890 = vst [vmem:[#allocation197_spill] sm:$0xff] %v12496_v45  ;;  %v2063_v45 = vrot.slane %v12432_v37, %v12110_v59 }
 0x5d1   : > { %2034 = vbcast.lane.b32.xlu1 %v2028_v25, 264  ;;  %2030 = vbcast.lane.b32.xlu0 %v2028_v25, 256 }
 0x5d3   : > { %v12498_v39 = vpop.permute.xlu0 %1785  ;;  %v12500_v62 = vpop.permute.xlu1 %1789 }
 0x5d4   : > { %17891 = vst [vmem:[#allocation198_spill] sm:$0xff] %v12498_v39  ;;  %17892 = vst [vmem:[#allocation199_spill] sm:$0xff] %v12500_v62 }
 0x5d5   : > { %2042 = vbcast.lane.b32.xlu1 %v2028_v25, 280  ;;  %2038 = vbcast.lane.b32.xlu0 %v2028_v25, 272 }
 0x5d7   : > { %v12502_v13 = vpop.permute.xlu0 %1793  ;;  %v12504_v6 = vpop.permute.xlu1 %1797 }
 0x5d8   : > { %17893 = vst [vmem:[#allocation200_spill] sm:$0xff] %v12502_v13  ;;  %17894 = vst [vmem:[#allocation201_spill] sm:$0xff] %v12504_v6 }
 0x5d9   : > { %2050 = vbcast.lane.b32.xlu1 %v2028_v25, 296  ;;  %2046 = vbcast.lane.b32.xlu0 %v2028_v25, 288 }
 0x5db   : > { %v12506_v19 = vpop.permute.xlu0 %1801  ;;  %v12508_v58 = vpop.permute.xlu1 %1805 }
 0x5dc   : > { %17895 = vst [vmem:[#allocation202_spill] sm:$0xff] %v12506_v19  ;;  %17896 = vst [vmem:[#allocation203_spill] sm:$0xff] %v12508_v58 }
 0x5dd   : > { %2058 = vbcast.lane.b32.xlu1 %v2028_v25, 312  ;;  %2054 = vbcast.lane.b32.xlu0 %v2028_v25, 304 }
 0x5df   : > { %v12512_v39 = vpop.permute.xlu0 %1809  ;;  %v12514_v62 = vpop.permute.xlu1 %1813 }
 0x5e0   : > { %17897 = vst [vmem:[#allocation204_spill] sm:$0xff] %v12514_v62  ;;  %v2098_v62 = vrot.slane %v12432_v37, %v12115_v31 }
 0x5e1   : > { %2069 = vbcast.lane.b32.xlu1 %v2063_v45, 264  ;;  %2065 = vbcast.lane.b32.xlu0 %v2063_v45, 256 }
 0x5e3   : > { %v12516_v13 = vpop.permute.xlu0 %1820  ;;  %v12518_v6 = vpop.permute.xlu1 %1824 }
 0x5e4   : > { %17898 = vst [vmem:[#allocation205_spill] sm:$0xff] %v12516_v13  ;;  %17899 = vst [vmem:[#allocation206_spill] sm:$0xff] %v12518_v6 }
 0x5e5   : > { %2077 = vbcast.lane.b32.xlu1 %v2063_v45, 280  ;;  %2073 = vbcast.lane.b32.xlu0 %v2063_v45, 272 }
 0x5e7   : > { %v12520_v19 = vpop.permute.xlu0 %1828  ;;  %v12522_v58 = vpop.permute.xlu1 %1832 }
 0x5e8   : > { %17900 = vst [vmem:[#allocation207_spill] sm:$0xff] %v12520_v19  ;;  %17901 = vst [vmem:[#allocation208_spill] sm:$0xff] %v12522_v58 }
 0x5e9   : > { %2085 = vbcast.lane.b32.xlu1 %v2063_v45, 296  ;;  %2081 = vbcast.lane.b32.xlu0 %v2063_v45, 288 }
 0x5eb   : > { %v12524_v25 = vpop.permute.xlu0 %1836  ;;  %v12526_v59 = vpop.permute.xlu1 %1840 }
 0x5ec   : > { %17902 = vst [vmem:[#allocation209_spill] sm:$0xff] %v12524_v25  ;;  %17903 = vst [vmem:[#allocation210_spill] sm:$0xff] %v12526_v59 }
 0x5ed   : > { %2093 = vbcast.lane.b32.xlu1 %v2063_v45, 312  ;;  %2089 = vbcast.lane.b32.xlu0 %v2063_v45, 304 }
 0x5ef   : > { %v12530_v13 = vpop.permute.xlu0 %1844  ;;  %v12532_v6 = vpop.permute.xlu1 %1848 }
 0x5f0   : > { %17904 = vst [vmem:[#allocation211_spill] sm:$0xff] %v12530_v13  ;;  %17905 = vst [vmem:[#allocation212_spill] sm:$0xff] %v12532_v6  ;;  %v2133_v6 = vrot.slane %v12432_v37, %v12120_v36 }
 0x5f1   : > { %2104 = vbcast.lane.b32.xlu1 %v2098_v62, 264  ;;  %2100 = vbcast.lane.b32.xlu0 %v2098_v62, 256 }
 0x5f3   : > { %v12534_v19 = vpop.permute.xlu0 %1855  ;;  %v12536_v58 = vpop.permute.xlu1 %1859 }
 0x5f4   : > { %17906 = vst [vmem:[#allocation213_spill] sm:$0xff] %v12534_v19  ;;  %17907 = vst [vmem:[#allocation214_spill] sm:$0xff] %v12536_v58 }
 0x5f5   : > { %2112 = vbcast.lane.b32.xlu1 %v2098_v62, 280  ;;  %2108 = vbcast.lane.b32.xlu0 %v2098_v62, 272 }
 0x5f7   : > { %v12538_v25 = vpop.permute.xlu0 %1863  ;;  %v12540_v59 = vpop.permute.xlu1 %1867 }
 0x5f8   : > { %17908 = vst [vmem:[#allocation215_spill] sm:$0xff] %v12538_v25  ;;  %17909 = vst [vmem:[#allocation216_spill] sm:$0xff] %v12540_v59 }
 0x5f9   : > { %2120 = vbcast.lane.b32.xlu1 %v2098_v62, 296  ;;  %2116 = vbcast.lane.b32.xlu0 %v2098_v62, 288 }
 0x5fb   : > { %v12542_v45 = vpop.permute.xlu0 %1871  ;;  %v12544_v31 = vpop.permute.xlu1 %1875 }
 0x5fc   : > { %17910 = vst [vmem:[#allocation217_spill] sm:$0xff] %v12542_v45  ;;  %17911 = vst [vmem:[#allocation218_spill] sm:$0xff] %v12544_v31 }
 0x5fd   : > { %2128 = vbcast.lane.b32.xlu1 %v2098_v62, 312  ;;  %2124 = vbcast.lane.b32.xlu0 %v2098_v62, 304 }
 0x5ff   : > { %v12548_v19 = vpop.permute.xlu0 %1879  ;;  %v12550_v58 = vpop.permute.xlu1 %1883 }
 0x600   : > { %17912 = vst [vmem:[#allocation219_spill] sm:$0xff] %v12548_v19  ;;  %17913 = vst [vmem:[#allocation220_spill] sm:$0xff] %v12550_v58  ;;  %v2168_v58 = vrot.slane %v12432_v37, %v12125_v32  ;;  %v11705_v32 = vmov 1966171168  }
 0x601   : > { %2139 = vbcast.lane.b32.xlu1 %v2133_v6, 264  ;;  %2135 = vbcast.lane.b32.xlu0 %v2133_v6, 256 }
 0x603   : > { %v12552_v25 = vpop.permute.xlu0 %1890  ;;  %v12554_v59 = vpop.permute.xlu1 %1894 }
 0x604   : > { %17914 = vst [vmem:[#allocation221_spill] sm:$0xff] %v12552_v25  ;;  %17915 = vst [vmem:[#allocation222_spill] sm:$0xff] %v12554_v59 }
 0x605   : > { %2147 = vbcast.lane.b32.xlu1 %v2133_v6, 280  ;;  %2143 = vbcast.lane.b32.xlu0 %v2133_v6, 272 }
 0x607   : > { %v12556_v45 = vpop.permute.xlu0 %1898  ;;  %v12558_v31 = vpop.permute.xlu1 %1902 }
 0x608   : > { %17916 = vst [vmem:[#allocation223_spill] sm:$0xff] %v12556_v45  ;;  %17917 = vst [vmem:[#allocation224_spill] sm:$0xff] %v12558_v31 }
 0x609   : > { %2155 = vbcast.lane.b32.xlu1 %v2133_v6, 296  ;;  %2151 = vbcast.lane.b32.xlu0 %v2133_v6, 288 }
 0x60b   : > { %v12560_v62 = vpop.permute.xlu0 %1906  ;;  %v12562_v36 = vpop.permute.xlu1 %1910 }
 0x60c   : > { %17918 = vst [vmem:[#allocation225_spill] sm:$0xff] %v12560_v62  ;;  %17919 = vst [vmem:[#allocation226_spill] sm:$0xff] %v12562_v36 }
 0x60d   : > { %2163 = vbcast.lane.b32.xlu1 %v2133_v6, 312  ;;  %2159 = vbcast.lane.b32.xlu0 %v2133_v6, 304 }
 0x60f   : > { %v12566_v25 = vpop.permute.xlu0 %1914  ;;  %v12568_v59 = vpop.permute.xlu1 %1918 }
 0x610   : > { %17920 = vst [vmem:[#allocation227_spill] sm:$0xff] %v12566_v25  ;;  %17921 = vst [vmem:[#allocation228_spill] sm:$0xff] %v12568_v59  ;;  %v886_v59 = vunpack.c.l.s4 %v11705_v32 }
 0x611   : > { %2174 = vbcast.lane.b32.xlu1 %v2168_v58, 264  ;;  %2170 = vbcast.lane.b32.xlu0 %v2168_v58, 256 }
 0x613   : > { %v12570_v45 = vpop.permute.xlu0 %1925  ;;  %v12572_v31 = vpop.permute.xlu1 %1929 }
 0x614   : > { %17922 = vst [vmem:[#allocation229_spill] sm:$0xff] %v12570_v45  ;;  %17923 = vst [vmem:[#allocation230_spill] sm:$0xff] %v12572_v31  ;;  %v887_v31 = vunpack.c.0.s8 %v886_v59 }
 0x615   : > { %2182 = vbcast.lane.b32.xlu1 %v2168_v58, 280  ;;  %2178 = vbcast.lane.b32.xlu0 %v2168_v58, 272 }
 0x617   : > { %v12574_v62 = vpop.permute.xlu0 %1933  ;;  %v12576_v36 = vpop.permute.xlu1 %1937 }
 0x618   : > { %17924 = vst [vmem:[#allocation231_spill] sm:$0xff] %v12574_v62  ;;  %17925 = vst [vmem:[#allocation232_spill] sm:$0xff] %v12576_v36  ;;  %v12591_v36 = vsub.s32 %v887_v31, %v17771_v3 }
 0x619   : > { %2190 = vbcast.lane.b32.xlu1 %v2168_v58, 296  ;;  %2186 = vbcast.lane.b32.xlu0 %v2168_v58, 288 }
 0x61b   : > { %v12578_v6 = vpop.permute.xlu0 %1941  ;;  %v12580_v37 = vpop.permute.xlu1 %1945 }
 0x61c   : > { %17926 = vst [vmem:[#allocation233_spill] sm:$0xff] %v12580_v37  ;;  %v891_v37 = vrot.slane %v12096_v40, %v12591_v36  ;;  %v17635_v40 = vmov 0.0  }
 0x61d   : > { %2198 = vbcast.lane.b32.xlu1 %v2168_v58, 312  ;;  %2194 = vbcast.lane.b32.xlu0 %v2168_v58, 304 }
 0x61f   : > { %v12582_v25 = vpop.permute.xlu0 %1949  ;;  %v12584_v45 = vpop.permute.xlu1 %1953 }
 0x620   : > { %17927 = vst [vmem:[#allocation234_spill] sm:$0xff] %v12582_v25  ;;  %17928 = vst [vmem:[#allocation235_spill] sm:$0xff] %v12584_v45  ;;  %v12602_v25 = vrot.slane %v891_v37, %v12591_v36 }
 0x623   : > { %v12586_v19 = vpop.permute.xlu0 %1960  ;;  %v12588_v62 = vpop.permute.xlu1 %1964 }
 0x624   : > { %17929 = vst [vmem:[#allocation236_spill] sm:$0xff] %v12586_v19  ;;  %17930 = vst [vmem:[#allocation237_spill] sm:$0xff] %v12588_v62  ;;  %v2203_v62 = vrot.slane %v12602_v25, %v11859_v4 }
 0x626   : > { %vm2360_vm9 = vcmp.gt.f32.partialorder %v2203_v62, %v12129_v41  ;;  %vm2362_vm10 = vcmp.gt.f32.partialorder %v2203_v62, %v12131_v18  ;;  %vm2361_vm11 = vcmp.gt.f32.partialorder %v2203_v62, %v12133_v17  ;;  %vm2363_vm12 = vcmp.gt.f32.partialorder %v2203_v62, %v12135_v20 }
 0x627   : > { %v12593_v13 = vpop.permute.xlu0 %1968  ;;  %v12597_v32 = vpop.permute.xlu1 %1972  ;;  %vm2364_vm13 = vcmp.gt.f32.partialorder %v2203_v62, %v12140_v7  ;;  %vm2365_vm14 = vcmp.gt.f32.partialorder %v2203_v62, %v12142_v8  ;;  %vm2366_vm15 = vcmp.gt.f32.partialorder %v2203_v62, %v12146_v34  ;;  %vm2367_vm1 = vcmp.gt.f32.partialorder %v2203_v62, %v12148_v42 }
 0x628   : > { %17931 = vst [vmem:[#allocation238_spill] sm:$0xff] %v12593_v13  ;;  %17932 = vst [vmem:[#allocation239_spill] sm:$0xff] %v12597_v32  ;;  %v10646_v32 = vsel %vm2360_vm9, 1.0, %v17635_v40  ;;  %v10650_v20 = vsel %vm2364_vm13, 1.0, %v17635_v40  ;;  %v10652_v8 = vsel %vm2366_vm15, 1.0, %v17635_v40 }
 0x62b   : > { %v12599_v58 = vpop.permute.xlu0 %1976  ;;  %v12604_v59 = vpop.permute.xlu1 %1980 }
 0x62c   : > { %17933 = vst [vmem:[#allocation240_spill] sm:$0xff] %v12599_v58  ;;  %17934 = vst [vmem:[#allocation241_spill] sm:$0xff] %v12604_v59  ;;  %v899_v58 = vcombine.high %v891_v37, %v891_v37  ;;  %v3128_v59 = vsel %vm747_vm0, %v10646_v32, 0.0  ;;  %v10649_v32 = vsel %vm2363_vm12, 1.0, %v17635_v40 }
 0x62e   : > { %v12628_v18 = vrot.slane %v899_v58, %v12591_v36 }
 0x62f   : > { %v12608_v19 = vpop.permute.xlu0 %1984  ;;  %v12611_v31 = vpop.permute.xlu1 %1988 }
 0x630   : > { %17935 = vst [vmem:[#allocation242_spill] sm:$0xff] %v12608_v19  ;;  %v10648_v19 = vsel %vm2362_vm10, 1.0, %v17635_v40  ;;  %v2207_v7 = vrot.slane %v12628_v18, %v11859_v4 }
 0x631   : > { %v3134_v17 = vsel %vm747_vm0, %v10648_v19, 0.0  ;;  %v3137_v19 = vsel %vm747_vm0, %v10649_v32, 0.0  ;;  %v10653_v32 = vsel %vm2367_vm1, 1.0, %v17635_v40 }
 0x632   : > { %vm2368_vm2 = vcmp.gt.f32.partialorder %v2207_v7, %v12150_v28  ;;  %vm2369_vm3 = vcmp.gt.f32.partialorder %v2207_v7, %v12152_v23  ;;  %vm2370_vm4 = vcmp.gt.f32.partialorder %v2207_v7, %v12154_v30  ;;  %v3149_v28 = vsel %vm747_vm0, %v10653_v32, 0.0 }
 0x633   : > { %v12613_v13 = vpop.permute.xlu0 %1995  ;;  %v12619_v45 = vpop.permute.xlu1 %1999  ;;  %v10654_v42 = vsel %vm2368_vm2, 1.0, %v17635_v40  ;;  %vm2371_vm5 = vcmp.gt.f32.partialorder %v2207_v7, %v12156_v48  ;;  %vm2372_vm6 = vcmp.gt.f32.partialorder %v2207_v7, %v12158_v60  ;;  %v929_v23 = vcombine.high %v12602_v25, %v12602_v25 }
 0x634   : > { %17936 = vst [vmem:[#allocation243_spill] sm:$0xff] %v12613_v13  ;;  %17937 = vst [vmem:[#allocation244_spill] sm:$0xff] %v12619_v45  ;;  %v10647_v13 = vsel %vm2361_vm11, 1.0, %v17635_v40  ;;  %v3152_v62 = vsel %vm747_vm0, %v10654_v42, 0.0  ;;  %vm2373_vm7 = vcmp.gt.f32.partialorder %v2207_v7, %v12160_v56  ;;  %v10658_v48 = vsel %vm2372_vm6, 1.0, %v17635_v40 }
 0x635   : > { %v3131_v37 = vsel %vm747_vm0, %v10647_v13, 0.0  ;;  %v3140_v13 = vsel %vm747_vm0, %v10650_v20, 0.0  ;;  %vm2374_vm8 = vcmp.gt.f32.partialorder %v2207_v7, %v12164_v51  ;;  %v2211_v60 = vrot.slane %v929_v23, %v11859_v4 }
 0x636   : > { %v3164_v42 = vsel %vm747_vm0, %v10658_v48, 0.0  ;;  %vm2375_vm9 = vcmp.gt.f32.partialorder %v2207_v7, %v12166_v1  ;;  %v10660_v56 = vsel %vm2374_vm8, 1.0, %v17635_v40 }
 0x637   : > { %v12623_v41 = vpop.permute.xlu0 %2003  ;;  %vm2376_vm10 = vcmp.gt.f32.partialorder %v2211_v60, %v12168_v47  ;;  %vm2377_vm11 = vcmp.gt.f32.partialorder %v2211_v60, %v12170_v26  ;;  %vm2378_vm12 = vcmp.gt.f32.partialorder %v2211_v60, %v12172_v54  ;;  %vm2379_vm13 = vcmp.gt.f32.partialorder %v2211_v60, %v12174_v10 }
 0x638   : > { %17938 = vst [vmem:[#allocation245_spill] sm:$0xff] %v12623_v41  ;;  %v10662_v23 = vsel %vm2376_vm10, 1.0, %v17635_v40  ;;  %v10664_v26 = vsel %vm2378_vm12, 1.0, %v17635_v40  ;;  %v931_v54 = vcombine.high %v12628_v18, %v12628_v18  ;;  %vm2381_vm15 = vcmp.gt.f32.partialorder %v2211_v60, %v12178_v50 }
 0x639   : > { %vm2382_vm1 = vcmp.gt.f32.partialorder %v2211_v60, %v12182_v52  ;;  %vm2383_vm2 = vcmp.gt.f32.partialorder %v2211_v60, %v12184_v57 }
 0x63a   : > { %v2215_v18 = vrot.slane %v931_v54, %v11859_v4  ;;  %v10668_v50 = vsel %vm2382_vm1, 1.0, %v17635_v40 }
 0x63b   : > { %v12640_v58 = vpop.permute.xlu0 %2011 }
 0x63c   : > { %3129 = vadd.xlane.f32.xlu0 %v3128_v59  ;;  %v12638_v59 = vpop.permute.xlu1 %2007  ;;  %17940 = vst [vmem:[#allocation247_spill] sm:$0xff] %v12640_v58  ;;  %v3146_v58 = vsel %vm747_vm0, %v10652_v8, 0.0  ;;  %vm2387_vm6 = vcmp.gt.f32.partialorder %v2215_v18, %v12192_v12  ;;  %vm2389_vm8 = vcmp.gt.f32.partialorder %v2215_v18, %v12196_v15  ;;  %vm2391_vm10 = vcmp.gt.f32.partialorder %v2215_v18, %v12202_v29 }
 0x63d   : > { %17939 = vst [vmem:[#allocation246_spill] sm:$0xff] %v12638_v59 }
 0x63f   : > { %v12654_v20 = vpop.permute.xlu0 %2019 }
 0x640   : > { %3135 = vadd.xlane.f32.xlu0 %v3134_v17  ;;  %v10651_v17 = vsel %vm2365_vm14, 1.0, %v17635_v40  ;;  %17942 = vst [vmem:[#allocation249_spill] sm:$0xff] %v12654_v20  ;;  %vm2380_vm14 = vcmp.gt.f32.partialorder %v2211_v60, %v12176_v61  ;;  %v18069_v20 = vld [vmem:[#allocation161_spill] sm:$0xff] }
 0x641   : > { %3132 = vadd.xlane.f32.xlu1 %v3131_v37  ;;  %v3143_v34 = vsel %vm747_vm0, %v10651_v17, 0.0  ;;  %v12649_v37 = vpop.permute.xlu1 %2015  ;;  %v10666_v61 = vsel %vm2380_vm14, 1.0, %v17635_v40 }
 0x642   : > { %17941 = vst [vmem:[#allocation248_spill] sm:$0xff] %v12649_v37 }
 0x643   : > { %v12668_v30 = vpop.permute.xlu0 %2030 }
 0x644   : > { %3138 = vadd.xlane.f32.xlu0 %v3137_v19  ;;  %v10655_v19 = vsel %vm2369_vm3, 1.0, %v17635_v40  ;;  %17944 = vst [vmem:[#allocation251_spill] sm:$0xff] %v12668_v30  ;;  %vm2384_vm3 = vcmp.gt.f32.partialorder %v2215_v18, %v12186_v21 }
 0x645   : > { %3141 = vadd.xlane.f32.xlu1 %v3140_v13  ;;  %v10656_v13 = vsel %vm2370_vm4, 1.0, %v17635_v40  ;;  %v3155_v17 = vsel %vm747_vm0, %v10655_v19, 0.0  ;;  %v3170_v19 = vsel %vm747_vm0, %v10660_v56, 0.0  ;;  %v3188_v56 = vsel %vm747_vm0, %v10666_v61, 0.0 }
 0x646   : > { %v3158_v8 = vsel %vm747_vm0, %v10656_v13, 0.0  ;;  %v10661_v13 = vsel %vm2375_vm9, 1.0, %v17635_v40  ;;  %vm2385_vm4 = vcmp.gt.f32.partialorder %v2215_v18, %v12188_v0  ;;  %v10670_v57 = vsel %vm2384_vm3, 1.0, %v17635_v40 }
 0x647   : > { %v3173_v47 = vsel %vm747_vm0, %v10661_v13, 0.0  ;;  %v3200_v54 = vsel %vm747_vm0, %v10670_v57, 0.0  ;;  %vm2390_vm9 = vcmp.gt.f32.partialorder %v2215_v18, %v12200_v22 }
 0x648   : > { %3144 = vadd.xlane.f32.xlu0 %v3143_v34  ;;  %v10657_v34 = vsel %vm2371_vm5, 1.0, %v17635_v40  ;;  %vm2386_vm5 = vcmp.gt.f32.partialorder %v2215_v18, %v12190_v14  ;;  %v10676_v15 = vsel %vm2390_vm9, 1.0, %v17635_v40 }
 0x649   : > { %3147 = vadd.xlane.f32.xlu1 %v3146_v58  ;;  %v12666_v58 = vpop.permute.xlu1 %2023  ;;  %v3161_v25 = vsel %vm747_vm0, %v10657_v34, 0.0  ;;  %v10672_v0 = vsel %vm2386_vm5, 1.0, %v17635_v40 }
 0x64a   : > { %17943 = vst [vmem:[#allocation250_spill] sm:$0xff] %v12666_v58  ;;  %v3206_v61 = vsel %vm747_vm0, %v10672_v0, 0.0 }
 0x64c   : > { %3150 = vadd.xlane.f32.xlu0 %v3149_v28  ;;  %v10659_v28 = vsel %vm2373_vm7, 1.0, %v17635_v40  ;;  %vm2388_vm7 = vcmp.gt.f32.partialorder %v2215_v18, %v12194_v24 }
 0x64d   : > { %3153 = vadd.xlane.f32.xlu1 %v3152_v62  ;;  %v12678_v32 = vpop.permute.xlu1 %2034  ;;  %v12683_v62 = vpop.permute.xlu0 %2038  ;;  %v3167_v51 = vsel %vm747_vm0, %v10659_v28, 0.0  ;;  %v10674_v12 = vsel %vm2388_vm7, 1.0, %v17635_v40 }
 0x64e   : > { %17945 = vst [vmem:[#allocation252_spill] sm:$0xff] %v12678_v32  ;;  %17946 = vst [vmem:[#allocation253_spill] sm:$0xff] %v12683_v62  ;;  %v18081_v62 = vld [vmem:[#allocation173_spill] sm:$0xff] }
 0x650   : > { %3156 = vadd.xlane.f32.xlu0 %v3155_v17  ;;  %v3176_v17 = vsel %vm747_vm0, %v10662_v23, 0.0 }
 0x651   : > { %3159 = vadd.xlane.f32.xlu1 %v3158_v8  ;;  %v12693_v1 = vpop.permute.xlu1 %2042  ;;  %v12695_v7 = vpop.permute.xlu0 %2046  ;;  %v10663_v8 = vsel %vm2377_vm11, 1.0, %v17635_v40 }
 0x652   : > { %17947 = vst [vmem:[#allocation254_spill] sm:$0xff] %v12693_v1  ;;  %17948 = vst [vmem:[#allocation255_spill] sm:$0xff] %v12695_v7  ;;  %v3179_v34 = vsel %vm747_vm0, %v10663_v8, 0.0  ;;  %v10669_v8 = vsel %vm2383_vm2, 1.0, %v17635_v40  ;;  %v18077_v1 = vld [vmem:[#allocation169_spill] sm:$0xff] }
 0x653   : > { %v3197_v60 = vsel %vm747_vm0, %v10669_v8, 0.0  ;;  %v10677_v8 = vsel %vm2391_vm10, 1.0, %v17635_v40 }
 0x654   : > { %3162 = vadd.xlane.f32.xlu0 %v3161_v25  ;;  %v3182_v25 = vsel %vm747_vm0, %v10664_v26, 0.0 }
 0x655   : > { %3165 = vadd.xlane.f32.xlu1 %v3164_v42  ;;  %v12706_v48 = vpop.permute.xlu1 %2050  ;;  %v10665_v42 = vsel %vm2379_vm13, 1.0, %v17635_v40  ;;  %v12711_v10 = vpop.permute.xlu0 %2054 }
 0x656   : > { %17949 = vst [vmem:[#allocation256_spill] sm:$0xff] %v12706_v48  ;;  %17950 = vst [vmem:[#allocation257_spill] sm:$0xff] %v12711_v10  ;;  %v3185_v28 = vsel %vm747_vm0, %v10665_v42, 0.0 }
 0x658   : > { %3168 = vadd.xlane.f32.xlu0 %v3167_v51  ;;  %v10667_v51 = vsel %vm2381_vm15, 1.0, %v17635_v40 }
 0x659   : > { %3171 = vadd.xlane.f32.xlu1 %v3170_v19  ;;  %v11551_v19 = vld [vmem:[%s12093_s13] sm:$0xff]  ;;  %v12723_v23 = vpop.permute.xlu1 %2058  ;;  %v12725_v52 = vpop.permute.xlu0 %2065 }
 0x65a   : > { %v884_v13 = vcombine.high %v11551_v19, %v11551_v19  ;;  %17951 = vst [vmem:[#allocation258_spill] sm:$0xff] %v12723_v23  ;;  %17952 = vst [vmem:[#allocation259_spill] sm:$0xff] %v12725_v52  ;;  %v3212_v19 = vsel %vm747_vm0, %v10674_v12, 0.0 }
 0x65c   : > { %3174 = vadd.xlane.f32.xlu0 %v3173_v47  ;;  %v3191_v47 = vsel %vm747_vm0, %v10667_v51, 0.0  ;;  %v898_v21 = vrot.slane %v884_v13, %v12591_v36  ;;  %v10675_v13 = vsel %vm2389_vm8, 1.0, %v17635_v40 }
 0x65d   : > { %3177 = vadd.xlane.f32.xlu1 %v3176_v17  ;;  %v3194_v17 = vsel %vm747_vm0, %v10668_v50, 0.0  ;;  %v12735_v26 = vpop.permute.xlu1 %2069  ;;  %v3215_v22 = vsel %vm747_vm0, %v10675_v13, 0.0 }
 0x65e   : > { %17953 = vst [vmem:[#allocation260_spill] sm:$0xff] %v12735_v26  ;;  %v12745_v14 = vrot.slane %v898_v21, %v12591_v36  ;;  %v900_v18 = vcombine.high %v898_v21, %v898_v21  ;;  %v18078_v26 = vld [vmem:[#allocation170_spill] sm:$0xff] }
 0x660   : > { %3180 = vadd.xlane.f32.xlu0 %v3179_v34  ;;  %v10671_v34 = vsel %vm2385_vm4, 1.0, %v17635_v40  ;;  %v2219_v24 = vrot.slane %v12745_v14, %v11859_v4 }
 0x661   : > { %3183 = vadd.xlane.f32.xlu1 %v3182_v25  ;;  %v12740_v25 = vpop.permute.xlu0 %2073  ;;  %v3203_v42 = vsel %vm747_vm0, %v10671_v34, 0.0  ;;  %v12782_v34 = vrot.slane %v900_v18, %v12591_v36  ;;  %v17965_v18 = vld [vmem:[#allocation86_spill] sm:$0xff] }
 0x662   : > { %17954 = vst [vmem:[#allocation261_spill] sm:$0xff] %v12740_v25  ;;  %vm2392_vm11 = vcmp.gt.f32.partialorder %v2219_v24, %v12204_v33  ;;  %vm2393_vm12 = vcmp.gt.f32.partialorder %v2219_v24, %v12206_v38  ;;  %vm2394_vm13 = vcmp.gt.f32.partialorder %v2219_v24, %v12208_v43  ;;  %v3221_v33 = vsel %vm747_vm0, %v10677_v8, 0.0 }
 0x663   : > { %v10678_v29 = vsel %vm2392_vm11, 1.0, %v17635_v40  ;;  %vm2395_vm14 = vcmp.gt.f32.partialorder %v2219_v24, %v12210_v49  ;;  %v10680_v38 = vsel %vm2394_vm13, 1.0, %v17635_v40  ;;  %vm2396_vm15 = vcmp.gt.f32.partialorder %v2219_v24, %v12212_v46 }
 0x664   : > { %3186 = vadd.xlane.f32.xlu0 %v3185_v28  ;;  %v10673_v28 = vsel %vm2387_vm6, 1.0, %v17635_v40  ;;  %vm2397_vm1 = vcmp.gt.f32.partialorder %v2219_v24, %v12214_v5  ;;  %v10682_v49 = vsel %vm2396_vm15, 1.0, %v17635_v40  ;;  %vm2398_vm2 = vcmp.gt.f32.partialorder %v2219_v24, %v12218_v16 }
 0x665   : > { %3189 = vadd.xlane.f32.xlu1 %v3188_v56  ;;  %v12755_v56 = vpop.permute.xlu1 %2077  ;;  %v12757_v51 = vpop.permute.xlu0 %2081  ;;  %v3209_v50 = vsel %vm747_vm0, %v10673_v28, 0.0  ;;  %v2223_v46 = vrot.slane %v12782_v34, %v11859_v4  ;;  %vm2399_vm3 = vcmp.gt.f32.partialorder %v2219_v24, %v12220_v2  ;;  %v10684_v13 = vsel %vm2398_vm2, 1.0, %v17635_v40 }
 0x666   : > { %17955 = vst [vmem:[#allocation262_spill] sm:$0xff] %v12755_v56  ;;  %17956 = vst [vmem:[#allocation263_spill] sm:$0xff] %v12757_v51  ;;  %v18068_v51 = vld [vmem:[#allocation160_spill] sm:$0xff] }
 0x667   : > { %vm2400_vm4 = vcmp.gt.f32.partialorder %v2223_v46, %v12222_v35  ;;  %vm2401_vm5 = vcmp.gt.f32.partialorder %v2223_v46, %v12224_v63  ;;  %vm2402_vm6 = vcmp.gt.f32.partialorder %v2223_v46, %v12226_v53  ;;  %vm2403_vm7 = vcmp.gt.f32.partialorder %v2223_v46, %v12228_v9  ;;  %v18072_v56 = vld [vmem:[#allocation164_spill] sm:$0xff] }
 0x668   : > { %3192 = vadd.xlane.f32.xlu0 %v3191_v47  ;;  %v10688_v63 = vsel %vm2402_vm6, 1.0, %v17635_v40  ;;  %vm2404_vm8 = vcmp.gt.f32.partialorder %v2223_v46, %v17965_v18  ;;  %v930_v53 = vcombine.high %v12745_v14, %v12745_v14 }
 0x669   : > { %3195 = vadd.xlane.f32.xlu1 %v3194_v17  ;;  %v12766_v47 = vpop.permute.xlu1 %2085  ;;  %v3218_v17 = vsel %vm747_vm0, %v10676_v15, 0.0  ;;  %v12771_v57 = vpop.permute.xlu0 %2089  ;;  %v3242_v15 = vsel %vm747_vm0, %v10684_v13, 0.0 }
 0x66a   : > { %17957 = vst [vmem:[#allocation264_spill] sm:$0xff] %v12766_v47  ;;  %17958 = vst [vmem:[#allocation265_spill] sm:$0xff] %v12771_v57  ;;  %v2227_v14 = vrot.slane %v930_v53, %v11859_v4 }
 0x66c   : > { %3198 = vadd.xlane.f32.xlu0 %v3197_v60  ;;  %v3224_v60 = vsel %vm747_vm0, %v10678_v29, 0.0  ;;  %v10687_v29 = vsel %vm2401_vm5, 1.0, %v17635_v40 }
 0x66d   : > { %3201 = vadd.xlane.f32.xlu1 %v3200_v54  ;;  %v10679_v54 = vsel %vm2393_vm12, 1.0, %v17635_v40  ;;  %v12784_v0 = vpop.permute.xlu1 %2093  ;;  %v12786_v43 = vpop.permute.xlu0 %2100 }
 0x66e   : > { %17959 = vst [vmem:[#allocation266_spill] sm:$0xff] %v12784_v0  ;;  %17960 = vst [vmem:[#allocation267_spill] sm:$0xff] %v12786_v43  ;;  %v3227_v21 = vsel %vm747_vm0, %v10679_v54, 0.0  ;;  %v3254_v54 = vsel %vm747_vm0, %v10688_v63, 0.0  ;;  %v17975_v63 = vld [vmem:[#allocation92_spill] sm:$0xff] }
 0x670   : > { %3204 = vadd.xlane.f32.xlu0 %v3203_v42  ;;  %v3230_v42 = vsel %vm747_vm0, %v10680_v38, 0.0  ;;  %v10689_v38 = vsel %vm2403_vm7, 1.0, %v17635_v40 }
 0x671   : > { %3207 = vadd.xlane.f32.xlu1 %v3206_v61  ;;  %v10681_v61 = vsel %vm2395_vm14, 1.0, %v17635_v40  ;;  %v12797_v12 = vpop.permute.xlu1 %2104  ;;  %v12802_v5 = vpop.permute.xlu0 %2108  ;;  %vm2410_vm14 = vcmp.gt.f32.partialorder %v2227_v14, %v17975_v63 }
 0x672   : > { %v3233_v28 = vsel %vm747_vm0, %v10681_v61, 0.0  ;;  %17961 = vst [vmem:[#allocation268_spill] sm:$0xff] %v12797_v12  ;;  %17962 = vst [vmem:[#allocation269_spill] sm:$0xff] %v12802_v5  ;;  %v17969_v61 = vld [vmem:[#allocation88_spill] sm:$0xff]  ;;  %v18075_v12 = vld [vmem:[#allocation167_spill] sm:$0xff] }
 0x673   : > { %vm2406_vm10 = vcmp.gt.f32.partialorder %v2223_v46, %v17969_v61  ;;  %v17979_v61 = vld [vmem:[#allocation94_spill] sm:$0xff] }
 0x674   : > { %3210 = vadd.xlane.f32.xlu0 %v3209_v50  ;;  %v3236_v50 = vsel %vm747_vm0, %v10682_v49, 0.0  ;;  %v3257_v49 = vsel %vm747_vm0, %v10689_v38, 0.0  ;;  %v10692_v13 = vsel %vm2406_vm10, 1.0, %v17635_v40  ;;  %v17977_v38 = vld [vmem:[#allocation93_spill] sm:$0xff] }
 0x675   : > { %3213 = vadd.xlane.f32.xlu1 %v3212_v19  ;;  %v10683_v19 = vsel %vm2397_vm1, 1.0, %v17635_v40  ;;  %v12812_v2 = vpop.permute.xlu1 %2112  ;;  %v12814_v24 = vpop.permute.xlu0 %2116  ;;  %vm2411_vm15 = vcmp.gt.f32.partialorder %v2227_v14, %v17977_v38  ;;  %vm2412_vm1 = vcmp.gt.f32.partialorder %v2227_v14, %v17979_v61 }
 0x676   : > { %v3239_v16 = vsel %vm747_vm0, %v10683_v19, 0.0  ;;  %17963 = vst [vmem:[#allocation270_spill] sm:$0xff] %v12812_v2  ;;  %17964 = vst [vmem:[#allocation271_spill] sm:$0xff] %v12814_v24  ;;  %v17970_v19 = vld [vmem:[#allocation89_spill] sm:$0xff]  ;;  %v18067_v2 = vld [vmem:[#allocation159_spill] sm:$0xff] }
 0x677   : > { %vm2407_vm11 = vcmp.gt.f32.partialorder %v2223_v46, %v17970_v19  ;;  %v10697_v19 = vsel %vm2411_vm15, 1.0, %v17635_v40  ;;  %v18022_v24 = vld [vmem:[#allocation117_spill] sm:$0xff] }
 0x678   : > { %3216 = vadd.xlane.f32.xlu0 %v3215_v22  ;;  %v10685_v22 = vsel %vm2399_vm3, 1.0, %v17635_v40 }
 0x679   : > { %3219 = vadd.xlane.f32.xlu1 %v3218_v17  ;;  %v10686_v17 = vsel %vm2400_vm4, 1.0, %v17635_v40  ;;  %v3245_v35 = vsel %vm747_vm0, %v10685_v22, 0.0  ;;  %v12830_v9 = vpop.permute.xlu0 %2124 }
 0x67a   : > { %v3248_v8 = vsel %vm747_vm0, %v10686_v17, 0.0 }
 0x67c   : > { %3222 = vadd.xlane.f32.xlu0 %v3221_v33  ;;  %v3251_v33 = vsel %vm747_vm0, %v10687_v29, 0.0  ;;  %v17974_v29 = vld [vmem:[#allocation91_spill] sm:$0xff] }
 0x67d   : > { %3225 = vadd.xlane.f32.xlu1 %v3224_v60  ;;  %v12825_v60 = vpop.permute.xlu1 %2120  ;;  %v12843_v22 = vpop.permute.xlu0 %2135  ;;  %vm2409_vm13 = vcmp.gt.f32.partialorder %v2227_v14, %v17974_v29 }
 0x67e   : > { %17966 = vst [vmem:[#allocation86_spill] sm:$0xff] %v12825_v60  ;;  %17973 = vst [vmem:[#allocation89_spill] sm:$0xff] %v12843_v22 }
 0x680   : > { %3228 = vadd.xlane.f32.xlu0 %v3227_v21  ;;  %v17967_v21 = vld [vmem:[#allocation87_spill] sm:$0xff] }
 0x681   : > { %3231 = vadd.xlane.f32.xlu1 %v3230_v42  ;;  %vm2405_vm9 = vcmp.gt.f32.partialorder %v2223_v46, %v17967_v21  ;;  %17968 = vst [vmem:[#allocation87_spill] sm:$0xff] %v12830_v9  ;;  %v10690_v42 = vsel %vm2404_vm8, 1.0, %v17635_v40  ;;  %v12857_v21 = vpop.permute.xlu0 %2143 }
 0x682   : > { %17978 = vst [vmem:[#allocation91_spill] sm:$0xff] %v12857_v21  ;;  %v18066_v21 = vld [vmem:[#allocation158_spill] sm:$0xff] }
 0x684   : > { %3234 = vadd.xlane.f32.xlu0 %v3233_v28  ;;  %v3260_v28 = vsel %vm747_vm0, %v10690_v42, 0.0  ;;  %v10696_v42 = vsel %vm2410_vm14, 1.0, %v17635_v40 }
 0x685   : > { %3237 = vadd.xlane.f32.xlu1 %v3236_v50  ;;  %v10691_v50 = vsel %vm2405_vm9, 1.0, %v17635_v40  ;;  %v12872_v29 = vpop.permute.xlu0 %2151 }
 0x686   : > { %v3263_v17 = vsel %vm747_vm0, %v10691_v50, 0.0  ;;  %v3278_v50 = vsel %vm747_vm0, %v10696_v42, 0.0  ;;  %17983 = vst [vmem:[#allocation93_spill] sm:$0xff] %v12872_v29 }
 0x688   : > { %3240 = vadd.xlane.f32.xlu0 %v3239_v16  ;;  %v17971_v16 = vld [vmem:[#allocation90_spill] sm:$0xff] }
 0x689   : > { %3243 = vadd.xlane.f32.xlu1 %v3242_v15  ;;  %vm2408_vm12 = vcmp.gt.f32.partialorder %v2227_v14, %v17971_v16  ;;  %v12841_v15 = vpop.permute.xlu1 %2128  ;;  %v10698_v16 = vsel %vm2412_vm1, 1.0, %v17635_v40 }
 0x68a   : > { %17972 = vst [vmem:[#allocation88_spill] sm:$0xff] %v12841_v15  ;;  %v10694_v46 = vsel %vm2408_vm12, 1.0, %v17635_v40  ;;  %v18000_v15 = vld [vmem:[#allocation107_spill] sm:$0xff] }
 0x68c   : > { %3246 = vadd.xlane.f32.xlu0 %v3245_v35  ;;  %v3266_v35 = vsel %vm747_vm0, %v10692_v13, 0.0  ;;  %v17980_v13 = vld [vmem:[#allocation95_spill] sm:$0xff] }
 0x68d   : > { %3249 = vadd.xlane.f32.xlu1 %v3248_v8  ;;  %v10693_v8 = vsel %vm2407_vm11, 1.0, %v17635_v40  ;;  %v12852_v53 = vpop.permute.xlu1 %2139  ;;  %vm2413_vm2 = vcmp.gt.f32.partialorder %v2227_v14, %v17980_v13  ;;  %v12891_v13 = vld [vmem:[%s12093_s13 + $0x8] sm:$0xff] }
 0x68e   : > { %v3269_v18 = vsel %vm747_vm0, %v10693_v8, 0.0  ;;  %17976 = vst [vmem:[#allocation90_spill] sm:$0xff] %v12852_v53  ;;  %v10699_v63 = vsel %vm2413_vm2, 1.0, %v17635_v40  ;;  %v18070_v53 = vld [vmem:[#allocation162_spill] sm:$0xff] }
 0x68f   : > { %v3287_v38 = vsel %vm747_vm0, %v10699_v63, 0.0  ;;  %v17990_v63 = vld [vmem:[#allocation101_spill] sm:$0xff] }
 0x690   : > { %3252 = vadd.xlane.f32.xlu0 %v3251_v33  ;;  %v3272_v33 = vsel %vm747_vm0, %v10694_v46, 0.0  ;;  %v3284_v46 = vsel %vm747_vm0, %v10698_v16, 0.0  ;;  %v940_v16 = vrot.slane %v12891_v13, %v12591_v36 }
 0x691   : > { %3255 = vadd.xlane.f32.xlu1 %v3254_v54  ;;  %v10695_v54 = vsel %vm2409_vm13, 1.0, %v17635_v40  ;;  %v12870_v8 = vpop.permute.xlu1 %2147 }
 0x692   : > { %17982 = vst [vmem:[#allocation92_spill] sm:$0xff] %v12870_v8 }
 0x694   : > { %3258 = vadd.xlane.f32.xlu0 %v3257_v49  ;;  %v932_v49 = vcombine.high %v12782_v34, %v12782_v34  ;;  %v3281_v34 = vsel %vm747_vm0, %v10697_v19, 0.0  ;;  %v17989_v19 = vld [vmem:[#allocation100_spill] sm:$0xff] }
 0x695   : > { %3261 = vadd.xlane.f32.xlu1 %v3260_v28  ;;  %v3275_v28 = vsel %vm747_vm0, %v10695_v54, 0.0  ;;  %v17985_v54 = vld [vmem:[#allocation98_spill] sm:$0xff]  ;;  %v12881_v42 = vpop.permute.xlu1 %2155 }
 0x696   : > { %17986 = vst [vmem:[#allocation94_spill] sm:$0xff] %v12881_v42 }
 0x698   : > { %3264 = vadd.xlane.f32.xlu0 %v3263_v17  ;;  %v17981_v17 = vld [vmem:[#allocation96_spill] sm:$0xff] }
 0x699   : > { %3267 = vadd.xlane.f32.xlu1 %v3266_v35  ;;  %vm2414_vm3 = vcmp.gt.f32.partialorder %v2227_v14, %v17981_v17  ;;  %v2231_v35 = vrot.slane %v932_v49, %v11859_v4 }
 0x69b   : > { %vm2416_vm5 = vcmp.gt.f32.partialorder %v2231_v35, %v17985_v54  ;;  %vm2418_vm7 = vcmp.gt.f32.partialorder %v2231_v35, %v17989_v19  ;;  %vm2419_vm8 = vcmp.gt.f32.partialorder %v2231_v35, %v17990_v63  ;;  %v12902_v54 = vrot.slane %v940_v16, %v12591_v36  ;;  %v17994_v19 = vld [vmem:[#allocation103_spill] sm:$0xff] }
 0x69c   : > { %3270 = vadd.xlane.f32.xlu0 %v3269_v18  ;;  %v17984_v18 = vld [vmem:[#allocation97_spill] sm:$0xff]  ;;  %vm2421_vm10 = vcmp.gt.f32.partialorder %v2231_v35, %v17994_v19 }
 0x69d   : > { %3273 = vadd.xlane.f32.xlu1 %v3272_v33  ;;  %vm2415_vm4 = vcmp.gt.f32.partialorder %v2227_v14, %v17984_v18  ;;  %v10700_v33 = vsel %vm2414_vm3, 1.0, %v17635_v40  ;;  %v10702_v14 = vsel %vm2416_vm5, 1.0, %v17635_v40  ;;  %v10704_v18 = vsel %vm2418_vm7, 1.0, %v17635_v40 }
 0x69e   : > { %v3290_v61 = vsel %vm747_vm0, %v10700_v33, 0.0  ;;  %v10701_v49 = vsel %vm2415_vm4, 1.0, %v17635_v40  ;;  %v17991_v33 = vld [vmem:[#allocation102_spill] sm:$0xff]  ;;  %v2235_v63 = vrot.slane %v12902_v54, %v11859_v4  ;;  %v978_v60 = vcombine.high %v12902_v54, %v12902_v54 }
 0x69f   : > { %v3293_v17 = vsel %vm747_vm0, %v10701_v49, 0.0  ;;  %vm2420_vm9 = vcmp.gt.f32.partialorder %v2231_v35, %v17991_v33 }
 0x6a0   : > { %3276 = vadd.xlane.f32.xlu0 %v3275_v28  ;;  %v17987_v28 = vld [vmem:[#allocation99_spill] sm:$0xff]  ;;  %vm2425_vm14 = vcmp.gt.f32.partialorder %v2235_v63, %v18000_v15 }
 0x6a1   : > { %3279 = vadd.xlane.f32.xlu1 %v3278_v50  ;;  %vm2417_vm6 = vcmp.gt.f32.partialorder %v2231_v35, %v17987_v28  ;;  %v12886_v50 = vpop.permute.xlu0 %2159  ;;  %v3302_v28 = vsel %vm747_vm0, %v10704_v18, 0.0  ;;  %v10707_v18 = vsel %vm2421_vm10, 1.0, %v17635_v40  ;;  %vm4170_vm10 = vcmask 195712  }
 0x6a2   : > { %17988 = vst [vmem:[#allocation95_spill] sm:$0xff] %v12886_v50  ;;  %v3311_v50 = vsel %vm747_vm0, %v10707_v18, 0.0  ;;  %v10711_v18 = vsel %vm2425_vm14, 1.0, %v17635_v40  ;;  %vm4184_vm14 = vcmask 326912  }
 0x6a4   : > { %3282 = vadd.xlane.f32.xlu0 %v3281_v34  ;;  %v3296_v34 = vsel %vm747_vm0, %v10702_v14, 0.0  ;;  %v10705_v14 = vsel %vm2419_vm8, 1.0, %v17635_v40 }
 0x6a5   : > { %3285 = vadd.xlane.f32.xlu1 %v3284_v46  ;;  %v10703_v46 = vsel %vm2417_vm6, 1.0, %v17635_v40  ;;  %v3305_v33 = vsel %vm747_vm0, %v10705_v14, 0.0 }
 0x6a6   : > { %v3299_v49 = vsel %vm747_vm0, %v10703_v46, 0.0 }
 0x6a8   : > { %3288 = vadd.xlane.f32.xlu0 %v3287_v38  ;;  %v12904_v38 = vpop.permute.xlu1 %2163 }
 0x6a9   : > { %3291 = vadd.xlane.f32.xlu1 %v3290_v61  ;;  %17992 = vst [vmem:[#allocation96_spill] sm:$0xff] %v12904_v38  ;;  %v12906_v61 = vpop.permute.xlu0 %2170 }
 0x6aa   : > { %17993 = vst [vmem:[#allocation97_spill] sm:$0xff] %v12906_v61 }
 0x6ac   : > { %3294 = vadd.xlane.f32.xlu0 %v3293_v17  ;;  %v10706_v17 = vsel %vm2420_vm9, 1.0, %v17635_v40  ;;  %v12917_v38 = vpop.permute.xlu1 %2174  ;;  %vm4163_vm9 = vcmask 130112  }
 0x6ad   : > { %3297 = vadd.xlane.f32.xlu1 %v3296_v34  ;;  %v17995_v34 = vld [vmem:[#allocation104_spill] sm:$0xff]  ;;  %17996 = vst [vmem:[#allocation98_spill] sm:$0xff] %v12917_v38  ;;  %v3308_v46 = vsel %vm747_vm0, %v10706_v17, 0.0  ;;  %v12922_v19 = vpop.permute.xlu0 %2178 }
 0x6ae   : > { %vm2422_vm11 = vcmp.gt.f32.partialorder %v2231_v35, %v17995_v34  ;;  %17998 = vst [vmem:[#allocation99_spill] sm:$0xff] %v12922_v19  ;;  %v17999_v34 = vld [vmem:[#allocation106_spill] sm:$0xff]  ;;  %v18019_v19 = vmov 0.0  }
 0x6af   : > { %vm2424_vm13 = vcmp.gt.f32.partialorder %v2235_v63, %v17999_v34 }
 0x6b0   : > { %3300 = vadd.xlane.f32.xlu0 %v3299_v49  ;;  %v17997_v49 = vld [vmem:[#allocation105_spill] sm:$0xff]  ;;  %v10710_v17 = vsel %vm2424_vm13, 1.0, %v17635_v40  ;;  %vm4177_vm13 = vcmask 261312  }
 0x6b1   : > { %3303 = vadd.xlane.f32.xlu1 %v3302_v28  ;;  %vm2423_vm12 = vcmp.gt.f32.partialorder %v2231_v35, %v17997_v49  ;;  %v10708_v28 = vsel %vm2422_vm11, 1.0, %v17635_v40  ;;  %v18001_v35 = vld [vmem:[#allocation108_spill] sm:$0xff]  ;;  %v948_v49 = vcombine.high %v940_v16, %v940_v16  ;;  %v12934_v42 = vpop.permute.xlu0 %2186 }
 0x6b2   : > { %v3314_v14 = vsel %vm747_vm0, %v10708_v28, 0.0  ;;  %vm2426_vm15 = vcmp.gt.f32.partialorder %v2235_v63, %v18001_v35  ;;  %18003 = vst [vmem:[#allocation101_spill] sm:$0xff] %v12934_v42  ;;  %v18004_v28 = vld [vmem:[#allocation109_spill] sm:$0xff]  ;;  %v3323_v35 = vsel %vm747_vm0, %v10711_v18, 0.0 }
 0x6b3   : > { %vm2427_vm1 = vcmp.gt.f32.partialorder %v2235_v63, %v18004_v28  ;;  %v10712_v15 = vsel %vm2426_vm15, 1.0, %v17635_v40  ;;  %v12943_v16 = vrot.slane %v948_v49, %v12591_v36  ;;  %v18010_v49 = vld [vmem:[#allocation112_spill] sm:$0xff] }
 0x6b4   : > { %3306 = vadd.xlane.f32.xlu0 %v3305_v33  ;;  %v10709_v33 = vsel %vm2423_vm12, 1.0, %v17635_v40  ;;  %vm2430_vm4 = vcmp.gt.f32.partialorder %v2235_v63, %v18010_v49  ;;  %v18012_v49 = vld [vmem:[#allocation114_spill] sm:$0xff] }
 0x6b5   : > { %3309 = vadd.xlane.f32.xlu1 %v3308_v46  ;;  %v12932_v46 = vpop.permute.xlu1 %2182  ;;  %v3317_v34 = vsel %vm747_vm0, %v10709_v33, 0.0  ;;  %v3326_v33 = vsel %vm747_vm0, %v10712_v15, 0.0  ;;  %v12951_v28 = vpop.permute.xlu0 %2194  ;;  %v12958_v18 = vrot.slane %v12943_v16, %v11859_v4  ;;  %v10716_v0 = vsel %vm2430_vm4, 1.0, %v17635_v40 }
 0x6b6   : > { %18002 = vst [vmem:[#allocation100_spill] sm:$0xff] %v12932_v46  ;;  %18008 = vst [vmem:[#allocation103_spill] sm:$0xff] %v12951_v28  ;;  %v18013_v46 = vld [vmem:[#allocation115_spill] sm:$0xff] }
 0x6b7   : > { %vm2432_vm6 = vcmp.gt.f32.partialorder %v12958_v18, %v18012_v49  ;;  %vm2433_vm7 = vcmp.gt.f32.partialorder %v12958_v18, %v18013_v46  ;;  %vm2435_vm11 = vcmp.gt.f32.partialorder %v12958_v18, %v18022_v24 }
 0x6b8   : > { %3312 = vadd.xlane.f32.xlu0 %v3311_v50  ;;  %v3320_v50 = vsel %vm747_vm0, %v10710_v17, 0.0  ;;  %v10713_v17 = vsel %vm2427_vm1, 1.0, %v17635_v40  ;;  %v10719_v54 = vsel %vm2433_vm7, 1.0, %v18019_v19  ;;  %vm4191_vm1 = vcmask 392512  }
 0x6b9   : > { %3315 = vadd.xlane.f32.xlu1 %v3314_v14  ;;  %v18005_v14 = vld [vmem:[#allocation110_spill] sm:$0xff]  ;;  %v12946_v42 = vpop.permute.xlu1 %2190  ;;  %v3329_v15 = vsel %vm747_vm0, %v10713_v17, 0.0  ;;  %v3347_v38 = vsel %vm747_vm0, %v10719_v54, 0.0 }
 0x6ba   : > { %vm2428_vm2 = vcmp.gt.f32.partialorder %v2235_v63, %v18005_v14  ;;  %18006 = vst [vmem:[#allocation102_spill] sm:$0xff] %v12946_v42 }
 0x6bb   : > { %v10714_v14 = vsel %vm2428_vm2, 1.0, %v17635_v40 }
 0x6bc   : > { %3318 = vadd.xlane.f32.xlu0 %v3317_v34  ;;  %v18007_v34 = vld [vmem:[#allocation111_spill] sm:$0xff] }
 0x6bd   : > { %3321 = vadd.xlane.f32.xlu1 %v3320_v50  ;;  %vm2429_vm3 = vcmp.gt.f32.partialorder %v2235_v63, %v18007_v34  ;;  %v18009_v50 = vlaneseq  ;;  %v3332_v34 = vsel %vm747_vm0, %v10714_v14, 0.0 }
 0x6bf   : > { %v4153_v9 = vand.u32 127, %v18009_v50 }
 0x6c0   : > { %3324 = vadd.xlane.f32.xlu0 %v3323_v35  ;;  %v18011_v35 = vld [vmem:[#allocation113_spill] sm:$0xff] }
 0x6c1   : > { %3327 = vadd.xlane.f32.xlu1 %v3326_v33  ;;  %vm2431_vm5 = vcmp.gt.f32.partialorder %v2235_v63, %v18011_v35  ;;  %v4158_v42 = vadd.s32 4294967288, %v4153_v9  ;;  %v10715_v33 = vsel %vm2429_vm3, 1.0, %v17635_v40  ;;  %v4165_v28 = vadd.s32 4294967280, %v4153_v9  ;;  %v12969_v63 = vpop.permute.xlu1 %2198 }
 0x6c2   : > { %18014 = vst [vmem:[#allocation104_spill] sm:$0xff] %v12969_v63  ;;  %v10717_v17 = vsel %vm2431_vm5, 1.0, %v17635_v40  ;;  %v4172_v35 = vadd.s32 4294967272, %v4153_v9  ;;  %v12973_v14 = vsub.s32 %v4153_v9, %v17771_v3  ;;  %v4179_v29 = vadd.s32 4294967264, %v4153_v9  ;;  %v18018_v40 = vld [vmem:[#allocation116_spill] sm:$0xff] }
 0x6c3   : > { %v12982_v57 = vsub.s32 %v4165_v28, %v17771_v3  ;;  %v3338_v63 = vsel %vm747_vm0, %v10716_v0, 0.0  ;;  %vm2434_vm8 = vcmp.gt.f32.partialorder %v12958_v18, %v18018_v40  ;;  %v4193_v49 = vadd.s32 4294967248, %v4153_v9 }
 0x6c4   : > { %3330 = vadd.xlane.f32.xlu0 %v3329_v15  ;;  %18015 = vst [vmem:[#allocation272_spill] sm:$0xff] %v12973_v14  ;;  %v3335_v15 = vsel %vm747_vm0, %v10715_v33, 0.0  ;;  %v3341_v33 = vsel %vm747_vm0, %v10717_v17, 0.0  ;;  %v12997_v0 = vsub.s32 %v4172_v35, %v17771_v3  ;;  %v13002_v8 = vsub.s32 %v4179_v29, %v17771_v3 }
 0x6c5   : > { %v3130_v50 = vpop.xlane.xlu0 %3129  ;;  %3333 = vadd.xlane.f32.xlu1 %v3332_v34  ;;  %v12977_v34 = vsub.s32 %v4158_v42, %v17771_v3  ;;  %18017 = vst [vmem:[#allocation274_spill] sm:$0xff] %v12982_v57  ;;  %v10718_v42 = vsel %vm2432_vm6, 1.0, %v18019_v19  ;;  %v10720_v35 = vsel %vm2434_vm8, 1.0, %v18019_v19  ;;  %v4200_v58 = vadd.s32 4294967240, %v4153_v9 }
 0x6c6   : > { %18020 = vst [vmem:[#allocation275_spill] sm:$0xff] %v12997_v0  ;;  %18021 = vst [vmem:[#allocation276_spill] sm:$0xff] %v13002_v8  ;;  %v3344_v47 = vsel %vm747_vm0, %v10718_v42, 0.0  ;;  %v13023_v61 = vsub.s32 %v4193_v49, %v17771_v3  ;;  %vm4198_vm3 = vcmask 458112   ;;  %vm4205_vm5 = vcmask 523712  }
 0x6c7   : > { %18016 = vst [vmem:[#allocation273_spill] sm:$0xff] %v12977_v34 }
 0x6c8   : > { %3336 = vadd.xlane.f32.xlu0 %v3335_v15  ;;  %v4186_v15 = vadd.s32 4294967256, %v4153_v9  ;;  %18025 = vst [vmem:[#allocation278_spill] sm:$0xff] %v13023_v61  ;;  %v10721_v9 = vsel %vm2435_vm11, 1.0, %v18019_v19 }
 0x6c9   : > { %v3136_v23 = vpop.xlane.xlu0 %3135  ;;  %3339 = vadd.xlane.f32.xlu1 %v3338_v63  ;;  %v4157_v63 = vrot.slane %v3130_v50, %v12973_v14  ;;  %v18023_v50 = vld [vmem:[#allocation118_spill] sm:$0xff] }
 0x6ca   : > { %v3133_v28 = vpop.xlane.xlu1 %3132  ;;  %v4169_v46 = vrot.slane %v3136_v23, %v12982_v57  ;;  %vm2436_vm12 = vcmp.gt.f32.partialorder %v12958_v18, %v18023_v50  ;;  %v13018_v42 = vsub.s32 %v4186_v15, %v17771_v3  ;;  %v18026_v15 = vld [vmem:[#allocation119_spill] sm:$0xff] }
 0x6cb   : > { %v4162_v17 = vrot.slane %v3133_v28, %v12977_v34  ;;  %vm2437_vm15 = vcmp.gt.f32.partialorder %v12958_v18, %v18026_v15 }
 0x6cc   : > { %3342 = vadd.xlane.f32.xlu0 %v3341_v33  ;;  %18024 = vst [vmem:[#allocation277_spill] sm:$0xff] %v13018_v42 }
 0x6cd   : > { %v4164_v29 = vsel %vm4163_vm9, %v4162_v17, %v4157_v63  ;;  %v3139_v28 = vpop.xlane.xlu0 %3138  ;;  %3345 = vadd.xlane.f32.xlu1 %v3344_v47  ;;  %v13026_v63 = vrot.slane %v978_v60, %v11859_v4  ;;  %v3350_v17 = vsel %vm747_vm0, %v10720_v35, 0.0  ;;  %v18027_v60 = vld [vmem:[#allocation120_spill] sm:$0xff] }
 0x6ce   : > { %v4171_v10 = vsel %vm4170_vm10, %v4169_v46, %v4164_v29  ;;  %v4176_v23 = vrot.slane %v3139_v28, %v12997_v0  ;;  %v3142_v33 = vpop.xlane.xlu1 %3141  ;;  %vm2438_vm2 = vcmp.gt.f32.partialorder %v12958_v18, %v18027_v60  ;;  %v13045_v46 = vsub.s32 %v4200_v58, %v17771_v3  ;;  %v18065_v3 = vld [vmem:[#allocation157_spill] sm:$0xff] }
 0x6cf   : > { %v4183_v40 = vrot.slane %v3142_v33, %v13002_v8  ;;  %v3353_v29 = vsel %vm747_vm0, %v10721_v9, 0.0  ;;  %v18029_v33 = vld [vmem:[#allocation121_spill] sm:$0xff] }
 0x6d0   : > { %v4178_v47 = vsel %vm4177_vm13, %v4176_v23, %v4171_v10  ;;  %3348 = vadd.xlane.f32.xlu0 %v3347_v38  ;;  %v10722_v10 = vsel %vm2436_vm12, 1.0, %v18019_v19  ;;  %18028 = vst [vmem:[#allocation279_spill] sm:$0xff] %v13045_v46  ;;  %v10723_v23 = vsel %vm2437_vm15, 1.0, %v18019_v19  ;;  %vm2439_vm4 = vcmp.gt.f32.partialorder %v12958_v18, %v18029_v33 }
 0x6d1   : > { %v4185_v54 = vsel %vm4184_vm14, %v4183_v40, %v4178_v47  ;;  %v3145_v49 = vpop.xlane.xlu0 %3144  ;;  %3351 = vadd.xlane.f32.xlu1 %v3350_v17  ;;  %v3356_v50 = vsel %vm747_vm0, %v10722_v10, 0.0  ;;  %v10724_v47 = vsel %vm2438_vm2, 1.0, %v18019_v19  ;;  %v18030_v17 = vld [vmem:[#allocation122_spill] sm:$0xff] }
 0x6d2   : > { %v4190_v38 = vrot.slane %v3145_v49, %v13018_v42  ;;  %v3148_v24 = vpop.xlane.xlu1 %3147  ;;  %vm2440_vm6 = vcmp.gt.f32.partialorder %v13026_v63, %v18030_v17  ;;  %v3362_v10 = vsel %vm747_vm0, %v10724_v47, 0.0  ;;  %v18033_v17 = vld [vmem:[#allocation125_spill] sm:$0xff] }
 0x6d3   : > { %v4197_v35 = vrot.slane %v3148_v24, %v13023_v61  ;;  %v18031_v24 = vld [vmem:[#allocation123_spill] sm:$0xff]  ;;  %v10726_v60 = vsel %vm2440_vm6, 1.0, %v18019_v19  ;;  %vm2443_vm11 = vcmp.gt.f32.partialorder %v13026_v63, %v18033_v17 }
 0x6d4   : > { %v4192_v28 = vsel %vm4191_vm1, %v4190_v38, %v4185_v54  ;;  %3354 = vadd.xlane.f32.xlu0 %v3353_v29  ;;  %v3359_v54 = vsel %vm747_vm0, %v10723_v23, 0.0  ;;  %v10725_v38 = vsel %vm2439_vm4, 1.0, %v18019_v19  ;;  %vm2441_vm7 = vcmp.gt.f32.partialorder %v13026_v63, %v18031_v24 }
 0x6d5   : > { %v4199_v58 = vsel %vm4198_vm3, %v4197_v35, %v4192_v28  ;;  %v3151_v40 = vpop.xlane.xlu0 %3150  ;;  %3357 = vadd.xlane.f32.xlu1 %v3356_v50  ;;  %v18032_v35 = vld [vmem:[#allocation124_spill] sm:$0xff]  ;;  %v3365_v33 = vsel %vm747_vm0, %v10725_v38, 0.0  ;;  %v10727_v47 = vsel %vm2441_vm7, 1.0, %v18019_v19  ;;  %v980_v38 = vcombine.high %v12943_v16, %v12943_v16 }
 0x6d6   : > { %v4204_v9 = vrot.slane %v3151_v40, %v13045_v46  ;;  %v3154_v15 = vpop.xlane.xlu1 %3153  ;;  %vm2442_vm8 = vcmp.gt.f32.partialorder %v13026_v63, %v18032_v35  ;;  %v3368_v40 = vsel %vm747_vm0, %v10726_v60, 0.0  ;;  %v3371_v35 = vsel %vm747_vm0, %v10727_v47, 0.0 }
 0x6d7   : > { %v4210_v29 = vrot.slane %v3154_v15, %v12973_v14  ;;  %v13104_v47 = vrot.slane %v980_v38, %v11859_v4  ;;  %vm17641_vm7 = vcmask 1041409  }
 0x6d8   : > { %v13067_v49 = vsel %vm4205_vm5, %v4204_v9, %v4199_v58  ;;  %3360 = vadd.xlane.f32.xlu0 %v3359_v54  ;;  %v10728_v54 = vsel %vm2442_vm8, 1.0, %v18019_v19 }
 0x6d9   : > { %v3157_v18 = vpop.xlane.xlu0 %3156  ;;  %3363 = vadd.xlane.f32.xlu1 %v3362_v10  ;;  %v18034_v10 = vld [vmem:[#allocation126_spill] sm:$0xff] }
 0x6da   : > { %v4214_v28 = vrot.slane %v3157_v18, %v12977_v34  ;;  %v3160_v50 = vpop.xlane.xlu1 %3159  ;;  %vm2444_vm12 = vcmp.gt.f32.partialorder %v13026_v63, %v18034_v10 }
 0x6db   : > { %v4219_v23 = vrot.slane %v3160_v50, %v12982_v57  ;;  %v10729_v50 = vsel %vm2443_vm11, 1.0, %v18019_v19 }
 0x6dc   : > { %v4215_v58 = vsel %vm4163_vm9, %v4214_v28, %v4210_v29  ;;  %3366 = vadd.xlane.f32.xlu0 %v3365_v33  ;;  %v3374_v28 = vsel %vm747_vm0, %v10728_v54, 0.0  ;;  %v3377_v54 = vsel %vm747_vm0, %v10729_v50, 0.0  ;;  %v933_v50 = vcombine.high %v12891_v13, %v12891_v13 }
 0x6dd   : > { %v4220_v9 = vsel %vm4170_vm10, %v4219_v23, %v4215_v58  ;;  %v3163_v15 = vpop.xlane.xlu0 %3162  ;;  %3369 = vadd.xlane.f32.xlu1 %v3368_v40  ;;  %v18035_v23 = vld [vmem:[#allocation127_spill] sm:$0xff]  ;;  %v10730_v58 = vsel %vm2444_vm12, 1.0, %v18019_v19  ;;  %v18036_v40 = vld [vmem:[#allocation128_spill] sm:$0xff] }
 0x6de   : > { %v4224_v24 = vrot.slane %v3163_v15, %v12997_v0  ;;  %v3166_v18 = vpop.xlane.xlu1 %3165  ;;  %vm2445_vm15 = vcmp.gt.f32.partialorder %v13026_v63, %v18035_v23  ;;  %vm2446_vm2 = vcmp.gt.f32.partialorder %v13026_v63, %v18036_v40 }
 0x6df   : > { %v4229_v60 = vrot.slane %v3166_v18, %v13002_v8  ;;  %v10731_v18 = vsel %vm2445_vm15, 1.0, %v18019_v19 }
 0x6e0   : > { %v4225_v29 = vsel %vm4177_vm13, %v4224_v24, %v4220_v9  ;;  %3372 = vadd.xlane.f32.xlu0 %v3371_v35  ;;  %v3380_v24 = vsel %vm747_vm0, %v10730_v58, 0.0 }
 0x6e1   : > { %v4230_v33 = vsel %vm4184_vm14, %v4229_v60, %v4225_v29  ;;  %v3169_v16 = vpop.xlane.xlu0 %3168  ;;  %3375 = vadd.xlane.f32.xlu1 %v3374_v28  ;;  %v18037_v60 = vld [vmem:[#allocation129_spill] sm:$0xff]  ;;  %v10732_v29 = vsel %vm2446_vm2, 1.0, %v18019_v19  ;;  %v18038_v28 = vld [vmem:[#allocation130_spill] sm:$0xff] }
 0x6e2   : > { %v4234_v17 = vrot.slane %v3169_v16, %v13018_v42  ;;  %v3172_v9 = vpop.xlane.xlu1 %3171  ;;  %vm2447_vm4 = vcmp.gt.f32.partialorder %v13026_v63, %v18037_v60  ;;  %vm2448_vm6 = vcmp.gt.f32.partialorder %v13104_v47, %v18038_v28  ;;  %v3383_v16 = vsel %vm747_vm0, %v10731_v18, 0.0 }
 0x6e3   : > { %v4239_v15 = vrot.slane %v3172_v9, %v13023_v61  ;;  %v3386_v58 = vsel %vm747_vm0, %v10732_v29, 0.0  ;;  %v10733_v40 = vsel %vm2447_vm4, 1.0, %v18019_v19 }
 0x6e4   : > { %v4235_v10 = vsel %vm4191_vm1, %v4234_v17, %v4230_v33  ;;  %3378 = vadd.xlane.f32.xlu0 %v3377_v54  ;;  %v18039_v17 = vld [vmem:[#allocation131_spill] sm:$0xff]  ;;  %v18040_v54 = vld [vmem:[#allocation132_spill] sm:$0xff] }
 0x6e5   : > { %v4240_v38 = vsel %vm4198_vm3, %v4239_v15, %v4235_v10  ;;  %v3175_v35 = vpop.xlane.xlu0 %3174  ;;  %3381 = vadd.xlane.f32.xlu1 %v3380_v24  ;;  %vm2449_vm8 = vcmp.gt.f32.partialorder %v13104_v47, %v18039_v17  ;;  %v10734_v15 = vsel %vm2448_vm6, 1.0, %v18019_v19  ;;  %vm2450_vm11 = vcmp.gt.f32.partialorder %v13104_v47, %v18040_v54 }
 0x6e6   : > { %v4244_v23 = vrot.slane %v3175_v35, %v13045_v46  ;;  %v3178_v33 = vpop.xlane.xlu1 %3177  ;;  %v13133_v10 = vrot.slane %v933_v50, %v12591_v36  ;;  %v3389_v35 = vsel %vm747_vm0, %v10733_v40, 0.0  ;;  %v3392_v29 = vsel %vm747_vm0, %v10734_v15, 0.0 }
 0x6e7   : > { %v4249_v24 = vrot.slane %v3178_v33, %v12973_v14  ;;  %v10735_v28 = vsel %vm2449_vm8, 1.0, %v18019_v19 }
 0x6e8   : > { %v4245_v63 = vsel %vm4205_vm5, %v4244_v23, %v4240_v38  ;;  %3384 = vadd.xlane.f32.xlu0 %v3383_v16  ;;  %v18041_v23 = vld [vmem:[#allocation133_spill] sm:$0xff]  ;;  %v10736_v16 = vsel %vm2450_vm11, 1.0, %v18019_v19  ;;  %v3395_v15 = vsel %vm747_vm0, %v10735_v28, 0.0  ;;  %vm17640_vm11 = vcmask 1042434  }
 0x6e9   : > { %v5417_v9 = vsel %vm17641_vm7, %v4245_v63, %v13067_v49  ;;  %v3181_v13 = vpop.xlane.xlu0 %3180  ;;  %3387 = vadd.xlane.f32.xlu1 %v3386_v58  ;;  %vm2451_vm12 = vcmp.gt.f32.partialorder %v13104_v47, %v18041_v23  ;;  %v18042_v63 = vld [vmem:[#allocation134_spill] sm:$0xff]  ;;  %v13150_v58 = vrot.slane %v13133_v10, %v12591_v36 }
 0x6ea   : > { %v4253_v18 = vrot.slane %v3181_v13, %v12977_v34  ;;  %v3184_v60 = vpop.xlane.xlu1 %3183  ;;  %vm2452_vm15 = vcmp.gt.f32.partialorder %v13104_v47, %v18042_v63 }
 0x6eb   : > { %v4258_v38 = vrot.slane %v3184_v60, %v12982_v57  ;;  %v18043_v60 = vld [vmem:[#allocation135_spill] sm:$0xff]  ;;  %v13166_v28 = vrot.slane %v13150_v58, %v11859_v4 }
 0x6ec   : > { %v4254_v49 = vsel %vm4163_vm9, %v4253_v18, %v4249_v24  ;;  %3390 = vadd.xlane.f32.xlu0 %v3389_v35  ;;  %v3398_v24 = vsel %vm747_vm0, %v10736_v16, 0.0  ;;  %v10737_v18 = vsel %vm2451_vm12, 1.0, %v18019_v19  ;;  %vm2453_vm2 = vcmp.gt.f32.partialorder %v13104_v47, %v18043_v60  ;;  %v18046_v60 = vld [vmem:[#allocation138_spill] sm:$0xff] }
 0x6ed   : > { %v4259_v50 = vsel %vm4170_vm10, %v4258_v38, %v4254_v49  ;;  %v3187_v33 = vpop.xlane.xlu0 %3186  ;;  %3393 = vadd.xlane.f32.xlu1 %v3392_v29  ;;  %v10738_v49 = vsel %vm2452_vm15, 1.0, %v18019_v19  ;;  %v18044_v29 = vld [vmem:[#allocation136_spill] sm:$0xff]  ;;  %v3401_v16 = vsel %vm747_vm0, %v10737_v18, 0.0  ;;  %vm2456_vm8 = vcmp.gt.f32.partialorder %v13166_v28, %v18046_v60 }
 0x6ee   : > { %v4263_v40 = vrot.slane %v3187_v33, %v12997_v0  ;;  %v3190_v17 = vpop.xlane.xlu1 %3189  ;;  %vm2454_vm4 = vcmp.gt.f32.partialorder %v13104_v47, %v18044_v29 }
 0x6ef   : > { %v4268_v13 = vrot.slane %v3190_v17, %v13002_v8  ;;  %v10739_v17 = vsel %vm2453_vm2, 1.0, %v18019_v19 }
 0x6f0   : > { %v4264_v54 = vsel %vm4177_vm13, %v4263_v40, %v4259_v50  ;;  %3396 = vadd.xlane.f32.xlu0 %v3395_v15  ;;  %v3404_v40 = vsel %vm747_vm0, %v10738_v49, 0.0 }
 0x6f1   : > { %v4269_v38 = vsel %vm4184_vm14, %v4268_v13, %v4264_v54  ;;  %v3193_v35 = vpop.xlane.xlu0 %3192  ;;  %3399 = vadd.xlane.f32.xlu1 %v3398_v24  ;;  %v18045_v13 = vld [vmem:[#allocation137_spill] sm:$0xff]  ;;  %v10740_v24 = vsel %vm2454_vm4, 1.0, %v18019_v19 }
 0x6f2   : > { %v4273_v23 = vrot.slane %v3193_v35, %v13018_v42  ;;  %v3196_v50 = vpop.xlane.xlu1 %3195  ;;  %vm2455_vm6 = vcmp.gt.f32.partialorder %v13104_v47, %v18045_v13  ;;  %v3407_v35 = vsel %vm747_vm0, %v10739_v17, 0.0  ;;  %v3410_v47 = vsel %vm747_vm0, %v10740_v24, 0.0 }
 0x6f3   : > { %v4278_v33 = vrot.slane %v3196_v50, %v13023_v61  ;;  %v10741_v29 = vsel %vm2455_vm6, 1.0, %v18019_v19 }
 0x6f4   : > { %v4274_v63 = vsel %vm4191_vm1, %v4273_v23, %v4269_v38  ;;  %3402 = vadd.xlane.f32.xlu0 %v3401_v16  ;;  %v18047_v23 = vld [vmem:[#allocation139_spill] sm:$0xff]  ;;  %v10742_v16 = vsel %vm2456_vm8, 1.0, %v18019_v19  ;;  %v3413_v24 = vsel %vm747_vm0, %v10741_v29, 0.0 }
 0x6f5   : > { %v4279_v15 = vsel %vm4198_vm3, %v4278_v33, %v4274_v63  ;;  %v3199_v54 = vpop.xlane.xlu0 %3198  ;;  %3405 = vadd.xlane.f32.xlu1 %v3404_v40  ;;  %vm2457_vm12 = vcmp.gt.f32.partialorder %v13166_v28, %v18047_v23  ;;  %v18048_v63 = vld [vmem:[#allocation140_spill] sm:$0xff]  ;;  %v949_v40 = vcombine.high %v13133_v10, %v13133_v10  ;;  %v3416_v60 = vsel %vm747_vm0, %v10742_v16, 0.0 }
 0x6f6   : > { %v4283_v18 = vrot.slane %v3199_v54, %v13045_v46  ;;  %v3202_v38 = vpop.xlane.xlu1 %3201  ;;  %vm2458_vm15 = vcmp.gt.f32.partialorder %v13166_v28, %v18048_v63 }
 0x6f7   : > { %v4288_v17 = vrot.slane %v3202_v38, %v12973_v14  ;;  %v13207_v29 = vrot.slane %v949_v40, %v12591_v36 }
 0x6f8   : > { %v4284_v49 = vsel %vm4205_vm5, %v4283_v18, %v4279_v15  ;;  %3408 = vadd.xlane.f32.xlu0 %v3407_v35  ;;  %v10743_v18 = vsel %vm2457_vm12, 1.0, %v18019_v19  ;;  %v18049_v35 = vld [vmem:[#allocation141_spill] sm:$0xff] }
 0x6f9   : > { %v5419_v50 = vsel %vm17640_vm11, %v4284_v49, %v5417_v9  ;;  %v3205_v33 = vpop.xlane.xlu0 %3204  ;;  %3411 = vadd.xlane.f32.xlu1 %v3410_v47  ;;  %vm2459_vm2 = vcmp.gt.f32.partialorder %v13166_v28, %v18049_v35  ;;  %v10744_v49 = vsel %vm2458_vm15, 1.0, %v18019_v19  ;;  %v18050_v47 = vld [vmem:[#allocation142_spill] sm:$0xff]  ;;  %v3419_v63 = vsel %vm747_vm0, %v10743_v18, 0.0 }
 0x6fa   : > { %v4292_v13 = vrot.slane %v3205_v33, %v12977_v34  ;;  %v3208_v15 = vpop.xlane.xlu1 %3207  ;;  %vm2460_vm4 = vcmp.gt.f32.partialorder %v13166_v28, %v18050_v47 }
 0x6fb   : > { %v4297_v54 = vrot.slane %v3208_v15, %v12982_v57  ;;  %v10745_v15 = vsel %vm2459_vm2, 1.0, %v18019_v19  ;;  %v10746_v40 = vsel %vm2460_vm4, 1.0, %v18019_v19  ;;  %vm17639_vm2 = vcmask 1043459  }
 0x6fc   : > { %v4293_v9 = vsel %vm4163_vm9, %v4292_v13, %v4288_v17  ;;  %3414 = vadd.xlane.f32.xlu0 %v3413_v24  ;;  %v3422_v13 = vsel %vm747_vm0, %v10744_v49, 0.0  ;;  %v3425_v49 = vsel %vm747_vm0, %v10745_v15, 0.0 }
 0x6fd   : > { %v4298_v10 = vsel %vm4170_vm10, %v4297_v54, %v4293_v9  ;;  %v3211_v38 = vpop.xlane.xlu0 %3210  ;;  %3417 = vadd.xlane.f32.xlu1 %v3416_v60  ;;  %v18051_v54 = vld [vmem:[#allocation143_spill] sm:$0xff]  ;;  %v18052_v9 = vld [vmem:[#allocation144_spill] sm:$0xff]  ;;  %v13222_v60 = vrot.slane %v13207_v29, %v11859_v4 }
 0x6fe   : > { %v4302_v23 = vrot.slane %v3211_v38, %v12997_v0  ;;  %v3214_v33 = vpop.xlane.xlu1 %3213  ;;  %vm2461_vm6 = vcmp.gt.f32.partialorder %v13166_v28, %v18051_v54  ;;  %vm2462_vm8 = vcmp.gt.f32.partialorder %v13166_v28, %v18052_v9 }
 0x6ff   : > { %v4307_v16 = vrot.slane %v3214_v33, %v13002_v8  ;;  %v10747_v33 = vsel %vm2461_vm6, 1.0, %v18019_v19  ;;  %v10748_v54 = vsel %vm2462_vm8, 1.0, %v18019_v19 }
 0x700   : > { %v4303_v17 = vsel %vm4177_vm13, %v4302_v23, %v4298_v10  ;;  %3420 = vadd.xlane.f32.xlu0 %v3419_v63  ;;  %v3428_v23 = vsel %vm747_vm0, %v10746_v40, 0.0  ;;  %v18053_v63 = vld [vmem:[#allocation145_spill] sm:$0xff]  ;;  %v3431_v40 = vsel %vm747_vm0, %v10747_v33, 0.0 }
 0x701   : > { %v3217_v24 = vpop.xlane.xlu0 %3216  ;;  %3423 = vadd.xlane.f32.xlu1 %v3422_v13  ;;  %v4308_v10 = vsel %vm4184_vm14, %v4307_v16, %v4303_v17  ;;  %vm2463_vm12 = vcmp.gt.f32.partialorder %v13166_v28, %v18053_v63  ;;  %v3434_v28 = vsel %vm747_vm0, %v10748_v54, 0.0  ;;  %v18057_v54 = vld [vmem:[#allocation149_spill] sm:$0xff] }
 0x702   : > { %v4312_v18 = vrot.slane %v3217_v24, %v13018_v42  ;;  %v3220_v35 = vpop.xlane.xlu1 %3219  ;;  %v18054_v24 = vld [vmem:[#allocation146_spill] sm:$0xff]  ;;  %vm2467_vm8 = vcmp.gt.f32.partialorder %v13222_v60, %v18057_v54 }
 0x703   : > { %v4317_v38 = vrot.slane %v3220_v35, %v13023_v61  ;;  %vm2464_vm15 = vcmp.gt.f32.partialorder %v13222_v60, %v18054_v24  ;;  %v18055_v35 = vld [vmem:[#allocation147_spill] sm:$0xff] }
 0x704   : > { %v4313_v47 = vsel %vm4191_vm1, %v4312_v18, %v4308_v10  ;;  %3426 = vadd.xlane.f32.xlu0 %v3425_v49  ;;  %v10749_v18 = vsel %vm2463_vm12, 1.0, %v18019_v19  ;;  %vm2465_vm4 = vcmp.gt.f32.partialorder %v13222_v60, %v18055_v35  ;;  %v18059_v35 = vld [vmem:[#allocation151_spill] sm:$0xff] }
 0x705   : > { %v3223_v13 = vpop.xlane.xlu0 %3222  ;;  %3429 = vadd.xlane.f32.xlu1 %v3428_v23  ;;  %v4318_v15 = vsel %vm4198_vm3, %v4317_v38, %v4313_v47  ;;  %v10750_v38 = vsel %vm2464_vm15, 1.0, %v18019_v19  ;;  %v18056_v47 = vld [vmem:[#allocation148_spill] sm:$0xff]  ;;  %v3437_v33 = vsel %vm747_vm0, %v10749_v18, 0.0  ;;  %v10753_v18 = vsel %vm2467_vm8, 1.0, %v18019_v19 }
 0x706   : > { %v4322_v16 = vrot.slane %v3223_v13, %v13045_v46  ;;  %v13237_v17 = vpop.xlane.xlu1 %3225  ;;  %vm2466_vm6 = vcmp.gt.f32.partialorder %v13222_v60, %v18056_v47  ;;  %v3440_v63 = vsel %vm747_vm0, %v10750_v38, 0.0  ;;  %v10751_v13 = vsel %vm2465_vm4, 1.0, %v18019_v19 }
 0x707   : > { %v10752_v24 = vsel %vm2466_vm6, 1.0, %v18019_v19  ;;  %vm2469_vm15 = vcmp.gt.f32.partialorder %v13222_v60, %v18059_v35  ;;  %v18062_v35 = vld [vmem:[#allocation154_spill] sm:$0xff] }
 0x708   : > { %v4323_v9 = vsel %vm4205_vm5, %v4322_v16, %v4318_v15  ;;  %3432 = vadd.xlane.f32.xlu0 %v3431_v40  ;;  %v18058_v16 = vld [vmem:[#allocation150_spill] sm:$0xff]  ;;  %v979_v15 = vcombine.high %v13150_v58, %v13150_v58 }
 0x709   : > { %v13247_v10 = vsel %vm17639_vm2, %v4323_v9, %v5419_v50  ;;  %v13249_v49 = vpop.xlane.xlu0 %3228  ;;  %3435 = vadd.xlane.f32.xlu1 %v3434_v28  ;;  %vm2468_vm12 = vcmp.gt.f32.partialorder %v13222_v60, %v18058_v16  ;;  %v3443_v9 = vsel %vm747_vm0, %v10751_v13, 0.0  ;;  %v3446_v28 = vsel %vm747_vm0, %v10752_v24, 0.0  ;;  %v18061_v16 = vld [vmem:[#allocation153_spill] sm:$0xff] }
 0x70a   : > { %v13254_v23 = vpop.xlane.xlu1 %3231  ;;  %v10754_v47 = vsel %vm2468_vm12, 1.0, %v18019_v19  ;;  %v13281_v58 = vrot.slane %v979_v15, %v11859_v4  ;;  %v3449_v13 = vsel %vm747_vm0, %v10753_v18, 0.0  ;;  %v10755_v24 = vsel %vm2469_vm15, 1.0, %v18019_v19 }
 0x70b   : > { %v3452_v54 = vsel %vm747_vm0, %v10754_v47, 0.0  ;;  %vm2471_vm6 = vcmp.gt.f32.partialorder %v13222_v60, %v18061_v16  ;;  %v3455_v18 = vsel %vm747_vm0, %v10755_v24, 0.0  ;;  %v18064_v16 = vld [vmem:[#allocation156_spill] sm:$0xff]  ;;  %v4331_v32 = vrot.slane %v13249_v49, %v12977_v34 }
 0x70c   : > { %3438 = vadd.xlane.f32.xlu0 %v3437_v33  ;;  %v18060_v33 = vld [vmem:[#allocation152_spill] sm:$0xff]  ;;  %vm2472_vm8 = vcmp.gt.f32.partialorder %v13281_v58, %v18062_v35  ;;  %vm2474_vm15 = vcmp.gt.f32.partialorder %v13281_v58, %v18064_v16 }
 0x70d   : > { %v13261_v50 = vpop.xlane.xlu0 %3234  ;;  %3441 = vadd.xlane.f32.xlu1 %v3440_v63  ;;  %vm2470_vm4 = vcmp.gt.f32.partialorder %v13222_v60, %v18060_v33  ;;  %v10757_v33 = vsel %vm2471_vm6, 1.0, %v18019_v19  ;;  %vm2476_vm6 = vcmp.gt.f32.partialorder %v13281_v58, %v18066_v21 }
 0x70e   : > { %v13268_v40 = vpop.xlane.xlu1 %3237  ;;  %v3461_v24 = vsel %vm747_vm0, %v10757_v33, 0.0  ;;  %v981_v33 = vcombine.high %v13207_v29, %v13207_v29  ;;  %v10762_v21 = vsel %vm2476_vm6, 1.0, %v18019_v19 }
 0x710   : > { %3444 = vadd.xlane.f32.xlu0 %v3443_v9  ;;  %v2263_v29 = vrot.slane %v981_v33, %v11859_v4 }
 0x711   : > { %v13275_v38 = vpop.xlane.xlu0 %3240  ;;  %3447 = vadd.xlane.f32.xlu1 %v3446_v28  ;;  %v10756_v28 = vsel %vm2470_vm4, 1.0, %v18019_v19  ;;  %vm2475_vm4 = vcmp.gt.f32.partialorder %v13281_v58, %v18065_v3 }
 0x712   : > { %v13283_v63 = vpop.xlane.xlu1 %3243  ;;  %v3458_v47 = vsel %vm747_vm0, %v10756_v28, 0.0  ;;  %v10761_v3 = vsel %vm2475_vm4, 1.0, %v18019_v19  ;;  %vm2480_vm4 = vcmp.gt.f32.partialorder %v2263_v29, %v18070_v53  ;;  %vm2487_vm11 = vcmp.gt.f32.partialorder %v2263_v29, %v18077_v1 }
 0x713   : > { %v10766_v53 = vsel %vm2480_vm4, 1.0, %v18019_v19  ;;  %vm2485_vm4 = vcmp.gt.f32.partialorder %v2263_v29, %v18075_v12  ;;  %v10773_v59 = vsel %vm2487_vm11, 1.0, %v18019_v19 }
 0x714   : > { %3450 = vadd.xlane.f32.xlu0 %v3449_v13  ;;  %v18063_v13 = vld [vmem:[#allocation155_spill] sm:$0xff] }
 0x715   : > { %v13290_v9 = vpop.xlane.xlu0 %3246  ;;  %3453 = vadd.xlane.f32.xlu1 %v3452_v54  ;;  %vm2473_vm12 = vcmp.gt.f32.partialorder %v13281_v58, %v18063_v13  ;;  %v10758_v54 = vsel %vm2472_vm8, 1.0, %v18019_v19  ;;  %vm2477_vm8 = vcmp.gt.f32.partialorder %v13281_v58, %v18067_v2  ;;  %v3476_v2 = vsel %vm747_vm0, %v10762_v21, 0.0 }
 0x716   : > { %v13295_v15 = vpop.xlane.xlu1 %3249  ;;  %v3464_v28 = vsel %vm747_vm0, %v10758_v54, 0.0 }
 0x718   : > { %3456 = vadd.xlane.f32.xlu0 %v3455_v18  ;;  %v10759_v18 = vsel %vm2473_vm12, 1.0, %v18019_v19  ;;  %vm2478_vm12 = vcmp.gt.f32.partialorder %v13281_v58, %v18068_v51 }
 0x719   : > { %v13302_v60 = vpop.xlane.xlu0 %3252  ;;  %3459 = vadd.xlane.f32.xlu1 %v3458_v47  ;;  %v10760_v47 = vsel %vm2474_vm15, 1.0, %v18019_v19  ;;  %v3467_v54 = vsel %vm747_vm0, %v10759_v18, 0.0  ;;  %v13337_v18 = vld [vmem:[%s12093_s13 + $0x10] sm:$0xff]  ;;  %vm2479_vm15 = vcmp.gt.f32.partialorder %v13281_v58, %v18069_v20  ;;  %v10764_v33 = vsel %vm2478_vm12, 1.0, %v18019_v19 }
 0x71a   : > { %v13307_v35 = vpop.xlane.xlu1 %3255  ;;  %v3482_v20 = vsel %vm747_vm0, %v10764_v33, 0.0  ;;  %v10765_v58 = vsel %vm2479_vm15, 1.0, %v18019_v19  ;;  %v4370_v1 = vrot.slane %v13302_v60, %v12977_v34 }
 0x71b   : > { %v3485_v33 = vsel %vm747_vm0, %v10765_v58, 0.0 }
 0x71c   : > { %3462 = vadd.xlane.f32.xlu0 %v3461_v24  ;;  %v3470_v24 = vsel %vm747_vm0, %v10760_v47, 0.0  ;;  %v989_v47 = vrot.slane %v13337_v18, %v12591_v36 }
 0x71d   : > { %v13314_v13 = vpop.xlane.xlu0 %3258  ;;  %3465 = vadd.xlane.f32.xlu1 %v3464_v28 }
 0x71e   : > { %v13321_v16 = vpop.xlane.xlu1 %3261  ;;  %v13353_v5 = vrot.slane %v989_v47, %v12591_v36 }
 0x720   : > { %3468 = vadd.xlane.f32.xlu0 %v3467_v54  ;;  %v3473_v54 = vsel %vm747_vm0, %v10761_v3, 0.0  ;;  %v997_v3 = vcombine.high %v989_v47, %v989_v47  ;;  %v13367_v47 = vrot.slane %v13353_v5, %v11859_v4 }
 0x721   : > { %v13328_v28 = vpop.xlane.xlu0 %3264  ;;  %3471 = vadd.xlane.f32.xlu1 %v3470_v24  ;;  %v10763_v24 = vsel %vm2477_vm8, 1.0, %v18019_v19  ;;  %vm2482_vm8 = vcmp.gt.f32.partialorder %v2263_v29, %v18072_v56  ;;  %v3488_v56 = vsel %vm747_vm0, %v10766_v53, 0.0 }
 0x722   : > { %v13334_v48 = vpop.xlane.xlu1 %3267  ;;  %v3479_v21 = vsel %vm747_vm0, %v10763_v24, 0.0  ;;  %v13370_v24 = vrot.slane %v997_v3, %v12591_v36  ;;  %v10768_v25 = vsel %vm2482_vm8, 1.0, %v18019_v19  ;;  %v18076_v3 = vld [vmem:[#allocation168_spill] sm:$0xff] }
 0x723   : > { %vm2486_vm2 = vcmp.gt.f32.partialorder %v2263_v29, %v18076_v3  ;;  %v4327_v3 = vrot.slane %v13237_v17, %v12973_v14  ;;  %v3509_v17 = vsel %vm747_vm0, %v10773_v59, 0.0  ;;  %v4375_v59 = vrot.slane %v13307_v35, %v12982_v57 }
 0x724   : > { %3474 = vadd.xlane.f32.xlu0 %v3473_v54  ;;  %v18071_v54 = vld [vmem:[#allocation163_spill] sm:$0xff]  ;;  %v13397_v52 = vrot.slane %v13370_v24, %v11859_v4  ;;  %v10772_v37 = vsel %vm2486_vm2, 1.0, %v18019_v19  ;;  %vm2494_vm2 = vcmp.gt.f32.partialorder %v13367_v47, %v12440_v11 }
 0x725   : > { %v13346_v51 = vpop.xlane.xlu0 %3270  ;;  %3477 = vadd.xlane.f32.xlu1 %v3476_v2  ;;  %vm2481_vm6 = vcmp.gt.f32.partialorder %v2263_v29, %v18071_v54  ;;  %v18073_v54 = vld [vmem:[#allocation165_spill] sm:$0xff] }
 0x726   : > { %v13350_v22 = vpop.xlane.xlu1 %3273  ;;  %vm2483_vm12 = vcmp.gt.f32.partialorder %v2263_v29, %v18073_v54 }
 0x727   : > { %v10769_v12 = vsel %vm2483_vm12, 1.0, %v18019_v19  ;;  %vm2491_vm12 = vcmp.gt.f32.partialorder %v13367_v47, %v18081_v62 }
 0x728   : > { %3480 = vadd.xlane.f32.xlu0 %v3479_v21  ;;  %v10767_v21 = vsel %vm2481_vm6, 1.0, %v18019_v19  ;;  %vm2488_vm6 = vcmp.gt.f32.partialorder %v13367_v47, %v18078_v26  ;;  %v4336_v26 = vrot.slane %v13254_v23, %v12982_v57  ;;  %v10777_v60 = vsel %vm2491_vm12, 1.0, %v18019_v19 }
 0x729   : > { %v13359_v2 = vpop.xlane.xlu0 %3276  ;;  %3483 = vadd.xlane.f32.xlu1 %v3482_v20  ;;  %v18074_v20 = vld [vmem:[#allocation166_spill] sm:$0xff]  ;;  %v3491_v54 = vsel %vm747_vm0, %v10767_v21, 0.0  ;;  %v3494_v21 = vsel %vm747_vm0, %v10768_v25, 0.0  ;;  %v3497_v25 = vsel %vm747_vm0, %v10769_v12, 0.0  ;;  %v10774_v49 = vsel %vm2488_vm6, 1.0, %v18019_v19 }
 0x72a   : > { %v13363_v7 = vpop.xlane.xlu1 %3279  ;;  %vm2484_vm15 = vcmp.gt.f32.partialorder %v2263_v29, %v18074_v20  ;;  %v18079_v20 = vld [vmem:[#allocation171_spill] sm:$0xff]  ;;  %v4409_v23 = vrot.slane %v13359_v2, %v12977_v34  ;;  %v3512_v62 = vsel %vm747_vm0, %v10774_v49, 0.0  ;;  %v4405_v2 = vrot.slane %v13350_v22, %v12973_v14 }
 0x72b   : > { %v10770_v53 = vsel %vm2484_vm15, 1.0, %v18019_v19  ;;  %vm2489_vm8 = vcmp.gt.f32.partialorder %v13367_v47, %v18079_v20  ;;  %v4341_v20 = vrot.slane %v13261_v50, %v12997_v0  ;;  %v4346_v49 = vrot.slane %v13268_v40, %v13002_v8 }
 0x72c   : > { %3486 = vadd.xlane.f32.xlu0 %v3485_v33  ;;  %v10771_v33 = vsel %vm2485_vm4, 1.0, %v18019_v19  ;;  %v3500_v41 = vsel %vm747_vm0, %v10770_v53, 0.0  ;;  %v10775_v29 = vsel %vm2489_vm8, 1.0, %v18019_v19  ;;  %v3506_v53 = vsel %vm747_vm0, %v10772_v37, 0.0 }
 0x72d   : > { %v13378_v43 = vpop.xlane.xlu0 %3282  ;;  %3489 = vadd.xlane.f32.xlu1 %v3488_v56  ;;  %v18080_v56 = vld [vmem:[#allocation172_spill] sm:$0xff]  ;;  %v3503_v45 = vsel %vm747_vm0, %v10771_v33, 0.0  ;;  %v4332_v33 = vsel %vm4163_vm9, %v4331_v32, %v4327_v3  ;;  %v3515_v32 = vsel %vm747_vm0, %v10775_v29, 0.0  ;;  %v18082_v3 = vld [vmem:[#allocation174_spill] sm:$0xff]  ;;  %v4351_v22 = vrot.slane %v13275_v38, %v13018_v42 }
 0x72e   : > { %v13383_v58 = vpop.xlane.xlu1 %3285  ;;  %vm2490_vm7 = vcmp.gt.f32.partialorder %v13367_v47, %v18080_v56  ;;  %v4366_v56 = vrot.slane %v13295_v15, %v12973_v14  ;;  %v4380_v15 = vrot.slane %v13314_v13, %v12997_v0  ;;  %v4337_v35 = vsel %vm4170_vm10, %v4336_v26, %v4332_v33 }
 0x72f   : > { %v10776_v12 = vsel %vm2490_vm7, 1.0, %v18019_v19  ;;  %vm2492_vm7 = vcmp.gt.f32.partialorder %v13367_v47, %v18082_v3  ;;  %v4342_v13 = vsel %vm4177_vm13, %v4341_v20, %v4337_v35  ;;  %v4410_v29 = vsel %vm4163_vm9, %v4409_v23, %v4405_v2  ;;  %v18083_v20 = vld [vmem:[#allocation175_spill] sm:$0xff] }
 0x730   : > { %3492 = vadd.xlane.f32.xlu0 %v3491_v54  ;;  %v4371_v50 = vsel %vm4163_vm9, %v4370_v1, %v4366_v56  ;;  %v4414_v1 = vrot.slane %v13363_v7, %v12982_v57  ;;  %v4385_v40 = vrot.slane %v13321_v16, %v13002_v8  ;;  %vm2493_vm11 = vcmp.gt.f32.partialorder %v13367_v47, %v18083_v20 }
 0x731   : > { %v13404_v30 = vpop.xlane.xlu0 %3288  ;;  %3495 = vadd.xlane.f32.xlu1 %v3494_v21  ;;  %v4376_v26 = vsel %vm4170_vm10, %v4375_v59, %v4371_v50  ;;  %v4424_v16 = vrot.slane %v13383_v58, %v13002_v8  ;;  %v10778_v59 = vsel %vm2492_vm7, 1.0, %v18019_v19  ;;  %vm17646_vm15 = vcmask 1044484  }
 0x732   : > { %v13412_v54 = vpop.xlane.xlu1 %3291  ;;  %v4381_v38 = vsel %vm4177_vm13, %v4380_v15, %v4376_v26  ;;  %v4415_v56 = vsel %vm4170_vm10, %v4414_v1, %v4410_v29  ;;  %v4429_v15 = vrot.slane %v13404_v30, %v13018_v42  ;;  %v3524_v26 = vsel %vm747_vm0, %v10778_v59, 0.0 }
 0x733   : > { %v4386_v3 = vsel %vm4184_vm14, %v4385_v40, %v4381_v38  ;;  %vm17645_vm4 = vcmask 1045509   ;;  %vm17644_vm8 = vcmask 1046534   ;;  %vm17643_vm7 = vcmask 1047559  }
 0x734   : > { %3498 = vadd.xlane.f32.xlu0 %v3497_v25  ;;  %v3518_v25 = vsel %vm747_vm0, %v10776_v12, 0.0  ;;  %v4419_v12 = vrot.slane %v13378_v43, %v12997_v0  ;;  %v4390_v43 = vrot.slane %v13328_v28, %v13018_v42  ;;  %v4356_v28 = vrot.slane %v13283_v63, %v13023_v61 }
 0x735   : > { %v13448_v21 = vpop.xlane.xlu0 %3294  ;;  %3501 = vadd.xlane.f32.xlu1 %v3500_v41  ;;  %v13461_v41 = vsel %vm747_vm0, %v10777_v60, 0.0  ;;  %v4395_v63 = vrot.slane %v13334_v48, %v13023_v61 }
 0x736   : > { %v3298_v37 = vpop.xlane.xlu1 %3297  ;;  %v4420_v50 = vsel %vm4177_vm13, %v4419_v12, %v4415_v56  ;;  %v4391_v1 = vsel %vm4191_vm1, %v4390_v43, %v4386_v3  ;;  %v4439_v48 = vrot.slane %v13448_v21, %v13045_v46  ;;  %v18084_v43 = vld [vmem:[#allocation176_spill] sm:$0xff] }
 0x737   : > { %v4444_v7 = vrot.slane %v3298_v37, %v12973_v14  ;;  %v4347_v37 = vsel %vm4184_vm14, %v4346_v49, %v4342_v13  ;;  %vm2495_vm6 = vcmp.gt.f32.partialorder %v13367_v47, %v18084_v43 }
 0x738   : > { %3504 = vadd.xlane.f32.xlu0 %v3503_v45  ;;  %v4352_v58 = vsel %vm4191_vm1, %v4351_v22, %v4347_v37  ;;  %v4425_v22 = vsel %vm4184_vm14, %v4424_v16, %v4420_v50  ;;  %v10780_v16 = vsel %vm2494_vm2, 1.0, %v18019_v19 }
 0x739   : > { %v3301_v60 = vpop.xlane.xlu0 %3300  ;;  %3507 = vadd.xlane.f32.xlu1 %v3506_v53  ;;  %v4430_v12 = vsel %vm4191_vm1, %v4429_v15, %v4425_v22 }
 0x73a   : > { %v4448_v45 = vrot.slane %v3301_v60, %v12977_v34  ;;  %v3304_v33 = vpop.xlane.xlu1 %3303 }
 0x73b   : > { %v4453_v53 = vrot.slane %v3304_v33, %v12982_v57 }
 0x73c   : > { %v4449_v23 = vsel %vm4163_vm9, %v4448_v45, %v4444_v7  ;;  %3510 = vadd.xlane.f32.xlu0 %v3509_v17  ;;  %v4361_v17 = vrot.slane %v13290_v9, %v13045_v46  ;;  %v4434_v9 = vrot.slane %v13412_v54, %v13023_v61  ;;  %v4357_v54 = vsel %vm4198_vm3, %v4356_v28, %v4352_v58 }
 0x73d   : > { %v3307_v2 = vpop.xlane.xlu0 %3306  ;;  %3513 = vadd.xlane.f32.xlu1 %v3512_v62  ;;  %v4454_v13 = vsel %vm4170_vm10, %v4453_v53, %v4449_v23  ;;  %v4400_v62 = vrot.slane %v13346_v51, %v13045_v46  ;;  %v10779_v51 = vsel %vm2493_vm11, 1.0, %v18019_v19  ;;  %v18085_v23 = vld [vmem:[#allocation177_spill] sm:$0xff]  ;;  %v3530_v58 = vsel %vm747_vm0, %v10780_v16, 0.0 }
 0x73e   : > { %v4458_v35 = vrot.slane %v3307_v2, %v12997_v0  ;;  %v3310_v49 = vpop.xlane.xlu1 %3309  ;;  %v4362_v21 = vsel %vm4205_vm5, %v4361_v17, %v4357_v54  ;;  %v4435_v20 = vsel %vm4198_vm3, %v4434_v9, %v4430_v12  ;;  %vm2496_vm12 = vcmp.gt.f32.partialorder %v13397_v52, %v18085_v23  ;;  %v18086_v17 = vld [vmem:[#allocation178_spill] sm:$0xff]  ;;  %v18088_v12 = vld [vmem:[#allocation180_spill] sm:$0xff] }
 0x73f   : > { %v4463_v30 = vrot.slane %v3310_v49, %v13002_v8  ;;  %v4440_v53 = vsel %vm4205_vm5, %v4439_v48, %v4435_v20  ;;  %v5423_v59 = vsel %vm17646_vm15, %v4362_v21, %v13247_v10  ;;  %v3527_v15 = vsel %vm747_vm0, %v10779_v51, 0.0  ;;  %v18089_v51 = vld [vmem:[#allocation181_spill] sm:$0xff]  ;;  %v18090_v20 = vld [vmem:[#allocation182_spill] sm:$0xff] }
 0x740   : > { %v4459_v29 = vsel %vm4177_vm13, %v4458_v35, %v4454_v13  ;;  %3516 = vadd.xlane.f32.xlu0 %v3515_v32  ;;  %v10781_v10 = vsel %vm2495_vm6, 1.0, %v18019_v19  ;;  %vm2497_vm11 = vcmp.gt.f32.partialorder %v13397_v52, %v18086_v17  ;;  %v10782_v49 = vsel %vm2496_vm12, 1.0, %v18019_v19 }
 0x741   : > { %v3313_v60 = vpop.xlane.xlu0 %3312  ;;  %3519 = vadd.xlane.f32.xlu1 %v3518_v25  ;;  %v4396_v25 = vsel %vm4198_vm3, %v4395_v63, %v4391_v1  ;;  %v4464_v7 = vsel %vm4184_vm14, %v4463_v30, %v4459_v29  ;;  %v18087_v1 = vld [vmem:[#allocation179_spill] sm:$0xff]  ;;  %v3536_v9 = vsel %vm747_vm0, %v10782_v49, 0.0  ;;  %v10783_v29 = vsel %vm2497_vm11, 1.0, %v18019_v19  ;;  %v18093_v49 = vld [vmem:[#allocation185_spill] sm:$0xff] }
 0x742   : > { %v4468_v32 = vrot.slane %v3313_v60, %v13018_v42  ;;  %v3316_v40 = vpop.xlane.xlu1 %3315  ;;  %v4401_v33 = vsel %vm4205_vm5, %v4400_v62, %v4396_v25  ;;  %vm2498_vm2 = vcmp.gt.f32.partialorder %v13397_v52, %v18087_v1  ;;  %v3533_v62 = vsel %vm747_vm0, %v10781_v10, 0.0 }
 0x743   : > { %v4473_v45 = vrot.slane %v3316_v40, %v13023_v61  ;;  %v5425_v28 = vsel %vm17645_vm4, %v4401_v33, %v5423_v59  ;;  %vm2499_vm6 = vcmp.gt.f32.partialorder %v13397_v52, %v18088_v12  ;;  %vm2500_vm12 = vcmp.gt.f32.partialorder %v13397_v52, %v18089_v51 }
 0x744   : > { %v4469_v38 = vsel %vm4191_vm1, %v4468_v32, %v4464_v7  ;;  %3522 = vadd.xlane.f32.xlu0 %v13461_v41  ;;  %v5427_v11 = vsel %vm17644_vm8, %v4440_v53, %v5425_v28  ;;  %v1027_v54 = vcombine.high %v13353_v5, %v13353_v5  ;;  %v3539_v25 = vsel %vm747_vm0, %v10783_v29, 0.0 }
 0x745   : > { %v3319_v56 = vpop.xlane.xlu0 %3318  ;;  %3525 = vadd.xlane.f32.xlu1 %v3524_v26  ;;  %v4474_v50 = vsel %vm4198_vm3, %v4473_v45, %v4469_v38  ;;  %v10784_v26 = vsel %vm2498_vm2, 1.0, %v18019_v19  ;;  %v10785_v33 = vsel %vm2499_vm6, 1.0, %v18019_v19  ;;  %vm2501_vm11 = vcmp.gt.f32.partialorder %v13397_v52, %v18090_v20 }
 0x746   : > { %v4478_v41 = vrot.slane %v3319_v56, %v13045_v46  ;;  %v3322_v37 = vpop.xlane.xlu1 %3321  ;;  %v3542_v45 = vsel %vm747_vm0, %v10784_v26, 0.0  ;;  %v10786_v43 = vsel %vm2500_vm12, 1.0, %v18019_v19  ;;  %vm2502_vm2 = vcmp.gt.f32.partialorder %v13397_v52, %v12458_v55 }
 0x747   : > { %v4483_v47 = vrot.slane %v3322_v37, %v12973_v14  ;;  %v13608_v53 = vrot.slane %v1027_v54, %v11859_v4  ;;  %v3545_v59 = vsel %vm747_vm0, %v10785_v33, 0.0  ;;  %v3548_v37 = vsel %vm747_vm0, %v10786_v43, 0.0 }
 0x748   : > { %v4479_v2 = vsel %vm4205_vm5, %v4478_v41, %v4474_v50  ;;  %3528 = vadd.xlane.f32.xlu0 %v3527_v15  ;;  %v10787_v28 = vsel %vm2501_vm11, 1.0, %v18019_v19  ;;  %v18091_v50 = vld [vmem:[#allocation183_spill] sm:$0xff] }
 0x749   : > { %v5429_v3 = vsel %vm17643_vm7, %v4479_v2, %v5427_v11  ;;  %v3325_v35 = vpop.xlane.xlu0 %3324  ;;  %3531 = vadd.xlane.f32.xlu1 %v3530_v58  ;;  %vm2503_vm6 = vcmp.gt.f32.partialorder %v13397_v52, %v18091_v50  ;;  %v10788_v11 = vsel %vm2502_vm2, 1.0, %v18019_v19  ;;  %v18092_v2 = vld [vmem:[#allocation184_spill] sm:$0xff]  ;;  %v3551_v17 = vsel %vm747_vm0, %v10787_v28, 0.0 }
 0x74a   : > { %5456 = vst.msk [vmem:[%s13570_s14] sm:$0xff] %vm747_vm0, %v5429_v3  ;;  %v4487_v63 = vrot.slane %v3325_v35, %v12977_v34  ;;  %v3328_v13 = vpop.xlane.xlu1 %3327  ;;  %vm2504_vm12 = vcmp.gt.f32.partialorder %v13608_v53, %v18092_v2  ;;  %v3554_v52 = vsel %vm747_vm0, %v10788_v11, 0.0  ;;  %v10789_v35 = vsel %vm2503_vm6, 1.0, %v18019_v19 }
 0x74b   : > { %v4492_v30 = vrot.slane %v3328_v13, %v12982_v57  ;;  %vm2505_vm11 = vcmp.gt.f32.partialorder %v13608_v53, %v18093_v49 }
 0x74c   : > { %v4488_v22 = vsel %vm4163_vm9, %v4487_v63, %v4483_v47  ;;  %3534 = vadd.xlane.f32.xlu0 %v3533_v62  ;;  %v10790_v47 = vsel %vm2504_vm12, 1.0, %v18019_v19  ;;  %v18094_v63 = vld [vmem:[#allocation186_spill] sm:$0xff] }
 0x74d   : > { %v4493_v48 = vsel %vm4170_vm10, %v4492_v30, %v4488_v22  ;;  %v3331_v60 = vpop.xlane.xlu0 %3330  ;;  %3537 = vadd.xlane.f32.xlu1 %v3536_v9  ;;  %vm2506_vm2 = vcmp.gt.f32.partialorder %v13608_v53, %v18094_v63  ;;  %v3557_v9 = vsel %vm747_vm0, %v10789_v35, 0.0  ;;  %v3560_v12 = vsel %vm747_vm0, %v10790_v47, 0.0  ;;  %v18100_v47 = vld [vmem:[#allocation192_spill] sm:$0xff] }
 0x74e   : > { %v4497_v32 = vrot.slane %v3331_v60, %v12997_v0  ;;  %v3334_v40 = vpop.xlane.xlu1 %3333  ;;  %v18095_v60 = vld [vmem:[#allocation187_spill] sm:$0xff]  ;;  %v10792_v54 = vsel %vm2506_vm2, 1.0, %v18019_v19  ;;  %vm2510_vm2 = vcmp.gt.f32.partialorder %v13608_v53, %v12476_v27 }
 0x74f   : > { %v4502_v21 = vrot.slane %v3334_v40, %v13002_v8  ;;  %vm2507_vm6 = vcmp.gt.f32.partialorder %v13608_v53, %v18095_v60  ;;  %v1029_v40 = vcombine.high %v13370_v24, %v13370_v24  ;;  %v3566_v20 = vsel %vm747_vm0, %v10792_v54, 0.0 }
 0x750   : > { %v4498_v7 = vsel %vm4177_vm13, %v4497_v32, %v4493_v48  ;;  %3540 = vadd.xlane.f32.xlu0 %v3539_v25  ;;  %v10791_v48 = vsel %vm2505_vm11, 1.0, %v18019_v19  ;;  %v18096_v32 = vld [vmem:[#allocation188_spill] sm:$0xff]  ;;  %v10796_v2 = vsel %vm2510_vm2, 1.0, %v18019_v19  ;;  %vm18101_vm2 = vcmask 1041409  }
 0x751   : > { %v4503_v38 = vsel %vm4184_vm14, %v4502_v21, %v4498_v7  ;;  %v3337_v5 = vpop.xlane.xlu0 %3336  ;;  %3543 = vadd.xlane.f32.xlu1 %v3542_v45  ;;  %vm2508_vm12 = vcmp.gt.f32.partialorder %v13608_v53, %v18096_v32  ;;  %v3563_v45 = vsel %vm747_vm0, %v10791_v48, 0.0 }
 0x752   : > { %v4507_v56 = vrot.slane %v3337_v5, %v13018_v42  ;;  %v3340_v16 = vpop.xlane.xlu1 %3339  ;;  %v18097_v5 = vld [vmem:[#allocation189_spill] sm:$0xff] }
 0x753   : > { %v4512_v23 = vrot.slane %v3340_v16, %v13023_v61  ;;  %vm2509_vm11 = vcmp.gt.f32.partialorder %v13608_v53, %v18097_v5  ;;  %v13662_v16 = vrot.slane %v1029_v40, %v11859_v4 }
 0x754   : > { %v4508_v41 = vsel %vm4191_vm1, %v4507_v56, %v4503_v38  ;;  %3546 = vadd.xlane.f32.xlu0 %v3545_v59  ;;  %v10793_v38 = vsel %vm2507_vm6, 1.0, %v18019_v19  ;;  %v10794_v56 = vsel %vm2508_vm12, 1.0, %v18019_v19 }
 0x755   : > { %v4513_v55 = vsel %vm4198_vm3, %v4512_v23, %v4508_v41  ;;  %v3343_v15 = vpop.xlane.xlu0 %3342  ;;  %3549 = vadd.xlane.f32.xlu1 %v3548_v37  ;;  %v3569_v37 = vsel %vm747_vm0, %v10793_v38, 0.0  ;;  %v3572_v50 = vsel %vm747_vm0, %v10794_v56, 0.0 }
 0x756   : > { %v4517_v58 = vrot.slane %v3343_v15, %v13045_v46  ;;  %v3346_v10 = vpop.xlane.xlu1 %3345  ;;  %v18098_v15 = vld [vmem:[#allocation190_spill] sm:$0xff] }
 0x757   : > { %v4522_v13 = vrot.slane %v3346_v10, %v12973_v14  ;;  %vm2511_vm6 = vcmp.gt.f32.partialorder %v13608_v53, %v18098_v15  ;;  %v982_v10 = vcombine.high %v13337_v18, %v13337_v18  ;;  %v3578_v53 = vsel %vm747_vm0, %v10796_v2, 0.0  ;;  %v18106_v2 = vld [vmem:[#allocation197_spill] sm:$0xff] }
 0x758   : > { %v13625_v3 = vsel %vm4205_vm5, %v4517_v58, %v4513_v55  ;;  %3552 = vadd.xlane.f32.xlu0 %v3551_v17  ;;  %v10795_v55 = vsel %vm2509_vm11, 1.0, %v18019_v19  ;;  %v18099_v58 = vld [vmem:[#allocation191_spill] sm:$0xff]  ;;  %vm2513_vm11 = vcmp.gt.f32.partialorder %v13662_v16, %v18100_v47 }
 0x759   : > { %v3349_v1 = vpop.xlane.xlu0 %3348  ;;  %3555 = vadd.xlane.f32.xlu1 %v3554_v52  ;;  %vm2512_vm12 = vcmp.gt.f32.partialorder %v13662_v16, %v18099_v58  ;;  %v3575_v35 = vsel %vm747_vm0, %v10795_v55, 0.0  ;;  %v18108_v47 = vld [vmem:[#allocation199_spill] sm:$0xff] }
 0x75a   : > { %v4526_v30 = vrot.slane %v3349_v1, %v12977_v34  ;;  %v3352_v62 = vpop.xlane.xlu1 %3351  ;;  %v10797_v1 = vsel %vm2511_vm6, 1.0, %v18019_v19  ;;  %v10798_v18 = vsel %vm2512_vm12, 1.0, %v18019_v19 }
 0x75b   : > { %v4531_v22 = vrot.slane %v3352_v62, %v12982_v57  ;;  %v13691_v62 = vrot.slane %v982_v10, %v12591_v36  ;;  %v3581_v48 = vsel %vm747_vm0, %v10797_v1, 0.0  ;;  %v3584_v60 = vsel %vm747_vm0, %v10798_v18, 0.0 }
 0x75c   : > { %v4527_v29 = vsel %vm4163_vm9, %v4526_v30, %v4522_v13  ;;  %3558 = vadd.xlane.f32.xlu0 %v3557_v9  ;;  %v18102_v30 = vld [vmem:[#allocation193_spill] sm:$0xff] }
 0x75d   : > { %v4532_v26 = vsel %vm4170_vm10, %v4531_v22, %v4527_v29  ;;  %v3355_v51 = vpop.xlane.xlu0 %3354  ;;  %3561 = vadd.xlane.f32.xlu1 %v3560_v12  ;;  %vm2514_vm7 = vcmp.gt.f32.partialorder %v13662_v16, %v18102_v30 }
 0x75e   : > { %v4536_v21 = vrot.slane %v3355_v51, %v12997_v0  ;;  %v3358_v25 = vpop.xlane.xlu1 %3357  ;;  %v18103_v51 = vld [vmem:[#allocation194_spill] sm:$0xff]  ;;  %v10800_v40 = vsel %vm2514_vm7, 1.0, %v18019_v19 }
 0x75f   : > { %v4541_v7 = vrot.slane %v3358_v25, %v13002_v8  ;;  %vm2515_vm6 = vcmp.gt.f32.partialorder %v13662_v16, %v18103_v51  ;;  %v13708_v25 = vrot.slane %v13691_v62, %v12591_v36  ;;  %v3590_v5 = vsel %vm747_vm0, %v10800_v40, 0.0 }
 0x760   : > { %v4537_v33 = vsel %vm4177_vm13, %v4536_v21, %v4532_v26  ;;  %3564 = vadd.xlane.f32.xlu0 %v3563_v45  ;;  %v10799_v26 = vsel %vm2513_vm11, 1.0, %v18019_v19  ;;  %v18104_v21 = vld [vmem:[#allocation195_spill] sm:$0xff]  ;;  %vm2518_vm11 = vcmp.gt.f32.partialorder %v13662_v16, %v12494_v44 }
 0x761   : > { %v4542_v43 = vsel %vm4184_vm14, %v4541_v7, %v4537_v33  ;;  %v3361_v24 = vpop.xlane.xlu0 %3360  ;;  %3567 = vadd.xlane.f32.xlu1 %v3566_v20  ;;  %vm2516_vm12 = vcmp.gt.f32.partialorder %v13662_v16, %v18104_v21  ;;  %v3587_v20 = vsel %vm747_vm0, %v10799_v26, 0.0  ;;  %v10804_v10 = vsel %vm2518_vm11, 1.0, %v18019_v19  ;;  %v18112_v21 = vld [vmem:[#allocation202_spill] sm:$0xff] }
 0x762   : > { %v4546_v23 = vrot.slane %v3361_v24, %v13018_v42  ;;  %v3364_v59 = vpop.xlane.xlu1 %3363  ;;  %v18105_v24 = vld [vmem:[#allocation196_spill] sm:$0xff]  ;;  %v3602_v1 = vsel %vm747_vm0, %v10804_v10, 0.0 }
 0x763   : > { %v4551_v41 = vrot.slane %v3364_v59, %v13023_v61  ;;  %vm2517_vm7 = vcmp.gt.f32.partialorder %v13662_v16, %v18105_v24  ;;  %v10802_v59 = vsel %vm2516_vm12, 1.0, %v18019_v19 }
 0x764   : > { %v4547_v28 = vsel %vm4191_vm1, %v4546_v23, %v4542_v43  ;;  %3570 = vadd.xlane.f32.xlu0 %v3569_v37  ;;  %v10801_v43 = vsel %vm2515_vm6, 1.0, %v18019_v19 }
 0x765   : > { %v4552_v27 = vsel %vm4198_vm3, %v4551_v41, %v4547_v28  ;;  %v3367_v11 = vpop.xlane.xlu0 %3366  ;;  %3573 = vadd.xlane.f32.xlu1 %v3572_v50  ;;  %v13724_v41 = vrot.slane %v13708_v25, %v11859_v4  ;;  %v3593_v55 = vsel %vm747_vm0, %v10801_v43, 0.0 }
 0x766   : > { %v4556_v17 = vrot.slane %v3367_v11, %v13045_v46  ;;  %v3370_v52 = vpop.xlane.xlu1 %3369  ;;  %v10803_v11 = vsel %vm2517_vm7, 1.0, %v18019_v19  ;;  %vm18109_vm7 = vcmask 1042434  }
 0x767   : > { %v4561_v22 = vrot.slane %v3370_v52, %v12973_v14  ;;  %vm2521_vm12 = vcmp.gt.f32.partialorder %v13724_v41, %v18108_v47  ;;  %v18116_v47 = vld [vmem:[#allocation206_spill] sm:$0xff] }
 0x768   : > { %v4557_v49 = vsel %vm4205_vm5, %v4556_v17, %v4552_v27  ;;  %3576 = vadd.xlane.f32.xlu0 %v3575_v35  ;;  %v3596_v27 = vsel %vm747_vm0, %v10802_v59, 0.0  ;;  %v18107_v17 = vld [vmem:[#allocation198_spill] sm:$0xff]  ;;  %v10807_v51 = vsel %vm2521_vm12, 1.0, %v18019_v19 }
 0x769   : > { %v5430_v63 = vsel %vm18101_vm2, %v4557_v49, %v13625_v3  ;;  %v3373_v13 = vpop.xlane.xlu0 %3372  ;;  %3579 = vadd.xlane.f32.xlu1 %v3578_v53  ;;  %vm2519_vm2 = vcmp.gt.f32.partialorder %v13662_v16, %v18106_v2  ;;  %vm2520_vm6 = vcmp.gt.f32.partialorder %v13724_v41, %v18107_v17  ;;  %v3599_v49 = vsel %vm747_vm0, %v10803_v11, 0.0  ;;  %v18115_v17 = vld [vmem:[#allocation205_spill] sm:$0xff] }
 0x76a   : > { %v4565_v9 = vrot.slane %v3373_v13, %v12977_v34  ;;  %v3376_v29 = vpop.xlane.xlu1 %3375  ;;  %v10805_v16 = vsel %vm2519_vm2, 1.0, %v18019_v19  ;;  %v10806_v30 = vsel %vm2520_vm6, 1.0, %v18019_v19  ;;  %vm2524_vm6 = vcmp.gt.f32.partialorder %v13724_v41, %v18112_v21  ;;  %v18121_v21 = vld [vmem:[#allocation210_spill] sm:$0xff] }
 0x76b   : > { %v4570_v12 = vrot.slane %v3376_v29, %v12982_v57  ;;  %v3608_v26 = vsel %vm747_vm0, %v10806_v30, 0.0  ;;  %v10810_v59 = vsel %vm2524_vm6, 1.0, %v18019_v19 }
 0x76c   : > { %v4566_v3 = vsel %vm4163_vm9, %v4565_v9, %v4561_v22  ;;  %3582 = vadd.xlane.f32.xlu0 %v3581_v48  ;;  %v18110_v22 = vld [vmem:[#allocation200_spill] sm:$0xff]  ;;  %v998_v9 = vcombine.high %v13691_v62, %v13691_v62  ;;  %v3620_v2 = vsel %vm747_vm0, %v10810_v59, 0.0 }
 0x76d   : > { %v4571_v54 = vsel %vm4170_vm10, %v4570_v12, %v4566_v3  ;;  %v3379_v32 = vpop.xlane.xlu0 %3378  ;;  %3585 = vadd.xlane.f32.xlu1 %v3584_v60  ;;  %vm2522_vm11 = vcmp.gt.f32.partialorder %v13724_v41, %v18110_v22  ;;  %v3605_v60 = vsel %vm747_vm0, %v10805_v16, 0.0 }
 0x76e   : > { %v4575_v7 = vrot.slane %v3379_v32, %v12997_v0  ;;  %v3382_v45 = vpop.xlane.xlu1 %3381  ;;  %v10808_v40 = vsel %vm2522_vm11, 1.0, %v18019_v19 }
 0x76f   : > { %v4580_v33 = vrot.slane %v3382_v45, %v13002_v8  ;;  %v3614_v43 = vsel %vm747_vm0, %v10808_v40, 0.0 }
 0x770   : > { %v4576_v38 = vsel %vm4177_vm13, %v4575_v7, %v4571_v54  ;;  %3588 = vadd.xlane.f32.xlu0 %v3587_v20  ;;  %v18111_v54 = vld [vmem:[#allocation201_spill] sm:$0xff]  ;;  %v13765_v7 = vrot.slane %v998_v9, %v12591_v36  ;;  %v18118_v9 = vld [vmem:[#allocation207_spill] sm:$0xff] }
 0x771   : > { %v4581_v56 = vsel %vm4184_vm14, %v4580_v33, %v4576_v38  ;;  %v3385_v23 = vpop.xlane.xlu0 %3384  ;;  %3591 = vadd.xlane.f32.xlu1 %v3590_v5  ;;  %vm2523_vm2 = vcmp.gt.f32.partialorder %v13724_v41, %v18111_v54  ;;  %v3611_v38 = vsel %vm747_vm0, %v10807_v51, 0.0  ;;  %v1028_v51 = vcombine.high %v13708_v25, %v13708_v25 }
 0x772   : > { %v4585_v37 = vrot.slane %v3385_v23, %v13018_v42  ;;  %v3388_v28 = vpop.xlane.xlu1 %3387  ;;  %v10809_v24 = vsel %vm2523_vm2, 1.0, %v18019_v19 }
 0x773   : > { %v4590_v50 = vrot.slane %v3388_v28, %v13023_v61  ;;  %v2291_v25 = vrot.slane %v1028_v51, %v11859_v4 }
 0x774   : > { %v4586_v15 = vsel %vm4191_vm1, %v4585_v37, %v4581_v56  ;;  %3594 = vadd.xlane.f32.xlu0 %v3593_v55  ;;  %v18113_v56 = vld [vmem:[#allocation203_spill] sm:$0xff]  ;;  %v13780_v37 = vrot.slane %v13765_v7, %v11859_v4 }
 0x775   : > { %v4591_v44 = vsel %vm4198_vm3, %v4590_v50, %v4586_v15  ;;  %v3391_v58 = vpop.xlane.xlu0 %3390  ;;  %3597 = vadd.xlane.f32.xlu1 %v3596_v27  ;;  %vm2525_vm12 = vcmp.gt.f32.partialorder %v13724_v41, %v18113_v56  ;;  %v3617_v27 = vsel %vm747_vm0, %v10809_v24, 0.0  ;;  %v18123_v56 = vld [vmem:[#allocation212_spill] sm:$0xff] }
 0x776   : > { %v4595_v52 = vrot.slane %v3391_v58, %v13045_v46  ;;  %v3394_v35 = vpop.xlane.xlu1 %3393  ;;  %vm2528_vm2 = vcmp.gt.f32.partialorder %v13780_v37, %v18115_v17  ;;  %vm2529_vm6 = vcmp.gt.f32.partialorder %v13780_v37, %v18116_v47 }
 0x777   : > { %v4600_v29 = vrot.slane %v3394_v35, %v12973_v14  ;;  %v10814_v22 = vsel %vm2528_vm2, 1.0, %v18019_v19 }
 0x778   : > { %v4596_v53 = vsel %vm4205_vm5, %v4595_v52, %v4591_v44  ;;  %3600 = vadd.xlane.f32.xlu0 %v3599_v49  ;;  %v18114_v44 = vld [vmem:[#allocation204_spill] sm:$0xff] }
 0x779   : > { %v5431_v13 = vsel %vm18109_vm7, %v4596_v53, %v5430_v63  ;;  %v3397_v18 = vpop.xlane.xlu0 %3396  ;;  %3603 = vadd.xlane.f32.xlu1 %v3602_v1  ;;  %vm2526_vm7 = vcmp.gt.f32.partialorder %v13724_v41, %v12512_v39  ;;  %v10811_v39 = vsel %vm2525_vm12, 1.0, %v18019_v19  ;;  %vm2527_vm11 = vcmp.gt.f32.partialorder %v13724_v41, %v18114_v44 }
 0x77a   : > { %v4604_v12 = vrot.slane %v3397_v18, %v12977_v34  ;;  %v3400_v48 = vpop.xlane.xlu1 %3399  ;;  %v10812_v10 = vsel %vm2526_vm7, 1.0, %v18019_v19  ;;  %v3623_v53 = vsel %vm747_vm0, %v10811_v39, 0.0  ;;  %v10813_v16 = vsel %vm2527_vm11, 1.0, %v18019_v19  ;;  %v18126_v39 = vld [vmem:[#allocation215_spill] sm:$0xff] }
 0x77b   : > { %v4609_v3 = vrot.slane %v3400_v48, %v12982_v57  ;;  %v3626_v41 = vsel %vm747_vm0, %v10812_v10, 0.0  ;;  %vm18117_vm12 = vcmask 1043459   ;;  %vm2530_vm7 = vcmp.gt.f32.partialorder %v13780_v37, %v18118_v9 }
 0x77c   : > { %v4605_v63 = vsel %vm4163_vm9, %v4604_v12, %v4600_v29  ;;  %3606 = vadd.xlane.f32.xlu0 %v3605_v60  ;;  %v3629_v12 = vsel %vm747_vm0, %v10813_v16, 0.0  ;;  %v3632_v48 = vsel %vm747_vm0, %v10814_v22, 0.0  ;;  %v18119_v60 = vld [vmem:[#allocation208_spill] sm:$0xff] }
 0x77d   : > { %v4610_v62 = vsel %vm4170_vm10, %v4609_v3, %v4605_v63  ;;  %v3403_v32 = vpop.xlane.xlu0 %3402  ;;  %3609 = vadd.xlane.f32.xlu1 %v3608_v26  ;;  %v10815_v3 = vsel %vm2529_vm6, 1.0, %v18019_v19  ;;  %vm2531_vm11 = vcmp.gt.f32.partialorder %v13780_v37, %v18119_v60  ;;  %v10816_v63 = vsel %vm2530_vm7, 1.0, %v18019_v19  ;;  %v18120_v26 = vld [vmem:[#allocation209_spill] sm:$0xff]  ;;  %v18130_v60 = vld [vmem:[#allocation219_spill] sm:$0xff] }
 0x77e   : > { %v4614_v45 = vrot.slane %v3403_v32, %v12997_v0  ;;  %v3406_v33 = vpop.xlane.xlu1 %3405  ;;  %vm2532_vm2 = vcmp.gt.f32.partialorder %v13780_v37, %v18120_v26  ;;  %v3638_v32 = vsel %vm747_vm0, %v10816_v63, 0.0  ;;  %v10817_v40 = vsel %vm2531_vm11, 1.0, %v18019_v19  ;;  %v13886_v26 = vld [vmem:[%s12093_s13 + $0x18] sm:$0xff] }
 0x77f   : > { %v4619_v20 = vrot.slane %v3406_v33, %v13002_v8  ;;  %vm2533_vm6 = vcmp.gt.f32.partialorder %v13780_v37, %v18121_v21  ;;  %v10818_v33 = vsel %vm2532_vm2, 1.0, %v18019_v19  ;;  %vm2535_vm7 = vcmp.gt.f32.partialorder %v13780_v37, %v18123_v56  ;;  %v18131_v21 = vld [vmem:[#allocation220_spill] sm:$0xff] }
 0x780   : > { %v4615_v5 = vsel %vm4177_vm13, %v4614_v45, %v4610_v62  ;;  %3612 = vadd.xlane.f32.xlu0 %v3611_v38  ;;  %v3635_v62 = vsel %vm747_vm0, %v10815_v3, 0.0  ;;  %v10819_v24 = vsel %vm2533_vm6, 1.0, %v18019_v19  ;;  %vm2538_vm6 = vcmp.gt.f32.partialorder %v2291_v25, %v18126_v39 }
 0x781   : > { %v3409_v23 = vpop.xlane.xlu0 %3408  ;;  %3615 = vadd.xlane.f32.xlu1 %v3614_v43  ;;  %v4620_v55 = vsel %vm4184_vm14, %v4619_v20, %v4615_v5  ;;  %v18122_v20 = vld [vmem:[#allocation211_spill] sm:$0xff]  ;;  %v3641_v5 = vsel %vm747_vm0, %v10817_v40, 0.0  ;;  %v3644_v43 = vsel %vm747_vm0, %v10818_v33, 0.0  ;;  %v1038_v51 = vrot.slane %v13886_v26, %v12591_v36 }
 0x782   : > { %v4624_v28 = vrot.slane %v3409_v23, %v13018_v42  ;;  %v3412_v50 = vpop.xlane.xlu1 %3411 }
 0x783   : > { %v4629_v15 = vrot.slane %v3412_v50, %v13023_v61 }
 0x784   : > { %v4625_v11 = vsel %vm4191_vm1, %v4624_v28, %v4620_v55  ;;  %3618 = vadd.xlane.f32.xlu0 %v3617_v27  ;;  %v18124_v28 = vld [vmem:[#allocation213_spill] sm:$0xff]  ;;  %v3647_v55 = vsel %vm747_vm0, %v10819_v24, 0.0  ;;  %v10821_v27 = vsel %vm2535_vm7, 1.0, %v18019_v19  ;;  %v13901_v24 = vrot.slane %v1038_v51, %v12591_v36 }
 0x785   : > { %v3415_v58 = vpop.xlane.xlu0 %3414  ;;  %3621 = vadd.xlane.f32.xlu1 %v3620_v2  ;;  %v4630_v49 = vsel %vm4198_vm3, %v4629_v15, %v4625_v11  ;;  %vm2536_vm11 = vcmp.gt.f32.partialorder %v2291_v25, %v18124_v28  ;;  %v18125_v11 = vld [vmem:[#allocation214_spill] sm:$0xff] }
 0x786   : > { %v4634_v52 = vrot.slane %v3415_v58, %v13045_v46  ;;  %v13795_v35 = vpop.xlane.xlu1 %3417  ;;  %vm2537_vm2 = vcmp.gt.f32.partialorder %v2291_v25, %v18125_v11  ;;  %v3653_v58 = vsel %vm747_vm0, %v10821_v27, 0.0  ;;  %v18134_v11 = vld [vmem:[#allocation223_spill] sm:$0xff]  ;;  %v13915_v39 = vrot.slane %v13901_v24, %v11859_v4 }
 0x787   : > { %v10823_v17 = vsel %vm2537_vm2, 1.0, %v18019_v19  ;;  %vm2542_vm2 = vcmp.gt.f32.partialorder %v2291_v25, %v18130_v60  ;;  %v18139_v60 = vld [vmem:[#allocation228_spill] sm:$0xff] }
 0x788   : > { %v4635_v1 = vsel %vm4205_vm5, %v4634_v52, %v4630_v49  ;;  %3624 = vadd.xlane.f32.xlu0 %v3623_v53  ;;  %v18127_v52 = vld [vmem:[#allocation216_spill] sm:$0xff]  ;;  %v10824_v53 = vsel %vm2538_vm6, 1.0, %v18019_v19  ;;  %v3659_v47 = vsel %vm747_vm0, %v10823_v17, 0.0  ;;  %vm2543_vm6 = vcmp.gt.f32.partialorder %v2291_v25, %v18131_v21  ;;  %v18141_v21 = vld [vmem:[#allocation230_spill] sm:$0xff] }
 0x789   : > { %v13805_v18 = vsel %vm18117_vm12, %v4635_v1, %v5431_v13  ;;  %v13807_v30 = vpop.xlane.xlu0 %3420  ;;  %3627 = vadd.xlane.f32.xlu1 %v3626_v41  ;;  %vm2534_vm12 = vcmp.gt.f32.partialorder %v13780_v37, %v18122_v20  ;;  %v10822_v37 = vsel %vm2536_vm11, 1.0, %v18019_v19  ;;  %v18128_v1 = vld [vmem:[#allocation217_spill] sm:$0xff]  ;;  %v1030_v41 = vcombine.high %v13765_v7, %v13765_v7  ;;  %v18135_v17 = vld [vmem:[#allocation224_spill] sm:$0xff] }
 0x78a   : > { %v13812_v29 = vpop.xlane.xlu1 %3423  ;;  %v10820_v59 = vsel %vm2534_vm12, 1.0, %v18019_v19  ;;  %v3656_v10 = vsel %vm747_vm0, %v10822_v37, 0.0  ;;  %vm2539_vm12 = vcmp.gt.f32.partialorder %v2291_v25, %v18127_v52  ;;  %vm2540_vm7 = vcmp.gt.f32.partialorder %v2291_v25, %v18128_v1  ;;  %v18136_v52 = vld [vmem:[#allocation225_spill] sm:$0xff] }
 0x78b   : > { %v3650_v15 = vsel %vm747_vm0, %v10820_v59, 0.0  ;;  %v3662_v22 = vsel %vm747_vm0, %v10824_v53, 0.0  ;;  %v10825_v9 = vsel %vm2539_vm12, 1.0, %v18019_v19  ;;  %v10826_v3 = vsel %vm2540_vm7, 1.0, %v18019_v19  ;;  %v18133_v59 = vld [vmem:[#allocation222_spill] sm:$0xff] }
 0x78c   : > { %3630 = vadd.xlane.f32.xlu0 %v3629_v12  ;;  %v18129_v12 = vld [vmem:[#allocation218_spill] sm:$0xff]  ;;  %v2295_v7 = vrot.slane %v1030_v41, %v11859_v4  ;;  %v10828_v20 = vsel %vm2542_vm2, 1.0, %v18019_v19 }
 0x78d   : > { %v13819_v13 = vpop.xlane.xlu0 %3426  ;;  %3633 = vadd.xlane.f32.xlu1 %v3632_v48  ;;  %vm2541_vm11 = vcmp.gt.f32.partialorder %v2291_v25, %v18129_v12  ;;  %v3674_v28 = vsel %vm747_vm0, %v10828_v20, 0.0  ;;  %v10829_v25 = vsel %vm2543_vm6, 1.0, %v18019_v19  ;;  %v18137_v53 = vld [vmem:[#allocation226_spill] sm:$0xff] }
 0x78e   : > { %v13826_v54 = vpop.xlane.xlu1 %3429  ;;  %v10827_v40 = vsel %vm2541_vm11, 1.0, %v18019_v19  ;;  %vm2545_vm7 = vcmp.gt.f32.partialorder %v2295_v7, %v18133_v59  ;;  %vm2546_vm11 = vcmp.gt.f32.partialorder %v2295_v7, %v18134_v11  ;;  %vm2547_vm2 = vcmp.gt.f32.partialorder %v2295_v7, %v18135_v17 }
 0x78f   : > { %v3671_v56 = vsel %vm747_vm0, %v10827_v40, 0.0  ;;  %vm2548_vm6 = vcmp.gt.f32.partialorder %v2295_v7, %v18136_v52  ;;  %vm2549_vm8 = vcmp.gt.f32.partialorder %v2295_v7, %v18137_v53  ;;  %v18140_v40 = vld [vmem:[#allocation229_spill] sm:$0xff]  ;;  %v4643_v59 = vrot.slane %v13807_v30, %v12977_v34 }
 0x790   : > { %3636 = vadd.xlane.f32.xlu0 %v3635_v62  ;;  %v3665_v62 = vsel %vm747_vm0, %v10825_v9, 0.0  ;;  %v18138_v9 = vld [vmem:[#allocation227_spill] sm:$0xff]  ;;  %vm2552_vm4 = vcmp.gt.f32.partialorder %v13915_v39, %v18140_v40  ;;  %v4639_v30 = vrot.slane %v13795_v35, %v12973_v14 }
 0x791   : > { %v13833_v45 = vpop.xlane.xlu0 %3432  ;;  %3639 = vadd.xlane.f32.xlu1 %v3638_v32  ;;  %v3668_v32 = vsel %vm747_vm0, %v10826_v3, 0.0  ;;  %v10838_v52 = vsel %vm2552_vm4, 1.0, %v18019_v19 }
 0x792   : > { %v13839_v38 = vpop.xlane.xlu1 %3435  ;;  %v3704_v40 = vsel %vm747_vm0, %v10838_v52, 0.0 }
 0x794   : > { %3642 = vadd.xlane.f32.xlu0 %v3641_v5  ;;  %v18132_v5 = vld [vmem:[#allocation221_spill] sm:$0xff] }
 0x795   : > { %v13846_v23 = vpop.xlane.xlu0 %3438  ;;  %3645 = vadd.xlane.f32.xlu1 %v3644_v43  ;;  %vm2544_vm12 = vcmp.gt.f32.partialorder %v2295_v7, %v18132_v5  ;;  %v18142_v5 = vld [vmem:[#allocation231_spill] sm:$0xff] }
 0x796   : > { %v13850_v50 = vpop.xlane.xlu1 %3441  ;;  %v10830_v27 = vsel %vm2544_vm12, 1.0, %v18019_v19  ;;  %vm2550_vm12 = vcmp.gt.f32.partialorder %v2295_v7, %v18138_v9  ;;  %vm2554_vm15 = vcmp.gt.f32.partialorder %v13915_v39, %v18142_v5  ;;  %v4653_v9 = vrot.slane %v13819_v13, %v12997_v0 }
 0x797   : > { %v3680_v1 = vsel %vm747_vm0, %v10830_v27, 0.0  ;;  %v4658_v5 = vrot.slane %v13826_v54, %v13002_v8 }
 0x798   : > { %3648 = vadd.xlane.f32.xlu0 %v3647_v55  ;;  %v1046_v55 = vcombine.high %v1038_v51, %v1038_v51  ;;  %v10833_v51 = vsel %vm2547_vm2, 1.0, %v18019_v19 }
 0x799   : > { %v13856_v2 = vpop.xlane.xlu0 %3444  ;;  %3651 = vadd.xlane.f32.xlu1 %v3650_v15  ;;  %v3689_v27 = vsel %vm747_vm0, %v10833_v51, 0.0 }
 0x79a   : > { %v13860_v44 = vpop.xlane.xlu1 %3447  ;;  %v13924_v41 = vrot.slane %v1046_v55, %v12591_v36  ;;  %v4682_v17 = vrot.slane %v13856_v2, %v12977_v34  ;;  %v10840_v2 = vsel %vm2554_vm15, 1.0, %v18019_v19  ;;  %vm2556_vm15 = vcmp.gt.f32.partialorder %v13915_v39, %v12578_v6 }
 0x79b   : > { %v4687_v51 = vrot.slane %v13860_v44, %v12982_v57 }
 0x79c   : > { %3654 = vadd.xlane.f32.xlu0 %v3653_v58  ;;  %v3677_v58 = vsel %vm747_vm0, %v10829_v25, 0.0  ;;  %v10836_v25 = vsel %vm2550_vm12, 1.0, %v18019_v19 }
 0x79d   : > { %v13866_v49 = vpop.xlane.xlu0 %3450  ;;  %3657 = vadd.xlane.f32.xlu1 %v3656_v10  ;;  %v10831_v10 = vsel %vm2545_vm7, 1.0, %v18019_v19  ;;  %vm2551_vm7 = vcmp.gt.f32.partialorder %v2295_v7, %v18139_v60  ;;  %v4648_v7 = vrot.slane %v13812_v29, %v12982_v57  ;;  %v3698_v35 = vsel %vm747_vm0, %v10836_v25, 0.0 }
 0x79e   : > { %v13872_v16 = vpop.xlane.xlu1 %3453  ;;  %v3683_v3 = vsel %vm747_vm0, %v10831_v10, 0.0  ;;  %v10837_v10 = vsel %vm2551_vm7, 1.0, %v18019_v19  ;;  %v3710_v25 = vsel %vm747_vm0, %v10840_v2, 0.0  ;;  %v4668_v2 = vrot.slane %v13839_v38, %v13023_v61 }
 0x79f   : > { %vm18148_vm7 = vcmask 1044484  }
 0x7a0   : > { %3660 = vadd.xlane.f32.xlu0 %v3659_v47 }
 0x7a1   : > { %v13878_v48 = vpop.xlane.xlu0 %3456  ;;  %3663 = vadd.xlane.f32.xlu1 %v3662_v22  ;;  %v10832_v22 = vsel %vm2546_vm11, 1.0, %v18019_v19  ;;  %vm2553_vm11 = vcmp.gt.f32.partialorder %v13915_v39, %v18141_v21 }
 0x7a2   : > { %v13883_v63 = vpop.xlane.xlu1 %3459  ;;  %v3686_v20 = vsel %vm747_vm0, %v10832_v22, 0.0  ;;  %v10839_v53 = vsel %vm2553_vm11, 1.0, %v18019_v19  ;;  %v4644_v22 = vsel %vm4163_vm9, %v4643_v59, %v4639_v30  ;;  %vm18149_vm11 = vcmask 1045509  }
 0x7a3   : > { %v3707_v21 = vsel %vm747_vm0, %v10839_v53, 0.0  ;;  %v18144_v53 = vld [vmem:[#allocation233_spill] sm:$0xff]  ;;  %v4707_v38 = vrot.slane %v13883_v63, %v13023_v61 }
 0x7a4   : > { %3666 = vadd.xlane.f32.xlu0 %v3665_v62  ;;  %v10834_v62 = vsel %vm2548_vm6, 1.0, %v18019_v19  ;;  %vm2557_vm4 = vcmp.gt.f32.partialorder %v13915_v39, %v18144_v53 }
 0x7a5   : > { %v13894_v33 = vpop.xlane.xlu0 %3462  ;;  %3669 = vadd.xlane.f32.xlu1 %v3668_v32  ;;  %v10835_v32 = vsel %vm2549_vm8, 1.0, %v18019_v19  ;;  %v3692_v11 = vsel %vm747_vm0, %v10834_v62, 0.0 }
 0x7a6   : > { %v13898_v43 = vpop.xlane.xlu1 %3465 }
 0x7a8   : > { %3672 = vadd.xlane.f32.xlu0 %v3671_v56  ;;  %v13946_v56 = vrot.slane %v13924_v41, %v11859_v4 }
 0x7a9   : > { %v13907_v15 = vpop.xlane.xlu0 %3468  ;;  %3675 = vadd.xlane.f32.xlu1 %v3674_v28 }
 0x7aa   : > { %v13911_v37 = vpop.xlane.xlu1 %3471  ;;  %v4721_v60 = vrot.slane %v13907_v15, %v12977_v34  ;;  %v4717_v15 = vrot.slane %v13898_v43, %v12973_v14  ;;  %v4663_v43 = vrot.slane %v13833_v45, %v13018_v42 }
 0x7ab   : > { %v4726_v59 = vrot.slane %v13911_v37, %v12982_v57  ;;  %v4697_v37 = vrot.slane %v13872_v16, %v13002_v8 }
 0x7ac   : > { %3678 = vadd.xlane.f32.xlu0 %v3677_v58  ;;  %v3695_v58 = vsel %vm747_vm0, %v10835_v32, 0.0  ;;  %v3701_v32 = vsel %vm747_vm0, %v10837_v10, 0.0 }
 0x7ad   : > { %v13926_v47 = vpop.xlane.xlu0 %3474  ;;  %3681 = vadd.xlane.f32.xlu1 %v3680_v1  ;;  %v18143_v1 = vld [vmem:[#allocation232_spill] sm:$0xff] }
 0x7ae   : > { %v13930_v12 = vpop.xlane.xlu1 %3477  ;;  %vm2555_vm8 = vcmp.gt.f32.partialorder %v13915_v39, %v18143_v1 }
 0x7af   : > { %v10841_v44 = vsel %vm2555_vm8, 1.0, %v18019_v19  ;;  %v4736_v1 = vrot.slane %v13930_v12, %v13002_v8  ;;  %v4673_v12 = vrot.slane %v13846_v23, %v13045_v46  ;;  %vm18150_vm8 = vcmask 1046534  }
 0x7b0   : > { %3684 = vadd.xlane.f32.xlu0 %v3683_v3  ;;  %v4678_v3 = vrot.slane %v13850_v50, %v12973_v14  ;;  %v4692_v50 = vrot.slane %v13866_v49, %v12997_v0 }
 0x7b1   : > { %v13950_v28 = vpop.xlane.xlu0 %3480  ;;  %3687 = vadd.xlane.f32.xlu1 %v3686_v20  ;;  %v4649_v20 = vsel %vm4170_vm10, %v4648_v7, %v4644_v22 }
 0x7b2   : > { %v13955_v55 = vpop.xlane.xlu1 %3483  ;;  %v4683_v13 = vsel %vm4163_vm9, %v4682_v17, %v4678_v3  ;;  %v4654_v49 = vsel %vm4177_vm13, %v4653_v9, %v4649_v20  ;;  %v4741_v22 = vrot.slane %v13950_v28, %v13018_v42 }
 0x7b3   : > { %v4688_v54 = vsel %vm4170_vm10, %v4687_v51, %v4683_v13  ;;  %v4746_v23 = vrot.slane %v13955_v55, %v13023_v61 }
 0x7b4   : > { %3690 = vadd.xlane.f32.xlu0 %v3689_v27  ;;  %v4722_v27 = vsel %vm4163_vm9, %v4721_v60, %v4717_v15  ;;  %v4693_v45 = vsel %vm4177_vm13, %v4692_v50, %v4688_v54 }
 0x7b5   : > { %v13991_v29 = vpop.xlane.xlu0 %3486  ;;  %3693 = vadd.xlane.f32.xlu1 %v3692_v11  ;;  %v4731_v11 = vrot.slane %v13926_v47, %v12997_v0  ;;  %v4702_v47 = vrot.slane %v13878_v48, %v13018_v42  ;;  %v4727_v16 = vsel %vm4170_vm10, %v4726_v59, %v4722_v27  ;;  %v4698_v60 = vsel %vm4184_vm14, %v4697_v37, %v4693_v45 }
 0x7b6   : > { %v3490_v62 = vpop.xlane.xlu1 %3489  ;;  %v4751_v63 = vrot.slane %v13991_v29, %v13045_v46  ;;  %v3713_v59 = vsel %vm747_vm0, %v10841_v44, 0.0  ;;  %v10843_v29 = vsel %vm2557_vm4, 1.0, %v18019_v19  ;;  %vm18152_vm4 = vcmask 1047559  }
 0x7b7   : > { %v4732_v48 = vsel %vm4177_vm13, %v4731_v11, %v4727_v16 }
 0x7b8   : > { %3696 = vadd.xlane.f32.xlu0 %v3695_v58  ;;  %v4756_v58 = vrot.slane %v3490_v62, %v12973_v14  ;;  %v4737_v50 = vsel %vm4184_vm14, %v4736_v1, %v4732_v48 }
 0x7b9   : > { %v3493_v10 = vpop.xlane.xlu0 %3492  ;;  %3699 = vadd.xlane.f32.xlu1 %v3698_v35  ;;  %v4659_v35 = vsel %vm4184_vm14, %v4658_v5, %v4654_v49  ;;  %v4742_v20 = vsel %vm4191_vm1, %v4741_v22, %v4737_v50  ;;  %v18145_v49 = vld [vmem:[#allocation234_spill] sm:$0xff] }
 0x7ba   : > { %v4760_v30 = vrot.slane %v3493_v10, %v12977_v34  ;;  %v3496_v17 = vpop.xlane.xlu1 %3495  ;;  %v4664_v3 = vsel %vm4191_vm1, %v4663_v43, %v4659_v35  ;;  %vm2558_vm2 = vcmp.gt.f32.partialorder %v13915_v39, %v18145_v49  ;;  %v4747_v10 = vsel %vm4198_vm3, %v4746_v23, %v4742_v20  ;;  %v18154_v23 = vld [vmem:[#allocation239_spill] sm:$0xff] }
 0x7bb   : > { %v4765_v52 = vrot.slane %v3496_v17, %v12982_v57  ;;  %v4669_v55 = vsel %vm4198_vm3, %v4668_v2, %v4664_v3  ;;  %v10844_v45 = vsel %vm2558_vm2, 1.0, %v18019_v19  ;;  %v3719_v35 = vsel %vm747_vm0, %v10843_v29, 0.0 }
 0x7bc   : > { %v4761_v7 = vsel %vm4163_vm9, %v4760_v30, %v4756_v58  ;;  %3702 = vadd.xlane.f32.xlu0 %v3701_v32  ;;  %v4703_v32 = vsel %vm4191_vm1, %v4702_v47, %v4698_v60  ;;  %v4674_v44 = vsel %vm4205_vm5, %v4673_v12, %v4669_v55  ;;  %v18146_v58 = vld [vmem:[#allocation235_spill] sm:$0xff]  ;;  %v4752_v30 = vsel %vm4205_vm5, %v4751_v63, %v4747_v10  ;;  %v18147_v47 = vld [vmem:[#allocation236_spill] sm:$0xff] }
 0x7bd   : > { %v3499_v9 = vpop.xlane.xlu0 %3498  ;;  %3705 = vadd.xlane.f32.xlu1 %v3704_v40  ;;  %v4766_v13 = vsel %vm4170_vm10, %v4765_v52, %v4761_v7  ;;  %v4712_v40 = vrot.slane %v13894_v33, %v13045_v46  ;;  %v10842_v33 = vsel %vm2556_vm15, 1.0, %v18019_v19  ;;  %vm2559_vm6 = vcmp.gt.f32.partialorder %v13915_v39, %v18146_v58 }
 0x7be   : > { %v4770_v51 = vrot.slane %v3499_v9, %v12997_v0  ;;  %v3502_v62 = vpop.xlane.xlu1 %3501  ;;  %v3716_v37 = vsel %vm747_vm0, %v10842_v33, 0.0  ;;  %vm2560_vm12 = vcmp.gt.f32.partialorder %v13946_v56, %v18147_v47  ;;  %v5433_v52 = vsel %vm18148_vm7, %v4674_v44, %v13805_v18  ;;  %v18151_v9 = vld [vmem:[#allocation237_spill] sm:$0xff] }
 0x7bf   : > { %v4775_v28 = vrot.slane %v3502_v62, %v13002_v8  ;;  %v3722_v22 = vsel %vm747_vm0, %v10844_v45, 0.0  ;;  %v10845_v18 = vsel %vm2559_vm6, 1.0, %v18019_v19  ;;  %vm2561_vm15 = vcmp.gt.f32.partialorder %v13946_v56, %v18151_v9 }
 0x7c0   : > { %v4771_v15 = vsel %vm4177_vm13, %v4770_v51, %v4766_v13  ;;  %3708 = vadd.xlane.f32.xlu0 %v3707_v21  ;;  %v10846_v60 = vsel %vm2560_vm12, 1.0, %v18019_v19  ;;  %v18153_v51 = vld [vmem:[#allocation238_spill] sm:$0xff]  ;;  %v3725_v13 = vsel %vm747_vm0, %v10845_v18, 0.0  ;;  %v10847_v50 = vsel %vm2561_vm15, 1.0, %v18019_v19  ;;  %v18159_v18 = vld [vmem:[#allocation244_spill] sm:$0xff] }
 0x7c1   : > { %v3505_v5 = vpop.xlane.xlu0 %3504  ;;  %3711 = vadd.xlane.f32.xlu1 %v3710_v25  ;;  %v4708_v25 = vsel %vm4198_vm3, %v4707_v38, %v4703_v32  ;;  %v4776_v6 = vsel %vm4184_vm14, %v4775_v28, %v4771_v15  ;;  %vm2562_vm2 = vcmp.gt.f32.partialorder %v13946_v56, %v18153_v51  ;;  %vm2563_vm6 = vcmp.gt.f32.partialorder %v13946_v56, %v18154_v23 }
 0x7c2   : > { %v4780_v21 = vrot.slane %v3505_v5, %v13018_v42  ;;  %v3508_v43 = vpop.xlane.xlu1 %3507  ;;  %v4713_v11 = vsel %vm4205_vm5, %v4712_v40, %v4708_v25  ;;  %v3728_v40 = vsel %vm747_vm0, %v10846_v60, 0.0  ;;  %v10848_v63 = vsel %vm2562_vm2, 1.0, %v18019_v19  ;;  %v18155_v5 = vld [vmem:[#allocation240_spill] sm:$0xff]  ;;  %v18156_v25 = vld [vmem:[#allocation241_spill] sm:$0xff] }
 0x7c3   : > { %v4785_v27 = vrot.slane %v3508_v43, %v13023_v61  ;;  %v5434_v1 = vsel %vm18149_vm11, %v4713_v11, %v5433_v52  ;;  %vm2564_vm12 = vcmp.gt.f32.partialorder %v13946_v56, %v18155_v5  ;;  %v3734_v29 = vsel %vm747_vm0, %v10848_v63, 0.0  ;;  %v18157_v11 = vld [vmem:[#allocation242_spill] sm:$0xff] }
 0x7c4   : > { %v4781_v54 = vsel %vm4191_vm1, %v4780_v21, %v4776_v6  ;;  %3714 = vadd.xlane.f32.xlu0 %v3713_v59  ;;  %v5435_v2 = vsel %vm18150_vm8, %v4752_v30, %v5434_v1  ;;  %v1076_v59 = vcombine.high %v13901_v24, %v13901_v24  ;;  %v3731_v21 = vsel %vm747_vm0, %v10847_v50, 0.0  ;;  %v18158_v1 = vld [vmem:[#allocation243_spill] sm:$0xff]  ;;  %v18161_v50 = vld [vmem:[#allocation246_spill] sm:$0xff] }
 0x7c5   : > { %v3511_v17 = vpop.xlane.xlu0 %3510  ;;  %3717 = vadd.xlane.f32.xlu1 %v3716_v37  ;;  %v4786_v7 = vsel %vm4198_vm3, %v4785_v27, %v4781_v54  ;;  %v10849_v44 = vsel %vm2563_vm6, 1.0, %v18019_v19  ;;  %vm2565_vm7 = vcmp.gt.f32.partialorder %v13946_v56, %v18156_v25  ;;  %v10850_v27 = vsel %vm2564_vm12, 1.0, %v18019_v19 }
 0x7c6   : > { %v4790_v53 = vrot.slane %v3511_v17, %v13045_v46  ;;  %v3514_v16 = vpop.xlane.xlu1 %3513  ;;  %vm2566_vm11 = vcmp.gt.f32.partialorder %v13946_v56, %v18157_v11  ;;  %v14143_v10 = vrot.slane %v1076_v59, %v11859_v4  ;;  %v3737_v30 = vsel %vm747_vm0, %v10849_v44, 0.0  ;;  %v18163_v44 = vld [vmem:[#allocation248_spill] sm:$0xff] }
 0x7c7   : > { %v4795_v39 = vrot.slane %v3514_v16, %v12973_v14  ;;  %v3740_v45 = vsel %vm747_vm0, %v10850_v27, 0.0  ;;  %v10851_v47 = vsel %vm2565_vm7, 1.0, %v18019_v19  ;;  %vm2567_vm8 = vcmp.gt.f32.partialorder %v13946_v56, %v12611_v31  ;;  %v18164_v27 = vld [vmem:[#allocation251_spill] sm:$0xff] }
 0x7c8   : > { %v4791_v48 = vsel %vm4205_vm5, %v4790_v53, %v4786_v7  ;;  %3720 = vadd.xlane.f32.xlu0 %v3719_v35  ;;  %v10852_v16 = vsel %vm2566_vm11, 1.0, %v18019_v19  ;;  %vm2568_vm15 = vcmp.gt.f32.partialorder %v14143_v10, %v18158_v1  ;;  %v10853_v56 = vsel %vm2567_vm8, 1.0, %v18019_v19 }
 0x7c9   : > { %v5436_v3 = vsel %vm18152_vm4, %v4791_v48, %v5435_v2  ;;  %v3517_v12 = vpop.xlane.xlu0 %3516  ;;  %3723 = vadd.xlane.f32.xlu1 %v3722_v22  ;;  %v3743_v2 = vsel %vm747_vm0, %v10851_v47, 0.0  ;;  %v1031_v48 = vcombine.high %v13886_v26, %v13886_v26  ;;  %v3746_v31 = vsel %vm747_vm0, %v10852_v16, 0.0 }
 0x7ca   : > { %5457 = vst.msk [vmem:[%s13570_s14 + $0x8] sm:$0xff] %vm747_vm0, %v5436_v3  ;;  %v4799_v62 = vrot.slane %v3517_v12, %v12977_v34  ;;  %v3520_v32 = vpop.xlane.xlu1 %3519  ;;  %vm2569_vm4 = vcmp.gt.f32.partialorder %v14143_v10, %v18159_v18  ;;  %v10854_v3 = vsel %vm2568_vm15, 1.0, %v18019_v19  ;;  %v18160_v12 = vld [vmem:[#allocation245_spill] sm:$0xff]  ;;  %v1078_v26 = vcombine.high %v13924_v41, %v13924_v41 }
 0x7cb   : > { %v4804_v38 = vrot.slane %v3520_v32, %v12982_v57  ;;  %vm2570_vm2 = vcmp.gt.f32.partialorder %v14143_v10, %v18160_v12  ;;  %v3749_v32 = vsel %vm747_vm0, %v10853_v56, 0.0  ;;  %vm2571_vm6 = vcmp.gt.f32.partialorder %v14143_v10, %v18161_v50 }
 0x7cc   : > { %v4800_v28 = vsel %vm4163_vm9, %v4799_v62, %v4795_v39  ;;  %3726 = vadd.xlane.f32.xlu0 %v3725_v13  ;;  %v14191_v63 = vrot.slane %v1078_v26, %v11859_v4  ;;  %vm2573_vm7 = vcmp.gt.f32.partialorder %v14143_v10, %v18163_v44 }
 0x7cd   : > { %v4805_v15 = vsel %vm4170_vm10, %v4804_v38, %v4800_v28  ;;  %v3523_v20 = vpop.xlane.xlu0 %3522  ;;  %3729 = vadd.xlane.f32.xlu1 %v3728_v40  ;;  %v1045_v38 = vrot.slane %v1031_v48, %v12591_v36  ;;  %v3752_v28 = vsel %vm747_vm0, %v10854_v3, 0.0  ;;  %v10855_v40 = vsel %vm2569_vm4, 1.0, %v18019_v19  ;;  %v18167_v3 = vld [vmem:[#allocation259_spill] sm:$0xff] }
 0x7ce   : > { %v4809_v33 = vrot.slane %v3523_v20, %v12997_v0  ;;  %v3526_v49 = vpop.xlane.xlu1 %3525  ;;  %v18162_v20 = vld [vmem:[#allocation247_spill] sm:$0xff]  ;;  %vm2576_vm11 = vcmp.gt.f32.partialorder %v14191_v63, %v18164_v27  ;;  %v10859_v47 = vsel %vm2573_vm7, 1.0, %v18019_v19 }
 0x7cf   : > { %v4814_v55 = vrot.slane %v3526_v49, %v13002_v8  ;;  %vm2572_vm12 = vcmp.gt.f32.partialorder %v14143_v10, %v18162_v20  ;;  %v3755_v49 = vsel %vm747_vm0, %v10855_v40, 0.0 }
 0x7d0   : > { %v4810_v43 = vsel %vm4177_vm13, %v4809_v33, %v4805_v15  ;;  %3732 = vadd.xlane.f32.xlu0 %v3731_v21  ;;  %v10856_v15 = vsel %vm2570_vm2, 1.0, %v18019_v19  ;;  %vm18168_vm2 = vcmask 1041409  }
 0x7d1   : > { %v4815_v6 = vsel %vm4184_vm14, %v4814_v55, %v4810_v43  ;;  %v3529_v24 = vpop.xlane.xlu0 %3528  ;;  %3735 = vadd.xlane.f32.xlu1 %v3734_v29  ;;  %v14197_v55 = vrot.slane %v1045_v38, %v12591_v36  ;;  %v3758_v43 = vsel %vm747_vm0, %v10856_v15, 0.0  ;;  %v10857_v29 = vsel %vm2571_vm6, 1.0, %v18019_v19 }
 0x7d2   : > { %v4819_v54 = vrot.slane %v3529_v24, %v13018_v42  ;;  %v3532_v37 = vpop.xlane.xlu1 %3531  ;;  %v10858_v24 = vsel %vm2572_vm12, 1.0, %v18019_v19 }
 0x7d3   : > { %v4824_v58 = vrot.slane %v3532_v37, %v13023_v61 }
 0x7d4   : > { %v4820_v17 = vsel %vm4191_vm1, %v4819_v54, %v4815_v6  ;;  %3738 = vadd.xlane.f32.xlu0 %v3737_v30  ;;  %v14213_v30 = vrot.slane %v14197_v55, %v11859_v4 }
 0x7d5   : > { %v4825_v52 = vsel %vm4198_vm3, %v4824_v58, %v4820_v17  ;;  %v3535_v53 = vpop.xlane.xlu0 %3534  ;;  %3741 = vadd.xlane.f32.xlu1 %v3740_v45  ;;  %v3761_v58 = vsel %vm747_vm0, %v10857_v29, 0.0  ;;  %v3764_v45 = vsel %vm747_vm0, %v10858_v24, 0.0 }
 0x7d6   : > { %v4829_v7 = vrot.slane %v3535_v53, %v13045_v46  ;;  %v3538_v35 = vpop.xlane.xlu1 %3537  ;;  %v1047_v53 = vcombine.high %v1045_v38, %v1045_v38  ;;  %vm2584_vm4 = vcmp.gt.f32.partialorder %v14213_v30, %v18167_v3 }
 0x7d7   : > { %v4834_v60 = vrot.slane %v3538_v35, %v12973_v14  ;;  %v18166_v35 = vld [vmem:[#allocation253_spill] sm:$0xff]  ;;  %v10870_v50 = vsel %vm2584_vm4, 1.0, %v18019_v19 }
 0x7d8   : > { %v14162_v22 = vsel %vm4205_vm5, %v4829_v7, %v4825_v52  ;;  %3744 = vadd.xlane.f32.xlu0 %v3743_v2  ;;  %v18165_v52 = vld [vmem:[#allocation252_spill] sm:$0xff]  ;;  %v10862_v7 = vsel %vm2576_vm11, 1.0, %v18019_v19  ;;  %vm2578_vm15 = vcmp.gt.f32.partialorder %v14191_v63, %v18166_v35  ;;  %v14232_v12 = vrot.slane %v1047_v53, %v12591_v36 }
 0x7d9   : > { %v3541_v9 = vpop.xlane.xlu0 %3540  ;;  %3747 = vadd.xlane.f32.xlu1 %v3746_v31  ;;  %vm2577_vm8 = vcmp.gt.f32.partialorder %v14191_v63, %v18165_v52  ;;  %v3767_v31 = vsel %vm747_vm0, %v10859_v47, 0.0  ;;  %v3776_v18 = vsel %vm747_vm0, %v10862_v7, 0.0 }
 0x7da   : > { %v4838_v51 = vrot.slane %v3541_v9, %v12977_v34  ;;  %v3544_v39 = vpop.xlane.xlu1 %3543  ;;  %v10863_v9 = vsel %vm2577_vm8, 1.0, %v18019_v19 }
 0x7db   : > { %v4843_v62 = vrot.slane %v3544_v39, %v12982_v57  ;;  %v18169_v39 = vld [vmem:[#allocation260_spill] sm:$0xff] }
 0x7dc   : > { %v4839_v13 = vsel %vm4163_vm9, %v4838_v51, %v4834_v60  ;;  %3750 = vadd.xlane.f32.xlu0 %v3749_v32  ;;  %v10864_v51 = vsel %vm2578_vm15, 1.0, %v18019_v19  ;;  %vm2585_vm6 = vcmp.gt.f32.partialorder %v14213_v30, %v18169_v39 }
 0x7dd   : > { %v4844_v41 = vsel %vm4170_vm10, %v4843_v62, %v4839_v13  ;;  %v3547_v23 = vpop.xlane.xlu0 %3546  ;;  %3753 = vadd.xlane.f32.xlu1 %v3752_v28  ;;  %v3779_v28 = vsel %vm747_vm0, %v10863_v9, 0.0 }
 0x7de   : > { %v4848_v5 = vrot.slane %v3547_v23, %v12997_v0  ;;  %v3550_v59 = vpop.xlane.xlu1 %3549  ;;  %v14250_v23 = vrot.slane %v14232_v12, %v11859_v4 }
 0x7df   : > { %v4853_v33 = vrot.slane %v3550_v59, %v13002_v8  ;;  %v18171_v59 = vld [vmem:[#allocation261_spill] sm:$0xff] }
 0x7e0   : > { %v4849_v21 = vsel %vm4177_vm13, %v4848_v5, %v4844_v41  ;;  %3756 = vadd.xlane.f32.xlu0 %v3755_v49  ;;  %v18170_v41 = vld [vmem:[#allocation254_spill] sm:$0xff]  ;;  %v10871_v5 = vsel %vm2585_vm6, 1.0, %v18019_v19  ;;  %vm2586_vm7 = vcmp.gt.f32.partialorder %v14213_v30, %v18171_v59  ;;  %vm18177_vm6 = vcmask 1042434  }
 0x7e1   : > { %v4854_v25 = vsel %vm4184_vm14, %v4853_v33, %v4849_v21  ;;  %v3553_v6 = vpop.xlane.xlu0 %3552  ;;  %3759 = vadd.xlane.f32.xlu1 %v3758_v43  ;;  %vm2579_vm12 = vcmp.gt.f32.partialorder %v14191_v63, %v18170_v41  ;;  %v3800_v43 = vsel %vm747_vm0, %v10870_v50, 0.0  ;;  %v3803_v44 = vsel %vm747_vm0, %v10871_v5, 0.0 }
 0x7e2   : > { %v4858_v11 = vrot.slane %v3553_v6, %v13018_v42  ;;  %v3556_v54 = vpop.xlane.xlu1 %3555  ;;  %v18172_v6 = vld [vmem:[#allocation267_spill] sm:$0xff] }
 0x7e3   : > { %v4863_v37 = vrot.slane %v3556_v54, %v13023_v61  ;;  %vm2592_vm11 = vcmp.gt.f32.partialorder %v14250_v23, %v18172_v6  ;;  %v18173_v54 = vld [vmem:[#allocation268_spill] sm:$0xff] }
 0x7e4   : > { %v4859_v17 = vsel %vm4191_vm1, %v4858_v11, %v4854_v25  ;;  %3762 = vadd.xlane.f32.xlu0 %v3761_v58  ;;  %v10865_v25 = vsel %vm2579_vm12, 1.0, %v18019_v19  ;;  %v10872_v11 = vsel %vm2586_vm7, 1.0, %v18019_v19  ;;  %vm2593_vm8 = vcmp.gt.f32.partialorder %v14250_v23, %v18173_v54 }
 0x7e5   : > { %v4864_v16 = vsel %vm4198_vm3, %v4863_v37, %v4859_v17  ;;  %v3559_v1 = vpop.xlane.xlu0 %3558  ;;  %3765 = vadd.xlane.f32.xlu1 %v3764_v45  ;;  %v1077_v37 = vcombine.high %v14197_v55, %v14197_v55  ;;  %v3785_v47 = vsel %vm747_vm0, %v10865_v25, 0.0  ;;  %v3806_v53 = vsel %vm747_vm0, %v10872_v11, 0.0 }
 0x7e6   : > { %v4868_v2 = vrot.slane %v3559_v1, %v13045_v46  ;;  %v3562_v48 = vpop.xlane.xlu1 %3561  ;;  %v18174_v1 = vld [vmem:[#allocation255_spill] sm:$0xff]  ;;  %v10879_v35 = vsel %vm2593_vm8, 1.0, %v18019_v19  ;;  %v1079_v11 = vcombine.high %v14232_v12, %v14232_v12 }
 0x7e7   : > { %v4873_v62 = vrot.slane %v3562_v48, %v12973_v14  ;;  %vm2580_vm15 = vcmp.gt.f32.partialorder %v14191_v63, %v18174_v1  ;;  %v14283_v48 = vrot.slane %v1077_v37, %v11859_v4  ;;  %v3827_v3 = vsel %vm747_vm0, %v10879_v35, 0.0 }
 0x7e8   : > { %v4869_v56 = vsel %vm4205_vm5, %v4868_v2, %v4864_v16  ;;  %3768 = vadd.xlane.f32.xlu0 %v3767_v31  ;;  %v10878_v16 = vsel %vm2592_vm11, 1.0, %v18019_v19  ;;  %v18175_v2 = vld [vmem:[#allocation262_spill] sm:$0xff] }
 0x7e9   : > { %v5437_v26 = vsel %vm18168_vm2, %v4869_v56, %v14162_v22  ;;  %v3565_v60 = vpop.xlane.xlu0 %3564  ;;  %3777 = vadd.xlane.f32.xlu1 %v3776_v18  ;;  %v3782_v22 = vsel %vm747_vm0, %v10864_v51, 0.0  ;;  %vm2587_vm4 = vcmp.gt.f32.partialorder %v14213_v30, %v18175_v2  ;;  %v3824_v18 = vsel %vm747_vm0, %v10878_v16, 0.0  ;;  %v18176_v51 = vld [vmem:[#allocation269_spill] sm:$0xff] }
 0x7ea   : > { %v4877_v32 = vrot.slane %v3565_v60, %v12977_v34  ;;  %v3568_v38 = vpop.xlane.xlu1 %3567  ;;  %v10866_v60 = vsel %vm2580_vm15, 1.0, %v18019_v19  ;;  %vm2594_vm2 = vcmp.gt.f32.partialorder %v14250_v23, %v18176_v51 }
 0x7eb   : > { %v4882_v13 = vrot.slane %v3568_v38, %v12982_v57  ;;  %v18178_v38 = vld [vmem:[#allocation89_spill] sm:$0xff]  ;;  %v3788_v50 = vsel %vm747_vm0, %v10866_v60, 0.0 }
 0x7ec   : > { %v4878_v40 = vsel %vm4163_vm9, %v4877_v32, %v4873_v62  ;;  %3780 = vadd.xlane.f32.xlu0 %v3779_v28  ;;  %v10873_v32 = vsel %vm2587_vm4, 1.0, %v18019_v19  ;;  %vm2600_vm12 = vcmp.gt.f32.partialorder %v14283_v48, %v18178_v38 }
 0x7ed   : > { %v4883_v15 = vsel %vm4170_vm10, %v4882_v13, %v4878_v40  ;;  %v3571_v20 = vpop.xlane.xlu0 %3570  ;;  %3783 = vadd.xlane.f32.xlu1 %v3782_v22 }
 0x7ee   : > { %v4887_v33 = vrot.slane %v3571_v20, %v12997_v0  ;;  %v3574_v49 = vpop.xlane.xlu1 %3573  ;;  %v18179_v20 = vld [vmem:[#allocation90_spill] sm:$0xff] }
 0x7ef   : > { %v4892_v21 = vrot.slane %v3574_v49, %v13002_v8  ;;  %vm2601_vm7 = vcmp.gt.f32.partialorder %v14283_v48, %v18179_v20  ;;  %v18180_v49 = vld [vmem:[#allocation249_spill] sm:$0xff] }
 0x7f0   : > { %v4888_v29 = vsel %vm4177_vm13, %v4887_v33, %v4883_v15  ;;  %3801 = vadd.xlane.f32.xlu0 %v3800_v43  ;;  %v10880_v15 = vsel %vm2594_vm2, 1.0, %v18019_v19  ;;  %v10886_v33 = vsel %vm2600_vm12, 1.0, %v18019_v19  ;;  %vm2574_vm11 = vcmp.gt.f32.partialorder %v14143_v10, %v18180_v49 }
 0x7f1   : > { %v4893_v24 = vsel %vm4184_vm14, %v4892_v21, %v4888_v29  ;;  %v3577_v27 = vpop.xlane.xlu0 %3576  ;;  %3804 = vadd.xlane.f32.xlu1 %v3803_v44  ;;  %v3830_v44 = vsel %vm747_vm0, %v10880_v15, 0.0  ;;  %v3848_v6 = vsel %vm747_vm0, %v10886_v33, 0.0  ;;  %v10860_v37 = vsel %vm2574_vm11, 1.0, %v18019_v19  ;;  %v18188_v15 = vld [vmem:[#allocation250_spill] sm:$0xff] }
 0x7f2   : > { %v4897_v58 = vrot.slane %v3577_v27, %v13018_v42  ;;  %v3580_v17 = vpop.xlane.xlu1 %3579  ;;  %v18181_v27 = vld [vmem:[#allocation256_spill] sm:$0xff]  ;;  %v3770_v12 = vsel %vm747_vm0, %v10860_v37, 0.0  ;;  %vm18186_vm12 = vcmask 1043459   ;;  %vm2575_vm11 = vcmp.gt.f32.partialorder %v14143_v10, %v18188_v15 }
 0x7f3   : > { %v4902_v45 = vrot.slane %v3580_v17, %v13023_v61  ;;  %vm2581_vm8 = vcmp.gt.f32.partialorder %v14191_v63, %v18181_v27 }
 0x7f4   : > { %v4898_v52 = vsel %vm4191_vm1, %v4897_v58, %v4893_v24  ;;  %3786 = vadd.xlane.f32.xlu0 %v3785_v47  ;;  %v10887_v24 = vsel %vm2601_vm7, 1.0, %v18019_v19  ;;  %v18182_v58 = vld [vmem:[#allocation263_spill] sm:$0xff]  ;;  %v10867_v1 = vsel %vm2581_vm8, 1.0, %v18019_v19 }
 0x7f5   : > { %v4903_v7 = vsel %vm4198_vm3, %v4902_v45, %v4898_v52  ;;  %v3583_v55 = vpop.xlane.xlu0 %3582  ;;  %3807 = vadd.xlane.f32.xlu1 %v3806_v53  ;;  %vm2588_vm15 = vcmp.gt.f32.partialorder %v14213_v30, %v18182_v58  ;;  %v3851_v53 = vsel %vm747_vm0, %v10887_v24, 0.0  ;;  %v18193_v58 = vld [vmem:[#allocation99_spill] sm:$0xff] }
 0x7f6   : > { %v4907_v31 = vrot.slane %v3583_v55, %v13045_v46  ;;  %v3586_v56 = vpop.xlane.xlu1 %3585  ;;  %v14332_v55 = vrot.slane %v1079_v11, %v11859_v4  ;;  %v10874_v2 = vsel %vm2588_vm15, 1.0, %v18019_v19  ;;  %v18192_v11 = vld [vmem:[#allocation92_spill] sm:$0xff] }
 0x7f7   : > { %v4912_v13 = vrot.slane %v3586_v56, %v12973_v14  ;;  %v3812_v51 = vsel %vm747_vm0, %v10874_v2, 0.0 }
 0x7f8   : > { %v4908_v9 = vsel %vm4205_vm5, %v4907_v31, %v4903_v7  ;;  %3825 = vadd.xlane.f32.xlu0 %v3824_v18  ;;  %v18183_v7 = vld [vmem:[#allocation270_spill] sm:$0xff]  ;;  %v18184_v31 = vld [vmem:[#allocation91_spill] sm:$0xff] }
 0x7f9   : > { %v5438_v39 = vsel %vm18177_vm6, %v4908_v9, %v5437_v26  ;;  %v3589_v62 = vpop.xlane.xlu0 %3588  ;;  %3828 = vadd.xlane.f32.xlu1 %v3827_v3  ;;  %v3809_v26 = vsel %vm747_vm0, %v10873_v32, 0.0  ;;  %vm2595_vm4 = vcmp.gt.f32.partialorder %v14250_v23, %v18183_v7  ;;  %vm2602_vm2 = vcmp.gt.f32.partialorder %v14283_v48, %v18184_v31  ;;  %v18185_v32 = vld [vmem:[#allocation97_spill] sm:$0xff] }
 0x7fa   : > { %v4916_v28 = vrot.slane %v3589_v62, %v12977_v34  ;;  %v3592_v40 = vpop.xlane.xlu1 %3591  ;;  %v3791_v3 = vsel %vm747_vm0, %v10867_v1, 0.0  ;;  %v10881_v62 = vsel %vm2595_vm4, 1.0, %v18019_v19  ;;  %vm2608_vm6 = vcmp.gt.f32.partialorder %v14332_v55, %v18185_v32  ;;  %v18195_v1 = vld [vmem:[#allocation265_spill] sm:$0xff] }
 0x7fb   : > { %v4921_v22 = vrot.slane %v3592_v40, %v12982_v57  ;;  %v18187_v40 = vld [vmem:[#allocation98_spill] sm:$0xff] }
 0x7fc   : > { %v4917_v41 = vsel %vm4163_vm9, %v4916_v28, %v4912_v13  ;;  %3789 = vadd.xlane.f32.xlu0 %v3788_v50  ;;  %v10888_v28 = vsel %vm2602_vm2, 1.0, %v18019_v19  ;;  %vm2609_vm7 = vcmp.gt.f32.partialorder %v14332_v55, %v18187_v40  ;;  %v3833_v50 = vsel %vm747_vm0, %v10881_v62, 0.0 }
 0x7fd   : > { %v4922_v5 = vsel %vm4170_vm10, %v4921_v22, %v4917_v41  ;;  %v3595_v59 = vpop.xlane.xlu0 %3594  ;;  %3810 = vadd.xlane.f32.xlu1 %v3809_v26  ;;  %v3854_v41 = vsel %vm747_vm0, %v10888_v28, 0.0  ;;  %v10894_v26 = vsel %vm2608_vm6, 1.0, %v18019_v19  ;;  %v10895_v20 = vsel %vm2609_vm7, 1.0, %v18019_v19  ;;  %v18198_v28 = vld [vmem:[#allocation100_spill] sm:$0xff] }
 0x7fe   : > { %v4926_v21 = vrot.slane %v3595_v59, %v12997_v0  ;;  %v3598_v43 = vpop.xlane.xlu1 %3597  ;;  %v3872_v33 = vsel %vm747_vm0, %v10894_v26, 0.0  ;;  %v3875_v49 = vsel %vm747_vm0, %v10895_v20, 0.0  ;;  %vm2603_vm2 = vcmp.gt.f32.partialorder %v14283_v48, %v18192_v11 }
 0x7ff   : > { %v4931_v29 = vrot.slane %v3598_v43, %v13002_v8  ;;  %v18190_v43 = vld [vmem:[#allocation264_spill] sm:$0xff]  ;;  %vm2610_vm6 = vcmp.gt.f32.partialorder %v14332_v55, %v18193_v58  ;;  %vm2590_vm7 = vcmp.gt.f32.partialorder %v14213_v30, %v18195_v1 }
 0x800   : > { %v4927_v25 = vsel %vm4177_vm13, %v4926_v21, %v4922_v5  ;;  %3831 = vadd.xlane.f32.xlu0 %v3830_v44  ;;  %v18189_v5 = vld [vmem:[#allocation257_spill] sm:$0xff]  ;;  %v10861_v21 = vsel %vm2575_vm11, 1.0, %v18019_v19  ;;  %vm2589_vm15 = vcmp.gt.f32.partialorder %v14213_v30, %v18190_v43  ;;  %v18191_v44 = vld [vmem:[#allocation271_spill] sm:$0xff]  ;;  %v18201_v43 = vld [vmem:[#allocation94_spill] sm:$0xff] }
 0x801   : > { %v3601_v54 = vpop.xlane.xlu0 %3600  ;;  %3849 = vadd.xlane.f32.xlu1 %v3848_v6  ;;  %v4932_v47 = vsel %vm4184_vm14, %v4931_v29, %v4927_v25  ;;  %vm2582_vm8 = vcmp.gt.f32.partialorder %v14191_v63, %v18189_v5  ;;  %vm2596_vm4 = vcmp.gt.f32.partialorder %v14250_v23, %v18191_v44  ;;  %v3773_v6 = vsel %vm747_vm0, %v10861_v21, 0.0 }
 0x802   : > { %v4936_v17 = vrot.slane %v3601_v54, %v13018_v42  ;;  %v3604_v45 = vpop.xlane.xlu1 %3603  ;;  %v10868_v29 = vsel %vm2582_vm8, 1.0, %v18019_v19  ;;  %v10875_v27 = vsel %vm2589_vm15, 1.0, %v18019_v19  ;;  %v10882_v37 = vsel %vm2596_vm4, 1.0, %v18019_v19 }
 0x803   : > { %v4941_v52 = vrot.slane %v3604_v45, %v13023_v61  ;;  %v3794_v24 = vsel %vm747_vm0, %v10868_v29, 0.0  ;;  %v3815_v45 = vsel %vm747_vm0, %v10875_v27, 0.0  ;;  %vm2611_vm15 = vcmp.gt.f32.partialorder %v14332_v55, %v18198_v28 }
 0x804   : > { %v4937_v16 = vsel %vm4191_vm1, %v4936_v17, %v4932_v47  ;;  %3852 = vadd.xlane.f32.xlu0 %v3851_v53  ;;  %v3836_v47 = vsel %vm747_vm0, %v10882_v37, 0.0  ;;  %v18194_v53 = vld [vmem:[#allocation258_spill] sm:$0xff]  ;;  %v10897_v5 = vsel %vm2611_vm15, 1.0, %v18019_v19  ;;  %v18203_v37 = vld [vmem:[#allocation88_spill] sm:$0xff] }
 0x805   : > { %v3607_v35 = vpop.xlane.xlu0 %3606  ;;  %3771 = vadd.xlane.f32.xlu1 %v3770_v12  ;;  %v4942_v9 = vsel %vm4198_vm3, %v4941_v52, %v4937_v16  ;;  %v10889_v52 = vsel %vm2603_vm2, 1.0, %v18019_v19  ;;  %v10896_v12 = vsel %vm2610_vm6, 1.0, %v18019_v19  ;;  %vm2605_vm6 = vcmp.gt.f32.partialorder %v14283_v48, %v18201_v43 }
 0x806   : > { %v4946_v56 = vrot.slane %v3607_v35, %v13045_v46  ;;  %v14338_v18 = vpop.xlane.xlu1 %3609  ;;  %v3857_v35 = vsel %vm747_vm0, %v10889_v52, 0.0  ;;  %v3878_v2 = vsel %vm747_vm0, %v10896_v12, 0.0  ;;  %v3881_v29 = vsel %vm747_vm0, %v10897_v5, 0.0 }
 0x807   : > { %v10891_v11 = vsel %vm2605_vm6, 1.0, %v18019_v19  ;;  %vm18209_vm6 = vcmask 1044484  }
 0x808   : > { %v4947_v60 = vsel %vm4205_vm5, %v4946_v56, %v4942_v9  ;;  %3792 = vadd.xlane.f32.xlu0 %v3791_v3  ;;  %v18196_v56 = vld [vmem:[#allocation86_spill] sm:$0xff]  ;;  %v10876_v9 = vsel %vm2590_vm7, 1.0, %v18019_v19  ;;  %v18197_v3 = vld [vmem:[#allocation93_spill] sm:$0xff]  ;;  %vm2599_vm7 = vcmp.gt.f32.partialorder %v14250_v23, %v18203_v37 }
 0x809   : > { %v14348_v38 = vsel %vm18186_vm12, %v4947_v60, %v5438_v39  ;;  %v14350_v13 = vpop.xlane.xlu0 %3612  ;;  %3813 = vadd.xlane.f32.xlu1 %v3812_v51  ;;  %vm2583_vm12 = vcmp.gt.f32.partialorder %v14191_v63, %v18194_v53  ;;  %vm2597_vm11 = vcmp.gt.f32.partialorder %v14250_v23, %v18196_v56  ;;  %vm2604_vm8 = vcmp.gt.f32.partialorder %v14283_v48, %v18197_v3  ;;  %v18204_v53 = vld [vmem:[#allocation95_spill] sm:$0xff] }
 0x80a   : > { %v14355_v22 = vpop.xlane.xlu1 %3615  ;;  %v10869_v31 = vsel %vm2583_vm12, 1.0, %v18019_v19  ;;  %v3818_v62 = vsel %vm747_vm0, %v10876_v9, 0.0  ;;  %v10883_v32 = vsel %vm2597_vm11, 1.0, %v18019_v19  ;;  %vm2606_vm11 = vcmp.gt.f32.partialorder %v14283_v48, %v18204_v53  ;;  %v18207_v3 = vld [vmem:[#allocation103_spill] sm:$0xff] }
 0x80b   : > { %v3797_v51 = vsel %vm747_vm0, %v10869_v31, 0.0  ;;  %v3839_v15 = vsel %vm747_vm0, %v10883_v32, 0.0  ;;  %v10885_v1 = vsel %vm2599_vm7, 1.0, %v18019_v19  ;;  %v18206_v31 = vld [vmem:[#allocation96_spill] sm:$0xff]  ;;  %v10892_v9 = vsel %vm2606_vm11, 1.0, %v18019_v19 }
 0x80c   : > { %3834 = vadd.xlane.f32.xlu0 %v3833_v50  ;;  %v10890_v50 = vsel %vm2604_vm8, 1.0, %v18019_v19  ;;  %vm2607_vm15 = vcmp.gt.f32.partialorder %v14283_v48, %v18206_v31  ;;  %v3845_v56 = vsel %vm747_vm0, %v10885_v1, 0.0  ;;  %v4951_v48 = vrot.slane %v14338_v18, %v12973_v14 }
 0x80d   : > { %v14362_v39 = vpop.xlane.xlu0 %3618  ;;  %3855 = vadd.xlane.f32.xlu1 %v3854_v41  ;;  %v18199_v41 = vld [vmem:[#allocation266_spill] sm:$0xff]  ;;  %v3860_v20 = vsel %vm747_vm0, %v10890_v50, 0.0  ;;  %vm18211_vm7 = vcmask 1046534   ;;  %vm18212_vm11 = vcmask 1047559  }
 0x80e   : > { %v14367_v59 = vpop.xlane.xlu1 %3621  ;;  %vm2591_vm4 = vcmp.gt.f32.partialorder %v14213_v30, %v18199_v41  ;;  %v3866_v41 = vsel %vm747_vm0, %v10892_v9, 0.0 }
 0x80f   : > { %v10877_v21 = vsel %vm2591_vm4, 1.0, %v18019_v19  ;;  %vm2614_vm4 = vcmp.gt.f32.partialorder %v14332_v55, %v18207_v3 }
 0x810   : > { %3873 = vadd.xlane.f32.xlu0 %v3872_v33  ;;  %v18200_v33 = vld [vmem:[#allocation87_spill] sm:$0xff]  ;;  %v3821_v44 = vsel %vm747_vm0, %v10877_v21, 0.0 }
 0x811   : > { %v14374_v10 = vpop.xlane.xlu0 %3624  ;;  %3876 = vadd.xlane.f32.xlu1 %v3875_v49  ;;  %vm2598_vm2 = vcmp.gt.f32.partialorder %v14250_v23, %v18200_v33  ;;  %v10900_v33 = vsel %vm2614_vm4, 1.0, %v18019_v19  ;;  %vm18215_vm4 = vcmask 1043459  }
 0x812   : > { %v14379_v25 = vpop.xlane.xlu1 %3627 }
 0x813   : > { %v4980_v3 = vrot.slane %v14379_v25, %v13023_v61 }
 0x814   : > { %3774 = vadd.xlane.f32.xlu0 %v3773_v6  ;;  %v10884_v6 = vsel %vm2598_vm2, 1.0, %v18019_v19 }
 0x815   : > { %v14386_v54 = vpop.xlane.xlu0 %3630  ;;  %3795 = vadd.xlane.f32.xlu1 %v3794_v24  ;;  %v18202_v24 = vld [vmem:[#allocation101_spill] sm:$0xff] }
 0x816   : > { %v14391_v17 = vpop.xlane.xlu1 %3633  ;;  %vm2612_vm12 = vcmp.gt.f32.partialorder %v14332_v55, %v18202_v24 }
 0x817   : > { %v10898_v52 = vsel %vm2612_vm12, 1.0, %v18019_v19  ;;  %v4990_v21 = vrot.slane %v14391_v17, %v12973_v14  ;;  %vm18210_vm12 = vcmask 1045509  }
 0x818   : > { %3816 = vadd.xlane.f32.xlu0 %v3815_v45  ;;  %v3842_v45 = vsel %vm747_vm0, %v10884_v6, 0.0 }
 0x819   : > { %v14398_v16 = vpop.xlane.xlu0 %3636  ;;  %3837 = vadd.xlane.f32.xlu1 %v3836_v47  ;;  %v3863_v47 = vsel %vm747_vm0, %v10891_v11, 0.0 }
 0x81a   : > { %v14403_v7 = vpop.xlane.xlu1 %3639  ;;  %v4994_v50 = vrot.slane %v14398_v16, %v12977_v34  ;;  %v4965_v16 = vrot.slane %v14362_v39, %v12997_v0 }
 0x81c   : > { %3858 = vadd.xlane.f32.xlu0 %v3857_v35  ;;  %v18205_v35 = vld [vmem:[#allocation102_spill] sm:$0xff]  ;;  %v4995_v24 = vsel %vm4163_vm9, %v4994_v50, %v4990_v21  ;;  %v4985_v50 = vrot.slane %v14386_v54, %v13045_v46 }
 0x81d   : > { %v14410_v63 = vpop.xlane.xlu0 %3642  ;;  %3879 = vadd.xlane.f32.xlu1 %v3878_v2  ;;  %vm2613_vm8 = vcmp.gt.f32.partialorder %v14332_v55, %v18205_v35  ;;  %v3884_v2 = vsel %vm747_vm0, %v10898_v52, 0.0 }
 0x81e   : > { %v14415_v60 = vpop.xlane.xlu1 %3645  ;;  %v10899_v32 = vsel %vm2613_vm8, 1.0, %v18019_v19  ;;  %v5004_v11 = vrot.slane %v14410_v63, %v12997_v0  ;;  %vm18213_vm8 = vcmask 1041409  }
 0x81f   : > { %v3887_v5 = vsel %vm747_vm0, %v10899_v32, 0.0 }
 0x820   : > { %3798 = vadd.xlane.f32.xlu0 %v3797_v51  ;;  %v4955_v51 = vrot.slane %v14350_v13, %v12977_v34  ;;  %v4960_v13 = vrot.slane %v14355_v22, %v12982_v57  ;;  %v4999_v22 = vrot.slane %v14403_v7, %v12982_v57  ;;  %v4970_v7 = vrot.slane %v14367_v59, %v13002_v8 }
 0x821   : > { %v14422_v40 = vpop.xlane.xlu0 %3648  ;;  %3819 = vadd.xlane.f32.xlu1 %v3818_v62 }
 0x822   : > { %v14427_v26 = vpop.xlane.xlu1 %3651  ;;  %v4956_v18 = vsel %vm4163_vm9, %v4955_v51, %v4951_v48  ;;  %v5000_v59 = vsel %vm4170_vm10, %v4999_v22, %v4995_v24 }
 0x823   : > { %v5005_v35 = vsel %vm4177_vm13, %v5004_v11, %v5000_v59  ;;  %v5019_v25 = vrot.slane %v14427_v26, %v13023_v61 }
 0x824   : > { %3840 = vadd.xlane.f32.xlu0 %v3839_v15  ;;  %v10893_v15 = vsel %vm2607_vm15, 1.0, %v18019_v19  ;;  %vm18214_vm15 = vcmask 1042434  }
 0x825   : > { %v14434_v49 = vpop.xlane.xlu0 %3654  ;;  %3861 = vadd.xlane.f32.xlu1 %v3860_v20  ;;  %v18208_v20 = vld [vmem:[#allocation104_spill] sm:$0xff]  ;;  %v3869_v6 = vsel %vm747_vm0, %v10893_v15, 0.0 }
 0x826   : > { %v14439_v30 = vpop.xlane.xlu1 %3657  ;;  %vm2615_vm2 = vcmp.gt.f32.partialorder %v14332_v55, %v18208_v20 }
 0x827   : > { %v5029_v39 = vrot.slane %v14439_v30, %v12973_v14  ;;  %v10901_v17 = vsel %vm2615_vm2, 1.0, %v18019_v19  ;;  %v4975_v30 = vrot.slane %v14374_v10, %v13018_v42  ;;  %v5014_v10 = vrot.slane %v14422_v40, %v13018_v42  ;;  %vm18216_vm2 = vmmov %vm18209_vm6 }
 0x828   : > { %3882 = vadd.xlane.f32.xlu0 %v3881_v29 }
 0x829   : > { %v3661_v27 = vpop.xlane.xlu0 %3660  ;;  %3822 = vadd.xlane.f32.xlu1 %v3821_v44 }
 0x82a   : > { %v14449_v58 = vpop.xlane.xlu1 %3663  ;;  %v5033_v43 = vrot.slane %v3661_v27, %v12977_v34  ;;  %v4961_v27 = vsel %vm4170_vm10, %v4960_v13, %v4956_v18 }
 0x82b   : > { %v5038_v37 = vrot.slane %v14449_v58, %v12982_v57  ;;  %v4966_v63 = vsel %vm4177_vm13, %v4965_v16, %v4961_v27  ;;  %v5009_v58 = vrot.slane %v14415_v60, %v13002_v8 }
 0x82c   : > { %3843 = vadd.xlane.f32.xlu0 %v3842_v45  ;;  %v3890_v45 = vsel %vm747_vm0, %v10900_v33, 0.0  ;;  %v4971_v9 = vsel %vm4184_vm14, %v4970_v7, %v4966_v63 }
 0x82d   : > { %v14456_v12 = vpop.xlane.xlu0 %3666  ;;  %3864 = vadd.xlane.f32.xlu1 %v3863_v47  ;;  %v5034_v47 = vsel %vm4163_vm9, %v5033_v43, %v5029_v39  ;;  %v4976_v48 = vsel %vm4191_vm1, %v4975_v30, %v4971_v9 }
 0x82e   : > { %v14461_v23 = vpop.xlane.xlu1 %3669  ;;  %v5043_v19 = vrot.slane %v14456_v12, %v12997_v0  ;;  %v3893_v12 = vsel %vm747_vm0, %v10901_v17, 0.0  ;;  %v5039_v31 = vsel %vm4170_vm10, %v5038_v37, %v5034_v47  ;;  %v4981_v43 = vsel %vm4198_vm3, %v4980_v3, %v4976_v48 }
 0x830   : > { %3885 = vadd.xlane.f32.xlu0 %v3884_v2  ;;  %v5044_v51 = vsel %vm4177_vm13, %v5043_v19, %v5039_v31 }
 0x831   : > { %v14472_v62 = vpop.xlane.xlu0 %3672  ;;  %3846 = vadd.xlane.f32.xlu1 %v3845_v56  ;;  %v5048_v56 = vrot.slane %v14461_v23, %v13002_v8  ;;  %v5010_v23 = vsel %vm4184_vm14, %v5009_v58, %v5005_v35 }
 0x832   : > { %v14475_v28 = vpop.xlane.xlu1 %3675  ;;  %v5053_v40 = vrot.slane %v14472_v62, %v13018_v42  ;;  %v5015_v20 = vsel %vm4191_vm1, %v5014_v10, %v5010_v23 }
 0x833   : > { %v5049_v33 = vsel %vm4184_vm14, %v5048_v56, %v5044_v51  ;;  %v5058_v54 = vrot.slane %v14475_v28, %v13023_v61 }
 0x834   : > { %3867 = vadd.xlane.f32.xlu0 %v3866_v41  ;;  %v5054_v16 = vsel %vm4191_vm1, %v5053_v40, %v5049_v33 }
 0x835   : > { %v14495_v29 = vpop.xlane.xlu0 %3678  ;;  %3888 = vadd.xlane.f32.xlu1 %v3887_v5  ;;  %v5024_v5 = vrot.slane %v14434_v49, %v13045_v46  ;;  %v4986_v49 = vsel %vm4205_vm5, %v4985_v50, %v4981_v43  ;;  %v5059_v39 = vsel %vm4198_vm3, %v5058_v54, %v5054_v16 }
 0x836   : > { %v3682_v44 = vpop.xlane.xlu1 %3681  ;;  %v5063_v21 = vrot.slane %v14495_v29, %v13045_v46  ;;  %v5440_v7 = vsel %vm18209_vm6, %v4986_v49, %v14348_v38  ;;  %vm18217_vm6 = vmmov %vm18210_vm12 }
 0x837   : > { %v5068_v52 = vrot.slane %v3682_v44, %v12973_v14 }
 0x838   : > { %3870 = vadd.xlane.f32.xlu0 %v3869_v6  ;;  %v5020_v6 = vsel %vm4198_vm3, %v5019_v25, %v5015_v20  ;;  %v5064_v17 = vsel %vm4205_vm5, %v5063_v21, %v5059_v39 }
 0x839   : > { %v3685_v55 = vpop.xlane.xlu0 %3684  ;;  %3891 = vadd.xlane.f32.xlu1 %v3890_v45  ;;  %v5025_v11 = vsel %vm4205_vm5, %v5024_v5, %v5020_v6 }
 0x83a   : > { %v5072_v53 = vrot.slane %v3685_v55, %v12977_v34  ;;  %v3688_v1 = vpop.xlane.xlu1 %3687  ;;  %v5441_v63 = vsel %vm18210_vm12, %v5025_v11, %v5440_v7  ;;  %vm18218_vm12 = vmmov %vm18211_vm7 }
 0x83b   : > { %v5077_v2 = vrot.slane %v3688_v1, %v12982_v57  ;;  %v5442_v47 = vsel %vm18211_vm7, %v5064_v17, %v5441_v63  ;;  %vm18219_vm7 = vmmov %vm18212_vm11 }
 0x83c   : > { %v5073_v60 = vsel %vm4163_vm9, %v5072_v53, %v5068_v52  ;;  %3894 = vadd.xlane.f32.xlu0 %v3893_v12 }
 0x83d   : > { %v3691_v32 = vpop.xlane.xlu0 %3690  ;;  %v5078_v13 = vsel %vm4170_vm10, %v5077_v2, %v5073_v60 }
 0x83e   : > { %v5082_v41 = vrot.slane %v3691_v32, %v12997_v0  ;;  %v3694_v15 = vpop.xlane.xlu1 %3693 }
 0x83f   : > { %v5087_v62 = vrot.slane %v3694_v15, %v13002_v8 }
 0x840   : > { %v5083_v18 = vsel %vm4177_vm13, %v5082_v41, %v5078_v13 }
 0x841   : > { %v3697_v26 = vpop.xlane.xlu0 %3696  ;;  %v5088_v24 = vsel %vm4184_vm14, %v5087_v62, %v5083_v18 }
 0x842   : > { %v5092_v22 = vrot.slane %v3697_v26, %v13018_v42  ;;  %v3700_v44 = vpop.xlane.xlu1 %3699 }
 0x843   : > { %v5097_v28 = vrot.slane %v3700_v44, %v13023_v61 }
 0x844   : > { %v5093_v29 = vsel %vm4191_vm1, %v5092_v22, %v5088_v24 }
 0x845   : > { %v3703_v27 = vpop.xlane.xlu0 %3702  ;;  %v5098_v30 = vsel %vm4198_vm3, %v5097_v28, %v5093_v29 }
 0x846   : > { %v5102_v37 = vrot.slane %v3703_v27, %v13045_v46  ;;  %v3706_v45 = vpop.xlane.xlu1 %3705 }
 0x847   : > { %v5107_v58 = vrot.slane %v3706_v45, %v12973_v14 }
 0x848   : > { %v5103_v19 = vsel %vm4205_vm5, %v5102_v37, %v5098_v30 }
 0x849   : > { %v5443_v55 = vsel %vm18212_vm11, %v5103_v19, %v5442_v47  ;;  %v3709_v59 = vpop.xlane.xlu0 %3708 }
 0x84a   : > { %5458 = vst.msk [vmem:[%s13570_s14 + $0x10] sm:$0xff] %vm747_vm0, %v5443_v55  ;;  %v5111_v38 = vrot.slane %v3709_v59, %v12977_v34  ;;  %v3712_v52 = vpop.xlane.xlu1 %3711 }
 0x84b   : > { %v5116_v53 = vrot.slane %v3712_v52, %v12982_v57 }
 0x84c   : > { %v5112_v1 = vsel %vm4163_vm9, %v5111_v38, %v5107_v58 }
 0x84d   : > { %v5117_v35 = vsel %vm4170_vm10, %v5116_v53, %v5112_v1  ;;  %v3715_v10 = vpop.xlane.xlu0 %3714 }
 0x84e   : > { %v5121_v2 = vrot.slane %v3715_v10, %v12997_v0  ;;  %v3718_v12 = vpop.xlane.xlu1 %3717 }
 0x84f   : > { %v5126_v31 = vrot.slane %v3718_v12, %v13002_v8 }
 0x850   : > { %v5122_v56 = vsel %vm4177_vm13, %v5121_v2, %v5117_v35 }
 0x851   : > { %v5127_v60 = vsel %vm4184_vm14, %v5126_v31, %v5122_v56  ;;  %v3721_v9 = vpop.xlane.xlu0 %3720 }
 0x852   : > { %v5131_v3 = vrot.slane %v3721_v9, %v13018_v42  ;;  %v3724_v51 = vpop.xlane.xlu1 %3723 }
 0x853   : > { %v5136_v40 = vrot.slane %v3724_v51, %v13023_v61 }
 0x854   : > { %v5132_v32 = vsel %vm4191_vm1, %v5131_v3, %v5127_v60 }
 0x855   : > { %v5137_v48 = vsel %vm4198_vm3, %v5136_v40, %v5132_v32  ;;  %v3727_v50 = vpop.xlane.xlu0 %3726 }
 0x856   : > { %v5141_v23 = vrot.slane %v3727_v50, %v13045_v46  ;;  %v3730_v41 = vpop.xlane.xlu1 %3729 }
 0x857   : > { %v5146_v25 = vrot.slane %v3730_v41, %v12973_v14 }
 0x858   : > { %v5142_v15 = vsel %vm4205_vm5, %v5141_v23, %v5137_v48 }
 0x859   : > { %v3733_v20 = vpop.xlane.xlu0 %3732 }
 0x85a   : > { %v5150_v13 = vrot.slane %v3733_v20, %v12977_v34  ;;  %v3736_v62 = vpop.xlane.xlu1 %3735 }
 0x85b   : > { %v5155_v5 = vrot.slane %v3736_v62, %v12982_v57 }
 0x85c   : > { %v5151_v33 = vsel %vm4163_vm9, %v5150_v13, %v5146_v25 }
 0x85d   : > { %v5156_v54 = vsel %vm4170_vm10, %v5155_v5, %v5151_v33  ;;  %v3739_v18 = vpop.xlane.xlu0 %3738 }
 0x85e   : > { %v5160_v16 = vrot.slane %v3739_v18, %v12997_v0  ;;  %v3742_v21 = vpop.xlane.xlu1 %3741 }
 0x85f   : > { %v5165_v26 = vrot.slane %v3742_v21, %v13002_v8 }
 0x860   : > { %v5161_v43 = vsel %vm4177_vm13, %v5160_v16, %v5156_v54 }
 0x861   : > { %v5166_v22 = vsel %vm4184_vm14, %v5165_v26, %v5161_v43  ;;  %v3745_v44 = vpop.xlane.xlu0 %3744 }
 0x862   : > { %v5170_v49 = vrot.slane %v3745_v44, %v13018_v42  ;;  %v3748_v6 = vpop.xlane.xlu1 %3747 }
 0x863   : > { %v5175_v24 = vrot.slane %v3748_v6, %v13023_v61 }
 0x864   : > { %v5171_v28 = vsel %vm4191_vm1, %v5170_v49, %v5166_v22 }
 0x865   : > { %v5176_v11 = vsel %vm4198_vm3, %v5175_v24, %v5171_v28  ;;  %v3751_v39 = vpop.xlane.xlu0 %3750 }
 0x866   : > { %v5180_v29 = vrot.slane %v3751_v39, %v13045_v46  ;;  %v3754_v17 = vpop.xlane.xlu1 %3753 }
 0x867   : > { %v5185_v45 = vrot.slane %v3754_v17, %v12973_v14 }
 0x868   : > { %v5181_v27 = vsel %vm4205_vm5, %v5180_v29, %v5176_v11 }
 0x869   : > { %v5444_v7 = vsel %vm18213_vm8, %v5181_v27, %v5142_v15  ;;  %v3757_v37 = vpop.xlane.xlu0 %3756 }
 0x86a   : > { %v5189_v63 = vrot.slane %v3757_v37, %v12977_v34  ;;  %v3760_v30 = vpop.xlane.xlu1 %3759 }
 0x86b   : > { %v5194_v47 = vrot.slane %v3760_v30, %v12982_v57 }
 0x86c   : > { %v5190_v19 = vsel %vm4163_vm9, %v5189_v63, %v5185_v45 }
 0x86d   : > { %v5195_v55 = vsel %vm4170_vm10, %v5194_v47, %v5190_v19  ;;  %v3763_v59 = vpop.xlane.xlu0 %3762 }
 0x86e   : > { %v5199_v58 = vrot.slane %v3763_v59, %v12997_v0  ;;  %v3766_v38 = vpop.xlane.xlu1 %3765 }
 0x86f   : > { %v5204_v52 = vrot.slane %v3766_v38, %v13002_v8 }
 0x870   : > { %v5200_v53 = vsel %vm4177_vm13, %v5199_v58, %v5195_v55 }
 0x871   : > { %v5205_v1 = vsel %vm4184_vm14, %v5204_v52, %v5200_v53  ;;  %v3769_v35 = vpop.xlane.xlu0 %3768 }
 0x872   : > { %v5209_v10 = vrot.slane %v3769_v35, %v13018_v42  ;;  %v3778_v2 = vpop.xlane.xlu1 %3777 }
 0x873   : > { %v5224_v56 = vrot.slane %v3778_v2, %v12973_v14 }
 0x874   : > { %v5210_v12 = vsel %vm4191_vm1, %v5209_v10, %v5205_v1 }
 0x875   : > { %v3781_v31 = vpop.xlane.xlu0 %3780 }
 0x876   : > { %v5228_v60 = vrot.slane %v3781_v31, %v12977_v34  ;;  %v3784_v9 = vpop.xlane.xlu1 %3783 }
 0x877   : > { %v5233_v3 = vrot.slane %v3784_v9, %v12982_v57 }
 0x878   : > { %v5229_v51 = vsel %vm4163_vm9, %v5228_v60, %v5224_v56 }
 0x879   : > { %v5234_v40 = vsel %vm4170_vm10, %v5233_v3, %v5229_v51  ;;  %v3802_v32 = vpop.xlane.xlu0 %3801 }
 0x87a   : > { %v5263_v48 = vrot.slane %v3802_v32, %v12973_v14  ;;  %v3805_v50 = vpop.xlane.xlu1 %3804 }
 0x87b   : > { %v5267_v23 = vrot.slane %v3805_v50, %v12977_v34 }
 0x87d   : > { %v5268_v41 = vsel %vm4163_vm9, %v5267_v23, %v5263_v48  ;;  %v3787_v15 = vpop.xlane.xlu0 %3786 }
 0x87e   : > { %v5238_v20 = vrot.slane %v3787_v15, %v12997_v0  ;;  %v3808_v25 = vpop.xlane.xlu1 %3807 }
 0x87f   : > { %v5272_v35 = vrot.slane %v3808_v25, %v12982_v57 }
 0x880   : > { %v5239_v13 = vsel %vm4177_vm13, %v5238_v20, %v5234_v40 }
 0x881   : > { %v14632_v62 = vpop.xlane.xlu0 %3825  ;;  %v5273_v3 = vsel %vm4170_vm10, %v5272_v35, %v5268_v41 }
 0x882   : > { %v14634_v5 = vpop.xlane.xlu1 %3828 }
 0x885   : > { %v3790_v33 = vpop.xlane.xlu0 %3789 }
 0x886   : > { %v3811_v54 = vpop.xlane.xlu1 %3810  ;;  %v5243_v30 = vrot.slane %v3790_v33, %v13002_v8 }
 0x887   : > { %v5277_v2 = vrot.slane %v3811_v54, %v12997_v0  ;;  %v5302_v54 = vrot.slane %v14632_v62, %v12973_v14 }
 0x888   : > { %v5244_v58 = vsel %vm4184_vm14, %v5243_v30, %v5239_v13 }
 0x889   : > { %v14636_v18 = vpop.xlane.xlu0 %3831  ;;  %v5278_v40 = vsel %vm4177_vm13, %v5277_v2, %v5273_v3 }
 0x88a   : > { %v14638_v16 = vpop.xlane.xlu1 %3849 }
 0x88d   : > { %v14640_v21 = vpop.xlane.xlu0 %3852 }
 0x88e   : > { %v3772_v26 = vpop.xlane.xlu1 %3771 }
 0x88f   : > { %v5214_v28 = vrot.slane %v3772_v26, %v13023_v61  ;;  %v5306_v26 = vrot.slane %v14634_v5, %v12977_v34 }
 0x891   : > { %v3793_v43 = vpop.xlane.xlu0 %3792  ;;  %v5215_v17 = vsel %vm4198_vm3, %v5214_v28, %v5210_v12  ;;  %v5345_v28 = vrot.slane %v14640_v21, %v12977_v34 }
 0x892   : > { %v3814_v22 = vpop.xlane.xlu1 %3813  ;;  %v5248_v19 = vrot.slane %v3793_v43, %v13018_v42 }
 0x893   : > { %v5282_v56 = vrot.slane %v3814_v22, %v13002_v8  ;;  %v5311_v22 = vrot.slane %v14636_v18, %v12982_v57 }
 0x894   : > { %v5249_v52 = vsel %vm4191_vm1, %v5248_v19, %v5244_v58 }
 0x895   : > { %v14642_v44 = vpop.xlane.xlu0 %3834  ;;  %v5283_v48 = vsel %vm4184_vm14, %v5282_v56, %v5278_v40 }
 0x896   : > { %v14644_v49 = vpop.xlane.xlu1 %3855 }
 0x897   : > { %v5350_v62 = vrot.slane %v14644_v49, %v12982_v57 }
 0x899   : > { %v14646_v6 = vpop.xlane.xlu0 %3873 }
 0x89a   : > { %v14648_v24 = vpop.xlane.xlu1 %3876  ;;  %v5380_v5 = vrot.slane %v14646_v6, %v12973_v14 }
 0x89b   : > { %v5384_v18 = vrot.slane %v14648_v24, %v12977_v34 }
 0x89d   : > { %v3775_v11 = vpop.xlane.xlu0 %3774 }
 0x89e   : > { %v5219_v39 = vrot.slane %v3775_v11, %v13045_v46  ;;  %v3796_v29 = vpop.xlane.xlu1 %3795 }
 0x89f   : > { %v5253_v59 = vrot.slane %v3796_v29, %v13023_v61  ;;  %v5307_v29 = vsel %vm4163_vm9, %v5306_v26, %v5302_v54 }
 0x8a0   : > { %v5220_v27 = vsel %vm4205_vm5, %v5219_v39, %v5215_v17  ;;  %v5316_v39 = vrot.slane %v14642_v44, %v12997_v0  ;;  %v5341_v17 = vrot.slane %v14638_v16, %v12973_v14 }
 0x8a1   : > { %v5445_v37 = vsel %vm18214_vm15, %v5220_v27, %v5444_v7  ;;  %v3817_v45 = vpop.xlane.xlu0 %3816  ;;  %v5254_v1 = vsel %vm4198_vm3, %v5253_v59, %v5249_v52  ;;  %v5385_v52 = vsel %vm4163_vm9, %v5384_v18, %v5380_v5  ;;  %v18229_v5 = vld [vmem:[#allocation49_spill] sm:$0xff] (%p870_p1)  ;;  %v18230_v18 = vld [vmem:[#allocation51_spill] sm:$0xff] (%p870_p1) }
 0x8a2   : > { %v14655_v63 = vpop.xlane.xlu1 %3837  ;;  %v5287_v9 = vrot.slane %v3817_v45, %v13018_v42  ;;  %v5346_v16 = vsel %vm4163_vm9, %v5345_v28, %v5341_v17  ;;  %v18223_v28 = vld [vmem:[#allocation58_spill] sm:$0xff] (%p870_p1) }
 0x8a3   : > { %v5321_v21 = vrot.slane %v14655_v63, %v13002_v8  ;;  %v18227_v17 = vld [vmem:[#allocation50_spill] sm:$0xff] (%p870_p1) }
 0x8a4   : > { %v5288_v23 = vsel %vm4191_vm1, %v5287_v9, %v5283_v48 }
 0x8a5   : > { %v14658_v47 = vpop.xlane.xlu0 %3858 }
 0x8a6   : > { %v14661_v55 = vpop.xlane.xlu1 %3879  ;;  %v5355_v44 = vrot.slane %v14658_v47, %v12997_v0  ;;  %v5351_v47 = vsel %vm4170_vm10, %v5350_v62, %v5346_v16  ;;  %v18228_v62 = vld [vmem:[#allocation48_spill] sm:$0xff] (%p870_p1)  ;;  %v18235_v16 = vld [vmem:[#allocation63_spill] sm:$0xff] (%p870_p1) }
 0x8a7   : > { %v5389_v24 = vrot.slane %v14661_v55, %v12982_v57 }
 0x8a9   : > { %v3799_v38 = vpop.xlane.xlu0 %3798  ;;  %v5390_v56 = vsel %vm4170_vm10, %v5389_v24, %v5385_v52  ;;  %v18239_v24 = vld [vmem:[#allocation36_spill] sm:$0xff] (%p870_p1) }
 0x8aa   : > { %v5258_v7 = vrot.slane %v3799_v38, %v13045_v46  ;;  %v3820_v53 = vpop.xlane.xlu1 %3819 }
 0x8ab   : > { %v5292_v51 = vrot.slane %v3820_v53, %v13023_v61  ;;  %v5356_v53 = vsel %vm4177_vm13, %v5355_v44, %v5351_v47  ;;  %v18232_v44 = vld [vmem:[#allocation55_spill] sm:$0xff] (%p870_p1)  ;;  %v18241_v47 = vld [vmem:[#allocation34_spill] sm:$0xff] (%p870_p1) }
 0x8ac   : > { %v5259_v10 = vsel %vm4205_vm5, %v5258_v7, %v5254_v1 }
 0x8ad   : > { %v5446_v12 = vsel %vm18215_vm4, %v5259_v10, %v5445_v37  ;;  %v3841_v31 = vpop.xlane.xlu0 %3840  ;;  %v5293_v20 = vsel %vm4198_vm3, %v5292_v51, %v5288_v23  ;;  %v5312_v37 = vsel %vm4170_vm10, %v5311_v22, %v5307_v29  ;;  %v18221_v22 = vld [vmem:[#allocation47_spill] sm:$0xff] (%p870_p1)  ;;  %v18226_v29 = vld [vmem:[#allocation52_spill] sm:$0xff] (%p870_p1) }
 0x8ae   : > { %v3862_v60 = vpop.xlane.xlu1 %3861  ;;  %v5326_v45 = vrot.slane %v3841_v31, %v13018_v42  ;;  %v5317_v6 = vsel %vm4177_vm13, %v5316_v39, %v5312_v37  ;;  %11459 = vmatprep.mubr.f32.mxu0 (%p870_p1), %v18221_v22  ;;  %v18225_v39 = vld [vmem:[#allocation54_spill] sm:$0xff] (%p870_p1)  ;;  %v18234_v37 = vld [vmem:[#allocation59_spill] sm:$0xff] (%p870_p1) }
 0x8af   : > { %v5360_v49 = vrot.slane %v3862_v60, %v13002_v8  ;;  %v5322_v7 = vsel %vm4184_vm14, %v5321_v21, %v5317_v6  ;;  %v18231_v21 = vld [vmem:[#allocation53_spill] sm:$0xff] (%p870_p1) }
 0x8b0   : > { %v5327_v35 = vsel %vm4191_vm1, %v5326_v45, %v5322_v7  ;;  %v18236_v45 = vld [vmem:[#allocation39_spill] sm:$0xff] (%p870_p1)  ;;  %v18238_v6 = vld [vmem:[#allocation37_spill] sm:$0xff] (%p870_p1) }
 0x8b1   : > { %v3883_v32 = vpop.xlane.xlu0 %3882  ;;  %v5361_v10 = vsel %vm4184_vm14, %v5360_v49, %v5356_v53  ;;  %v18237_v49 = vld [vmem:[#allocation38_spill] sm:$0xff] (%p870_p1) }
 0x8b2   : > { %v3823_v50 = vpop.xlane.xlu1 %3822  ;;  %v5394_v59 = vrot.slane %v3883_v32, %v12997_v0 }
 0x8b3   : > { %v5297_v15 = vrot.slane %v3823_v50, %v13045_v46 }
 0x8b4   : > { %v5395_v51 = vsel %vm4177_vm13, %v5394_v59, %v5390_v56 }
 0x8b5   : > { %v5298_v25 = vsel %vm4205_vm5, %v5297_v15, %v5293_v20  ;;  %v3844_v13 = vpop.xlane.xlu0 %3843 }
 0x8b6   : > { %v5447_v33 = vsel %vm18216_vm2, %v5298_v25, %v5446_v12  ;;  %v3865_v41 = vpop.xlane.xlu1 %3864  ;;  %v5331_v63 = vrot.slane %v3844_v13, %v13023_v61 }
 0x8b7   : > { %v5365_v19 = vrot.slane %v3865_v41, %v13018_v42 }
 0x8b8   : > { %v5332_v60 = vsel %vm4198_vm3, %v5331_v63, %v5327_v35  ;;  %v5530_v63 = vpack.c.bf16 (%p870_p1), %v18239_v24, %v18238_v6 }
 0x8b9   : > { %v3886_v43 = vpop.xlane.xlu0 %3885  ;;  %v5366_v9 = vsel %vm4191_vm1, %v5365_v19, %v5361_v10  ;;  %v18240_v19 = vld [vmem:[#allocation35_spill] sm:$0xff] (%p870_p1)  ;;  %v18244_v10 = vld [vmem:[#allocation66_spill] sm:$0xff] (%p870_p1) }
 0x8ba   : > { %v3847_v11 = vpop.xlane.xlu1 %3846  ;;  %v5399_v55 = vrot.slane %v3886_v43, %v13002_v8  ;;  %v18220_v43 = vld [vmem:[#allocation64_spill] sm:$0xff] (%p870_p1)  ;;  %v5529_v59 = vpack.c.bf16 (%p870_p1), %v18241_v47, %v18240_v19 }
 0x8bb   : > { %v5336_v58 = vrot.slane %v3847_v11, %v13045_v46  ;;  %11443 = vmatprep.subr.mxu0 (%p870_p1), %v18220_v43  ;;  %v18224_v11 = vld [vmem:[#allocation56_spill] sm:$0xff] (%p870_p1) }
 0x8bc   : > { %v5400_v48 = vsel %vm4184_vm14, %v5399_v55, %v5395_v51  ;;  %11444 = vmatpush3.xpose.msra.mxu0 (%p870_p1), %v18220_v43  ;;  %v18246_v51 = vld [vmem:[#allocation68_spill] sm:$0xff] (%p870_p1)  ;;  %v18248_v43 = vld [vmem:[#allocation70_spill] sm:$0xff] (%p870_p1) }
 0x8bd   : > { %v3868_v27 = vpop.xlane.xlu0 %3867  ;;  %v5337_v40 = vsel %vm4205_vm5, %v5336_v58, %v5332_v60  ;;  %v18242_v58 = vld [vmem:[#allocation33_spill] sm:$0xff] (%p870_p1)  ;;  %v5504_v22 = vsub.f32 (%p870_p1), 1.0, %v18248_v43 }
 0x8be   : > { %v3889_v30 = vpop.xlane.xlu1 %3888  ;;  %v5370_v38 = vrot.slane %v3868_v27, %v13023_v61  ;;  %v5448_v25 = vsel %vm18217_vm6, %v5337_v40, %v5447_v33  ;;  %v18222_v33 = vld [vmem:[#allocation61_spill] sm:$0xff] (%p870_p1)  ;;  %v5502_v40 = vsub.f32 (%p870_p1), 1.0, %v18246_v51 }
 0x8bf   : > { %v5404_v2 = vrot.slane %v3889_v30, %v13018_v42  ;;  %11445 = vmatprep.subr.mxu0 (%p870_p1), %v18222_v33  ;;  %v18233_v27 = vld [vmem:[#allocation57_spill] sm:$0xff] (%p870_p1)  ;;  %v5531_v30 = vpack.c.bf16 (%p870_p1), %v18237_v49, %v18236_v45 }
 0x8c0   : > { %v5371_v32 = vsel %vm4198_vm3, %v5370_v38, %v5366_v9  ;;  %11446 = vmatpush3.xpose.msra.mxu0 (%p870_p1), %v18222_v33  ;;  %v18243_v38 = vld [vmem:[#allocation32_spill] sm:$0xff] (%p870_p1)  ;;  %v18249_v33 = vld [vmem:[#allocation69_spill] sm:$0xff] (%p870_p1) }
 0x8c1   : > { %v3871_v1 = vpop.xlane.xlu0 %3870  ;;  %v5405_v15 = vsel %vm4191_vm1, %v5404_v2, %v5400_v48  ;;  %11447 = vmatprep.subr.mxu0 (%p870_p1), %v18223_v28  ;;  %v14780_v52 = vpack.c.bf16 (%p870_p1), %v18243_v38, %v18242_v58  ;;  %v5500_v2 = vsub.f32 (%p870_p1), 1.0, %v18244_v10  ;;  %11427 = vmatprep.subr.bf16.mxu1 (%p870_p1), %v5531_v30 }
 0x8c2   : > { %v5375_v12 = vrot.slane %v3871_v1, %v13045_v46  ;;  %v3892_v31 = vpop.xlane.xlu1 %3891  ;;  %11428 = vmatpush3.bf16.msra.mxu1 (%p870_p1), %v5531_v30 }
 0x8c3   : > { %v5409_v3 = vrot.slane %v3892_v31, %v13023_v61  ;;  %11429 = vmatprep.subr.bf16.mxu1 (%p870_p1), %v5530_v63 }
 0x8c4   : > { %v5376_v50 = vsel %vm4205_vm5, %v5375_v12, %v5371_v32  ;;  %11448 = vmatpush3.xpose.msra.mxu0 (%p870_p1), %v18223_v28  ;;  %v18245_v12 = vld [vmem:[#allocation65_spill] sm:$0xff] (%p870_p1)  ;;  %v18247_v32 = vld [vmem:[#allocation67_spill] sm:$0xff] (%p870_p1)  ;;  %v5505_v28 = vsub.f32 (%p870_p1), 1.0, %v18249_v33 }
 0x8c5   : > { %v3895_v23 = vpop.xlane.xlu0 %3894  ;;  %v5410_v13 = vsel %vm4198_vm3, %v5409_v3, %v5405_v15  ;;  %v5449_v41 = vsel %vm18218_vm12, %v5376_v50, %v5448_v25  ;;  %11449 = vmatprep.subr.mxu0 (%p870_p1), %v18224_v11  ;;  %v5501_v31 = vsub.f32 (%p870_p1), 1.0, %v18245_v12  ;;  %v5503_v48 = vsub.f32 (%p870_p1), 1.0, %v18247_v32 }
 0x8c6   : > { %v5414_v20 = vrot.slane %v3895_v23, %v13045_v46  ;;  %872 = sbr.rel (!%p870_p1) target bundleno = 1052 (0x41c), region = 71  ;;  %11430 = vmatpush3.bf16.msra.mxu1 (%p870_p1), %v5530_v63 }
 0x8c7   :  { %11431 = vmatprep.subr.bf16.mxu1 (%p870_p1), %v5529_v59 }
 0x8c8   : > { %v5415_v54 = vsel %vm4205_vm5, %v5414_v20, %v5410_v13  ;;  %11450 = vmatpush3.xpose.msra.mxu0 (%p870_p1), %v18224_v11 }
 0x8c9   : > { %v5450_v26 = vsel %vm18219_vm7, %v5415_v54, %v5449_v41  ;;  %11451 = vmatprep.subr.mxu0 (%p870_p1), %v18225_v39 }
 0x8ca   : > { %5459 = vst.msk [vmem:[%s13570_s14 + $0x18] sm:$0xff] %vm747_vm0, %v5450_v26  ;;  %11432 = vmatpush3.bf16.msra.mxu1 (%p870_p1), %v5529_v59  ;;  %v18257_v59 = vld [vmem:[#allocation77_spill] sm:$0xff] (%p870_p1) }
 0x8cb   :  { %11433 = vmatprep.subr.bf16.mxu1 %v14780_v52 }
 0x8cc   :  { %11452 = vmatpush3.xpose.msra.mxu0 %v18225_v39 }
 0x8cd   :  { %11453 = vmatprep.subr.mxu0 %v18226_v29 }
 0x8ce   :  { %11434 = vmatpush3.bf16.msra.mxu1 %v14780_v52 }
 0x8d0   :  { %11454 = vmatpush3.xpose.msra.mxu0 %v18226_v29 }
 0x8d1   :  { %11455 = vmatprep.subr.mxu0 %v18227_v17  ;;  %v5460_v7 = vld [vmem:[#allocation3] sm:$0xff]  ;;  %v5461_v53 = vld [vmem:[#allocation3 + $0x8] sm:$0xff]  ;;  %v5462_v55 = vld [vmem:[#allocation3 + $0x10] sm:$0xff] }
 0x8d2   :  { %v5468_v1 = vadd.f32 1.0, %v5460_v7  ;;  %v5469_v35 = vadd.f32 1.0, %v5461_v53  ;;  %v5463_v56 = vld [vmem:[#allocation3 + $0x18] sm:$0xff]  ;;  %v5464_v60 = vld [vmem:[#allocation3 + $0x20] sm:$0xff]  ;;  %v5470_v9 = vadd.f32 1.0, %v5462_v55  ;;  %v5465_v50 = vld [vmem:[#allocation3 + $0x28] sm:$0xff] }
 0x8d3   :  { %v5471_v3 = vadd.f32 1.0, %v5463_v56  ;;  %v5472_v20 = vadd.f32 1.0, %v5464_v60  ;;  %v5473_v25 = vadd.f32 1.0, %v5465_v50  ;;  %v5466_v13 = vld [vmem:[#allocation3 + $0x30] sm:$0xff]  ;;  %v5467_v41 = vld [vmem:[#allocation3 + $0x38] sm:$0xff]  ;;  %v18250_v55 = vld [vmem:[#allocation74_spill] sm:$0xff] }
 0x8d4   :  { %11456 = vmatpush3.xpose.msra.mxu0 %v18227_v17  ;;  %v5476_v23 = vmul.f32 %v5468_v1, %v5468_v1  ;;  %v5477_v15 = vmul.f32 %v5469_v35, %v5469_v35  ;;  %v5478_v54 = vmul.f32 %v5470_v9, %v5470_v9  ;;  %v18252_v60 = vld [vmem:[#allocation76_spill] sm:$0xff]  ;;  %v18256_v50 = vld [vmem:[#allocation78_spill] sm:$0xff] }
 0x8d5   :  { %11457 = vmatprep.subr.mxu0 %v18228_v62  ;;  %v5479_v26 = vmul.f32 %v5471_v3, %v5471_v3  ;;  %v5480_v29 = vmul.f32 %v5472_v20, %v5472_v20  ;;  %v5481_v17 = vmul.f32 %v5473_v25, %v5473_v25 }
 0x8d6   :  { %v5484_v11 = vmul.f32 %v5476_v23, %v5468_v1  ;;  %v5485_v39 = vmul.f32 %v5477_v15, %v5469_v35  ;;  %v18251_v35 = vld [vmem:[#allocation73_spill] sm:$0xff] }
 0x8d8   :  { %11458 = vmatpush3.xpose.msra.mxu0 %v18228_v62  ;;  %v5486_v62 = vmul.f32 %v5478_v54, %v5470_v9 }
 0x8da   :  { %v5494_v45 = vmul.f32 %v18246_v51, %v5486_v62 }
 0x8db   :  { %11460 = vmatmul.mubr.f32.vlgmr.msra.gmra.mxu0 %v18229_v5  ;;  %v5487_v5 = vmul.f32 %v5479_v26, %v5471_v3  ;;  %v18254_v3 = vld [vmem:[#allocation72_spill] sm:$0xff] }
 0x8dc   :  { %11462 = vmatprep.mubr.f32.mxu0 %v18230_v18  ;;  %v5474_v18 = vadd.f32 1.0, %v5466_v13  ;;  %v5510_v63 = vadd.f32 %v5502_v40, %v5494_v45 }
 0x8dd   :  { %v5495_v49 = vmul.f32 %v18247_v32, %v5487_v5  ;;  %v18255_v32 = vld [vmem:[#allocation71_spill] sm:$0xff]  ;;  %v18260_v5 = vmov 0.0  }
 0x8de   :  { %v5482_v30 = vmul.f32 %v5474_v18, %v5474_v18  ;;  %v5507_v13 = vsub.f32 1.0, %v18255_v32 }
 0x8df   :  { %11463 = vmatmul.mubr.f32.gmra.mxu0 %v18231_v21  ;;  %v5475_v21 = vadd.f32 1.0, %v5467_v41  ;;  %v5511_v38 = vadd.f32 %v5503_v48, %v5495_v49 }
 0x8e0   :  { %11465 = vmatprep.mubr.f32.mxu0 %v18232_v44  ;;  %v5492_v44 = vmul.f32 %v18244_v10, %v5484_v11  ;;  %v5490_v7 = vmul.f32 %v5482_v30, %v5474_v18 }
 0x8e1   :  { %v5483_v6 = vmul.f32 %v5475_v21, %v5475_v21 }
 0x8e2   :  { %v5508_v24 = vadd.f32 %v5500_v2, %v5492_v44  ;;  %v5518_v2 = vmul.f32 %v5510_v63, %v18252_v60  ;;  %v5498_v51 = vmul.f32 %v18254_v3, %v5490_v7 }
 0x8e3   :  { %11466 = vmatmul.mubr.f32.gmra.mxu0 %v18233_v27  ;;  %v5493_v27 = vmul.f32 %v18245_v12, %v5485_v39  ;;  %v5491_v53 = vmul.f32 %v5483_v6, %v5475_v21 }
 0x8e4   :  { %11468 = vmatprep.mubr.f32.mxu0 %v18234_v37  ;;  %v5488_v37 = vmul.f32 %v5480_v29, %v5472_v20  ;;  %v5516_v1 = vmul.f32 %v5508_v24, %v18250_v55  ;;  %v5506_v20 = vsub.f32 1.0, %v18254_v3 }
 0x8e5   :  { %v5509_v19 = vadd.f32 %v5501_v31, %v5493_v27  ;;  %v18253_v31 = vld [vmem:[#allocation75_spill] sm:$0xff]  ;;  %v5499_v40 = vmul.f32 %v18255_v32, %v5491_v53 }
 0x8e6   :  { %v5496_v47 = vmul.f32 %v18248_v43, %v5488_v37  ;;  %v5519_v9 = vmul.f32 %v5511_v38, %v18253_v31  ;;  %v5514_v54 = vadd.f32 %v5506_v20, %v5498_v51  ;;  %v18258_v43 = vld [vmem:[#allocation80_spill] sm:$0xff] }
 0x8e7   :  { %11469 = vmatmul.mubr.f32.gmra.mxu0 %v18235_v16  ;;  %v5489_v16 = vmul.f32 %v5481_v17, %v5473_v25  ;;  %v5517_v10 = vmul.f32 %v5509_v19, %v18251_v35  ;;  %v5515_v26 = vadd.f32 %v5507_v13, %v5499_v40 }
 0x8e8   :  { %v5512_v12 = vadd.f32 %v5504_v22, %v5496_v47  ;;  %v5525_v25 = vpack.c.bf16 %v5519_v9, %v5518_v2  ;;  %v5522_v22 = vmul.f32 %v5514_v54, %v18258_v43 }
 0x8e9   :  { %v5497_v58 = vmul.f32 %v18249_v33, %v5489_v16  ;;  %v5524_v48 = vpack.c.bf16 %v5517_v10, %v5516_v1  ;;  %v18259_v33 = vld [vmem:[#allocation79_spill] sm:$0xff] }
 0x8ea   :  { %v5520_v23 = vmul.f32 %v5512_v12, %v18256_v50 }
 0x8eb   :  { %v5513_v56 = vadd.f32 %v5505_v28, %v5497_v58  ;;  %11435 = vmatprep.mubr.msk.bf16.mxu1 %vm747_vm0, %v5524_v48  ;;  %v5523_v28 = vmul.f32 %v5515_v26, %v18259_v33 }
 0x8ec   :  { %11436 = vmatmul.mubr.msk.bf16.vlgmr.msra.gmra.mxu1 %vm747_vm0, %v5525_v25 }
 0x8ed   :  { %v5521_v15 = vmul.f32 %v5513_v56, %v18257_v59  ;;  %v5527_v11 = vpack.c.bf16 %v5523_v28, %v5522_v22 }
 0x8ef   :  { %v5526_v41 = vpack.c.bf16 %v5521_v15, %v5520_v23 }
 0x8f1   :  { %11439 = vmatprep.mubr.msk.bf16.mxu1 %vm747_vm0, %v5526_v41 }
 0x8f4   :  { %11440 = vmatmul.mubr.msk.bf16.gmra.mxu1 %vm747_vm0, %v5527_v11 }
 0x99b   :  { %v11461_v39 = vpop.f32.mrf.mxu0 }
 0x99c   :  { %v5723_v29 = vmul.f32 0.088388346, %v11461_v39 }
 0x99d   :  { %v5683_v17 = vpop.f32.mrf.mxu0 }
 0x99e   :  { %5731 = vst.msk [vmem:[#allocation2 + $0x8] sm:$0xff] %vm747_vm0, %v5723_v29  ;;  %vm5827_vm11 = vcmp.ge.f32.partialorder %v5723_v29, 0.0  ;;  %v5722_v52 = vmul.f32 0.088388346, %v5683_v17  ;;  %v5741_v62 = vsel %vm747_vm0, %v5723_v29, -inf }
 0x99f   :  { %v14815_v18 = vsel %vm5827_vm11, 1.0, %v18260_v5  ;;  %5742 = vmax.xlane.f32.xlu0 %v5741_v62  ;;  %v11464_v21 = vpop.f32.mrf.mxu0 }
 0x9a0   :  { %18261 = vst [vmem:[#allocation30_spill] sm:$0xff] %v14815_v18  ;;  %5730 = vst.msk [vmem:[#allocation2] sm:$0xff] %vm747_vm0, %v5722_v52  ;;  %vm5826_vm8 = vcmp.ge.f32.partialorder %v5722_v52, 0.0  ;;  %v5725_v44 = vmul.f32 0.088388346, %v11464_v21  ;;  %v5738_v45 = vsel %vm747_vm0, %v5722_v52, -inf }
 0x9a1   :  { %v14819_v27 = vsel %vm5826_vm8, 1.0, %v18260_v5  ;;  %v5693_v37 = vpop.f32.mrf.mxu0 }
 0x9a2   :  { %18262 = vst [vmem:[#allocation64_spill] sm:$0xff] %v14819_v27  ;;  %5733 = vst.msk [vmem:[#allocation2 + $0x18] sm:$0xff] %vm747_vm0, %v5725_v44  ;;  %vm5829_vm15 = vcmp.ge.f32.partialorder %v5725_v44, 0.0  ;;  %v5724_v16 = vmul.f32 0.088388346, %v5693_v37  ;;  %v5747_v49 = vsel %vm747_vm0, %v5725_v44, -inf }
 0x9a3   :  { %v14825_v30 = vsel %vm5829_vm15, 1.0, %v18260_v5  ;;  %5739 = vmax.xlane.f32.xlu0 %v5738_v45  ;;  %5748 = vmax.xlane.f32.xlu1 %v5747_v49  ;;  %v11467_v6 = vpop.f32.mrf.mxu0 }
 0x9a4   :  { %18263 = vst [vmem:[#allocation47_spill] sm:$0xff] %v14825_v30  ;;  %5732 = vst.msk [vmem:[#allocation2 + $0x10] sm:$0xff] %vm747_vm0, %v5724_v16  ;;  %vm5828_vm4 = vcmp.ge.f32.partialorder %v5724_v16, 0.0  ;;  %v5727_v24 = vmul.f32 0.088388346, %v11467_v6  ;;  %v5744_v63 = vsel %vm747_vm0, %v5724_v16, -inf }
 0x9a5   :  { %v14829_v19 = vsel %vm5828_vm4, 1.0, %v18260_v5  ;;  %v5703_v47 = vpop.f32.mrf.mxu0 }
 0x9a6   :  { %18264 = vst [vmem:[#allocation61_spill] sm:$0xff] %v14829_v19  ;;  %5735 = vst.msk [vmem:[#allocation2 + $0x28] sm:$0xff] %vm747_vm0, %v5727_v24  ;;  %vm5831_vm2 = vcmp.ge.f32.partialorder %v5727_v24, 0.0  ;;  %v5726_v58 = vmul.f32 0.088388346, %v5703_v47  ;;  %v5753_v12 = vsel %vm747_vm0, %v5727_v24, -inf }
 0x9a7   :  { %v14834_v38 = vsel %vm5831_vm2, 1.0, %v18260_v5  ;;  %5745 = vmax.xlane.f32.xlu1 %v5744_v63  ;;  %v11470_v7 = vpop.f32.mrf.mxu0 }
 0x9a8   :  { %18265 = vst [vmem:[#allocation58_spill] sm:$0xff] %v14834_v38  ;;  %5734 = vst.msk [vmem:[#allocation2 + $0x20] sm:$0xff] %vm747_vm0, %v5726_v58  ;;  %vm5830_vm6 = vcmp.ge.f32.partialorder %v5726_v58, 0.0  ;;  %v5729_v53 = vmul.f32 0.088388346, %v11470_v7  ;;  %v5750_v55 = vsel %vm747_vm0, %v5726_v58, -inf }
 0x9a9   :  { %v14839_v1 = vsel %vm5830_vm6, 1.0, %v18260_v5  ;;  %5751 = vmax.xlane.f32.xlu0 %v5750_v55  ;;  %v5713_v35 = vpop.f32.mrf.mxu0 }
 0x9aa   :  { %18266 = vst [vmem:[#allocation56_spill] sm:$0xff] %v14839_v1  ;;  %5737 = vst.msk [vmem:[#allocation2 + $0x38] sm:$0xff] %vm747_vm0, %v5729_v53  ;;  %vm5833_vm12 = vcmp.ge.f32.partialorder %v5729_v53, 0.0  ;;  %v5728_v10 = vmul.f32 0.088388346, %v5713_v35  ;;  %v5759_v31 = vsel %vm747_vm0, %v5729_v53, -inf }
 0x9ab   :  { %v14844_v56 = vsel %vm5833_vm12, 1.0, %v18260_v5  ;;  %5754 = vmax.xlane.f32.xlu1 %v5753_v12 }
 0x9ac   :  { %18267 = vst [vmem:[#allocation54_spill] sm:$0xff] %v14844_v56  ;;  %5736 = vst.msk [vmem:[#allocation2 + $0x30] sm:$0xff] %vm747_vm0, %v5728_v10  ;;  %vm5832_vm7 = vcmp.ge.f32.partialorder %v5728_v10, 0.0  ;;  %v5756_v60 = vsel %vm747_vm0, %v5728_v10, -inf  ;;  %v11437_v55 = vpop.f32.mrf.mxu1 }
 0x9ad   :  { %v14849_v2 = vsel %vm5832_vm7, 1.0, %v18260_v5  ;;  %5757 = vmax.xlane.f32.xlu0 %v5756_v60  ;;  %v18269_v60 = vld [vmem:[#allocation17_spill] sm:$0xff] }
 0x9ae   :  { %18268 = vst [vmem:[#allocation52_spill] sm:$0xff] %v14849_v2  ;;  %v5578_v35 = vpop.f32.mrf.mxu1 }
 0x9af   :  { %5760 = vmax.xlane.f32.xlu1 %v5759_v31  ;;  %v5587_v31 = vadd.f32 %v11437_v55, %v18269_v60 }
 0x9b1   :  { %5611 = vst [vmem:[#allocation10 + $0x10] sm:$0xff] %v5587_v31 }
 0xa28   :  { %v5743_v9 = vpop.xlane.xlu0 %5742 }
 0xa29   :  { %v5763_v3 = vsub.f32 %v5723_v29, %v5743_v9  ;;  %v18270_v9 = vld [vmem:[#allocation14_spill] sm:$0xff] }
 0xa2b   :  { %v5772_v51 = vmul.f32 1.442695, %v5763_v3  ;;  %v5579_v3 = vadd.f32 %v5578_v35, %v18270_v9 }
 0xa2c   :  { %v5740_v32 = vpop.xlane.xlu0 %5739  ;;  %v5749_v40 = vpop.xlane.xlu1 %5748 }
 0xa2d   :  { %11555 = vpow2.f32 %v5772_v51  ;;  %v5762_v48 = vsub.f32 %v5722_v52, %v5740_v32  ;;  %v5765_v50 = vsub.f32 %v5725_v44, %v5749_v40  ;;  %v18271_v51 = vld [vmem:[#allocation16_spill] sm:$0xff]  ;;  %v18272_v40 = vld [vmem:[#allocation15_spill] sm:$0xff]  ;;  %5609 = vst [vmem:[#allocation10] sm:$0xff] %v5579_v3 }
 0xa2f   :  { %v5770_v23 = vmul.f32 1.442695, %v5762_v48  ;;  %v5776_v59 = vmul.f32 1.442695, %v5765_v50 }
 0xa30   :  { %v5746_v15 = vpop.xlane.xlu1 %5745 }
 0xa31   :  { %11557 = vpow2.f32 %v5770_v23  ;;  %v5764_v20 = vsub.f32 %v5724_v16, %v5746_v15 }
 0xa32   :  { %11559 = vpow2.f32 %v5776_v59  ;;  %v5752_v25 = vpop.xlane.xlu0 %5751 }
 0xa33   :  { %v5774_v13 = vmul.f32 1.442695, %v5764_v20  ;;  %v5766_v41 = vsub.f32 %v5726_v58, %v5752_v25  ;;  %v18273_v20 = vld [vmem:[#allocation21_spill] sm:$0xff] }
 0xa34   :  { %v5755_v54 = vpop.xlane.xlu1 %5754 }
 0xa35   :  { %11561 = vpow2.f32 %v5774_v13  ;;  %v5778_v26 = vmul.f32 1.442695, %v5766_v41  ;;  %v5767_v43 = vsub.f32 %v5727_v24, %v5755_v54  ;;  %v18274_v13 = vld [vmem:[#allocation19_spill] sm:$0xff]  ;;  %v18275_v54 = vld [vmem:[#allocation20_spill] sm:$0xff] }
 0xa36   :  { %v5758_v22 = vpop.xlane.xlu0 %5757 }
 0xa37   :  { %11563 = vpow2.f32 %v5778_v26  ;;  %v5780_v33 = vmul.f32 1.442695, %v5767_v43  ;;  %v5768_v28 = vsub.f32 %v5728_v10, %v5758_v22  ;;  %v11438_v10 = vpop.f32.mrf.mxu1  ;;  %v18276_v43 = vld [vmem:[#allocation18_spill] sm:$0xff] }
 0xa38   :  { %v5761_v11 = vpop.xlane.xlu1 %5760  ;;  %v5590_v32 = vadd.f32 %v11438_v10, %v18271_v51 }
 0xa39   :  { %11565 = vpow2.f32 %v5780_v33  ;;  %v5782_v39 = vmul.f32 1.442695, %v5768_v28  ;;  %v5769_v29 = vsub.f32 %v5729_v53, %v5761_v11  ;;  %v5581_v12 = vpop.f32.mrf.mxu1 }
 0xa3a   :  { %v14852_v17 = vpop.eup %11555  ;;  %v5582_v48 = vadd.f32 %v5581_v12, %v18272_v40  ;;  %5612 = vst [vmem:[#allocation10 + $0x18] sm:$0xff] %v5590_v32 }
 0xa3b   :  { %11567 = vpow2.f32 %v5782_v39  ;;  %v5784_v52 = vmul.f32 1.442695, %v5769_v29  ;;  %v5789_v62 = vsel %vm747_vm0, %v14852_v17, 0.0  ;;  %v11441_v50 = vpop.f32.mrf.mxu1 }
 0xa3c   :  { %5790 = vadd.xlane.f32.xlu1 %v5789_v62  ;;  %5610 = vst [vmem:[#allocation10 + $0x8] sm:$0xff] %v5582_v48  ;;  %v5603_v25 = vadd.f32 %v11441_v50, %v18273_v20 }
 0xa3d   :  { %11569 = vpow2.f32 %v5784_v52  ;;  %v5594_v23 = vpop.f32.mrf.mxu1 }
 0xa3e   :  { %v14856_v5 = vpop.eup %11557  ;;  %v5595_v41 = vadd.f32 %v5594_v23, %v18274_v13  ;;  %5615 = vst [vmem:[#allocation10 + $0x30] sm:$0xff] %v5603_v25 }
 0xa3f   :  { %v14858_v21 = vpop.eup %11559  ;;  %v5786_v44 = vsel %vm747_vm0, %v14856_v5, 0.0  ;;  %v11442_v59 = vpop.f32.mrf.mxu1 }
 0xa40   :  { %v5795_v37 = vsel %vm747_vm0, %v14858_v21, 0.0  ;;  %5787 = vadd.xlane.f32.xlu0 %v5786_v44  ;;  %v5606_v26 = vadd.f32 %v11442_v59, %v18275_v54  ;;  %5613 = vst [vmem:[#allocation10 + $0x20] sm:$0xff] %v5595_v41 }
 0xa41   :  { %5796 = vadd.xlane.f32.xlu1 %v5795_v37  ;;  %v5597_v15 = vpop.f32.mrf.mxu1 }
 0xa42   :  { %v11562_v16 = vpop.eup %11561  ;;  %v5598_v22 = vadd.f32 %v5597_v15, %v18276_v43  ;;  %5616 = vst [vmem:[#allocation10 + $0x38] sm:$0xff] %v5606_v26 }
 0xa43   :  { %v5792_v45 = vsel %vm747_vm0, %v11562_v16, 0.0 }
 0xa44   :  { %v14865_v49 = vpop.eup %11563  ;;  %5793 = vadd.xlane.f32.xlu0 %v5792_v45  ;;  %5614 = vst [vmem:[#allocation10 + $0x28] sm:$0xff] %v5598_v22 }
 0xa45   :  { %v5798_v47 = vsel %vm747_vm0, %v14865_v49, 0.0 }
 0xa46   :  { %v11566_v6 = vpop.eup %11565 }
 0xa47   :  { %v5801_v24 = vsel %vm747_vm0, %v11566_v6, 0.0 }
 0xa48   :  { %v14870_v58 = vpop.eup %11567  ;;  %5802 = vadd.xlane.f32.xlu1 %v5801_v24  ;;  %5799 = vadd.xlane.f32.xlu0 %v5798_v47 }
 0xa49   :  { %v5804_v53 = vsel %vm747_vm0, %v14870_v58, 0.0 }
 0xa4a   :  { %v11570_v63 = vpop.eup %11569 }
 0xa4b   :  { %v5807_v7 = vsel %vm747_vm0, %v11570_v63, 0.0 }
 0xa4c   :  { %5808 = vadd.xlane.f32.xlu1 %v5807_v7  ;;  %5805 = vadd.xlane.f32.xlu0 %v5804_v53 }
 0xac5   :  { %v5791_v33 = vpop.xlane.xlu1 %5790 }
 0xac6   :  { %11571 = vrcp.f32 %v5791_v33 }
 0xac9   :  { %v5788_v28 = vpop.xlane.xlu0 %5787 }
 0xaca   :  { %v5797_v11 = vpop.xlane.xlu1 %5796  ;;  %11573 = vrcp.f32 %v5788_v28 }
 0xacb   :  { %11575 = vrcp.f32 %v5797_v11 }
 0xacd   :  { %v5794_v39 = vpop.xlane.xlu0 %5793 }
 0xace   :  { %11577 = vrcp.f32 %v5794_v39 }
 0xad1   :  { %v5803_v29 = vpop.xlane.xlu1 %5802  ;;  %v5800_v52 = vpop.xlane.xlu0 %5799 }
 0xad2   :  { %11579 = vrcp.f32 %v5803_v29 }
 0xad3   :  { %v11572_v62 = vpop.eup %11571  ;;  %11581 = vrcp.f32 %v5800_v52 }
 0xad4   :  { %v14884_v44 = vmul.f32 %v11572_v62, %v14852_v17 }
 0xad5   :  { %v5809_v37 = vpop.xlane.xlu1 %5808  ;;  %v5806_v45 = vpop.xlane.xlu0 %5805 }
 0xad6   :  { %18277 = vst [vmem:[#allocation50_spill] sm:$0xff] %v14884_v44  ;;  %11583 = vrcp.f32 %v5809_v37 }
 0xad7   :  { %v11574_v24 = vpop.eup %11573  ;;  %11585 = vrcp.f32 %v5806_v45 }
 0xad8   :  { %v11576_v47 = vpop.eup %11575  ;;  %v14887_v7 = vmul.f32 %v11574_v24, %v14856_v5 }
 0xad9   :  { %v14890_v53 = vmul.f32 %v11576_v47, %v14858_v21 }
 0xada   :  { %18278 = vst [vmem:[#allocation48_spill] sm:$0xff] %v14887_v7 }
 0xadb   :  { %18279 = vst [vmem:[#allocation49_spill] sm:$0xff] %v14890_v53  ;;  %v11578_v55 = vpop.eup %11577 }
 0xadc   :  { %v14892_v35 = vmul.f32 %v11578_v55, %v11562_v16 }
 0xade   :  { %18280 = vst [vmem:[#allocation51_spill] sm:$0xff] %v14892_v35 }
 0xadf   :  { %v11580_v10 = vpop.eup %11579 }
 0xae0   :  { %v11582_v12 = vpop.eup %11581  ;;  %v14894_v60 = vmul.f32 %v11580_v10, %v11566_v6 }
 0xae1   :  { %v14897_v17 = vmul.f32 %v11582_v12, %v14865_v49 }
 0xae2   :  { %18281 = vst [vmem:[#allocation53_spill] sm:$0xff] %v14894_v60 }
 0xae3   :  { %18282 = vst [vmem:[#allocation55_spill] sm:$0xff] %v14897_v17  ;;  %v11584_v31 = vpop.eup %11583 }
 0xae4   :  { %v11586_v9 = vpop.eup %11585  ;;  %v14899_v3 = vmul.f32 %v11584_v31, %v11570_v63 }
 0xae5   :  { %v14902_v5 = vmul.f32 %v11586_v9, %v14870_v58 }
 0xae6   :  { %18283 = vst [vmem:[#allocation57_spill] sm:$0xff] %v14899_v3 }
 0xae7   :  { %18284 = vst [vmem:[#allocation59_spill] sm:$0xff] %v14902_v5 }
 0xae8 LB: > { %s10914_s16 = sshll.u32 %s11695_s15, 5  ;;  %v18285_v49 = vld [vmem:[#allocation44_spill] sm:$0xff]  ;;  %v18286_v58 = vld [vmem:[#allocation31_spill] sm:$0xff]  ;;  %v18287_v51 = vld [vmem:[#allocation81_spill] sm:$0xff]  ;;  %s5855_s15 = sadd.s32 1, %s11695_s15   ;;  %s11695_s15 = sphi %s14904_s15, %s5855_s15  }
 0xae9   : > { %s14912_s17 = scalar_lea.vmem [#allocation2], %s10914_s16  ;;  %v18288_v40 = vld [vmem:[#allocation82_spill] sm:$0xff]  ;;  %v18289_v50 = vld [vmem:[#allocation83_spill] sm:$0xff]  ;;  %v18290_v59 = vld [vmem:[#allocation84_spill] sm:$0xff]  ;;  %s16312_s18 = scalar_lea.vmem [#allocation3], %s10914_s16 }
 0xaea   : > { %v14915_v21 = vld [vmem:[%s14912_s17] sm:$0xff]  ;;  %v18291_v20 = vld [vmem:[#allocation85_spill] sm:$0xff]  ;;  %v14942_v43 = vld [vmem:[%s14912_s17 + $0x8] sm:$0xff]  ;;  %p5852_p2 = scmp.ge.s32.totalorder %s5855_s15, 2  }
 0xaeb   : > { %v6065_v16 = vrot.slane %v14915_v21, %v11859_v4  ;;  %v6100_v6 = vrot.slane %v14915_v21, %v18285_v49  ;;  %v6135_v63 = vrot.slane %v14915_v21, %v18286_v58  ;;  %v6170_v32 = vrot.slane %v14915_v21, %v18287_v51  ;;  %s11708_s19 = smov (%p5852_p2), [#allocation10]  }
 0xaec   : > { %v6205_v48 = vrot.slane %v14915_v21, %v18288_v40  ;;  %v6240_v23 = vrot.slane %v14915_v21, %v18289_v50  ;;  %v6275_v15 = vrot.slane %v14915_v21, %v18290_v59  ;;  %v6310_v25 = vrot.slane %v14915_v21, %v18291_v20  ;;  %s10605_s20 = sshll.u32 (%p5852_p2), %s11708_s19, 4  ;;  %s10606_s20 = int_to_ptr.vmem [resolvable:$true] %s10605_s20 }
 0xaed   : > { %6075 = vbcast.lane.b32.xlu1 %v6065_v16, 272  ;;  %6067 = vbcast.lane.b32.xlu0 %v6065_v16, 256  ;;  %v6345_v28 = vrot.slane %v14942_v43, %v11859_v4  ;;  %v6380_v47 = vrot.slane %v14942_v43, %v18285_v49  ;;  %v6450_v60 = vrot.slane %v14942_v43, %v18287_v51  ;;  %s11655_s21 = scalar_lea.vmem (%p5852_p2), %s10606_s20, 2048  ;;  %p11660_p4 = scmp.lt.s32.totalorder (%p5852_p2), %s10606_s20, %s10606_s20 }
 0xaee   : > { %v6485_v38 = vrot.slane %v14942_v43, %v18288_v40  ;;  %v6520_v42 = vrot.slane %v14942_v43, %v18289_v50  ;;  %p11656_p3 = scmp.ne.s32.totalorder (%p5852_p2), %s10606_s20, %s11655_s21  ;;  %p11661_p5 = scmp.lt.s32.totalorder (%p5852_p2), %s11655_s21, %s11655_s21 }
 0xaf0   :  { %p11662_p6 = por (%p5852_p2), %p11661_p5, %p11660_p4 }
 0xaf1   : > { %6079 = vbcast.lane.b32.xlu1 %v6065_v16, 280  ;;  %6071 = vbcast.lane.b32.xlu0 %v6065_v16, 264 }
 0xaf2   :  { %p11663_p7 = pnand (%p5852_p2), %p11662_p6, %p11656_p3 }
 0xaf5   : > { %6087 = vbcast.lane.b32.xlu1 %v6065_v16, 296  ;;  %6083 = vbcast.lane.b32.xlu0 %v6065_v16, 288 }
 0xaf9   : > { %6095 = vbcast.lane.b32.xlu1 %v6065_v16, 312  ;;  %6091 = vbcast.lane.b32.xlu0 %v6065_v16, 304 }
 0xafd   : > { %6106 = vbcast.lane.b32.xlu1 %v6100_v6, 264  ;;  %6102 = vbcast.lane.b32.xlu0 %v6100_v6, 256 }
 0xb01   : > { %6114 = vbcast.lane.b32.xlu1 %v6100_v6, 280  ;;  %6110 = vbcast.lane.b32.xlu0 %v6100_v6, 272 }
 0xb05   : > { %6122 = vbcast.lane.b32.xlu1 %v6100_v6, 296  ;;  %6118 = vbcast.lane.b32.xlu0 %v6100_v6, 288 }
 0xb09   : > { %6130 = vbcast.lane.b32.xlu1 %v6100_v6, 312  ;;  %6126 = vbcast.lane.b32.xlu0 %v6100_v6, 304 }
 0xb0d   : > { %6141 = vbcast.lane.b32.xlu1 %v6135_v63, 264  ;;  %6137 = vbcast.lane.b32.xlu0 %v6135_v63, 256 }
 0xb11   : > { %6149 = vbcast.lane.b32.xlu1 %v6135_v63, 280  ;;  %6145 = vbcast.lane.b32.xlu0 %v6135_v63, 272 }
 0xb15   : > { %6157 = vbcast.lane.b32.xlu1 %v6135_v63, 296  ;;  %6153 = vbcast.lane.b32.xlu0 %v6135_v63, 288 }
 0xb19   : > { %6165 = vbcast.lane.b32.xlu1 %v6135_v63, 312  ;;  %6161 = vbcast.lane.b32.xlu0 %v6135_v63, 304 }
 0xb1d   : > { %6176 = vbcast.lane.b32.xlu1 %v6170_v32, 264  ;;  %6172 = vbcast.lane.b32.xlu0 %v6170_v32, 256 }
 0xb21   : > { %6184 = vbcast.lane.b32.xlu1 %v6170_v32, 280  ;;  %6180 = vbcast.lane.b32.xlu0 %v6170_v32, 272 }
 0xb25   : > { %6192 = vbcast.lane.b32.xlu1 %v6170_v32, 296  ;;  %6188 = vbcast.lane.b32.xlu0 %v6170_v32, 288 }
 0xb29   : > { %6200 = vbcast.lane.b32.xlu1 %v6170_v32, 312  ;;  %6196 = vbcast.lane.b32.xlu0 %v6170_v32, 304  ;;  %v6415_v32 = vrot.slane %v14942_v43, %v18286_v58 }
 0xb2d   : > { %6211 = vbcast.lane.b32.xlu1 %v6205_v48, 264  ;;  %6207 = vbcast.lane.b32.xlu0 %v6205_v48, 256 }
 0xb31   : > { %6219 = vbcast.lane.b32.xlu1 %v6205_v48, 280  ;;  %6215 = vbcast.lane.b32.xlu0 %v6205_v48, 272 }
 0xb35   : > { %6227 = vbcast.lane.b32.xlu1 %v6205_v48, 296  ;;  %6223 = vbcast.lane.b32.xlu0 %v6205_v48, 288 }
 0xb39   : > { %6235 = vbcast.lane.b32.xlu1 %v6205_v48, 312  ;;  %6231 = vbcast.lane.b32.xlu0 %v6205_v48, 304 }
 0xb3d   : > { %6246 = vbcast.lane.b32.xlu1 %v6240_v23, 264  ;;  %6242 = vbcast.lane.b32.xlu0 %v6240_v23, 256 }
 0xb41   : > { %6254 = vbcast.lane.b32.xlu1 %v6240_v23, 280  ;;  %6250 = vbcast.lane.b32.xlu0 %v6240_v23, 272 }
 0xb45   : > { %6262 = vbcast.lane.b32.xlu1 %v6240_v23, 296  ;;  %6258 = vbcast.lane.b32.xlu0 %v6240_v23, 288 }
 0xb49   : > { %6270 = vbcast.lane.b32.xlu1 %v6240_v23, 312  ;;  %6266 = vbcast.lane.b32.xlu0 %v6240_v23, 304 }
 0xb4d   : > { %6281 = vbcast.lane.b32.xlu1 %v6275_v15, 264  ;;  %6277 = vbcast.lane.b32.xlu0 %v6275_v15, 256 }
 0xb51   : > { %6289 = vbcast.lane.b32.xlu1 %v6275_v15, 280  ;;  %6285 = vbcast.lane.b32.xlu0 %v6275_v15, 272 }
 0xb55   : > { %6297 = vbcast.lane.b32.xlu1 %v6275_v15, 296  ;;  %6293 = vbcast.lane.b32.xlu0 %v6275_v15, 288 }
 0xb59   : > { %6305 = vbcast.lane.b32.xlu1 %v6275_v15, 312  ;;  %6301 = vbcast.lane.b32.xlu0 %v6275_v15, 304 }
 0xb5d   : > { %6316 = vbcast.lane.b32.xlu1 %v6310_v25, 264  ;;  %6312 = vbcast.lane.b32.xlu0 %v6310_v25, 256 }
 0xb5f   : > { %v14933_v13 = vpop.permute.xlu0 %6067  ;;  %v14935_v41 = vpop.permute.xlu1 %6075 }
 0xb61   : > { %6324 = vbcast.lane.b32.xlu1 %v6310_v25, 280  ;;  %6320 = vbcast.lane.b32.xlu0 %v6310_v25, 272 }
 0xb63   : > { %v14937_v54 = vpop.permute.xlu0 %6071  ;;  %v14939_v26 = vpop.permute.xlu1 %6079 }
 0xb65   : > { %6332 = vbcast.lane.b32.xlu1 %v6310_v25, 296  ;;  %6328 = vbcast.lane.b32.xlu0 %v6310_v25, 288 }
 0xb67   : > { %v14944_v22 = vpop.permute.xlu0 %6083  ;;  %v14946_v33 = vpop.permute.xlu1 %6087 }
 0xb69   : > { %6340 = vbcast.lane.b32.xlu1 %v6310_v25, 312  ;;  %6336 = vbcast.lane.b32.xlu0 %v6310_v25, 304 }
 0xb6b   : > { %v14950_v11 = vpop.permute.xlu0 %6091  ;;  %v14952_v39 = vpop.permute.xlu1 %6095 }
 0xb6d   : > { %6351 = vbcast.lane.b32.xlu1 %v6345_v28, 264  ;;  %6347 = vbcast.lane.b32.xlu0 %v6345_v28, 256 }
 0xb6f   : > { %v14954_v29 = vpop.permute.xlu0 %6102  ;;  %v14956_v52 = vpop.permute.xlu1 %6106 }
 0xb71   : > { %6359 = vbcast.lane.b32.xlu1 %v6345_v28, 280  ;;  %6355 = vbcast.lane.b32.xlu0 %v6345_v28, 272 }
 0xb73   : > { %v14958_v62 = vpop.permute.xlu0 %6110  ;;  %v14960_v37 = vpop.permute.xlu1 %6114 }
 0xb75   : > { %6367 = vbcast.lane.b32.xlu1 %v6345_v28, 296  ;;  %6363 = vbcast.lane.b32.xlu0 %v6345_v28, 288 }
 0xb77   : > { %v14962_v45 = vpop.permute.xlu0 %6118  ;;  %v14964_v24 = vpop.permute.xlu1 %6122 }
 0xb79   : > { %6375 = vbcast.lane.b32.xlu1 %v6345_v28, 312  ;;  %6371 = vbcast.lane.b32.xlu0 %v6345_v28, 304 }
 0xb7b   : > { %v14968_v55 = vpop.permute.xlu0 %6126  ;;  %v14970_v10 = vpop.permute.xlu1 %6130 }
 0xb7d   : > { %6386 = vbcast.lane.b32.xlu1 %v6380_v47, 264  ;;  %6382 = vbcast.lane.b32.xlu0 %v6380_v47, 256 }
 0xb7f   : > { %v14972_v12 = vpop.permute.xlu0 %6137  ;;  %v14974_v31 = vpop.permute.xlu1 %6141 }
 0xb81   : > { %6394 = vbcast.lane.b32.xlu1 %v6380_v47, 280  ;;  %6390 = vbcast.lane.b32.xlu0 %v6380_v47, 272 }
 0xb83   : > { %v14976_v9 = vpop.permute.xlu0 %6145  ;;  %v14978_v16 = vpop.permute.xlu1 %6149 }
 0xb85   : > { %6402 = vbcast.lane.b32.xlu1 %v6380_v47, 296  ;;  %6398 = vbcast.lane.b32.xlu0 %v6380_v47, 288 }
 0xb87   : > { %v14980_v6 = vpop.permute.xlu0 %6153  ;;  %v14982_v63 = vpop.permute.xlu1 %6157 }
 0xb89   : > { %6410 = vbcast.lane.b32.xlu1 %v6380_v47, 312  ;;  %6406 = vbcast.lane.b32.xlu0 %v6380_v47, 304 }
 0xb8b   : > { %v14986_v48 = vpop.permute.xlu0 %6161  ;;  %v14988_v23 = vpop.permute.xlu1 %6165 }
 0xb8d   : > { %6421 = vbcast.lane.b32.xlu1 %v6415_v32, 264  ;;  %6417 = vbcast.lane.b32.xlu0 %v6415_v32, 256 }
 0xb8f   : > { %v14990_v15 = vpop.permute.xlu0 %6172  ;;  %v14992_v25 = vpop.permute.xlu1 %6176 }
 0xb91   : > { %6429 = vbcast.lane.b32.xlu1 %v6415_v32, 280  ;;  %6425 = vbcast.lane.b32.xlu0 %v6415_v32, 272 }
 0xb93   : > { %v14994_v28 = vpop.permute.xlu0 %6180  ;;  %v14996_v3 = vpop.permute.xlu1 %6184 }
 0xb95   : > { %6437 = vbcast.lane.b32.xlu1 %v6415_v32, 296  ;;  %6433 = vbcast.lane.b32.xlu0 %v6415_v32, 288 }
 0xb97   : > { %v14998_v47 = vpop.permute.xlu0 %6188  ;;  %v15000_v5 = vpop.permute.xlu1 %6192 }
 0xb99   : > { %6445 = vbcast.lane.b32.xlu1 %v6415_v32, 312  ;;  %6441 = vbcast.lane.b32.xlu0 %v6415_v32, 304 }
 0xb9b   : > { %v15004_v17 = vpop.permute.xlu0 %6196  ;;  %v15006_v56 = vpop.permute.xlu1 %6200 }
 0xb9d   : > { %6456 = vbcast.lane.b32.xlu1 %v6450_v60, 264  ;;  %6452 = vbcast.lane.b32.xlu0 %v6450_v60, 256 }
 0xb9f   : > { %v15008_v2 = vpop.permute.xlu0 %6207  ;;  %v15010_v53 = vpop.permute.xlu1 %6211 }
 0xba1   : > { %6464 = vbcast.lane.b32.xlu1 %v6450_v60, 280  ;;  %6460 = vbcast.lane.b32.xlu0 %v6450_v60, 272 }
 0xba3   : > { %v15012_v35 = vpop.permute.xlu0 %6215  ;;  %v15014_v44 = vpop.permute.xlu1 %6219 }
 0xba5   : > { %6472 = vbcast.lane.b32.xlu1 %v6450_v60, 296  ;;  %6468 = vbcast.lane.b32.xlu0 %v6450_v60, 288 }
 0xba7   : > { %v15016_v32 = vpop.permute.xlu0 %6223  ;;  %v15018_v7 = vpop.permute.xlu1 %6227 }
 0xba9   : > { %6480 = vbcast.lane.b32.xlu1 %v6450_v60, 312  ;;  %6476 = vbcast.lane.b32.xlu0 %v6450_v60, 304 }
 0xbab   : > { %v15022_v1 = vpop.permute.xlu0 %6231  ;;  %v15024_v30 = vpop.permute.xlu1 %6235 }
 0xbad   : > { %6491 = vbcast.lane.b32.xlu1 %v6485_v38, 264  ;;  %6487 = vbcast.lane.b32.xlu0 %v6485_v38, 256 }
 0xbaf   : > { %v15026_v19 = vpop.permute.xlu0 %6242  ;;  %v15028_v18 = vpop.permute.xlu1 %6246 }
 0xbb1   : > { %6499 = vbcast.lane.b32.xlu1 %v6485_v38, 280  ;;  %6495 = vbcast.lane.b32.xlu0 %v6485_v38, 272 }
 0xbb3   : > { %v15030_v27 = vpop.permute.xlu0 %6250  ;;  %v15032_v46 = vpop.permute.xlu1 %6254 }
 0xbb5   : > { %6507 = vbcast.lane.b32.xlu1 %v6485_v38, 296  ;;  %6503 = vbcast.lane.b32.xlu0 %v6485_v38, 288 }
 0xbb7   : > { %v15034_v60 = vpop.permute.xlu0 %6258  ;;  %v15036_v61 = vpop.permute.xlu1 %6262 }
 0xbb8   : > { %18292 = vst [vmem:[#allocation280_spill] sm:$0xff] %v15034_v60  ;;  %18293 = vst [vmem:[#allocation281_spill] sm:$0xff] %v15036_v61 }
 0xbb9   : > { %6515 = vbcast.lane.b32.xlu1 %v6485_v38, 312  ;;  %6511 = vbcast.lane.b32.xlu0 %v6485_v38, 304 }
 0xbbb   : > { %v15040_v8 = vpop.permute.xlu0 %6266  ;;  %v15042_v0 = vpop.permute.xlu1 %6270 }
 0xbbc   : > { %18294 = vst [vmem:[#allocation282_spill] sm:$0xff] %v15040_v8  ;;  %18295 = vst [vmem:[#allocation283_spill] sm:$0xff] %v15042_v0  ;;  %v6555_v0 = vrot.slane %v14942_v43, %v18290_v59 }
 0xbbd   : > { %6526 = vbcast.lane.b32.xlu1 %v6520_v42, 264  ;;  %6522 = vbcast.lane.b32.xlu0 %v6520_v42, 256 }
 0xbbf   : > { %v15044_v57 = vpop.permute.xlu0 %6277  ;;  %v15046_v34 = vpop.permute.xlu1 %6281 }
 0xbc0   : > { %18296 = vst [vmem:[#allocation284_spill] sm:$0xff] %v15044_v57  ;;  %18297 = vst [vmem:[#allocation285_spill] sm:$0xff] %v15046_v34 }
 0xbc1   : > { %6534 = vbcast.lane.b32.xlu1 %v6520_v42, 280  ;;  %6530 = vbcast.lane.b32.xlu0 %v6520_v42, 272 }
 0xbc3   : > { %v15048_v14 = vpop.permute.xlu0 %6285  ;;  %v15050_v61 = vpop.permute.xlu1 %6289 }
 0xbc4   : > { %18298 = vst [vmem:[#allocation286_spill] sm:$0xff] %v15048_v14  ;;  %18299 = vst [vmem:[#allocation287_spill] sm:$0xff] %v15050_v61 }
 0xbc5   : > { %6542 = vbcast.lane.b32.xlu1 %v6520_v42, 296  ;;  %6538 = vbcast.lane.b32.xlu0 %v6520_v42, 288 }
 0xbc7   : > { %v15052_v38 = vpop.permute.xlu0 %6293  ;;  %v15054_v60 = vpop.permute.xlu1 %6297 }
 0xbc8   : > { %18300 = vst [vmem:[#allocation288_spill] sm:$0xff] %v15052_v38  ;;  %18301 = vst [vmem:[#allocation289_spill] sm:$0xff] %v15054_v60 }
 0xbc9   : > { %6550 = vbcast.lane.b32.xlu1 %v6520_v42, 312  ;;  %6546 = vbcast.lane.b32.xlu0 %v6520_v42, 304 }
 0xbcb   : > { %v15058_v57 = vpop.permute.xlu0 %6301  ;;  %v15060_v34 = vpop.permute.xlu1 %6305 }
 0xbcc   : > { %18302 = vst [vmem:[#allocation290_spill] sm:$0xff] %v15058_v57  ;;  %18303 = vst [vmem:[#allocation291_spill] sm:$0xff] %v15060_v34 }
 0xbcd   : > { %6561 = vbcast.lane.b32.xlu1 %v6555_v0, 264  ;;  %6557 = vbcast.lane.b32.xlu0 %v6555_v0, 256 }
 0xbcf   : > { %v15062_v14 = vpop.permute.xlu0 %6312  ;;  %v15064_v61 = vpop.permute.xlu1 %6316 }
 0xbd0   : > { %18304 = vst [vmem:[#allocation292_spill] sm:$0xff] %v15062_v14  ;;  %18305 = vst [vmem:[#allocation293_spill] sm:$0xff] %v15064_v61  ;;  %v6590_v14 = vrot.slane %v14942_v43, %v18291_v20 }
 0xbd1   : > { %6569 = vbcast.lane.b32.xlu1 %v6555_v0, 280  ;;  %6565 = vbcast.lane.b32.xlu0 %v6555_v0, 272 }
 0xbd3   : > { %v15066_v38 = vpop.permute.xlu0 %6320  ;;  %v15068_v60 = vpop.permute.xlu1 %6324 }
 0xbd4   : > { %18306 = vst [vmem:[#allocation294_spill] sm:$0xff] %v15066_v38  ;;  %18307 = vst [vmem:[#allocation295_spill] sm:$0xff] %v15068_v60 }
 0xbd5   : > { %6577 = vbcast.lane.b32.xlu1 %v6555_v0, 296  ;;  %6573 = vbcast.lane.b32.xlu0 %v6555_v0, 288 }
 0xbd7   : > { %v15070_v42 = vpop.permute.xlu0 %6328  ;;  %v15072_v8 = vpop.permute.xlu1 %6332 }
 0xbd8   : > { %18308 = vst [vmem:[#allocation296_spill] sm:$0xff] %v15070_v42  ;;  %18309 = vst [vmem:[#allocation297_spill] sm:$0xff] %v15072_v8 }
 0xbd9   : > { %6585 = vbcast.lane.b32.xlu1 %v6555_v0, 312  ;;  %6581 = vbcast.lane.b32.xlu0 %v6555_v0, 304  ;;  %v15089_v0 = vld [vmem:[%s14912_s17 + $0x10] sm:$0xff] }
 0xbdb   : > { %v15076_v34 = vpop.permute.xlu0 %6336  ;;  %v15078_v61 = vpop.permute.xlu1 %6340 }
 0xbdc   : > { %18310 = vst [vmem:[#allocation298_spill] sm:$0xff] %v15076_v34  ;;  %18311 = vst [vmem:[#allocation299_spill] sm:$0xff] %v15078_v61 }
 0xbdd   : > { %6596 = vbcast.lane.b32.xlu1 %v6590_v14, 264  ;;  %6592 = vbcast.lane.b32.xlu0 %v6590_v14, 256 }
 0xbdf   : > { %v15080_v38 = vpop.permute.xlu0 %6347  ;;  %v15082_v60 = vpop.permute.xlu1 %6351 }
 0xbe0   : > { %18312 = vst [vmem:[#allocation300_spill] sm:$0xff] %v15080_v38  ;;  %18313 = vst [vmem:[#allocation301_spill] sm:$0xff] %v15082_v60  ;;  %v6625_v38 = vrot.slane %v15089_v0, %v11859_v4 }
 0xbe1   : > { %6604 = vbcast.lane.b32.xlu1 %v6590_v14, 280  ;;  %6600 = vbcast.lane.b32.xlu0 %v6590_v14, 272 }
 0xbe3   : > { %v15084_v42 = vpop.permute.xlu0 %6355  ;;  %v15086_v8 = vpop.permute.xlu1 %6359 }
 0xbe4   : > { %18314 = vst [vmem:[#allocation302_spill] sm:$0xff] %v15084_v42  ;;  %18315 = vst [vmem:[#allocation303_spill] sm:$0xff] %v15086_v8 }
 0xbe5   : > { %6612 = vbcast.lane.b32.xlu1 %v6590_v14, 296  ;;  %6608 = vbcast.lane.b32.xlu0 %v6590_v14, 288 }
 0xbe7   : > { %v15091_v43 = vpop.permute.xlu0 %6363  ;;  %v15093_v34 = vpop.permute.xlu1 %6367 }
 0xbe8   : > { %18316 = vst [vmem:[#allocation304_spill] sm:$0xff] %v15091_v43  ;;  %18317 = vst [vmem:[#allocation305_spill] sm:$0xff] %v15093_v34 }
 0xbe9   : > { %6620 = vbcast.lane.b32.xlu1 %v6590_v14, 312  ;;  %6616 = vbcast.lane.b32.xlu0 %v6590_v14, 304 }
 0xbeb   : > { %v15097_v60 = vpop.permute.xlu0 %6371  ;;  %v15099_v61 = vpop.permute.xlu1 %6375 }
 0xbec   : > { %18318 = vst [vmem:[#allocation306_spill] sm:$0xff] %v15097_v60  ;;  %18319 = vst [vmem:[#allocation307_spill] sm:$0xff] %v15099_v61  ;;  %v6660_v61 = vrot.slane %v15089_v0, %v18285_v49 }
 0xbed   : > { %6631 = vbcast.lane.b32.xlu1 %v6625_v38, 264  ;;  %6627 = vbcast.lane.b32.xlu0 %v6625_v38, 256 }
 0xbef   : > { %v15101_v8 = vpop.permute.xlu0 %6382  ;;  %v15103_v42 = vpop.permute.xlu1 %6386 }
 0xbf0   : > { %18320 = vst [vmem:[#allocation308_spill] sm:$0xff] %v15101_v8  ;;  %18321 = vst [vmem:[#allocation309_spill] sm:$0xff] %v15103_v42 }
 0xbf1   : > { %6639 = vbcast.lane.b32.xlu1 %v6625_v38, 280  ;;  %6635 = vbcast.lane.b32.xlu0 %v6625_v38, 272 }
 0xbf3   : > { %v15105_v43 = vpop.permute.xlu0 %6390  ;;  %v15107_v34 = vpop.permute.xlu1 %6394 }
 0xbf4   : > { %18322 = vst [vmem:[#allocation310_spill] sm:$0xff] %v15105_v43  ;;  %18323 = vst [vmem:[#allocation311_spill] sm:$0xff] %v15107_v34 }
 0xbf5   : > { %6647 = vbcast.lane.b32.xlu1 %v6625_v38, 296  ;;  %6643 = vbcast.lane.b32.xlu0 %v6625_v38, 288 }
 0xbf7   : > { %v15109_v14 = vpop.permute.xlu0 %6398  ;;  %v15111_v57 = vpop.permute.xlu1 %6402 }
 0xbf8   : > { %18324 = vst [vmem:[#allocation312_spill] sm:$0xff] %v15109_v14  ;;  %18325 = vst [vmem:[#allocation313_spill] sm:$0xff] %v15111_v57 }
 0xbf9   : > { %6655 = vbcast.lane.b32.xlu1 %v6625_v38, 312  ;;  %6651 = vbcast.lane.b32.xlu0 %v6625_v38, 304 }
 0xbfb   : > { %v15115_v8 = vpop.permute.xlu0 %6406  ;;  %v15117_v42 = vpop.permute.xlu1 %6410 }
 0xbfc   : > { %18326 = vst [vmem:[#allocation314_spill] sm:$0xff] %v15115_v8  ;;  %18327 = vst [vmem:[#allocation315_spill] sm:$0xff] %v15117_v42  ;;  %v6695_v42 = vrot.slane %v15089_v0, %v18286_v58 }
 0xbfd   : > { %6666 = vbcast.lane.b32.xlu1 %v6660_v61, 264  ;;  %6662 = vbcast.lane.b32.xlu0 %v6660_v61, 256 }
 0xbff   : > { %v15119_v43 = vpop.permute.xlu0 %6417  ;;  %v15121_v34 = vpop.permute.xlu1 %6421 }
 0xc00   : > { %18328 = vst [vmem:[#allocation316_spill] sm:$0xff] %v15119_v43  ;;  %18329 = vst [vmem:[#allocation317_spill] sm:$0xff] %v15121_v34 }
 0xc01   : > { %6674 = vbcast.lane.b32.xlu1 %v6660_v61, 280  ;;  %6670 = vbcast.lane.b32.xlu0 %v6660_v61, 272 }
 0xc03   : > { %v15123_v14 = vpop.permute.xlu0 %6425  ;;  %v15125_v57 = vpop.permute.xlu1 %6429 }
 0xc04   : > { %18330 = vst [vmem:[#allocation318_spill] sm:$0xff] %v15123_v14  ;;  %18331 = vst [vmem:[#allocation319_spill] sm:$0xff] %v15125_v57 }
 0xc05   : > { %6682 = vbcast.lane.b32.xlu1 %v6660_v61, 296  ;;  %6678 = vbcast.lane.b32.xlu0 %v6660_v61, 288 }
 0xc07   : > { %v15127_v38 = vpop.permute.xlu0 %6433  ;;  %v15129_v60 = vpop.permute.xlu1 %6437 }
 0xc08   : > { %18332 = vst [vmem:[#allocation320_spill] sm:$0xff] %v15127_v38  ;;  %18333 = vst [vmem:[#allocation321_spill] sm:$0xff] %v15129_v60 }
 0xc09   : > { %6690 = vbcast.lane.b32.xlu1 %v6660_v61, 312  ;;  %6686 = vbcast.lane.b32.xlu0 %v6660_v61, 304 }
 0xc0b   : > { %v15133_v43 = vpop.permute.xlu0 %6441  ;;  %v15135_v34 = vpop.permute.xlu1 %6445 }
 0xc0c   : > { %18334 = vst [vmem:[#allocation322_spill] sm:$0xff] %v15133_v43  ;;  %18335 = vst [vmem:[#allocation323_spill] sm:$0xff] %v15135_v34  ;;  %v6730_v34 = vrot.slane %v15089_v0, %v18287_v51 }
 0xc0d   : > { %6701 = vbcast.lane.b32.xlu1 %v6695_v42, 264  ;;  %6697 = vbcast.lane.b32.xlu0 %v6695_v42, 256 }
 0xc0f   : > { %v15137_v14 = vpop.permute.xlu0 %6452  ;;  %v15139_v57 = vpop.permute.xlu1 %6456 }
 0xc10   : > { %18336 = vst [vmem:[#allocation324_spill] sm:$0xff] %v15137_v14  ;;  %18337 = vst [vmem:[#allocation325_spill] sm:$0xff] %v15139_v57 }
 0xc11   : > { %6709 = vbcast.lane.b32.xlu1 %v6695_v42, 280  ;;  %6705 = vbcast.lane.b32.xlu0 %v6695_v42, 272 }
 0xc13   : > { %v15141_v38 = vpop.permute.xlu0 %6460  ;;  %v15143_v60 = vpop.permute.xlu1 %6464 }
 0xc14   : > { %18338 = vst [vmem:[#allocation326_spill] sm:$0xff] %v15141_v38  ;;  %18339 = vst [vmem:[#allocation327_spill] sm:$0xff] %v15143_v60 }
 0xc15   : > { %6717 = vbcast.lane.b32.xlu1 %v6695_v42, 296  ;;  %6713 = vbcast.lane.b32.xlu0 %v6695_v42, 288 }
 0xc17   : > { %v15145_v61 = vpop.permute.xlu0 %6468  ;;  %v15147_v8 = vpop.permute.xlu1 %6472 }
 0xc18   : > { %18340 = vst [vmem:[#allocation328_spill] sm:$0xff] %v15145_v61  ;;  %18341 = vst [vmem:[#allocation329_spill] sm:$0xff] %v15147_v8 }
 0xc19   : > { %6725 = vbcast.lane.b32.xlu1 %v6695_v42, 312  ;;  %6721 = vbcast.lane.b32.xlu0 %v6695_v42, 304 }
 0xc1b   : > { %v15151_v14 = vpop.permute.xlu0 %6476  ;;  %v15153_v57 = vpop.permute.xlu1 %6480 }
 0xc1c   : > { %18342 = vst [vmem:[#allocation330_spill] sm:$0xff] %v15151_v14  ;;  %18343 = vst [vmem:[#allocation331_spill] sm:$0xff] %v15153_v57  ;;  %v6765_v57 = vrot.slane %v15089_v0, %v18288_v40 }
 0xc1d   : > { %6736 = vbcast.lane.b32.xlu1 %v6730_v34, 264  ;;  %6732 = vbcast.lane.b32.xlu0 %v6730_v34, 256 }
 0xc1f   : > { %v15155_v38 = vpop.permute.xlu0 %6487  ;;  %v15157_v60 = vpop.permute.xlu1 %6491 }
 0xc20   : > { %18344 = vst [vmem:[#allocation332_spill] sm:$0xff] %v15155_v38  ;;  %18345 = vst [vmem:[#allocation333_spill] sm:$0xff] %v15157_v60 }
 0xc21   : > { %6744 = vbcast.lane.b32.xlu1 %v6730_v34, 280  ;;  %6740 = vbcast.lane.b32.xlu0 %v6730_v34, 272 }
 0xc23   : > { %v15159_v61 = vpop.permute.xlu0 %6495  ;;  %v15161_v8 = vpop.permute.xlu1 %6499 }
 0xc24   : > { %18346 = vst [vmem:[#allocation334_spill] sm:$0xff] %v15159_v61  ;;  %18347 = vst [vmem:[#allocation335_spill] sm:$0xff] %v15161_v8 }
 0xc25   : > { %6752 = vbcast.lane.b32.xlu1 %v6730_v34, 296  ;;  %6748 = vbcast.lane.b32.xlu0 %v6730_v34, 288 }
 0xc27   : > { %v15163_v42 = vpop.permute.xlu0 %6503  ;;  %v15165_v43 = vpop.permute.xlu1 %6507 }
 0xc28   : > { %18348 = vst [vmem:[#allocation336_spill] sm:$0xff] %v15163_v42  ;;  %18349 = vst [vmem:[#allocation337_spill] sm:$0xff] %v15165_v43 }
 0xc29   : > { %6760 = vbcast.lane.b32.xlu1 %v6730_v34, 312  ;;  %6756 = vbcast.lane.b32.xlu0 %v6730_v34, 304 }
 0xc2b   : > { %v15169_v38 = vpop.permute.xlu0 %6511  ;;  %v15171_v60 = vpop.permute.xlu1 %6515 }
 0xc2c   : > { %18350 = vst [vmem:[#allocation338_spill] sm:$0xff] %v15169_v38  ;;  %18351 = vst [vmem:[#allocation339_spill] sm:$0xff] %v15171_v60  ;;  %v6800_v60 = vrot.slane %v15089_v0, %v18289_v50 }
 0xc2d   : > { %6771 = vbcast.lane.b32.xlu1 %v6765_v57, 264  ;;  %6767 = vbcast.lane.b32.xlu0 %v6765_v57, 256 }
 0xc2f   : > { %v15173_v61 = vpop.permute.xlu0 %6522  ;;  %v15175_v8 = vpop.permute.xlu1 %6526 }
 0xc30   : > { %18352 = vst [vmem:[#allocation340_spill] sm:$0xff] %v15173_v61  ;;  %18353 = vst [vmem:[#allocation341_spill] sm:$0xff] %v15175_v8 }
 0xc31   : > { %6779 = vbcast.lane.b32.xlu1 %v6765_v57, 280  ;;  %6775 = vbcast.lane.b32.xlu0 %v6765_v57, 272 }
 0xc33   : > { %v15177_v42 = vpop.permute.xlu0 %6530  ;;  %v15179_v43 = vpop.permute.xlu1 %6534 }
 0xc34   : > { %18354 = vst [vmem:[#allocation342_spill] sm:$0xff] %v15177_v42  ;;  %18355 = vst [vmem:[#allocation343_spill] sm:$0xff] %v15179_v43 }
 0xc35   : > { %6787 = vbcast.lane.b32.xlu1 %v6765_v57, 296  ;;  %6783 = vbcast.lane.b32.xlu0 %v6765_v57, 288 }
 0xc37   : > { %v15181_v34 = vpop.permute.xlu0 %6538  ;;  %v15183_v14 = vpop.permute.xlu1 %6542 }
 0xc38   : > { %18356 = vst [vmem:[#allocation344_spill] sm:$0xff] %v15181_v34  ;;  %18357 = vst [vmem:[#allocation345_spill] sm:$0xff] %v15183_v14 }
 0xc39   : > { %6795 = vbcast.lane.b32.xlu1 %v6765_v57, 312  ;;  %6791 = vbcast.lane.b32.xlu0 %v6765_v57, 304 }
 0xc3b   : > { %v15187_v61 = vpop.permute.xlu0 %6546  ;;  %v15189_v8 = vpop.permute.xlu1 %6550 }
 0xc3c   : > { %18358 = vst [vmem:[#allocation346_spill] sm:$0xff] %v15187_v61  ;;  %18359 = vst [vmem:[#allocation347_spill] sm:$0xff] %v15189_v8  ;;  %v6835_v8 = vrot.slane %v15089_v0, %v18290_v59 }
 0xc3d   : > { %6806 = vbcast.lane.b32.xlu1 %v6800_v60, 264  ;;  %6802 = vbcast.lane.b32.xlu0 %v6800_v60, 256 }
 0xc3f   : > { %v15191_v42 = vpop.permute.xlu0 %6557  ;;  %v15193_v43 = vpop.permute.xlu1 %6561 }
 0xc40   : > { %18360 = vst [vmem:[#allocation348_spill] sm:$0xff] %v15191_v42  ;;  %18361 = vst [vmem:[#allocation349_spill] sm:$0xff] %v15193_v43 }
 0xc41   : > { %6814 = vbcast.lane.b32.xlu1 %v6800_v60, 280  ;;  %6810 = vbcast.lane.b32.xlu0 %v6800_v60, 272 }
 0xc43   : > { %v15195_v34 = vpop.permute.xlu0 %6565  ;;  %v15197_v14 = vpop.permute.xlu1 %6569 }
 0xc44   : > { %18362 = vst [vmem:[#allocation350_spill] sm:$0xff] %v15195_v34  ;;  %18363 = vst [vmem:[#allocation351_spill] sm:$0xff] %v15197_v14 }
 0xc45   : > { %6822 = vbcast.lane.b32.xlu1 %v6800_v60, 296  ;;  %6818 = vbcast.lane.b32.xlu0 %v6800_v60, 288 }
 0xc47   : > { %v15199_v57 = vpop.permute.xlu0 %6573  ;;  %v15201_v38 = vpop.permute.xlu1 %6577 }
 0xc48   : > { %18364 = vst [vmem:[#allocation352_spill] sm:$0xff] %v15199_v57  ;;  %18365 = vst [vmem:[#allocation353_spill] sm:$0xff] %v15201_v38 }
 0xc49   : > { %6830 = vbcast.lane.b32.xlu1 %v6800_v60, 312  ;;  %6826 = vbcast.lane.b32.xlu0 %v6800_v60, 304 }
 0xc4b   : > { %v15205_v42 = vpop.permute.xlu0 %6581  ;;  %v15207_v43 = vpop.permute.xlu1 %6585 }
 0xc4c   : > { %18366 = vst [vmem:[#allocation354_spill] sm:$0xff] %v15205_v42  ;;  %18367 = vst [vmem:[#allocation355_spill] sm:$0xff] %v15207_v43 }
 0xc4d   : > { %6841 = vbcast.lane.b32.xlu1 %v6835_v8, 264  ;;  %6837 = vbcast.lane.b32.xlu0 %v6835_v8, 256 }
 0xc4f   : > { %v15209_v34 = vpop.permute.xlu0 %6592  ;;  %v15211_v14 = vpop.permute.xlu1 %6596 }
 0xc50   : > { %18368 = vst [vmem:[#allocation356_spill] sm:$0xff] %v15209_v34  ;;  %18369 = vst [vmem:[#allocation357_spill] sm:$0xff] %v15211_v14  ;;  %v6870_v34 = vrot.slane %v15089_v0, %v18291_v20 }
 0xc51   : > { %6849 = vbcast.lane.b32.xlu1 %v6835_v8, 280  ;;  %6845 = vbcast.lane.b32.xlu0 %v6835_v8, 272 }
 0xc53   : > { %v15213_v57 = vpop.permute.xlu0 %6600  ;;  %v15215_v38 = vpop.permute.xlu1 %6604 }
 0xc54   : > { %18370 = vst [vmem:[#allocation358_spill] sm:$0xff] %v15213_v57  ;;  %18371 = vst [vmem:[#allocation359_spill] sm:$0xff] %v15215_v38 }
 0xc55   : > { %6857 = vbcast.lane.b32.xlu1 %v6835_v8, 296  ;;  %6853 = vbcast.lane.b32.xlu0 %v6835_v8, 288 }
 0xc57   : > { %v15217_v60 = vpop.permute.xlu0 %6608  ;;  %v15219_v61 = vpop.permute.xlu1 %6612 }
 0xc58   : > { %18372 = vst [vmem:[#allocation360_spill] sm:$0xff] %v15217_v60  ;;  %18373 = vst [vmem:[#allocation361_spill] sm:$0xff] %v15219_v61 }
 0xc59   : > { %6865 = vbcast.lane.b32.xlu1 %v6835_v8, 312  ;;  %6861 = vbcast.lane.b32.xlu0 %v6835_v8, 304  ;;  %v15236_v8 = vld [vmem:[%s14912_s17 + $0x18] sm:$0xff] }
 0xc5b   : > { %v15223_v43 = vpop.permute.xlu0 %6616  ;;  %v15225_v14 = vpop.permute.xlu1 %6620 }
 0xc5c   : > { %18374 = vst [vmem:[#allocation362_spill] sm:$0xff] %v15223_v43  ;;  %18375 = vst [vmem:[#allocation363_spill] sm:$0xff] %v15225_v14 }
 0xc5d   : > { %6876 = vbcast.lane.b32.xlu1 %v6870_v34, 264  ;;  %6872 = vbcast.lane.b32.xlu0 %v6870_v34, 256 }
 0xc5f   : > { %v15227_v57 = vpop.permute.xlu0 %6627  ;;  %v15229_v38 = vpop.permute.xlu1 %6631 }
 0xc60   : > { %18376 = vst [vmem:[#allocation364_spill] sm:$0xff] %v15227_v57  ;;  %18377 = vst [vmem:[#allocation365_spill] sm:$0xff] %v15229_v38  ;;  %v6905_v57 = vrot.slane %v15236_v8, %v11859_v4 }
 0xc61   : > { %6884 = vbcast.lane.b32.xlu1 %v6870_v34, 280  ;;  %6880 = vbcast.lane.b32.xlu0 %v6870_v34, 272 }
 0xc63   : > { %v15231_v60 = vpop.permute.xlu0 %6635  ;;  %v15233_v61 = vpop.permute.xlu1 %6639 }
 0xc64   : > { %18378 = vst [vmem:[#allocation366_spill] sm:$0xff] %v15231_v60  ;;  %18379 = vst [vmem:[#allocation367_spill] sm:$0xff] %v15233_v61 }
 0xc65   : > { %6892 = vbcast.lane.b32.xlu1 %v6870_v34, 296  ;;  %6888 = vbcast.lane.b32.xlu0 %v6870_v34, 288 }
 0xc67   : > { %v15238_v0 = vpop.permute.xlu0 %6643  ;;  %v15240_v43 = vpop.permute.xlu1 %6647 }
 0xc68   : > { %18380 = vst [vmem:[#allocation368_spill] sm:$0xff] %v15238_v0  ;;  %18381 = vst [vmem:[#allocation369_spill] sm:$0xff] %v15240_v43 }
 0xc69   : > { %6900 = vbcast.lane.b32.xlu1 %v6870_v34, 312  ;;  %6896 = vbcast.lane.b32.xlu0 %v6870_v34, 304 }
 0xc6b   : > { %v15244_v38 = vpop.permute.xlu0 %6651  ;;  %v15246_v14 = vpop.permute.xlu1 %6655 }
 0xc6c   : > { %18382 = vst [vmem:[#allocation370_spill] sm:$0xff] %v15246_v14  ;;  %v6940_v14 = vrot.slane %v15236_v8, %v18285_v49 }
 0xc6d   : > { %6911 = vbcast.lane.b32.xlu1 %v6905_v57, 264  ;;  %6907 = vbcast.lane.b32.xlu0 %v6905_v57, 256 }
 0xc6f   : > { %v15248_v61 = vpop.permute.xlu0 %6662  ;;  %v15250_v60 = vpop.permute.xlu1 %6666 }
 0xc70   : > { %18383 = vst [vmem:[#allocation371_spill] sm:$0xff] %v15248_v61  ;;  %18384 = vst [vmem:[#allocation372_spill] sm:$0xff] %v15250_v60 }
 0xc71   : > { %6919 = vbcast.lane.b32.xlu1 %v6905_v57, 280  ;;  %6915 = vbcast.lane.b32.xlu0 %v6905_v57, 272 }
 0xc73   : > { %v15252_v0 = vpop.permute.xlu0 %6670  ;;  %v15254_v43 = vpop.permute.xlu1 %6674 }
 0xc74   : > { %18385 = vst [vmem:[#allocation373_spill] sm:$0xff] %v15252_v0  ;;  %18386 = vst [vmem:[#allocation374_spill] sm:$0xff] %v15254_v43 }
 0xc75   : > { %6927 = vbcast.lane.b32.xlu1 %v6905_v57, 296  ;;  %6923 = vbcast.lane.b32.xlu0 %v6905_v57, 288 }
 0xc77   : > { %v15256_v34 = vpop.permute.xlu0 %6678  ;;  %v15258_v42 = vpop.permute.xlu1 %6682 }
 0xc78   : > { %18387 = vst [vmem:[#allocation375_spill] sm:$0xff] %v15256_v34  ;;  %18388 = vst [vmem:[#allocation376_spill] sm:$0xff] %v15258_v42 }
 0xc79   : > { %6935 = vbcast.lane.b32.xlu1 %v6905_v57, 312  ;;  %6931 = vbcast.lane.b32.xlu0 %v6905_v57, 304 }
 0xc7b   : > { %v15262_v61 = vpop.permute.xlu0 %6686  ;;  %v15264_v60 = vpop.permute.xlu1 %6690 }
 0xc7c   : > { %18389 = vst [vmem:[#allocation377_spill] sm:$0xff] %v15264_v60  ;;  %v6975_v60 = vrot.slane %v15236_v8, %v18286_v58 }
 0xc7d   : > { %6946 = vbcast.lane.b32.xlu1 %v6940_v14, 264  ;;  %6942 = vbcast.lane.b32.xlu0 %v6940_v14, 256 }
 0xc7f   : > { %v15266_v0 = vpop.permute.xlu0 %6697  ;;  %v15268_v43 = vpop.permute.xlu1 %6701 }
 0xc80   : > { %18390 = vst [vmem:[#allocation378_spill] sm:$0xff] %v15266_v0  ;;  %18391 = vst [vmem:[#allocation379_spill] sm:$0xff] %v15268_v43 }
 0xc81   : > { %6954 = vbcast.lane.b32.xlu1 %v6940_v14, 280  ;;  %6950 = vbcast.lane.b32.xlu0 %v6940_v14, 272 }
 0xc83   : > { %v15270_v34 = vpop.permute.xlu0 %6705  ;;  %v15272_v42 = vpop.permute.xlu1 %6709 }
 0xc84   : > { %18392 = vst [vmem:[#allocation380_spill] sm:$0xff] %v15270_v34  ;;  %18393 = vst [vmem:[#allocation381_spill] sm:$0xff] %v15272_v42 }
 0xc85   : > { %6962 = vbcast.lane.b32.xlu1 %v6940_v14, 296  ;;  %6958 = vbcast.lane.b32.xlu0 %v6940_v14, 288 }
 0xc87   : > { %v15274_v57 = vpop.permute.xlu0 %6713  ;;  %v15276_v49 = vpop.permute.xlu1 %6717 }
 0xc88   : > { %18394 = vst [vmem:[#allocation382_spill] sm:$0xff] %v15274_v57  ;;  %18395 = vst [vmem:[#allocation383_spill] sm:$0xff] %v15276_v49 }
 0xc89   : > { %6970 = vbcast.lane.b32.xlu1 %v6940_v14, 312  ;;  %6966 = vbcast.lane.b32.xlu0 %v6940_v14, 304 }
 0xc8b   : > { %v15280_v0 = vpop.permute.xlu0 %6721  ;;  %v15282_v43 = vpop.permute.xlu1 %6725 }
 0xc8c   : > { %18396 = vst [vmem:[#allocation384_spill] sm:$0xff] %v15282_v43  ;;  %v7010_v43 = vrot.slane %v15236_v8, %v18287_v51 }
 0xc8d   : > { %6981 = vbcast.lane.b32.xlu1 %v6975_v60, 264  ;;  %6977 = vbcast.lane.b32.xlu0 %v6975_v60, 256 }
 0xc8f   : > { %v15284_v34 = vpop.permute.xlu0 %6732  ;;  %v15286_v42 = vpop.permute.xlu1 %6736 }
 0xc90   : > { %18397 = vst [vmem:[#allocation385_spill] sm:$0xff] %v15284_v34  ;;  %18398 = vst [vmem:[#allocation386_spill] sm:$0xff] %v15286_v42 }
 0xc91   : > { %6989 = vbcast.lane.b32.xlu1 %v6975_v60, 280  ;;  %6985 = vbcast.lane.b32.xlu0 %v6975_v60, 272 }
 0xc93   : > { %v15288_v57 = vpop.permute.xlu0 %6740  ;;  %v15290_v49 = vpop.permute.xlu1 %6744 }
 0xc94   : > { %18399 = vst [vmem:[#allocation387_spill] sm:$0xff] %v15288_v57  ;;  %18400 = vst [vmem:[#allocation388_spill] sm:$0xff] %v15290_v49 }
 0xc95   : > { %6997 = vbcast.lane.b32.xlu1 %v6975_v60, 296  ;;  %6993 = vbcast.lane.b32.xlu0 %v6975_v60, 288 }
 0xc97   : > { %v15292_v14 = vpop.permute.xlu0 %6748  ;;  %v15294_v58 = vpop.permute.xlu1 %6752 }
 0xc98   : > { %18401 = vst [vmem:[#allocation389_spill] sm:$0xff] %v15292_v14  ;;  %18402 = vst [vmem:[#allocation390_spill] sm:$0xff] %v15294_v58 }
 0xc99   : > { %7005 = vbcast.lane.b32.xlu1 %v6975_v60, 312  ;;  %7001 = vbcast.lane.b32.xlu0 %v6975_v60, 304 }
 0xc9b   : > { %v15298_v34 = vpop.permute.xlu0 %6756  ;;  %v15300_v42 = vpop.permute.xlu1 %6760 }
 0xc9c   : > { %18403 = vst [vmem:[#allocation391_spill] sm:$0xff] %v15300_v42  ;;  %v7045_v42 = vrot.slane %v15236_v8, %v18288_v40 }
 0xc9d   : > { %7016 = vbcast.lane.b32.xlu1 %v7010_v43, 264  ;;  %7012 = vbcast.lane.b32.xlu0 %v7010_v43, 256 }
 0xc9f   : > { %v15302_v57 = vpop.permute.xlu0 %6767  ;;  %v15304_v49 = vpop.permute.xlu1 %6771 }
 0xca0   : > { %18404 = vst [vmem:[#allocation392_spill] sm:$0xff] %v15302_v57  ;;  %18405 = vst [vmem:[#allocation393_spill] sm:$0xff] %v15304_v49 }
 0xca1   : > { %7024 = vbcast.lane.b32.xlu1 %v7010_v43, 280  ;;  %7020 = vbcast.lane.b32.xlu0 %v7010_v43, 272 }
 0xca3   : > { %v15306_v14 = vpop.permute.xlu0 %6775  ;;  %v15308_v58 = vpop.permute.xlu1 %6779 }
 0xca4   : > { %18406 = vst [vmem:[#allocation394_spill] sm:$0xff] %v15306_v14  ;;  %18407 = vst [vmem:[#allocation395_spill] sm:$0xff] %v15308_v58 }
 0xca5   : > { %7032 = vbcast.lane.b32.xlu1 %v7010_v43, 296  ;;  %7028 = vbcast.lane.b32.xlu0 %v7010_v43, 288 }
 0xca7   : > { %v15310_v60 = vpop.permute.xlu0 %6783  ;;  %v15312_v51 = vpop.permute.xlu1 %6787 }
 0xca8   : > { %18408 = vst [vmem:[#allocation396_spill] sm:$0xff] %v15310_v60  ;;  %18409 = vst [vmem:[#allocation397_spill] sm:$0xff] %v15312_v51 }
 0xca9   : > { %7040 = vbcast.lane.b32.xlu1 %v7010_v43, 312  ;;  %7036 = vbcast.lane.b32.xlu0 %v7010_v43, 304 }
 0xcab   : > { %v15316_v57 = vpop.permute.xlu0 %6791  ;;  %v15318_v49 = vpop.permute.xlu1 %6795 }
 0xcac   : > { %18410 = vst [vmem:[#allocation398_spill] sm:$0xff] %v15318_v49  ;;  %v7080_v49 = vrot.slane %v15236_v8, %v18289_v50 }
 0xcad   : > { %7051 = vbcast.lane.b32.xlu1 %v7045_v42, 264  ;;  %7047 = vbcast.lane.b32.xlu0 %v7045_v42, 256 }
 0xcaf   : > { %v15320_v14 = vpop.permute.xlu0 %6802  ;;  %v15322_v58 = vpop.permute.xlu1 %6806 }
 0xcb0   : > { %18411 = vst [vmem:[#allocation399_spill] sm:$0xff] %v15320_v14  ;;  %18412 = vst [vmem:[#allocation400_spill] sm:$0xff] %v15322_v58 }
 0xcb1   : > { %7059 = vbcast.lane.b32.xlu1 %v7045_v42, 280  ;;  %7055 = vbcast.lane.b32.xlu0 %v7045_v42, 272 }
 0xcb3   : > { %v15324_v60 = vpop.permute.xlu0 %6810  ;;  %v15326_v51 = vpop.permute.xlu1 %6814 }
 0xcb4   : > { %18413 = vst [vmem:[#allocation401_spill] sm:$0xff] %v15324_v60  ;;  %18414 = vst [vmem:[#allocation402_spill] sm:$0xff] %v15326_v51 }
 0xcb5   : > { %7067 = vbcast.lane.b32.xlu1 %v7045_v42, 296  ;;  %7063 = vbcast.lane.b32.xlu0 %v7045_v42, 288 }
 0xcb7   : > { %v15328_v43 = vpop.permute.xlu0 %6818  ;;  %v15330_v40 = vpop.permute.xlu1 %6822 }
 0xcb8   : > { %18415 = vst [vmem:[#allocation403_spill] sm:$0xff] %v15328_v43  ;;  %18416 = vst [vmem:[#allocation404_spill] sm:$0xff] %v15330_v40 }
 0xcb9   : > { %7075 = vbcast.lane.b32.xlu1 %v7045_v42, 312  ;;  %7071 = vbcast.lane.b32.xlu0 %v7045_v42, 304 }
 0xcbb   : > { %v15334_v14 = vpop.permute.xlu0 %6826  ;;  %v15336_v58 = vpop.permute.xlu1 %6830 }
 0xcbc   : > { %18417 = vst [vmem:[#allocation405_spill] sm:$0xff] %v15336_v58  ;;  %v7115_v58 = vrot.slane %v15236_v8, %v18290_v59 }
 0xcbd   : > { %7086 = vbcast.lane.b32.xlu1 %v7080_v49, 264  ;;  %7082 = vbcast.lane.b32.xlu0 %v7080_v49, 256 }
 0xcbf   : > { %v15338_v60 = vpop.permute.xlu0 %6837  ;;  %v15340_v51 = vpop.permute.xlu1 %6841 }
 0xcc0   : > { %18418 = vst [vmem:[#allocation406_spill] sm:$0xff] %v15338_v60  ;;  %18419 = vst [vmem:[#allocation407_spill] sm:$0xff] %v15340_v51 }
 0xcc1   : > { %7094 = vbcast.lane.b32.xlu1 %v7080_v49, 280  ;;  %7090 = vbcast.lane.b32.xlu0 %v7080_v49, 272 }
 0xcc3   : > { %v15342_v43 = vpop.permute.xlu0 %6845  ;;  %v15344_v40 = vpop.permute.xlu1 %6849 }
 0xcc4   : > { %18420 = vst [vmem:[#allocation408_spill] sm:$0xff] %v15342_v43  ;;  %18421 = vst [vmem:[#allocation409_spill] sm:$0xff] %v15344_v40 }
 0xcc5   : > { %7102 = vbcast.lane.b32.xlu1 %v7080_v49, 296  ;;  %7098 = vbcast.lane.b32.xlu0 %v7080_v49, 288 }
 0xcc7   : > { %v15346_v42 = vpop.permute.xlu0 %6853  ;;  %v15348_v50 = vpop.permute.xlu1 %6857 }
 0xcc8   : > { %18422 = vst [vmem:[#allocation410_spill] sm:$0xff] %v15346_v42  ;;  %18423 = vst [vmem:[#allocation411_spill] sm:$0xff] %v15348_v50 }
 0xcc9   : > { %7110 = vbcast.lane.b32.xlu1 %v7080_v49, 312  ;;  %7106 = vbcast.lane.b32.xlu0 %v7080_v49, 304 }
 0xccb   : > { %v15352_v60 = vpop.permute.xlu0 %6861  ;;  %v15354_v51 = vpop.permute.xlu1 %6865 }
 0xccc   : > { %18424 = vst [vmem:[#allocation412_spill] sm:$0xff] %v15354_v51  ;;  %v7150_v51 = vrot.slane %v15236_v8, %v18291_v20 }
 0xccd   : > { %7121 = vbcast.lane.b32.xlu1 %v7115_v58, 264  ;;  %7117 = vbcast.lane.b32.xlu0 %v7115_v58, 256 }
 0xccf   : > { %v15356_v43 = vpop.permute.xlu0 %6872  ;;  %v15358_v40 = vpop.permute.xlu1 %6876 }
 0xcd0   : > { %18425 = vst [vmem:[#allocation413_spill] sm:$0xff] %v15356_v43  ;;  %18426 = vst [vmem:[#allocation414_spill] sm:$0xff] %v15358_v40 }
 0xcd1   : > { %7129 = vbcast.lane.b32.xlu1 %v7115_v58, 280  ;;  %7125 = vbcast.lane.b32.xlu0 %v7115_v58, 272 }
 0xcd3   : > { %v15360_v42 = vpop.permute.xlu0 %6880  ;;  %v15362_v50 = vpop.permute.xlu1 %6884 }
 0xcd4   : > { %18427 = vst [vmem:[#allocation415_spill] sm:$0xff] %v15360_v42  ;;  %18428 = vst [vmem:[#allocation416_spill] sm:$0xff] %v15362_v50 }
 0xcd5   : > { %7137 = vbcast.lane.b32.xlu1 %v7115_v58, 296  ;;  %7133 = vbcast.lane.b32.xlu0 %v7115_v58, 288 }
 0xcd7   : > { %v15364_v49 = vpop.permute.xlu0 %6888  ;;  %v15366_v59 = vpop.permute.xlu1 %6892 }
 0xcd8   : > { %18429 = vst [vmem:[#allocation417_spill] sm:$0xff] %v15364_v49  ;;  %18430 = vst [vmem:[#allocation418_spill] sm:$0xff] %v15366_v59 }
 0xcd9   : > { %7145 = vbcast.lane.b32.xlu1 %v7115_v58, 312  ;;  %7141 = vbcast.lane.b32.xlu0 %v7115_v58, 304 }
 0xcdb   : > { %v15370_v43 = vpop.permute.xlu0 %6896  ;;  %v15372_v40 = vpop.permute.xlu1 %6900 }
 0xcdc   : > { %18431 = vst [vmem:[#allocation419_spill] sm:$0xff] %v15370_v43  ;;  %18432 = vst [vmem:[#allocation420_spill] sm:$0xff] %v15372_v40 }
 0xcdd   : > { %7156 = vbcast.lane.b32.xlu1 %v7150_v51, 264  ;;  %7152 = vbcast.lane.b32.xlu0 %v7150_v51, 256 }
 0xcdf   : > { %v15374_v42 = vpop.permute.xlu0 %6907  ;;  %v15376_v50 = vpop.permute.xlu1 %6911 }
 0xce0   : > { %18433 = vst [vmem:[#allocation421_spill] sm:$0xff] %v15374_v42  ;;  %18434 = vst [vmem:[#allocation422_spill] sm:$0xff] %v15376_v50 }
 0xce1   : > { %7164 = vbcast.lane.b32.xlu1 %v7150_v51, 280  ;;  %7160 = vbcast.lane.b32.xlu0 %v7150_v51, 272 }
 0xce3   : > { %v15378_v49 = vpop.permute.xlu0 %6915  ;;  %v15380_v59 = vpop.permute.xlu1 %6919 }
 0xce4   : > { %18435 = vst [vmem:[#allocation423_spill] sm:$0xff] %v15378_v49  ;;  %18436 = vst [vmem:[#allocation424_spill] sm:$0xff] %v15380_v59  ;;  %v5873_v59 = vrot.slane %v14915_v21, %v12591_v36  ;;  %v17700_v21 = vmov 0.0  }
 0xce5   : > { %7172 = vbcast.lane.b32.xlu1 %v7150_v51, 296  ;;  %7168 = vbcast.lane.b32.xlu0 %v7150_v51, 288 }
 0xce7   : > { %v15382_v58 = vpop.permute.xlu0 %6923  ;;  %v15384_v8 = vpop.permute.xlu1 %6927 }
 0xce8   : > { %18437 = vst [vmem:[#allocation425_spill] sm:$0xff] %v15382_v58  ;;  %18438 = vst [vmem:[#allocation426_spill] sm:$0xff] %v15384_v8  ;;  %v15403_v8 = vrot.slane %v5873_v59, %v12591_v36 }
 0xce9   : > { %7180 = vbcast.lane.b32.xlu1 %v7150_v51, 312  ;;  %7176 = vbcast.lane.b32.xlu0 %v7150_v51, 304 }
 0xceb   : > { %v15386_v20 = vpop.permute.xlu0 %6931  ;;  %v15388_v40 = vpop.permute.xlu1 %6935 }
 0xcec   : > { %18439 = vst [vmem:[#allocation427_spill] sm:$0xff] %v15386_v20  ;;  %18440 = vst [vmem:[#allocation428_spill] sm:$0xff] %v15388_v40  ;;  %v7185_v40 = vrot.slane %v15403_v8, %v11859_v4 }
 0xcee   : > { %vm7342_vm11 = vcmp.gt.f32.partialorder %v7185_v40, %v14933_v13  ;;  %vm7344_vm8 = vcmp.gt.f32.partialorder %v7185_v40, %v14935_v41  ;;  %vm7343_vm15 = vcmp.gt.f32.partialorder %v7185_v40, %v14937_v54  ;;  %vm7345_vm4 = vcmp.gt.f32.partialorder %v7185_v40, %v14939_v26 }
 0xcef   : > { %v15390_v42 = vpop.permute.xlu0 %6942  ;;  %v15392_v50 = vpop.permute.xlu1 %6946  ;;  %vm7346_vm2 = vcmp.gt.f32.partialorder %v7185_v40, %v14944_v22  ;;  %vm7347_vm6 = vcmp.gt.f32.partialorder %v7185_v40, %v14946_v33  ;;  %vm7348_vm12 = vcmp.gt.f32.partialorder %v7185_v40, %v14950_v11  ;;  %vm7349_vm7 = vcmp.gt.f32.partialorder %v7185_v40, %v14952_v39 }
 0xcf0   : > { %18441 = vst [vmem:[#allocation429_spill] sm:$0xff] %v15390_v42  ;;  %18442 = vst [vmem:[#allocation430_spill] sm:$0xff] %v15392_v50  ;;  %v10919_v26 = vsel %vm7346_vm2, 1.0, %v17700_v21  ;;  %v10921_v33 = vsel %vm7348_vm12, 1.0, %v17700_v21 }
 0xcf3   : > { %v15394_v43 = vpop.permute.xlu0 %6950  ;;  %v15398_v49 = vpop.permute.xlu1 %6954 }
 0xcf4   : > { %18443 = vst [vmem:[#allocation431_spill] sm:$0xff] %v15394_v43  ;;  %18444 = vst [vmem:[#allocation432_spill] sm:$0xff] %v15398_v49  ;;  %v10915_v49 = vsel %vm7342_vm11, 1.0, %v17700_v21 }
 0xcf7   : > { %v15400_v58 = vpop.permute.xlu0 %6958  ;;  %v15405_v51 = vpop.permute.xlu1 %6962 }
 0xcf8   : > { %18445 = vst [vmem:[#allocation433_spill] sm:$0xff] %v15400_v58  ;;  %18446 = vst [vmem:[#allocation434_spill] sm:$0xff] %v15405_v51  ;;  %v5881_v58 = vcombine.high %v5873_v59, %v5873_v59  ;;  %v8110_v51 = vsel %vm747_vm0, %v10915_v49, 0.0  ;;  %v10918_v49 = vsel %vm7345_vm4, 1.0, %v17700_v21 }
 0xcfa   : > { %v15429_v41 = vrot.slane %v5881_v58, %v12591_v36 }
 0xcfb   : > { %v15409_v42 = vpop.permute.xlu0 %6966  ;;  %v15412_v43 = vpop.permute.xlu1 %6970 }
 0xcfc   : > { %18447 = vst [vmem:[#allocation435_spill] sm:$0xff] %v15409_v42  ;;  %v10917_v42 = vsel %vm7344_vm8, 1.0, %v17700_v21  ;;  %v7189_v22 = vrot.slane %v15429_v41, %v11859_v4 }
 0xcfd   : > { %v8116_v59 = vsel %vm747_vm0, %v10917_v42, 0.0  ;;  %v8119_v42 = vsel %vm747_vm0, %v10918_v49, 0.0  ;;  %v10922_v49 = vsel %vm7349_vm7, 1.0, %v17700_v21 }
 0xcfe   : > { %vm7350_vm11 = vcmp.gt.f32.partialorder %v7189_v22, %v14954_v29  ;;  %vm7351_vm8 = vcmp.gt.f32.partialorder %v7189_v22, %v14956_v52  ;;  %v8131_v39 = vsel %vm747_vm0, %v10922_v49, 0.0  ;;  %vm7353_vm4 = vcmp.gt.f32.partialorder %v7189_v22, %v14960_v37 }
 0xcff   : > { %v15414_v50 = vpop.permute.xlu0 %6977  ;;  %v15420_v20 = vpop.permute.xlu1 %6981  ;;  %v10923_v40 = vsel %vm7350_vm11, 1.0, %v17700_v21  ;;  %vm7354_vm2 = vcmp.gt.f32.partialorder %v7189_v22, %v14962_v45  ;;  %v5911_v52 = vcombine.high %v15403_v8, %v15403_v8  ;;  %vm7356_vm12 = vcmp.gt.f32.partialorder %v7189_v22, %v14968_v55 }
 0xd00   : > { %18448 = vst [vmem:[#allocation436_spill] sm:$0xff] %v15414_v50  ;;  %18449 = vst [vmem:[#allocation437_spill] sm:$0xff] %v15420_v20  ;;  %v10916_v50 = vsel %vm7343_vm15, 1.0, %v17700_v21  ;;  %vm7352_vm15 = vcmp.gt.f32.partialorder %v7189_v22, %v14958_v62  ;;  %v8134_v29 = vsel %vm747_vm0, %v10923_v40, 0.0  ;;  %v10927_v37 = vsel %vm7354_vm2, 1.0, %v17700_v21 }
 0xd01   : > { %v8113_v54 = vsel %vm747_vm0, %v10916_v50, 0.0  ;;  %v8122_v50 = vsel %vm747_vm0, %v10919_v26, 0.0  ;;  %v7193_v45 = vrot.slane %v5911_v52, %v11859_v4  ;;  %v8146_v40 = vsel %vm747_vm0, %v10927_v37, 0.0 }
 0xd02   : > { %vm7357_vm7 = vcmp.gt.f32.partialorder %v7189_v22, %v14970_v10 }
 0xd03   : > { %v15424_v13 = vpop.permute.xlu0 %6985  ;;  %vm7358_vm11 = vcmp.gt.f32.partialorder %v7193_v45, %v14972_v12  ;;  %vm7362_vm2 = vcmp.gt.f32.partialorder %v7193_v45, %v14980_v6 }
 0xd04   : > { %18450 = vst [vmem:[#allocation438_spill] sm:$0xff] %v15424_v13  ;;  %v10931_v52 = vsel %vm7358_vm11, 1.0, %v17700_v21  ;;  %v10935_v6 = vsel %vm7362_vm2, 1.0, %v17700_v21 }
 0xd07   : > { %v15441_v58 = vpop.permute.xlu0 %6993 }
 0xd08   : > { %8111 = vadd.xlane.f32.xlu0 %v8110_v51  ;;  %v15439_v51 = vpop.permute.xlu1 %6989  ;;  %18452 = vst [vmem:[#allocation440_spill] sm:$0xff] %v15441_v58  ;;  %v8128_v58 = vsel %vm747_vm0, %v10921_v33, 0.0 }
 0xd09   : > { %18451 = vst [vmem:[#allocation439_spill] sm:$0xff] %v15439_v51 }
 0xd0b   : > { %v15455_v26 = vpop.permute.xlu0 %7001 }
 0xd0c   : > { %8117 = vadd.xlane.f32.xlu0 %v8116_v59  ;;  %v10920_v59 = vsel %vm7347_vm6, 1.0, %v17700_v21  ;;  %18454 = vst [vmem:[#allocation442_spill] sm:$0xff] %v15455_v26  ;;  %vm7355_vm6 = vcmp.gt.f32.partialorder %v7189_v22, %v14964_v24  ;;  %v10929_v24 = vsel %vm7356_vm12, 1.0, %v17700_v21  ;;  %vm7364_vm12 = vcmp.gt.f32.partialorder %v7193_v45, %v14986_v48 }
 0xd0d   : > { %8114 = vadd.xlane.f32.xlu1 %v8113_v54  ;;  %v8125_v11 = vsel %vm747_vm0, %v10920_v59, 0.0  ;;  %v15450_v54 = vpop.permute.xlu1 %6997 }
 0xd0e   : > { %18453 = vst [vmem:[#allocation441_spill] sm:$0xff] %v15450_v54 }
 0xd0f   : > { %v15469_v62 = vpop.permute.xlu0 %7012 }
 0xd10   : > { %8120 = vadd.xlane.f32.xlu0 %v8119_v42  ;;  %v10924_v42 = vsel %vm7351_vm8, 1.0, %v17700_v21  ;;  %18456 = vst [vmem:[#allocation444_spill] sm:$0xff] %v15469_v62  ;;  %vm7359_vm8 = vcmp.gt.f32.partialorder %v7193_v45, %v14974_v31  ;;  %v18594_v62 = vmov 0.0  }
 0xd11   : > { %8123 = vadd.xlane.f32.xlu1 %v8122_v50  ;;  %v10925_v50 = vsel %vm7352_vm15, 1.0, %v17700_v21  ;;  %v8137_v59 = vsel %vm747_vm0, %v10924_v42, 0.0  ;;  %v8152_v42 = vsel %vm747_vm0, %v10929_v24, 0.0  ;;  %vm7360_vm15 = vcmp.gt.f32.partialorder %v7193_v45, %v14976_v9 }
 0xd12   : > { %v8140_v33 = vsel %vm747_vm0, %v10925_v50, 0.0  ;;  %v10930_v50 = vsel %vm7357_vm7, 1.0, %v17700_v21  ;;  %v10933_v31 = vsel %vm7360_vm15, 1.0, %v17700_v21  ;;  %v5913_v9 = vcombine.high %v15429_v41, %v15429_v41 }
 0xd13   : > { %v8155_v12 = vsel %vm747_vm0, %v10930_v50, 0.0  ;;  %v8170_v24 = vsel %vm747_vm0, %v10935_v6, 0.0  ;;  %vm7365_vm7 = vcmp.gt.f32.partialorder %v7193_v45, %v14988_v23 }
 0xd14   : > { %8126 = vadd.xlane.f32.xlu0 %v8125_v11  ;;  %v10926_v11 = vsel %vm7353_vm4, 1.0, %v17700_v21  ;;  %vm7361_vm4 = vcmp.gt.f32.partialorder %v7193_v45, %v14978_v16  ;;  %v7197_v41 = vrot.slane %v5913_v9, %v11859_v4 }
 0xd15   : > { %8129 = vadd.xlane.f32.xlu1 %v8128_v58  ;;  %v15467_v58 = vpop.permute.xlu1 %7005  ;;  %v8143_v8 = vsel %vm747_vm0, %v10926_v11, 0.0 }
 0xd16   : > { %18455 = vst [vmem:[#allocation443_spill] sm:$0xff] %v15467_v58  ;;  %vm7366_vm11 = vcmp.gt.f32.partialorder %v7197_v41, %v14990_v15  ;;  %vm7368_vm15 = vcmp.gt.f32.partialorder %v7197_v41, %v14994_v28  ;;  %vm7370_vm2 = vcmp.gt.f32.partialorder %v7197_v41, %v14998_v47  ;;  %v18557_v58 = vld [vmem:[#allocation332_spill] sm:$0xff] }
 0xd17   : > { %v10939_v23 = vsel %vm7366_vm11, 1.0, %v17700_v21 }
 0xd18   : > { %8132 = vadd.xlane.f32.xlu0 %v8131_v39  ;;  %v10928_v39 = vsel %vm7355_vm6, 1.0, %v17700_v21  ;;  %vm7363_vm6 = vcmp.gt.f32.partialorder %v7193_v45, %v14982_v63  ;;  %v10937_v63 = vsel %vm7364_vm12, 1.0, %v17700_v21  ;;  %v8182_v9 = vsel %vm747_vm0, %v10939_v23, 0.0 }
 0xd19   : > { %8135 = vadd.xlane.f32.xlu1 %v8134_v29  ;;  %v15479_v49 = vpop.permute.xlu1 %7016  ;;  %v15484_v29 = vpop.permute.xlu0 %7020  ;;  %v8149_v55 = vsel %vm747_vm0, %v10928_v39, 0.0  ;;  %vm7372_vm12 = vcmp.gt.f32.partialorder %v7197_v41, %v15004_v17 }
 0xd1a   : > { %18457 = vst [vmem:[#allocation445_spill] sm:$0xff] %v15479_v49  ;;  %18458 = vst [vmem:[#allocation446_spill] sm:$0xff] %v15484_v29  ;;  %v18593_v29 = vld [vmem:[#allocation366_spill] sm:$0xff] }
 0xd1c   : > { %8138 = vadd.xlane.f32.xlu0 %v8137_v59  ;;  %v8158_v59 = vsel %vm747_vm0, %v10931_v52, 0.0 }
 0xd1d   : > { %8141 = vadd.xlane.f32.xlu1 %v8140_v33  ;;  %v15494_v10 = vpop.permute.xlu1 %7024  ;;  %v15496_v22 = vpop.permute.xlu0 %7028  ;;  %v10932_v33 = vsel %vm7359_vm8, 1.0, %v17700_v21  ;;  %vm7367_vm8 = vcmp.gt.f32.partialorder %v7197_v41, %v14992_v25  ;;  %v10941_v25 = vsel %vm7368_vm15, 1.0, %v17700_v21 }
 0xd1e   : > { %18459 = vst [vmem:[#allocation447_spill] sm:$0xff] %v15494_v10  ;;  %18460 = vst [vmem:[#allocation448_spill] sm:$0xff] %v15496_v22  ;;  %v8161_v11 = vsel %vm747_vm0, %v10932_v33, 0.0  ;;  %v10938_v33 = vsel %vm7365_vm7, 1.0, %v17700_v21  ;;  %v8188_v6 = vsel %vm747_vm0, %v10941_v25, 0.0  ;;  %vm7373_vm7 = vcmp.gt.f32.partialorder %v7197_v41, %v15006_v56  ;;  %v18585_v22 = vld [vmem:[#allocation358_spill] sm:$0xff] }
 0xd1f   : > { %v8179_v45 = vsel %vm747_vm0, %v10938_v33, 0.0  ;;  %v10946_v33 = vsel %vm7373_vm7, 1.0, %v17700_v21 }
 0xd20   : > { %8144 = vadd.xlane.f32.xlu0 %v8143_v8  ;;  %v8164_v8 = vsel %vm747_vm0, %v10933_v31, 0.0 }
 0xd21   : > { %8147 = vadd.xlane.f32.xlu1 %v8146_v40  ;;  %v15507_v37 = vpop.permute.xlu1 %7032  ;;  %v10934_v40 = vsel %vm7361_vm4, 1.0, %v17700_v21  ;;  %v15512_v16 = vpop.permute.xlu0 %7036  ;;  %vm7369_vm4 = vcmp.gt.f32.partialorder %v7197_v41, %v14996_v3  ;;  %v10943_v3 = vsel %vm7370_vm2, 1.0, %v17700_v21 }
 0xd22   : > { %18461 = vst [vmem:[#allocation449_spill] sm:$0xff] %v15507_v37  ;;  %18462 = vst [vmem:[#allocation450_spill] sm:$0xff] %v15512_v16  ;;  %v8167_v39 = vsel %vm747_vm0, %v10934_v40, 0.0  ;;  %v18544_v16 = vld [vmem:[#allocation320_spill] sm:$0xff] }
 0xd24   : > { %8150 = vadd.xlane.f32.xlu0 %v8149_v55  ;;  %v10936_v55 = vsel %vm7363_vm6, 1.0, %v17700_v21  ;;  %vm7371_vm6 = vcmp.gt.f32.partialorder %v7197_v41, %v15000_v5  ;;  %v10945_v5 = vsel %vm7372_vm12, 1.0, %v17700_v21 }
 0xd25   : > { %8153 = vadd.xlane.f32.xlu1 %v8152_v42  ;;  %v11591_v42 = vld [vmem:[%s14912_s17] sm:$0xff]  ;;  %v15524_v52 = vpop.permute.xlu1 %7040  ;;  %v15526_v48 = vpop.permute.xlu0 %7047 }
 0xd26   : > { %v5866_v50 = vcombine.high %v11591_v42, %v11591_v42  ;;  %18463 = vst [vmem:[#allocation451_spill] sm:$0xff] %v15524_v52  ;;  %18464 = vst [vmem:[#allocation452_spill] sm:$0xff] %v15526_v48  ;;  %v8194_v42 = vsel %vm747_vm0, %v10943_v3, 0.0  ;;  %v18531_v52 = vld [vmem:[#allocation312_spill] sm:$0xff] }
 0xd28   : > { %8156 = vadd.xlane.f32.xlu0 %v8155_v12  ;;  %v8173_v12 = vsel %vm747_vm0, %v10936_v55, 0.0  ;;  %v5880_v15 = vrot.slane %v5866_v50, %v12591_v36  ;;  %v10944_v50 = vsel %vm7371_vm6, 1.0, %v17700_v21 }
 0xd29   : > { %8159 = vadd.xlane.f32.xlu1 %v8158_v59  ;;  %v8176_v59 = vsel %vm747_vm0, %v10937_v63, 0.0  ;;  %v15536_v31 = vpop.permute.xlu1 %7051  ;;  %v8197_v17 = vsel %vm747_vm0, %v10944_v50, 0.0 }
 0xd2a   : > { %18465 = vst [vmem:[#allocation453_spill] sm:$0xff] %v15536_v31  ;;  %v15546_v28 = vrot.slane %v5880_v15, %v12591_v36  ;;  %v5882_v41 = vcombine.high %v5880_v15, %v5880_v15 }
 0xd2c   : > { %8162 = vadd.xlane.f32.xlu0 %v8161_v11  ;;  %v10940_v11 = vsel %vm7367_vm8, 1.0, %v17700_v21  ;;  %v7201_v47 = vrot.slane %v15546_v28, %v11859_v4 }
 0xd2d   : > { %8165 = vadd.xlane.f32.xlu1 %v8164_v8  ;;  %v15541_v8 = vpop.permute.xlu0 %7055  ;;  %v8185_v40 = vsel %vm747_vm0, %v10940_v11, 0.0  ;;  %v15583_v11 = vrot.slane %v5882_v41, %v12591_v36  ;;  %v18477_v41 = vld [vmem:[#allocation280_spill] sm:$0xff] }
 0xd2e   : > { %18466 = vst [vmem:[#allocation454_spill] sm:$0xff] %v15541_v8  ;;  %vm7374_vm11 = vcmp.gt.f32.partialorder %v7201_v47, %v15008_v2  ;;  %vm7375_vm8 = vcmp.gt.f32.partialorder %v7201_v47, %v15010_v53  ;;  %vm7376_vm15 = vcmp.gt.f32.partialorder %v7201_v47, %v15012_v35  ;;  %v8203_v2 = vsel %vm747_vm0, %v10946_v33, 0.0 }
 0xd2f   : > { %v10947_v56 = vsel %vm7374_vm11, 1.0, %v17700_v21  ;;  %v10949_v53 = vsel %vm7376_vm15, 1.0, %v17700_v21  ;;  %vm7378_vm2 = vcmp.gt.f32.partialorder %v7201_v47, %v15016_v32  ;;  %vm7379_vm6 = vcmp.gt.f32.partialorder %v7201_v47, %v15018_v7 }
 0xd30   : > { %8168 = vadd.xlane.f32.xlu0 %v8167_v39  ;;  %v10942_v39 = vsel %vm7369_vm4, 1.0, %v17700_v21  ;;  %vm7377_vm4 = vcmp.gt.f32.partialorder %v7201_v47, %v15014_v44  ;;  %v10951_v44 = vsel %vm7378_vm2, 1.0, %v17700_v21  ;;  %vm7380_vm12 = vcmp.gt.f32.partialorder %v7201_v47, %v15022_v1 }
 0xd31   : > { %8171 = vadd.xlane.f32.xlu1 %v8170_v24  ;;  %v15556_v24 = vpop.permute.xlu1 %7059  ;;  %v15558_v55 = vpop.permute.xlu0 %7063  ;;  %v8191_v63 = vsel %vm747_vm0, %v10942_v39, 0.0  ;;  %v7205_v32 = vrot.slane %v15583_v11, %v11859_v4  ;;  %vm7381_vm7 = vcmp.gt.f32.partialorder %v7201_v47, %v15024_v30  ;;  %v10953_v50 = vsel %vm7380_vm12, 1.0, %v17700_v21 }
 0xd32   : > { %18467 = vst [vmem:[#allocation455_spill] sm:$0xff] %v15556_v24  ;;  %18468 = vst [vmem:[#allocation456_spill] sm:$0xff] %v15558_v55 }
 0xd33   : > { %vm7382_vm11 = vcmp.gt.f32.partialorder %v7205_v32, %v15026_v19  ;;  %vm7384_vm15 = vcmp.gt.f32.partialorder %v7205_v32, %v15030_v27  ;;  %vm7386_vm2 = vcmp.gt.f32.partialorder %v7205_v32, %v18477_v41  ;;  %v5912_v27 = vcombine.high %v15546_v28, %v15546_v28 }
 0xd34   : > { %8174 = vadd.xlane.f32.xlu0 %v8173_v12 }
 0xd35   : > { %8177 = vadd.xlane.f32.xlu1 %v8176_v59  ;;  %v15567_v12 = vpop.permute.xlu1 %7067  ;;  %v8200_v59 = vsel %vm747_vm0, %v10945_v5, 0.0  ;;  %v15572_v23 = vpop.permute.xlu0 %7071  ;;  %v8224_v5 = vsel %vm747_vm0, %v10953_v50, 0.0  ;;  %v7209_v28 = vrot.slane %v5912_v27, %v11859_v4 }
 0xd36   : > { %18469 = vst [vmem:[#allocation457_spill] sm:$0xff] %v15567_v12  ;;  %18470 = vst [vmem:[#allocation458_spill] sm:$0xff] %v15572_v23  ;;  %v18539_v12 = vld [vmem:[#allocation316_spill] sm:$0xff] }
 0xd38   : > { %8180 = vadd.xlane.f32.xlu0 %v8179_v45  ;;  %v8206_v45 = vsel %vm747_vm0, %v10947_v56, 0.0 }
 0xd39   : > { %8183 = vadd.xlane.f32.xlu1 %v8182_v9  ;;  %v10948_v9 = vsel %vm7375_vm8, 1.0, %v17700_v21  ;;  %v15585_v25 = vpop.permute.xlu1 %7075  ;;  %v15587_v35 = vpop.permute.xlu0 %7082  ;;  %vm7383_vm8 = vcmp.gt.f32.partialorder %v7205_v32, %v15028_v18  ;;  %v10957_v18 = vsel %vm7384_vm15, 1.0, %v17700_v21 }
 0xd3a   : > { %18471 = vst [vmem:[#allocation459_spill] sm:$0xff] %v15585_v25  ;;  %18472 = vst [vmem:[#allocation460_spill] sm:$0xff] %v15587_v35  ;;  %v8209_v15 = vsel %vm747_vm0, %v10948_v9, 0.0  ;;  %v10956_v56 = vsel %vm7383_vm8, 1.0, %v17700_v21  ;;  %v8236_v9 = vsel %vm747_vm0, %v10957_v18, 0.0  ;;  %v18487_v18 = vld [vmem:[#allocation286_spill] sm:$0xff] }
 0xd3b   : > { %vm7392_vm15 = vcmp.gt.f32.partialorder %v7209_v28, %v18487_v18  ;;  %v18527_v25 = vld [vmem:[#allocation272_spill] sm:$0xff]  ;;  %v18588_v35 = vld [vmem:[#allocation361_spill] sm:$0xff] }
 0xd3c   : > { %8186 = vadd.xlane.f32.xlu0 %v8185_v40  ;;  %v8212_v40 = vsel %vm747_vm0, %v10949_v53, 0.0 }
 0xd3d   : > { %8189 = vadd.xlane.f32.xlu1 %v8188_v6  ;;  %v10950_v6 = vsel %vm7377_vm4, 1.0, %v17700_v21  ;;  %v15598_v3 = vpop.permute.xlu1 %7086  ;;  %v15603_v7 = vpop.permute.xlu0 %7090  ;;  %vm7385_vm4 = vcmp.gt.f32.partialorder %v7205_v32, %v15032_v46 }
 0xd3e   : > { %v8215_v39 = vsel %vm747_vm0, %v10950_v6, 0.0  ;;  %18473 = vst [vmem:[#allocation461_spill] sm:$0xff] %v15598_v3  ;;  %18474 = vst [vmem:[#allocation462_spill] sm:$0xff] %v15603_v7  ;;  %v10958_v53 = vsel %vm7385_vm4, 1.0, %v17700_v21  ;;  %v18481_v6 = vld [vmem:[#allocation282_spill] sm:$0xff] }
 0xd3f   : > { %vm7388_vm12 = vcmp.gt.f32.partialorder %v7205_v32, %v18481_v6  ;;  %v18491_v6 = vld [vmem:[#allocation288_spill] sm:$0xff] }
 0xd40   : > { %8192 = vadd.xlane.f32.xlu0 %v8191_v63  ;;  %v8218_v63 = vsel %vm747_vm0, %v10951_v44, 0.0  ;;  %v8239_v44 = vsel %vm747_vm0, %v10958_v53, 0.0  ;;  %v10961_v50 = vsel %vm7388_vm12, 1.0, %v17700_v21  ;;  %v18489_v53 = vld [vmem:[#allocation287_spill] sm:$0xff] }
 0xd41   : > { %8195 = vadd.xlane.f32.xlu1 %v8194_v42  ;;  %v10952_v42 = vsel %vm7379_vm6, 1.0, %v17700_v21  ;;  %v15613_v30 = vpop.permute.xlu1 %7094  ;;  %v15615_v47 = vpop.permute.xlu0 %7098  ;;  %vm7393_vm4 = vcmp.gt.f32.partialorder %v7209_v28, %v18489_v53 }
 0xd42   : > { %v8221_v1 = vsel %vm747_vm0, %v10952_v42, 0.0  ;;  %18475 = vst [vmem:[#allocation463_spill] sm:$0xff] %v15613_v30  ;;  %18476 = vst [vmem:[#allocation464_spill] sm:$0xff] %v15615_v47  ;;  %v18482_v42 = vld [vmem:[#allocation283_spill] sm:$0xff] }
 0xd44   : > { %8198 = vadd.xlane.f32.xlu0 %v8197_v17  ;;  %v10954_v17 = vsel %vm7381_vm7, 1.0, %v17700_v21  ;;  %vm7389_vm7 = vcmp.gt.f32.partialorder %v7205_v32, %v18482_v42  ;;  %v10966_v42 = vsel %vm7393_vm4, 1.0, %v17700_v21 }
 0xd45   : > { %8201 = vadd.xlane.f32.xlu1 %v8200_v59  ;;  %v10955_v59 = vsel %vm7382_vm11, 1.0, %v17700_v21  ;;  %v8227_v19 = vsel %vm747_vm0, %v10954_v17, 0.0  ;;  %v15631_v46 = vpop.permute.xlu0 %7106 }
 0xd46   : > { %v8230_v33 = vsel %vm747_vm0, %v10955_v59, 0.0 }
 0xd48   : > { %8204 = vadd.xlane.f32.xlu0 %v8203_v2  ;;  %v8233_v2 = vsel %vm747_vm0, %v10956_v56, 0.0  ;;  %v18486_v56 = vld [vmem:[#allocation285_spill] sm:$0xff] }
 0xd49   : > { %8207 = vadd.xlane.f32.xlu1 %v8206_v45  ;;  %v15626_v45 = vpop.permute.xlu1 %7102  ;;  %v15644_v17 = vpop.permute.xlu0 %7117  ;;  %vm7391_vm8 = vcmp.gt.f32.partialorder %v7209_v28, %v18486_v56 }
 0xd4a   : > { %18478 = vst [vmem:[#allocation280_spill] sm:$0xff] %v15626_v45  ;;  %18485 = vst [vmem:[#allocation283_spill] sm:$0xff] %v15644_v17 }
 0xd4c   : > { %8210 = vadd.xlane.f32.xlu0 %v8209_v15  ;;  %v18479_v15 = vld [vmem:[#allocation281_spill] sm:$0xff] }
 0xd4d   : > { %8213 = vadd.xlane.f32.xlu1 %v8212_v40  ;;  %vm7387_vm6 = vcmp.gt.f32.partialorder %v7205_v32, %v18479_v15  ;;  %18480 = vst [vmem:[#allocation281_spill] sm:$0xff] %v15631_v46  ;;  %v10959_v40 = vsel %vm7386_vm2, 1.0, %v17700_v21  ;;  %v15658_v15 = vpop.permute.xlu0 %7125  ;;  %vm7394_vm2 = vcmp.gt.f32.partialorder %v7209_v28, %v18491_v6 }
 0xd4e   : > { %18490 = vst [vmem:[#allocation285_spill] sm:$0xff] %v15658_v15 }
 0xd50   : > { %8216 = vadd.xlane.f32.xlu0 %v8215_v39  ;;  %v8242_v39 = vsel %vm747_vm0, %v10959_v40, 0.0  ;;  %v10965_v40 = vsel %vm7392_vm15, 1.0, %v17700_v21 }
 0xd51   : > { %8219 = vadd.xlane.f32.xlu1 %v8218_v63  ;;  %v10960_v63 = vsel %vm7387_vm6, 1.0, %v17700_v21  ;;  %v15673_v56 = vpop.permute.xlu0 %7133 }
 0xd52   : > { %v8245_v59 = vsel %vm747_vm0, %v10960_v63, 0.0  ;;  %v8260_v63 = vsel %vm747_vm0, %v10965_v40, 0.0  ;;  %18495 = vst [vmem:[#allocation287_spill] sm:$0xff] %v15673_v56 }
 0xd54   : > { %8222 = vadd.xlane.f32.xlu0 %v8221_v1  ;;  %v18483_v1 = vld [vmem:[#allocation284_spill] sm:$0xff] }
 0xd55   : > { %8225 = vadd.xlane.f32.xlu1 %v8224_v5  ;;  %vm7390_vm11 = vcmp.gt.f32.partialorder %v7209_v28, %v18483_v1  ;;  %v15642_v5 = vpop.permute.xlu1 %7110  ;;  %v10967_v1 = vsel %vm7394_vm2, 1.0, %v17700_v21 }
 0xd56   : > { %18484 = vst [vmem:[#allocation282_spill] sm:$0xff] %v15642_v5  ;;  %v10963_v32 = vsel %vm7390_vm11, 1.0, %v17700_v21  ;;  %v18512_v5 = vld [vmem:[#allocation301_spill] sm:$0xff] }
 0xd58   : > { %8228 = vadd.xlane.f32.xlu0 %v8227_v19  ;;  %v8248_v19 = vsel %vm747_vm0, %v10961_v50, 0.0  ;;  %v18492_v50 = vld [vmem:[#allocation289_spill] sm:$0xff] }
 0xd59   : > { %8231 = vadd.xlane.f32.xlu1 %v8230_v33  ;;  %v10962_v33 = vsel %vm7389_vm7, 1.0, %v17700_v21  ;;  %v15653_v27 = vpop.permute.xlu1 %7121  ;;  %vm7395_vm6 = vcmp.gt.f32.partialorder %v7209_v28, %v18492_v50  ;;  %v15692_v50 = vld [vmem:[%s14912_s17 + $0x8] sm:$0xff] }
 0xd5a   : > { %v8251_v41 = vsel %vm747_vm0, %v10962_v33, 0.0  ;;  %18488 = vst [vmem:[#allocation284_spill] sm:$0xff] %v15653_v27  ;;  %v10968_v18 = vsel %vm7395_vm6, 1.0, %v17700_v21  ;;  %v16083_v27 = vld [vmem:[%s14912_s17 + $0x10] sm:$0xff] }
 0xd5b   : > { %v8269_v53 = vsel %vm747_vm0, %v10968_v18, 0.0  ;;  %v18502_v18 = vld [vmem:[#allocation295_spill] sm:$0xff] }
 0xd5c   : > { %8234 = vadd.xlane.f32.xlu0 %v8233_v2  ;;  %v8254_v2 = vsel %vm747_vm0, %v10963_v32, 0.0  ;;  %v8266_v32 = vsel %vm747_vm0, %v10967_v1, 0.0  ;;  %v5922_v1 = vrot.slane %v15692_v50, %v12591_v36 }
 0xd5d   : > { %8237 = vadd.xlane.f32.xlu1 %v8236_v9  ;;  %v10964_v9 = vsel %vm7391_vm8, 1.0, %v17700_v21  ;;  %v15671_v33 = vpop.permute.xlu1 %7129 }
 0xd5e   : > { %18494 = vst [vmem:[#allocation286_spill] sm:$0xff] %v15671_v33 }
 0xd60   : > { %8240 = vadd.xlane.f32.xlu0 %v8239_v44  ;;  %v5914_v44 = vcombine.high %v15583_v11, %v15583_v11  ;;  %v8263_v11 = vsel %vm747_vm0, %v10966_v42, 0.0  ;;  %v18501_v42 = vld [vmem:[#allocation294_spill] sm:$0xff] }
 0xd61   : > { %8243 = vadd.xlane.f32.xlu1 %v8242_v39  ;;  %v8257_v39 = vsel %vm747_vm0, %v10964_v9, 0.0  ;;  %v18497_v9 = vld [vmem:[#allocation292_spill] sm:$0xff]  ;;  %v15682_v40 = vpop.permute.xlu1 %7137 }
 0xd62   : > { %18498 = vst [vmem:[#allocation288_spill] sm:$0xff] %v15682_v40 }
 0xd64   : > { %8246 = vadd.xlane.f32.xlu0 %v8245_v59  ;;  %v18493_v59 = vld [vmem:[#allocation290_spill] sm:$0xff] }
 0xd65   : > { %8249 = vadd.xlane.f32.xlu1 %v8248_v19  ;;  %vm7396_vm12 = vcmp.gt.f32.partialorder %v7209_v28, %v18493_v59  ;;  %v7213_v19 = vrot.slane %v5914_v44, %v11859_v4 }
 0xd67   : > { %vm7398_vm11 = vcmp.gt.f32.partialorder %v7213_v19, %v18497_v9  ;;  %vm7400_vm15 = vcmp.gt.f32.partialorder %v7213_v19, %v18501_v42  ;;  %vm7401_vm4 = vcmp.gt.f32.partialorder %v7213_v19, %v18502_v18  ;;  %v15703_v9 = vrot.slane %v5922_v1, %v12591_v36  ;;  %v18506_v42 = vld [vmem:[#allocation297_spill] sm:$0xff] }
 0xd68   : > { %8252 = vadd.xlane.f32.xlu0 %v8251_v41  ;;  %v18496_v41 = vld [vmem:[#allocation291_spill] sm:$0xff]  ;;  %vm7403_vm6 = vcmp.gt.f32.partialorder %v7213_v19, %v18506_v42 }
 0xd69   : > { %8255 = vadd.xlane.f32.xlu1 %v8254_v2  ;;  %vm7397_vm7 = vcmp.gt.f32.partialorder %v7209_v28, %v18496_v41  ;;  %v10969_v2 = vsel %vm7396_vm12, 1.0, %v17700_v21  ;;  %v10971_v28 = vsel %vm7398_vm11, 1.0, %v17700_v21  ;;  %v10973_v41 = vsel %vm7400_vm15, 1.0, %v17700_v21 }
 0xd6a   : > { %v8272_v6 = vsel %vm747_vm0, %v10969_v2, 0.0  ;;  %v10970_v44 = vsel %vm7397_vm7, 1.0, %v17700_v21  ;;  %v18503_v2 = vld [vmem:[#allocation296_spill] sm:$0xff]  ;;  %v7217_v18 = vrot.slane %v15703_v9, %v11859_v4 }
 0xd6b   : > { %v8275_v59 = vsel %vm747_vm0, %v10970_v44, 0.0  ;;  %vm7402_vm2 = vcmp.gt.f32.partialorder %v7213_v19, %v18503_v2 }
 0xd6c   : > { %8258 = vadd.xlane.f32.xlu0 %v8257_v39  ;;  %v18499_v39 = vld [vmem:[#allocation293_spill] sm:$0xff] }
 0xd6d   : > { %8261 = vadd.xlane.f32.xlu1 %v8260_v63  ;;  %vm7399_vm8 = vcmp.gt.f32.partialorder %v7213_v19, %v18499_v39  ;;  %v15687_v63 = vpop.permute.xlu0 %7141  ;;  %v8284_v39 = vsel %vm747_vm0, %v10973_v41, 0.0  ;;  %v10976_v41 = vsel %vm7403_vm6, 1.0, %v17700_v21 }
 0xd6e   : > { %18500 = vst [vmem:[#allocation289_spill] sm:$0xff] %v15687_v63  ;;  %v8293_v63 = vsel %vm747_vm0, %v10976_v41, 0.0 }
 0xd70   : > { %8264 = vadd.xlane.f32.xlu0 %v8263_v11  ;;  %v8278_v11 = vsel %vm747_vm0, %v10971_v28, 0.0  ;;  %v10974_v28 = vsel %vm7401_vm4, 1.0, %v17700_v21 }
 0xd71   : > { %8267 = vadd.xlane.f32.xlu1 %v8266_v32  ;;  %v10972_v32 = vsel %vm7399_vm8, 1.0, %v17700_v21  ;;  %v8287_v2 = vsel %vm747_vm0, %v10974_v28, 0.0  ;;  %vm7407_vm8 = vcmp.gt.f32.partialorder %v7217_v18, %v18512_v5 }
 0xd72   : > { %v8281_v44 = vsel %vm747_vm0, %v10972_v32, 0.0  ;;  %v10980_v41 = vsel %vm7407_vm8, 1.0, %v17700_v21 }
 0xd74   : > { %8270 = vadd.xlane.f32.xlu0 %v8269_v53  ;;  %v15705_v53 = vpop.permute.xlu1 %7145 }
 0xd75   : > { %8273 = vadd.xlane.f32.xlu1 %v8272_v6  ;;  %18504 = vst [vmem:[#allocation290_spill] sm:$0xff] %v15705_v53  ;;  %v15707_v6 = vpop.permute.xlu0 %7152 }
 0xd76   : > { %18505 = vst [vmem:[#allocation291_spill] sm:$0xff] %v15707_v6 }
 0xd78   : > { %8276 = vadd.xlane.f32.xlu0 %v8275_v59  ;;  %v10975_v59 = vsel %vm7402_vm2, 1.0, %v17700_v21  ;;  %v15718_v53 = vpop.permute.xlu1 %7156 }
 0xd79   : > { %8279 = vadd.xlane.f32.xlu1 %v8278_v11  ;;  %v18507_v11 = vld [vmem:[#allocation298_spill] sm:$0xff]  ;;  %18508 = vst [vmem:[#allocation292_spill] sm:$0xff] %v15718_v53  ;;  %v8290_v32 = vsel %vm747_vm0, %v10975_v59, 0.0  ;;  %v15723_v42 = vpop.permute.xlu0 %7160  ;;  %v18566_v53 = vld [vmem:[#allocation340_spill] sm:$0xff] }
 0xd7a   : > { %vm7404_vm12 = vcmp.gt.f32.partialorder %v7213_v19, %v18507_v11  ;;  %18510 = vst [vmem:[#allocation293_spill] sm:$0xff] %v15723_v42  ;;  %v18511_v11 = vld [vmem:[#allocation300_spill] sm:$0xff] }
 0xd7b   : > { %vm7406_vm11 = vcmp.gt.f32.partialorder %v7217_v18, %v18511_v11  ;;  %v18533_v42 = vld [vmem:[#allocation276_spill] sm:$0xff] }
 0xd7c   : > { %8282 = vadd.xlane.f32.xlu0 %v8281_v44  ;;  %v18509_v44 = vld [vmem:[#allocation299_spill] sm:$0xff]  ;;  %v10979_v59 = vsel %vm7406_vm11, 1.0, %v17700_v21 }
 0xd7d   : > { %8285 = vadd.xlane.f32.xlu1 %v8284_v39  ;;  %vm7405_vm7 = vcmp.gt.f32.partialorder %v7213_v19, %v18509_v44  ;;  %v10977_v39 = vsel %vm7404_vm12, 1.0, %v17700_v21  ;;  %v18513_v19 = vld [vmem:[#allocation302_spill] sm:$0xff]  ;;  %v5930_v44 = vcombine.high %v5922_v1, %v5922_v1  ;;  %v15735_v40 = vpop.permute.xlu0 %7168 }
 0xd7e   : > { %v8296_v28 = vsel %vm747_vm0, %v10977_v39, 0.0  ;;  %vm7408_vm15 = vcmp.gt.f32.partialorder %v7217_v18, %v18513_v19  ;;  %18515 = vst [vmem:[#allocation295_spill] sm:$0xff] %v15735_v40  ;;  %v18516_v39 = vld [vmem:[#allocation303_spill] sm:$0xff]  ;;  %v8305_v19 = vsel %vm747_vm0, %v10980_v41, 0.0 }
 0xd7f   : > { %vm7409_vm4 = vcmp.gt.f32.partialorder %v7217_v18, %v18516_v39  ;;  %v10981_v5 = vsel %vm7408_vm15, 1.0, %v17700_v21  ;;  %v15744_v1 = vrot.slane %v5930_v44, %v12591_v36 }
 0xd80   : > { %8288 = vadd.xlane.f32.xlu0 %v8287_v2  ;;  %v10978_v2 = vsel %vm7405_vm7, 1.0, %v17700_v21 }
 0xd81   : > { %8291 = vadd.xlane.f32.xlu1 %v8290_v32  ;;  %v15733_v32 = vpop.permute.xlu1 %7164  ;;  %v8299_v11 = vsel %vm747_vm0, %v10978_v2, 0.0  ;;  %v8308_v2 = vsel %vm747_vm0, %v10981_v5, 0.0  ;;  %v15752_v39 = vpop.permute.xlu0 %7176  ;;  %v15758_v44 = vrot.slane %v15744_v1, %v11859_v4 }
 0xd82   : > { %18514 = vst [vmem:[#allocation294_spill] sm:$0xff] %v15733_v32  ;;  %18520 = vst [vmem:[#allocation297_spill] sm:$0xff] %v15752_v39  ;;  %v18523_v39 = vld [vmem:[#allocation308_spill] sm:$0xff]  ;;  %v18528_v32 = vld [vmem:[#allocation273_spill] sm:$0xff] }
 0xd83   : > { %vm7414_vm11 = vcmp.gt.f32.partialorder %v15758_v44, %v18523_v39 }
 0xd84   : > { %8294 = vadd.xlane.f32.xlu0 %v8293_v63  ;;  %v8302_v63 = vsel %vm747_vm0, %v10979_v59, 0.0  ;;  %v10982_v59 = vsel %vm7409_vm4, 1.0, %v17700_v21 }
 0xd85   : > { %8297 = vadd.xlane.f32.xlu1 %v8296_v28  ;;  %v18517_v28 = vld [vmem:[#allocation304_spill] sm:$0xff]  ;;  %v15747_v40 = vpop.permute.xlu1 %7172  ;;  %v8311_v41 = vsel %vm747_vm0, %v10982_v59, 0.0 }
 0xd86   : > { %vm7410_vm2 = vcmp.gt.f32.partialorder %v7217_v18, %v18517_v28  ;;  %18518 = vst [vmem:[#allocation296_spill] sm:$0xff] %v15747_v40  ;;  %v18521_v28 = vld [vmem:[#allocation306_spill] sm:$0xff]  ;;  %v18522_v40 = vld [vmem:[#allocation307_spill] sm:$0xff] }
 0xd87   : > { %vm7412_vm12 = vcmp.gt.f32.partialorder %v7217_v18, %v18521_v28  ;;  %vm7413_vm7 = vcmp.gt.f32.partialorder %v7217_v18, %v18522_v40 }
 0xd88   : > { %8300 = vadd.xlane.f32.xlu0 %v8299_v11  ;;  %v18519_v11 = vld [vmem:[#allocation305_spill] sm:$0xff] }
 0xd89   : > { %8303 = vadd.xlane.f32.xlu1 %v8302_v63  ;;  %vm7411_vm6 = vcmp.gt.f32.partialorder %v7217_v18, %v18519_v11  ;;  %v10983_v63 = vsel %vm7410_vm2, 1.0, %v17700_v21  ;;  %v15767_v28 = vpop.permute.xlu1 %7180  ;;  %v10987_v18 = vsel %vm7414_vm11, 1.0, %v17700_v21  ;;  %vm7418_vm2 = vcmp.gt.f32.partialorder %v15758_v44, %v18531_v52  ;;  %v18534_v52 = vld [vmem:[#allocation313_spill] sm:$0xff] }
 0xd8a   : > { %v8314_v5 = vsel %vm747_vm0, %v10983_v63, 0.0  ;;  %18524 = vst [vmem:[#allocation298_spill] sm:$0xff] %v15767_v28  ;;  %v10986_v63 = vsel %vm7413_vm7, 1.0, %v17700_v21  ;;  %v8326_v45 = vsel %vm747_vm0, %v10987_v18, 0.0  ;;  %v18532_v18 = vld [vmem:[#allocation275_spill] sm:$0xff] }
 0xd8c   : > { %8306 = vadd.xlane.f32.xlu0 %v8305_v19  ;;  %v10984_v19 = vsel %vm7411_vm6, 1.0, %v17700_v21  ;;  %vm7419_vm6 = vcmp.gt.f32.partialorder %v15758_v44, %v18534_v52 }
 0xd8d   : > { %8309 = vadd.xlane.f32.xlu1 %v8308_v2  ;;  %v10985_v2 = vsel %vm7412_vm12, 1.0, %v17700_v21  ;;  %v8317_v46 = vsel %vm747_vm0, %v10984_v19, 0.0 }
 0xd8e   : > { %v8320_v59 = vsel %vm747_vm0, %v10985_v2, 0.0  ;;  %v18529_v2 = vld [vmem:[#allocation274_spill] sm:$0xff] }
 0xd90   : > { %8312 = vadd.xlane.f32.xlu0 %v8311_v41  ;;  %v18525_v41 = vld [vmem:[#allocation309_spill] sm:$0xff] }
 0xd91   : > { %v8112_v11 = vpop.xlane.xlu0 %8111  ;;  %8315 = vadd.xlane.f32.xlu1 %v8314_v5  ;;  %vm7415_vm8 = vcmp.gt.f32.partialorder %v15758_v44, %v18525_v41  ;;  %v18526_v5 = vld [vmem:[#allocation310_spill] sm:$0xff] }
 0xd92   : > { %vm7416_vm15 = vcmp.gt.f32.partialorder %v15758_v44, %v18526_v5  ;;  %v9139_v28 = vrot.slane %v8112_v11, %v18527_v25  ;;  %v10988_v41 = vsel %vm7415_vm8, 1.0, %v17700_v21 }
 0xd93   : > { %v10989_v11 = vsel %vm7416_vm15, 1.0, %v17700_v21 }
 0xd94   : > { %8318 = vadd.xlane.f32.xlu0 %v8317_v46  ;;  %v8323_v46 = vsel %vm747_vm0, %v10986_v63, 0.0  ;;  %v5960_v63 = vcombine.high %v15703_v9, %v15703_v9 }
 0xd95   : > { %v8118_v40 = vpop.xlane.xlu0 %8117  ;;  %8321 = vadd.xlane.f32.xlu1 %v8320_v59  ;;  %v18530_v59 = vld [vmem:[#allocation311_spill] sm:$0xff] }
 0xd96   : > { %v8115_v39 = vpop.xlane.xlu1 %8114  ;;  %v9151_v56 = vrot.slane %v8118_v40, %v18529_v2  ;;  %vm7417_vm4 = vcmp.gt.f32.partialorder %v15758_v44, %v18530_v59  ;;  %v8329_v59 = vsel %vm747_vm0, %v10988_v41, 0.0  ;;  %v15805_v41 = vrot.slane %v5960_v63, %v11859_v4 }
 0xd97   : > { %v9144_v19 = vrot.slane %v8115_v39, %v18528_v32 }
 0xd98   : > { %8324 = vadd.xlane.f32.xlu0 %v8323_v46  ;;  %vm7422_vm11 = vcmp.gt.f32.partialorder %v15805_v41, %v18539_v12 }
 0xd99   : > { %v9146_v23 = vsel %vm4163_vm9, %v9144_v19, %v9139_v28  ;;  %v8121_v5 = vpop.xlane.xlu0 %8120  ;;  %8327 = vadd.xlane.f32.xlu1 %v8326_v45  ;;  %v8332_v45 = vsel %vm747_vm0, %v10989_v11, 0.0  ;;  %v10990_v19 = vsel %vm7417_vm4, 1.0, %v17700_v21  ;;  %v10995_v12 = vsel %vm7422_vm11, 1.0, %v17700_v21 }
 0xd9a   : > { %v9153_v40 = vsel %vm4170_vm10, %v9151_v56, %v9146_v23  ;;  %v9158_v39 = vrot.slane %v8121_v5, %v18532_v18  ;;  %v8124_v46 = vpop.xlane.xlu1 %8123  ;;  %v10991_v56 = vsel %vm7418_vm2, 1.0, %v17700_v21  ;;  %v18535_v5 = vld [vmem:[#allocation314_spill] sm:$0xff]  ;;  %v8335_v47 = vsel %vm747_vm0, %v10990_v19, 0.0  ;;  %v18540_v19 = vld [vmem:[#allocation279_spill] sm:$0xff] }
 0xd9b   : > { %v9165_v33 = vrot.slane %v8124_v46, %v18533_v42  ;;  %vm7420_vm12 = vcmp.gt.f32.partialorder %v15758_v44, %v18535_v5  ;;  %v18537_v46 = vld [vmem:[#allocation278_spill] sm:$0xff]  ;;  %vm7426_vm2 = vcmp.gt.f32.partialorder %v15805_v41, %v18544_v16 }
 0xd9c   : > { %v9160_v28 = vsel %vm4177_vm13, %v9158_v39, %v9153_v40  ;;  %8330 = vadd.xlane.f32.xlu0 %v8329_v59  ;;  %v18536_v40 = vld [vmem:[#allocation277_spill] sm:$0xff] }
 0xd9d   : > { %v9167_v9 = vsel %vm4184_vm14, %v9165_v33, %v9160_v28  ;;  %v8127_v23 = vpop.xlane.xlu0 %8126  ;;  %8333 = vadd.xlane.f32.xlu1 %v8332_v45  ;;  %v8338_v33 = vsel %vm747_vm0, %v10991_v56, 0.0  ;;  %v10992_v28 = vsel %vm7419_vm6, 1.0, %v17700_v21  ;;  %v18538_v45 = vld [vmem:[#allocation315_spill] sm:$0xff] }
 0xd9e   : > { %v9172_v39 = vrot.slane %v8127_v23, %v18536_v40  ;;  %v8130_v11 = vpop.xlane.xlu1 %8129  ;;  %vm7421_vm7 = vcmp.gt.f32.partialorder %v15758_v44, %v18538_v45  ;;  %v10993_v23 = vsel %vm7420_vm12, 1.0, %v17700_v21 }
 0xd9f   : > { %v9179_v59 = vrot.slane %v8130_v11, %v18537_v46  ;;  %v8344_v44 = vsel %vm747_vm0, %v10993_v23, 0.0 }
 0xda0   : > { %v9174_v52 = vsel %vm4191_vm1, %v9172_v39, %v9167_v9  ;;  %8336 = vadd.xlane.f32.xlu0 %v8335_v47  ;;  %v8341_v47 = vsel %vm747_vm0, %v10992_v28, 0.0  ;;  %v10994_v39 = vsel %vm7421_vm7, 1.0, %v17700_v21 }
 0xda1   : > { %v9181_v63 = vsel %vm4198_vm3, %v9179_v59, %v9174_v52  ;;  %v8133_v5 = vpop.xlane.xlu0 %8132  ;;  %8339 = vadd.xlane.f32.xlu1 %v8338_v33  ;;  %v18541_v59 = vld [vmem:[#allocation317_spill] sm:$0xff]  ;;  %v18542_v33 = vld [vmem:[#allocation318_spill] sm:$0xff]  ;;  %v8347_v23 = vsel %vm747_vm0, %v10994_v39, 0.0  ;;  %v5962_v39 = vcombine.high %v15744_v1, %v15744_v1 }
 0xda2   : > { %v9186_v11 = vrot.slane %v8133_v5, %v18540_v19  ;;  %v8136_v9 = vpop.xlane.xlu1 %8135  ;;  %vm7423_vm8 = vcmp.gt.f32.partialorder %v15805_v41, %v18541_v59  ;;  %vm7424_vm15 = vcmp.gt.f32.partialorder %v15805_v41, %v18542_v33  ;;  %v18543_v59 = vld [vmem:[#allocation319_spill] sm:$0xff] }
 0xda3   : > { %v9192_v28 = vrot.slane %v8136_v9, %v18527_v25  ;;  %vm7425_vm4 = vcmp.gt.f32.partialorder %v15805_v41, %v18543_v59  ;;  %v10999_v59 = vsel %vm7426_vm2, 1.0, %v17700_v21 }
 0xda4   : > { %v15822_v56 = vsel %vm4205_vm5, %v9186_v11, %v9181_v63  ;;  %8342 = vadd.xlane.f32.xlu0 %v8341_v47  ;;  %v8350_v47 = vsel %vm747_vm0, %v10995_v12, 0.0 }
 0xda5   : > { %v8139_v52 = vpop.xlane.xlu0 %8138  ;;  %8345 = vadd.xlane.f32.xlu1 %v8344_v44  ;;  %v10996_v44 = vsel %vm7423_vm8, 1.0, %v17700_v21 }
 0xda6   : > { %v9196_v45 = vrot.slane %v8139_v52, %v18528_v32  ;;  %v8142_v63 = vpop.xlane.xlu1 %8141  ;;  %v10997_v52 = vsel %vm7424_vm15, 1.0, %v17700_v21  ;;  %vm18550_vm15 = vcmask 1041409  }
 0xda7   : > { %v9201_v5 = vrot.slane %v8142_v63, %v18529_v2  ;;  %v8353_v63 = vsel %vm747_vm0, %v10996_v44, 0.0  ;;  %v15859_v44 = vrot.slane %v5962_v39, %v11859_v4 }
 0xda8   : > { %v9197_v11 = vsel %vm4163_vm9, %v9196_v45, %v9192_v28  ;;  %8348 = vadd.xlane.f32.xlu0 %v8347_v23 }
 0xda9   : > { %v9202_v33 = vsel %vm4170_vm10, %v9201_v5, %v9197_v11  ;;  %v8145_v9 = vpop.xlane.xlu0 %8144  ;;  %8351 = vadd.xlane.f32.xlu1 %v8350_v47  ;;  %v8356_v5 = vsel %vm747_vm0, %v10997_v52, 0.0  ;;  %v10998_v11 = vsel %vm7425_vm4, 1.0, %v17700_v21  ;;  %v18545_v47 = vld [vmem:[#allocation321_spill] sm:$0xff] }
 0xdaa   : > { %v9206_v28 = vrot.slane %v8145_v9, %v18532_v18  ;;  %v8148_v12 = vpop.xlane.xlu1 %8147  ;;  %vm7427_vm6 = vcmp.gt.f32.partialorder %v15805_v41, %v18545_v47  ;;  %v18546_v9 = vld [vmem:[#allocation322_spill] sm:$0xff] }
 0xdab   : > { %v9211_v45 = vrot.slane %v8148_v12, %v18533_v42  ;;  %vm7428_vm12 = vcmp.gt.f32.partialorder %v15805_v41, %v18546_v9  ;;  %v8359_v12 = vsel %vm747_vm0, %v10998_v11, 0.0  ;;  %v18548_v9 = vld [vmem:[#allocation324_spill] sm:$0xff]  ;;  %v5915_v11 = vcombine.high %v15692_v50, %v15692_v50 }
 0xdac   : > { %v9207_v23 = vsel %vm4177_vm13, %v9206_v28, %v9202_v33  ;;  %8354 = vadd.xlane.f32.xlu0 %v8353_v63  ;;  %vm7430_vm11 = vcmp.gt.f32.partialorder %v15859_v44, %v18548_v9 }
 0xdad   : > { %v9212_v16 = vsel %vm4184_vm14, %v9211_v45, %v9207_v23  ;;  %v8151_v1 = vpop.xlane.xlu0 %8150  ;;  %8357 = vadd.xlane.f32.xlu1 %v8356_v5  ;;  %v8362_v45 = vsel %vm747_vm0, %v10999_v59, 0.0  ;;  %v11000_v23 = vsel %vm7427_vm6, 1.0, %v17700_v21  ;;  %v18547_v5 = vld [vmem:[#allocation323_spill] sm:$0xff]  ;;  %v11003_v50 = vsel %vm7430_vm11, 1.0, %v17700_v21 }
 0xdae   : > { %v9216_v33 = vrot.slane %v8151_v1, %v18536_v40  ;;  %v8154_v52 = vpop.xlane.xlu1 %8153  ;;  %vm7429_vm7 = vcmp.gt.f32.partialorder %v15805_v41, %v18547_v5  ;;  %v11001_v1 = vsel %vm7428_vm12, 1.0, %v17700_v21  ;;  %v18551_v5 = vld [vmem:[#allocation326_spill] sm:$0xff] }
 0xdaf   : > { %v9221_v28 = vrot.slane %v8154_v52, %v18537_v46  ;;  %v8368_v41 = vsel %vm747_vm0, %v11001_v1, 0.0  ;;  %vm7432_vm4 = vcmp.gt.f32.partialorder %v15859_v44, %v18551_v5 }
 0xdb0   : > { %v9217_v63 = vsel %vm4191_vm1, %v9216_v33, %v9212_v16  ;;  %8360 = vadd.xlane.f32.xlu0 %v8359_v12  ;;  %v8365_v33 = vsel %vm747_vm0, %v11000_v23, 0.0  ;;  %v18549_v12 = vld [vmem:[#allocation325_spill] sm:$0xff]  ;;  %v15888_v23 = vrot.slane %v5915_v11, %v12591_v36 }
 0xdb1   : > { %v9222_v39 = vsel %vm4198_vm3, %v9221_v28, %v9217_v63  ;;  %v8157_v47 = vpop.xlane.xlu0 %8156  ;;  %8363 = vadd.xlane.f32.xlu1 %v8362_v45  ;;  %v11002_v28 = vsel %vm7429_vm7, 1.0, %v17700_v21  ;;  %vm7431_vm8 = vcmp.gt.f32.partialorder %v15859_v44, %v18549_v12  ;;  %v11005_v12 = vsel %vm7432_vm4, 1.0, %v17700_v21 }
 0xdb2   : > { %v9226_v16 = vrot.slane %v8157_v47, %v18540_v19  ;;  %v8160_v59 = vpop.xlane.xlu1 %8159  ;;  %vm18559_vm4 = vcmask 1042434  }
 0xdb4   : > { %v9227_v52 = vsel %vm4205_vm5, %v9226_v16, %v9222_v39  ;;  %8366 = vadd.xlane.f32.xlu0 %v8365_v33  ;;  %v9231_v39 = vrot.slane %v8160_v59, %v18527_v25  ;;  %v8371_v16 = vsel %vm747_vm0, %v11002_v28, 0.0  ;;  %v8374_v33 = vsel %vm747_vm0, %v11003_v50, 0.0 }
 0xdb5   : > { %v10399_v63 = vsel %vm18550_vm15, %v9227_v52, %v15822_v56  ;;  %v8163_v45 = vpop.xlane.xlu0 %8162  ;;  %8369 = vadd.xlane.f32.xlu1 %v8368_v41  ;;  %v11004_v52 = vsel %vm7431_vm8, 1.0, %v17700_v21  ;;  %v18552_v41 = vld [vmem:[#allocation327_spill] sm:$0xff]  ;;  %v15905_v28 = vrot.slane %v15888_v23, %v12591_v36 }
 0xdb6   : > { %v9235_v47 = vrot.slane %v8163_v45, %v18528_v32  ;;  %v8166_v1 = vpop.xlane.xlu1 %8165  ;;  %vm7433_vm2 = vcmp.gt.f32.partialorder %v15859_v44, %v18552_v41  ;;  %v18553_v45 = vld [vmem:[#allocation328_spill] sm:$0xff] }
 0xdb7   : > { %v9240_v9 = vrot.slane %v8166_v1, %v18529_v2  ;;  %vm7434_vm6 = vcmp.gt.f32.partialorder %v15859_v44, %v18553_v45  ;;  %v18555_v45 = vld [vmem:[#allocation330_spill] sm:$0xff] }
 0xdb8   : > { %v9236_v56 = vsel %vm4163_vm9, %v9235_v47, %v9231_v39  ;;  %8372 = vadd.xlane.f32.xlu0 %v8371_v16  ;;  %v8377_v47 = vsel %vm747_vm0, %v11004_v52, 0.0  ;;  %v11006_v16 = vsel %vm7433_vm2, 1.0, %v17700_v21  ;;  %vm7436_vm7 = vcmp.gt.f32.partialorder %v15859_v44, %v18555_v45 }
 0xdb9   : > { %v9241_v11 = vsel %vm4170_vm10, %v9240_v9, %v9236_v56  ;;  %v8169_v59 = vpop.xlane.xlu0 %8168  ;;  %8375 = vadd.xlane.f32.xlu1 %v8374_v33  ;;  %v8380_v9 = vsel %vm747_vm0, %v11005_v12, 0.0  ;;  %v18554_v56 = vld [vmem:[#allocation329_spill] sm:$0xff]  ;;  %v15921_v52 = vrot.slane %v15905_v28, %v11859_v4 }
 0xdba   : > { %v9245_v50 = vrot.slane %v8169_v59, %v18532_v18  ;;  %v8172_v5 = vpop.xlane.xlu1 %8171  ;;  %vm7435_vm12 = vcmp.gt.f32.partialorder %v15859_v44, %v18554_v56  ;;  %v11007_v59 = vsel %vm7434_vm6, 1.0, %v17700_v21 }
 0xdbb   : > { %v9250_v39 = vrot.slane %v8172_v5, %v18533_v42  ;;  %v8383_v5 = vsel %vm747_vm0, %v11006_v16, 0.0  ;;  %vm7438_vm8 = vcmp.gt.f32.partialorder %v15921_v52, %v18557_v58 }
 0xdbc   : > { %v9246_v1 = vsel %vm4177_vm13, %v9245_v50, %v9241_v11  ;;  %8378 = vadd.xlane.f32.xlu0 %v8377_v47  ;;  %v8386_v47 = vsel %vm747_vm0, %v11007_v59, 0.0  ;;  %v11011_v58 = vsel %vm7438_vm8, 1.0, %v17700_v21 }
 0xdbd   : > { %v9251_v33 = vsel %vm4184_vm14, %v9250_v39, %v9246_v1  ;;  %v8175_v41 = vpop.xlane.xlu0 %8174  ;;  %8381 = vadd.xlane.f32.xlu1 %v8380_v9  ;;  %v11008_v1 = vsel %vm7435_vm12, 1.0, %v17700_v21  ;;  %v18556_v9 = vld [vmem:[#allocation331_spill] sm:$0xff] }
 0xdbe   : > { %v9255_v11 = vrot.slane %v8175_v41, %v18536_v40  ;;  %v8178_v12 = vpop.xlane.xlu1 %8177  ;;  %vm7437_vm11 = vcmp.gt.f32.partialorder %v15859_v44, %v18556_v9  ;;  %v11009_v41 = vsel %vm7436_vm7, 1.0, %v17700_v21 }
 0xdbf   : > { %v9260_v50 = vrot.slane %v8178_v12, %v18537_v46  ;;  %v8392_v12 = vsel %vm747_vm0, %v11009_v41, 0.0  ;;  %v11010_v44 = vsel %vm7437_vm11, 1.0, %v17700_v21 }
 0xdc0   : > { %v9256_v39 = vsel %vm4191_vm1, %v9255_v11, %v9251_v33  ;;  %8384 = vadd.xlane.f32.xlu0 %v8383_v5  ;;  %v8389_v11 = vsel %vm747_vm0, %v11008_v1, 0.0  ;;  %v5931_v1 = vcombine.high %v15888_v23, %v15888_v23 }
 0xdc1   : > { %v9261_v56 = vsel %vm4198_vm3, %v9260_v50, %v9256_v39  ;;  %v8181_v45 = vpop.xlane.xlu0 %8180  ;;  %8387 = vadd.xlane.f32.xlu1 %v8386_v47  ;;  %v18558_v50 = vld [vmem:[#allocation333_spill] sm:$0xff]  ;;  %v18560_v47 = vld [vmem:[#allocation334_spill] sm:$0xff] }
 0xdc2   : > { %v9265_v16 = vrot.slane %v8181_v45, %v18540_v19  ;;  %v8184_v33 = vpop.xlane.xlu1 %8183  ;;  %vm7439_vm15 = vcmp.gt.f32.partialorder %v15921_v52, %v18558_v50  ;;  %vm7440_vm2 = vcmp.gt.f32.partialorder %v15921_v52, %v18560_v47 }
 0xdc3   : > { %v9270_v9 = vrot.slane %v8184_v33, %v18527_v25  ;;  %v11013_v50 = vsel %vm7440_vm2, 1.0, %v17700_v21  ;;  %vm18568_vm2 = vcmask 1043459  }
 0xdc4   : > { %v9266_v59 = vsel %vm4205_vm5, %v9265_v16, %v9261_v56  ;;  %8390 = vadd.xlane.f32.xlu0 %v8389_v11  ;;  %v8395_v16 = vsel %vm747_vm0, %v11010_v44, 0.0  ;;  %v8398_v11 = vsel %vm747_vm0, %v11011_v58, 0.0  ;;  %v15962_v44 = vrot.slane %v5931_v1, %v12591_v36 }
 0xdc5   : > { %v10401_v5 = vsel %vm18559_vm4, %v9266_v59, %v10399_v63  ;;  %v8187_v39 = vpop.xlane.xlu0 %8186  ;;  %8393 = vadd.xlane.f32.xlu1 %v8392_v12  ;;  %v11012_v59 = vsel %vm7439_vm15, 1.0, %v17700_v21  ;;  %v18561_v12 = vld [vmem:[#allocation335_spill] sm:$0xff] }
 0xdc6   : > { %v9274_v56 = vrot.slane %v8187_v39, %v18528_v32  ;;  %v8190_v45 = vpop.xlane.xlu1 %8189  ;;  %vm7441_vm6 = vcmp.gt.f32.partialorder %v15921_v52, %v18561_v12  ;;  %v18562_v39 = vld [vmem:[#allocation336_spill] sm:$0xff]  ;;  %v18564_v12 = vld [vmem:[#allocation338_spill] sm:$0xff] }
 0xdc7   : > { %v9279_v41 = vrot.slane %v8190_v45, %v18529_v2  ;;  %vm7442_vm12 = vcmp.gt.f32.partialorder %v15921_v52, %v18562_v39  ;;  %vm7444_vm11 = vcmp.gt.f32.partialorder %v15921_v52, %v18564_v12 }
 0xdc8   : > { %v9275_v63 = vsel %vm4163_vm9, %v9274_v56, %v9270_v9  ;;  %8396 = vadd.xlane.f32.xlu0 %v8395_v16  ;;  %v8401_v56 = vsel %vm747_vm0, %v11012_v59, 0.0  ;;  %v11014_v16 = vsel %vm7441_vm6, 1.0, %v17700_v21  ;;  %v11015_v1 = vsel %vm7442_vm12, 1.0, %v17700_v21 }
 0xdc9   : > { %v9280_v23 = vsel %vm4170_vm10, %v9279_v41, %v9275_v63  ;;  %v8193_v33 = vpop.xlane.xlu0 %8192  ;;  %8399 = vadd.xlane.f32.xlu1 %v8398_v11  ;;  %v8404_v41 = vsel %vm747_vm0, %v11013_v50, 0.0  ;;  %v18563_v63 = vld [vmem:[#allocation337_spill] sm:$0xff]  ;;  %v15977_v59 = vrot.slane %v15962_v44, %v11859_v4 }
 0xdca   : > { %v9284_v47 = vrot.slane %v8193_v33, %v18532_v18  ;;  %v8196_v58 = vpop.xlane.xlu1 %8195  ;;  %vm7443_vm7 = vcmp.gt.f32.partialorder %v15921_v52, %v18563_v63  ;;  %v18565_v63 = vld [vmem:[#allocation339_spill] sm:$0xff] }
 0xdcb   : > { %v9289_v9 = vrot.slane %v8196_v58, %v18533_v42  ;;  %vm7445_vm8 = vcmp.gt.f32.partialorder %v15921_v52, %v18565_v63  ;;  %vm7446_vm15 = vcmp.gt.f32.partialorder %v15977_v59, %v18566_v53 }
 0xdcc   : > { %v9285_v45 = vsel %vm4177_vm13, %v9284_v47, %v9280_v23  ;;  %8402 = vadd.xlane.f32.xlu0 %v8401_v56  ;;  %v8407_v47 = vsel %vm747_vm0, %v11014_v16, 0.0  ;;  %v8410_v56 = vsel %vm747_vm0, %v11015_v1, 0.0 }
 0xdcd   : > { %v8199_v11 = vpop.xlane.xlu0 %8198  ;;  %8405 = vadd.xlane.f32.xlu1 %v8404_v41  ;;  %v9290_v50 = vsel %vm4184_vm14, %v9289_v9, %v9285_v45  ;;  %v11016_v41 = vsel %vm7443_vm7, 1.0, %v17700_v21 }
 0xdce   : > { %v9294_v23 = vrot.slane %v8199_v11, %v18536_v40  ;;  %v8202_v33 = vpop.xlane.xlu1 %8201  ;;  %v11017_v11 = vsel %vm7444_vm11, 1.0, %v17700_v21  ;;  %v8413_v1 = vsel %vm747_vm0, %v11016_v41, 0.0 }
 0xdcf   : > { %v9299_v39 = vrot.slane %v8202_v33, %v18537_v46  ;;  %v8416_v52 = vsel %vm747_vm0, %v11017_v11, 0.0  ;;  %v11018_v33 = vsel %vm7445_vm8, 1.0, %v17700_v21  ;;  %v18570_v11 = vld [vmem:[#allocation343_spill] sm:$0xff] }
 0xdd0   : > { %v9295_v58 = vsel %vm4191_vm1, %v9294_v23, %v9290_v50  ;;  %8408 = vadd.xlane.f32.xlu0 %v8407_v47  ;;  %v18567_v50 = vld [vmem:[#allocation341_spill] sm:$0xff]  ;;  %v8419_v41 = vsel %vm747_vm0, %v11018_v33, 0.0  ;;  %vm7449_vm12 = vcmp.gt.f32.partialorder %v15977_v59, %v18570_v11 }
 0xdd1   : > { %v8205_v12 = vpop.xlane.xlu0 %8204  ;;  %8411 = vadd.xlane.f32.xlu1 %v8410_v56  ;;  %v9300_v16 = vsel %vm4198_vm3, %v9299_v39, %v9295_v58  ;;  %vm7447_vm4 = vcmp.gt.f32.partialorder %v15977_v59, %v18567_v50  ;;  %v11019_v39 = vsel %vm7446_vm15, 1.0, %v17700_v21  ;;  %v18569_v58 = vld [vmem:[#allocation342_spill] sm:$0xff]  ;;  %v11022_v50 = vsel %vm7449_vm12, 1.0, %v17700_v21 }
 0xdd2   : > { %v9304_v9 = vrot.slane %v8205_v12, %v18540_v19  ;;  %v15992_v45 = vpop.xlane.xlu1 %8207  ;;  %vm7448_vm6 = vcmp.gt.f32.partialorder %v15977_v59, %v18569_v58  ;;  %v8422_v63 = vsel %vm747_vm0, %v11019_v39, 0.0  ;;  %v11020_v12 = vsel %vm7447_vm4, 1.0, %v17700_v21  ;;  %v18572_v39 = vld [vmem:[#allocation345_spill] sm:$0xff] }
 0xdd3   : > { %vm7451_vm11 = vcmp.gt.f32.partialorder %v15977_v59, %v18572_v39 }
 0xdd4   : > { %v9305_v23 = vsel %vm4205_vm5, %v9304_v9, %v9300_v16  ;;  %8414 = vadd.xlane.f32.xlu0 %v8413_v1  ;;  %v11021_v9 = vsel %vm7448_vm6, 1.0, %v17700_v21  ;;  %v18571_v16 = vld [vmem:[#allocation344_spill] sm:$0xff]  ;;  %v5961_v1 = vcombine.high %v15905_v28, %v15905_v28 }
 0xdd5   : > { %v16002_v53 = vsel %vm18568_vm2, %v9305_v23, %v10401_v5  ;;  %v16004_v47 = vpop.xlane.xlu0 %8210  ;;  %8417 = vadd.xlane.f32.xlu1 %v8416_v52  ;;  %vm7450_vm7 = vcmp.gt.f32.partialorder %v15977_v59, %v18571_v16  ;;  %v8425_v52 = vsel %vm747_vm0, %v11020_v12, 0.0  ;;  %v8428_v33 = vsel %vm747_vm0, %v11021_v9, 0.0 }
 0xdd6   : > { %v16009_v56 = vpop.xlane.xlu1 %8213  ;;  %v7241_v28 = vrot.slane %v5961_v1, %v11859_v4  ;;  %v8431_v12 = vsel %vm747_vm0, %v11022_v50, 0.0  ;;  %v11024_v16 = vsel %vm7451_vm11, 1.0, %v17700_v21  ;;  %v9313_v49 = vrot.slane %v16004_v47, %v18528_v32 }
 0xdd7   : > { %v8437_v6 = vsel %vm747_vm0, %v11024_v16, 0.0  ;;  %v9309_v47 = vrot.slane %v15992_v45, %v18527_v25 }
 0xdd8   : > { %8420 = vadd.xlane.f32.xlu0 %v8419_v41  ;;  %v11023_v41 = vsel %vm7450_vm7, 1.0, %v17700_v21 }
 0xdd9   : > { %v16016_v5 = vpop.xlane.xlu0 %8216  ;;  %8423 = vadd.xlane.f32.xlu1 %v8422_v63  ;;  %v18573_v63 = vld [vmem:[#allocation346_spill] sm:$0xff]  ;;  %v8434_v9 = vsel %vm747_vm0, %v11023_v41, 0.0 }
 0xdda   : > { %v16023_v23 = vpop.xlane.xlu1 %8219  ;;  %vm7452_vm8 = vcmp.gt.f32.partialorder %v15977_v59, %v18573_v63  ;;  %v18575_v63 = vld [vmem:[#allocation348_spill] sm:$0xff] }
 0xddb   : > { %v11025_v39 = vsel %vm7452_vm8, 1.0, %v17700_v21  ;;  %vm7454_vm4 = vcmp.gt.f32.partialorder %v7241_v28, %v18575_v63 }
 0xddc   : > { %8426 = vadd.xlane.f32.xlu0 %v8425_v52  ;;  %v18574_v52 = vld [vmem:[#allocation347_spill] sm:$0xff]  ;;  %v8440_v50 = vsel %vm747_vm0, %v11025_v39, 0.0 }
 0xddd   : > { %v16030_v58 = vpop.xlane.xlu0 %8222  ;;  %8429 = vadd.xlane.f32.xlu1 %v8428_v33  ;;  %vm7453_vm15 = vcmp.gt.f32.partialorder %v15977_v59, %v18574_v52  ;;  %v11027_v59 = vsel %vm7454_vm4, 1.0, %v17700_v21  ;;  %v18578_v39 = vld [vmem:[#allocation351_spill] sm:$0xff] }
 0xdde   : > { %v16036_v11 = vpop.xlane.xlu1 %8225  ;;  %v11026_v41 = vsel %vm7453_vm15, 1.0, %v17700_v21  ;;  %vm7457_vm12 = vcmp.gt.f32.partialorder %v7241_v28, %v18578_v39  ;;  %v18580_v39 = vld [vmem:[#allocation353_spill] sm:$0xff] }
 0xddf   : > { %v8443_v63 = vsel %vm747_vm0, %v11026_v41, 0.0  ;;  %vm7459_vm11 = vcmp.gt.f32.partialorder %v7241_v28, %v18580_v39  ;;  %v18582_v39 = vld [vmem:[#allocation355_spill] sm:$0xff] }
 0xde0   : > { %8432 = vadd.xlane.f32.xlu0 %v8431_v12  ;;  %v18576_v12 = vld [vmem:[#allocation349_spill] sm:$0xff]  ;;  %vm7461_vm15 = vcmp.gt.f32.partialorder %v7241_v28, %v18582_v39 }
 0xde1   : > { %v16043_v33 = vpop.xlane.xlu0 %8228  ;;  %8435 = vadd.xlane.f32.xlu1 %v8434_v9  ;;  %vm7455_vm2 = vcmp.gt.f32.partialorder %v7241_v28, %v18576_v12  ;;  %v18577_v9 = vld [vmem:[#allocation350_spill] sm:$0xff]  ;;  %v18579_v12 = vld [vmem:[#allocation352_spill] sm:$0xff] }
 0xde2   : > { %v16047_v1 = vpop.xlane.xlu1 %8231  ;;  %vm7456_vm6 = vcmp.gt.f32.partialorder %v7241_v28, %v18577_v9  ;;  %v11028_v16 = vsel %vm7455_vm2, 1.0, %v17700_v21  ;;  %vm7458_vm7 = vcmp.gt.f32.partialorder %v7241_v28, %v18579_v12  ;;  %v5963_v9 = vcombine.high %v15962_v44, %v15962_v44  ;;  %v18581_v12 = vld [vmem:[#allocation354_spill] sm:$0xff] }
 0xde3   : > { %v8449_v41 = vsel %vm747_vm0, %v11028_v16, 0.0  ;;  %v11031_v37 = vsel %vm7458_vm7, 1.0, %v17700_v21  ;;  %vm7460_vm8 = vcmp.gt.f32.partialorder %v7241_v28, %v18581_v12  ;;  %v5971_v16 = vrot.slane %v16083_v27, %v12591_v36  ;;  %v18583_v12 = vld [vmem:[#allocation356_spill] sm:$0xff] }
 0xde4   : > { %8438 = vadd.xlane.f32.xlu0 %v8437_v6  ;;  %v8446_v6 = vsel %vm747_vm0, %v11027_v59, 0.0  ;;  %v7245_v44 = vrot.slane %v5963_v9, %v11859_v4  ;;  %v11033_v9 = vsel %vm7460_vm8, 1.0, %v17700_v21  ;;  %v11034_v28 = vsel %vm7461_vm15, 1.0, %v17700_v21 }
 0xde5   : > { %v16053_v15 = vpop.xlane.xlu0 %8234  ;;  %8441 = vadd.xlane.f32.xlu1 %v8440_v50  ;;  %v11029_v50 = vsel %vm7456_vm6, 1.0, %v17700_v21  ;;  %v16098_v24 = vrot.slane %v5971_v16, %v12591_v36  ;;  %v5979_v39 = vcombine.high %v5971_v16, %v5971_v16  ;;  %v18587_v16 = vld [vmem:[#allocation360_spill] sm:$0xff] }
 0xde6   : > { %v16057_v52 = vpop.xlane.xlu1 %8237  ;;  %v8452_v59 = vsel %vm747_vm0, %v11029_v50, 0.0  ;;  %vm7462_vm4 = vcmp.gt.f32.partialorder %v7245_v44, %v18583_v12  ;;  %vm7464_vm6 = vcmp.gt.f32.partialorder %v7245_v44, %v18585_v22  ;;  %vm7466_vm7 = vcmp.gt.f32.partialorder %v7245_v44, %v18587_v16  ;;  %v18590_v16 = vld [vmem:[#allocation363_spill] sm:$0xff] }
 0xde7   : > { %v11035_v12 = vsel %vm7462_vm4, 1.0, %v17700_v21  ;;  %v16121_v22 = vrot.slane %v5979_v39, %v12591_v36  ;;  %v11037_v10 = vsel %vm7464_vm6, 1.0, %v17700_v21  ;;  %vm7469_vm15 = vcmp.gt.f32.partialorder %v7245_v44, %v18590_v16 }
 0xde8   : > { %8444 = vadd.xlane.f32.xlu0 %v8443_v63  ;;  %v11030_v63 = vsel %vm7457_vm12, 1.0, %v17700_v21  ;;  %v8476_v48 = vsel %vm747_vm0, %v11037_v10, 0.0  ;;  %v11042_v20 = vsel %vm7469_vm15, 1.0, %v18594_v62  ;;  %v9314_v16 = vsel %vm4163_vm9, %v9313_v49, %v9309_v47 }
 0xde9   : > { %v16063_v30 = vpop.xlane.xlu0 %8240  ;;  %8447 = vadd.xlane.f32.xlu1 %v8446_v6  ;;  %v8455_v50 = vsel %vm747_vm0, %v11030_v63, 0.0 }
 0xdea   : > { %v16069_v55 = vpop.xlane.xlu1 %8243 }
 0xdec   : > { %8450 = vadd.xlane.f32.xlu0 %v8449_v41  ;;  %v8458_v41 = vsel %vm747_vm0, %v11031_v37, 0.0  ;;  %v8464_v37 = vsel %vm747_vm0, %v11033_v9, 0.0 }
 0xded   : > { %v16075_v6 = vpop.xlane.xlu0 %8246  ;;  %8453 = vadd.xlane.f32.xlu1 %v8452_v59  ;;  %v11032_v59 = vsel %vm7459_vm11, 1.0, %v17700_v21  ;;  %vm7467_vm11 = vcmp.gt.f32.partialorder %v7245_v44, %v18588_v35 }
 0xdee   : > { %v16080_v26 = vpop.xlane.xlu1 %8249  ;;  %v8461_v63 = vsel %vm747_vm0, %v11032_v59, 0.0  ;;  %v16112_v59 = vrot.slane %v16098_v24, %v11859_v4  ;;  %v11040_v39 = vsel %vm7467_vm11, 1.0, %v17700_v21 }
 0xdef   : > { %v8485_v13 = vsel %vm747_vm0, %v11040_v39, 0.0  ;;  %v9323_v39 = vrot.slane %v16016_v5, %v18532_v18 }
 0xdf0   : > { %8456 = vadd.xlane.f32.xlu0 %v8455_v50  ;;  %v18584_v50 = vld [vmem:[#allocation357_spill] sm:$0xff]  ;;  %vm7472_vm6 = vcmp.gt.f32.partialorder %v16112_v59, %v18593_v29  ;;  %v8491_v29 = vsel %vm747_vm0, %v11042_v20, 0.0  ;;  %v9328_v20 = vrot.slane %v16023_v23, %v18533_v42 }
 0xdf1   : > { %v16091_v17 = vpop.xlane.xlu0 %8252  ;;  %8459 = vadd.xlane.f32.xlu1 %v8458_v41  ;;  %vm7463_vm2 = vcmp.gt.f32.partialorder %v7245_v44, %v18584_v50  ;;  %v18586_v50 = vld [vmem:[#allocation359_spill] sm:$0xff] }
 0xdf2   : > { %v16095_v7 = vpop.xlane.xlu1 %8255  ;;  %v11036_v9 = vsel %vm7463_vm2, 1.0, %v17700_v21  ;;  %vm7465_vm12 = vcmp.gt.f32.partialorder %v7245_v44, %v18586_v50 }
 0xdf3   : > { %v8473_v50 = vsel %vm747_vm0, %v11036_v9, 0.0  ;;  %v11038_v35 = vsel %vm7465_vm12, 1.0, %v17700_v21  ;;  %v16143_v9 = vrot.slane %v16121_v22, %v11859_v4 }
 0xdf4   : > { %8462 = vadd.xlane.f32.xlu0 %v8461_v63  ;;  %v8467_v63 = vsel %vm747_vm0, %v11034_v28, 0.0  ;;  %v18589_v28 = vld [vmem:[#allocation362_spill] sm:$0xff]  ;;  %v8479_v10 = vsel %vm747_vm0, %v11038_v35, 0.0 }
 0xdf5   : > { %v16104_v41 = vpop.xlane.xlu0 %8258  ;;  %8465 = vadd.xlane.f32.xlu1 %v8464_v37  ;;  %v8470_v37 = vsel %vm747_vm0, %v11035_v12, 0.0  ;;  %vm7468_vm8 = vcmp.gt.f32.partialorder %v7245_v44, %v18589_v28  ;;  %v11039_v12 = vsel %vm7466_vm7, 1.0, %v17700_v21  ;;  %v9318_v44 = vrot.slane %v16009_v56, %v18529_v2 }
 0xdf6   : > { %v16108_v3 = vpop.xlane.xlu1 %8261  ;;  %v11041_v54 = vsel %vm7468_vm8, 1.0, %v18594_v62  ;;  %v8482_v51 = vsel %vm747_vm0, %v11039_v12, 0.0  ;;  %v18595_v12 = vld [vmem:[#allocation367_spill] sm:$0xff]  ;;  %vm7476_vm8 = vcmp.gt.f32.partialorder %v16112_v59, %v15244_v38 }
 0xdf7   : > { %vm7473_vm12 = vcmp.gt.f32.partialorder %v16112_v59, %v18595_v12  ;;  %v8488_v45 = vsel %vm747_vm0, %v11041_v54, 0.0  ;;  %v9357_v54 = vrot.slane %v16057_v52, %v18529_v2  ;;  %v9319_v52 = vsel %vm4170_vm10, %v9318_v44, %v9314_v16 }
 0xdf8   : > { %8468 = vadd.xlane.f32.xlu0 %v8467_v63  ;;  %v18591_v63 = vld [vmem:[#allocation364_spill] sm:$0xff] }
 0xdf9   : > { %v16123_v8 = vpop.xlane.xlu0 %8264  ;;  %8471 = vadd.xlane.f32.xlu1 %v8470_v37  ;;  %vm7470_vm4 = vcmp.gt.f32.partialorder %v16112_v59, %v18591_v63  ;;  %v18592_v37 = vld [vmem:[#allocation365_spill] sm:$0xff]  ;;  %v9348_v63 = vrot.slane %v16047_v1, %v18527_v25  ;;  %v9362_v1 = vrot.slane %v16063_v30, %v18532_v18  ;;  %v9324_v30 = vsel %vm4177_vm13, %v9323_v39, %v9319_v52  ;;  %v18596_v39 = vld [vmem:[#allocation368_spill] sm:$0xff] }
 0xdfa   : > { %v16127_v31 = vpop.xlane.xlu1 %8267  ;;  %vm7471_vm2 = vcmp.gt.f32.partialorder %v16112_v59, %v18592_v37  ;;  %v11043_v28 = vsel %vm7470_vm4, 1.0, %v18594_v62  ;;  %v9391_v37 = vrot.slane %v16104_v41, %v18528_v32  ;;  %v9387_v41 = vrot.slane %v16095_v7, %v18527_v25 }
 0xdfb   : > { %v11044_v35 = vsel %vm7471_vm2, 1.0, %v18594_v62  ;;  %v8494_v49 = vsel %vm747_vm0, %v11043_v28, 0.0  ;;  %v9396_v28 = vrot.slane %v16108_v3, %v18529_v2  ;;  %v9333_v7 = vrot.slane %v16030_v58, %v18536_v40 }
 0xdfc   : > { %8474 = vadd.xlane.f32.xlu0 %v8473_v50  ;;  %v8497_v47 = vsel %vm747_vm0, %v11044_v35, 0.0  ;;  %v9392_v35 = vsel %vm4163_vm9, %v9391_v37, %v9387_v41  ;;  %v9401_v12 = vrot.slane %v16123_v8, %v18532_v18  ;;  %v9367_v3 = vrot.slane %v16069_v55, %v18533_v42 }
 0xdfd   : > { %v16147_v21 = vpop.xlane.xlu0 %8270  ;;  %8477 = vadd.xlane.f32.xlu1 %v8476_v48  ;;  %v9352_v48 = vrot.slane %v16053_v15, %v18528_v32  ;;  %v11045_v15 = vsel %vm7472_vm6, 1.0, %v18594_v62  ;;  %vm7474_vm7 = vcmp.gt.f32.partialorder %v16112_v59, %v18596_v39  ;;  %v9372_v8 = vrot.slane %v16075_v6, %v18536_v40 }
 0xdfe   : > { %v16152_v50 = vpop.xlane.xlu1 %8273  ;;  %v9397_v55 = vsel %vm4170_vm10, %v9396_v28, %v9392_v35  ;;  %v9406_v37 = vrot.slane %v16127_v31, %v18533_v42  ;;  %v9343_v31 = vrot.slane %v16043_v33, %v18540_v19  ;;  %vm18600_vm2 = vcmask 1044484  }
 0xdff   : > { %v9353_v5 = vsel %vm4163_vm9, %v9352_v48, %v9348_v63  ;;  %v8500_v48 = vsel %vm747_vm0, %v11045_v15, 0.0  ;;  %v18597_v63 = vld [vmem:[#allocation369_spill] sm:$0xff]  ;;  %v9402_v6 = vsel %vm4177_vm13, %v9401_v12, %v9397_v55  ;;  %v9416_v33 = vrot.slane %v16152_v50, %v18537_v46  ;;  %v18598_v55 = vld [vmem:[#allocation370_spill] sm:$0xff] }
 0xe00   : > { %8480 = vadd.xlane.f32.xlu0 %v8479_v10  ;;  %v9358_v23 = vsel %vm4170_vm10, %v9357_v54, %v9353_v5  ;;  %vm7475_vm11 = vcmp.gt.f32.partialorder %v16112_v59, %v18597_v63  ;;  %v9338_v5 = vrot.slane %v16036_v11, %v18537_v46  ;;  %v9377_v11 = vrot.slane %v16080_v26, %v18537_v46 }
 0xe01   : > { %v16188_v56 = vpop.xlane.xlu0 %8276  ;;  %8483 = vadd.xlane.f32.xlu1 %v8482_v51  ;;  %v11046_v51 = vsel %vm7473_vm12, 1.0, %v18594_v62  ;;  %v9363_v58 = vsel %vm4177_vm13, %v9362_v1, %v9358_v23  ;;  %v9411_v1 = vrot.slane %v16147_v21, %v18536_v40  ;;  %vm7477_vm15 = vcmp.gt.f32.partialorder %v16112_v59, %v18598_v55 }
 0xe02   : > { %v8280_v10 = vpop.xlane.xlu1 %8279  ;;  %v9368_v28 = vsel %vm4184_vm14, %v9367_v3, %v9363_v58  ;;  %v9421_v26 = vrot.slane %v16188_v56, %v18540_v19  ;;  %v8503_v3 = vsel %vm747_vm0, %v11046_v51, 0.0  ;;  %v11048_v56 = vsel %vm7475_vm11, 1.0, %v18594_v62 }
 0xe03   : > { %vm18601_vm6 = vcmask 1045509   ;;  %vm18602_vm12 = vcmask 1046534   ;;  %vm18604_vm11 = vcmask 1047559  }
 0xe04   : > { %8486 = vadd.xlane.f32.xlu0 %v8485_v13  ;;  %v9426_v13 = vrot.slane %v8280_v10, %v18527_v25  ;;  %v9329_v10 = vsel %vm4184_vm14, %v9328_v20, %v9324_v30  ;;  %v9373_v30 = vsel %vm4191_vm1, %v9372_v8, %v9368_v28 }
 0xe05   : > { %v8283_v44 = vpop.xlane.xlu0 %8282  ;;  %8489 = vadd.xlane.f32.xlu1 %v8488_v45  ;;  %v9334_v52 = vsel %vm4191_vm1, %v9333_v7, %v9329_v10  ;;  %v9407_v7 = vsel %vm4184_vm14, %v9406_v37, %v9402_v6  ;;  %v18599_v10 = vld [vmem:[#allocation371_spill] sm:$0xff] }
 0xe06   : > { %v9430_v15 = vrot.slane %v8283_v44, %v18528_v32  ;;  %v8286_v16 = vpop.xlane.xlu1 %8285  ;;  %v9412_v44 = vsel %vm4191_vm1, %v9411_v1, %v9407_v7  ;;  %v9339_v50 = vsel %vm4198_vm3, %v9338_v5, %v9334_v52  ;;  %vm7478_vm4 = vcmp.gt.f32.partialorder %v16143_v9, %v18599_v10 }
 0xe07   : > { %v9435_v45 = vrot.slane %v8286_v16, %v18529_v2  ;;  %v9344_v51 = vsel %vm4205_vm5, %v9343_v31, %v9339_v50  ;;  %v9417_v58 = vsel %vm4198_vm3, %v9416_v33, %v9412_v44  ;;  %v8509_v31 = vsel %vm747_vm0, %v11048_v56, 0.0 }
 0xe08   : > { %v9431_v54 = vsel %vm4163_vm9, %v9430_v15, %v9426_v13  ;;  %8492 = vadd.xlane.f32.xlu0 %v8491_v29  ;;  %v9422_v63 = vsel %vm4205_vm5, %v9421_v26, %v9417_v58  ;;  %v10405_v5 = vsel %vm18600_vm2, %v9344_v51, %v16002_v53  ;;  %v11050_v53 = vsel %vm7477_vm15, 1.0, %v18594_v62 }
 0xe09   : > { %v8289_v41 = vpop.xlane.xlu0 %8288  ;;  %8495 = vadd.xlane.f32.xlu1 %v8494_v49  ;;  %v9436_v35 = vsel %vm4170_vm10, %v9435_v45, %v9431_v54  ;;  %v9382_v49 = vrot.slane %v16091_v17, %v18540_v19  ;;  %v11047_v17 = vsel %vm7474_vm7, 1.0, %v18594_v62  ;;  %v11049_v54 = vsel %vm7476_vm8, 1.0, %v18594_v62 }
 0xe0a   : > { %v9440_v29 = vrot.slane %v8289_v41, %v18532_v18  ;;  %v8292_v20 = vpop.xlane.xlu1 %8291  ;;  %v8506_v45 = vsel %vm747_vm0, %v11047_v17, 0.0  ;;  %v6009_v56 = vcombine.high %v16098_v24, %v16098_v24 }
 0xe0b   : > { %v9445_v21 = vrot.slane %v8292_v20, %v18533_v42  ;;  %v18603_v20 = vld [vmem:[#allocation372_spill] sm:$0xff] }
 0xe0c   : > { %v9441_v12 = vsel %vm4177_vm13, %v9440_v29, %v9436_v35  ;;  %8498 = vadd.xlane.f32.xlu0 %v8497_v47  ;;  %v8512_v29 = vsel %vm747_vm0, %v11049_v54, 0.0  ;;  %vm7479_vm7 = vcmp.gt.f32.partialorder %v16143_v9, %v18603_v20  ;;  %v11051_v35 = vsel %vm7478_vm4, 1.0, %v18594_v62 }
 0xe0d   : > { %v8295_v23 = vpop.xlane.xlu0 %8294  ;;  %8501 = vadd.xlane.f32.xlu1 %v8500_v48  ;;  %v9378_v48 = vsel %vm4198_vm3, %v9377_v11, %v9373_v30  ;;  %v9446_v15 = vsel %vm4184_vm14, %v9445_v21, %v9441_v12  ;;  %v18605_v21 = vld [vmem:[#allocation373_spill] sm:$0xff]  ;;  %v8515_v12 = vsel %vm747_vm0, %v11050_v53, 0.0  ;;  %v8518_v26 = vsel %vm747_vm0, %v11051_v35, 0.0 }
 0xe0e   : > { %v9450_v47 = vrot.slane %v8295_v23, %v18536_v40  ;;  %v8298_v13 = vpop.xlane.xlu1 %8297  ;;  %v9383_v39 = vsel %vm4205_vm5, %v9382_v49, %v9378_v48  ;;  %vm7480_vm8 = vcmp.gt.f32.partialorder %v16143_v9, %v18605_v21  ;;  %v11052_v23 = vsel %vm7479_vm7, 1.0, %v18594_v62  ;;  %v18611_v21 = vld [vmem:[#allocation379_spill] sm:$0xff] }
 0xe0f   : > { %v9455_v16 = vrot.slane %v8298_v13, %v18537_v46  ;;  %v10407_v41 = vsel %vm18601_vm6, %v9383_v39, %v10405_v5  ;;  %v18607_v13 = vld [vmem:[#allocation375_spill] sm:$0xff]  ;;  %vm7484_vm6 = vcmp.gt.f32.partialorder %v16143_v9, %v15262_v61 }
 0xe10   : > { %v9451_v8 = vsel %vm4191_vm1, %v9450_v47, %v9446_v15  ;;  %8504 = vadd.xlane.f32.xlu0 %v8503_v3  ;;  %v10409_v28 = vsel %vm18602_vm12, %v9422_v63, %v10407_v41  ;;  %v18606_v3 = vld [vmem:[#allocation374_spill] sm:$0xff]  ;;  %v11053_v47 = vsel %vm7480_vm8, 1.0, %v18594_v62  ;;  %vm7482_vm4 = vcmp.gt.f32.partialorder %v16143_v9, %v18607_v13 }
 0xe11   : > { %v8301_v37 = vpop.xlane.xlu0 %8300  ;;  %8507 = vadd.xlane.f32.xlu1 %v8506_v45  ;;  %v9456_v52 = vsel %vm4198_vm3, %v9455_v16, %v9451_v8  ;;  %vm7481_vm15 = vcmp.gt.f32.partialorder %v16143_v9, %v18606_v3  ;;  %v8521_v16 = vsel %vm747_vm0, %v11052_v23, 0.0  ;;  %v8524_v58 = vsel %vm747_vm0, %v11053_v47, 0.0  ;;  %v18608_v45 = vld [vmem:[#allocation376_spill] sm:$0xff]  ;;  %v18613_v47 = vld [vmem:[#allocation381_spill] sm:$0xff] }
 0xe12   : > { %v9460_v6 = vrot.slane %v8301_v37, %v18540_v19  ;;  %v8304_v1 = vpop.xlane.xlu1 %8303  ;;  %v11054_v8 = vsel %vm7481_vm15, 1.0, %v18594_v62  ;;  %vm7483_vm2 = vcmp.gt.f32.partialorder %v16143_v9, %v18608_v45  ;;  %v11055_v63 = vsel %vm7482_vm4, 1.0, %v18594_v62 }
 0xe13   : > { %v9465_v59 = vrot.slane %v8304_v1, %v18527_v25  ;;  %v16350_v37 = vrot.slane %v6009_v56, %v11859_v4  ;;  %v8530_v41 = vsel %vm747_vm0, %v11055_v63, 0.0  ;;  %v18615_v63 = vld [vmem:[#allocation383_spill] sm:$0xff] }
 0xe14   : > { %v9461_v38 = vsel %vm4205_vm5, %v9460_v6, %v9456_v52  ;;  %8510 = vadd.xlane.f32.xlu0 %v8509_v31  ;;  %v8527_v6 = vsel %vm747_vm0, %v11054_v8, 0.0  ;;  %v11056_v52 = vsel %vm7483_vm2, 1.0, %v18594_v62  ;;  %v18609_v31 = vld [vmem:[#allocation377_spill] sm:$0xff] }
 0xe15   : > { %v10411_v30 = vsel %vm18604_vm11, %v9461_v38, %v10409_v28  ;;  %v8307_v11 = vpop.xlane.xlu0 %8306  ;;  %8513 = vadd.xlane.f32.xlu1 %v8512_v29  ;;  %vm7485_vm12 = vcmp.gt.f32.partialorder %v16143_v9, %v18609_v31  ;;  %v11057_v38 = vsel %vm7484_vm6, 1.0, %v18594_v62  ;;  %v18610_v29 = vld [vmem:[#allocation378_spill] sm:$0xff]  ;;  %vm7487_vm11 = vcmp.gt.f32.partialorder %v16350_v37, %v18611_v21 }
 0xe16   : > { %10438 = vst.msk [vmem:[%s16312_s18] sm:$0xff] %vm747_vm0, %v10411_v30  ;;  %v9469_v49 = vrot.slane %v8307_v11, %v18528_v32  ;;  %v8310_v7 = vpop.xlane.xlu1 %8309  ;;  %vm7486_vm7 = vcmp.gt.f32.partialorder %v16350_v37, %v18610_v29  ;;  %v8533_v30 = vsel %vm747_vm0, %v11056_v52, 0.0  ;;  %v8536_v9 = vsel %vm747_vm0, %v11057_v38, 0.0  ;;  %v18616_v38 = vld [vmem:[#allocation384_spill] sm:$0xff] }
 0xe17   : > { %v9474_v33 = vrot.slane %v8310_v7, %v18529_v2  ;;  %v11058_v35 = vsel %vm7485_vm12, 1.0, %v18594_v62  ;;  %v18612_v7 = vld [vmem:[#allocation380_spill] sm:$0xff]  ;;  %vm7489_vm15 = vcmp.gt.f32.partialorder %v16350_v37, %v18613_v47  ;;  %vm7491_vm2 = vcmp.gt.f32.partialorder %v16350_v37, %v18615_v63 }
 0xe18   : > { %v9470_v44 = vsel %vm4163_vm9, %v9469_v49, %v9465_v59  ;;  %8516 = vadd.xlane.f32.xlu0 %v8515_v12  ;;  %v11059_v49 = vsel %vm7486_vm7, 1.0, %v18594_v62  ;;  %vm7488_vm8 = vcmp.gt.f32.partialorder %v16350_v37, %v18612_v7  ;;  %v8539_v23 = vsel %vm747_vm0, %v11058_v35, 0.0  ;;  %v18618_v7 = vld [vmem:[#allocation386_spill] sm:$0xff] }
 0xe19   : > { %v9475_v17 = vsel %vm4170_vm10, %v9474_v33, %v9470_v44  ;;  %v8313_v50 = vpop.xlane.xlu0 %8312  ;;  %8519 = vadd.xlane.f32.xlu1 %v8518_v26  ;;  %vm7492_vm6 = vcmp.gt.f32.partialorder %v16350_v37, %v15280_v0  ;;  %vm7493_vm12 = vcmp.gt.f32.partialorder %v16350_v37, %v18616_v38 }
 0xe1a   : > { %v9479_v51 = vrot.slane %v8313_v50, %v18532_v18  ;;  %v8316_v48 = vpop.xlane.xlu1 %8315  ;;  %v11060_v50 = vsel %vm7487_vm11, 1.0, %v18594_v62 }
 0xe1b   : > { %v9484_v15 = vrot.slane %v8316_v48, %v18533_v42  ;;  %v18614_v48 = vld [vmem:[#allocation382_spill] sm:$0xff]  ;;  %v8545_v8 = vsel %vm747_vm0, %v11060_v50, 0.0 }
 0xe1c   : > { %v9480_v39 = vsel %vm4177_vm13, %v9479_v51, %v9475_v17  ;;  %8522 = vadd.xlane.f32.xlu0 %v8521_v16  ;;  %v8542_v17 = vsel %vm747_vm0, %v11059_v49, 0.0  ;;  %v11061_v51 = vsel %vm7488_vm8, 1.0, %v18594_v62  ;;  %vm7490_vm4 = vcmp.gt.f32.partialorder %v16350_v37, %v18614_v48 }
 0xe1d   : > { %v9485_v55 = vsel %vm4184_vm14, %v9484_v15, %v9480_v39  ;;  %v8319_v24 = vpop.xlane.xlu0 %8318  ;;  %8525 = vadd.xlane.f32.xlu1 %v8524_v58  ;;  %v6011_v15 = vcombine.high %v16121_v22, %v16121_v22  ;;  %v11066_v49 = vsel %vm7493_vm12, 1.0, %v18594_v62  ;;  %vm18619_vm8 = vcmask 1041409  }
 0xe1e   : > { %v9489_v54 = vrot.slane %v8319_v24, %v18536_v40  ;;  %v8322_v10 = vpop.xlane.xlu1 %8321  ;;  %v11062_v24 = vsel %vm7489_vm15, 1.0, %v18594_v62  ;;  %v8563_v47 = vsel %vm747_vm0, %v11066_v49, 0.0 }
 0xe1f   : > { %v9494_v5 = vrot.slane %v8322_v10, %v18537_v46  ;;  %v11063_v10 = vsel %vm7490_vm4, 1.0, %v18594_v62  ;;  %v8551_v52 = vsel %vm747_vm0, %v11062_v24, 0.0 }
 0xe20   : > { %v9490_v1 = vsel %vm4191_vm1, %v9489_v54, %v9485_v55  ;;  %8528 = vadd.xlane.f32.xlu0 %v8527_v6  ;;  %v8548_v55 = vsel %vm747_vm0, %v11061_v51, 0.0  ;;  %v18621_v51 = vld [vmem:[#allocation388_spill] sm:$0xff] }
 0xe21   : > { %v9495_v61 = vsel %vm4198_vm3, %v9494_v5, %v9490_v1  ;;  %v8325_v28 = vpop.xlane.xlu0 %8324  ;;  %8531 = vadd.xlane.f32.xlu1 %v8530_v41  ;;  %v16404_v5 = vrot.slane %v6011_v15, %v11859_v4 }
 0xe22   : > { %v9499_v53 = vrot.slane %v8325_v28, %v18540_v19  ;;  %v8328_v20 = vpop.xlane.xlu1 %8327  ;;  %v11064_v28 = vsel %vm7491_vm2, 1.0, %v18594_v62 }
 0xe23   : > { %v9504_v33 = vrot.slane %v8328_v20, %v18527_v25  ;;  %v18617_v20 = vld [vmem:[#allocation385_spill] sm:$0xff]  ;;  %v8557_v21 = vsel %vm747_vm0, %v11064_v28, 0.0  ;;  %vm7495_vm11 = vcmp.gt.f32.partialorder %v16404_v5, %v18618_v7  ;;  %vm7497_vm4 = vcmp.gt.f32.partialorder %v16404_v5, %v18621_v51 }
 0xe24   : > { %v16367_v11 = vsel %vm4205_vm5, %v9499_v53, %v9495_v61  ;;  %8534 = vadd.xlane.f32.xlu0 %v8533_v30  ;;  %v8554_v61 = vsel %vm747_vm0, %v11063_v10, 0.0  ;;  %v11065_v53 = vsel %vm7492_vm6, 1.0, %v18594_v62  ;;  %vm7494_vm7 = vcmp.gt.f32.partialorder %v16404_v5, %v18617_v20  ;;  %v18623_v10 = vld [vmem:[#allocation390_spill] sm:$0xff]  ;;  %v18624_v20 = vld [vmem:[#allocation391_spill] sm:$0xff] }
 0xe25   : > { %v8331_v59 = vpop.xlane.xlu0 %8330  ;;  %8537 = vadd.xlane.f32.xlu1 %v8536_v9  ;;  %v5964_v30 = vcombine.high %v16083_v27, %v16083_v27  ;;  %v8560_v37 = vsel %vm747_vm0, %v11065_v53, 0.0  ;;  %v11067_v27 = vsel %vm7494_vm7, 1.0, %v18594_v62  ;;  %vm7499_vm6 = vcmp.gt.f32.partialorder %v16404_v5, %v18623_v10 }
 0xe26   : > { %v9508_v12 = vrot.slane %v8331_v59, %v18528_v32  ;;  %v8334_v44 = vpop.xlane.xlu1 %8333  ;;  %vm7500_vm12 = vcmp.gt.f32.partialorder %v16404_v5, %v15298_v34  ;;  %v11072_v53 = vsel %vm7499_vm6, 1.0, %v18594_v62  ;;  %vm7501_vm7 = vcmp.gt.f32.partialorder %v16404_v5, %v18624_v20 }
 0xe27   : > { %v9513_v26 = vrot.slane %v8334_v44, %v18529_v2  ;;  %v18620_v44 = vld [vmem:[#allocation387_spill] sm:$0xff] }
 0xe28   : > { %v9509_v3 = vsel %vm4163_vm9, %v9508_v12, %v9504_v33  ;;  %8540 = vadd.xlane.f32.xlu0 %v8539_v23  ;;  %vm7496_vm15 = vcmp.gt.f32.partialorder %v16404_v5, %v18620_v44 }
 0xe29   : > { %v9514_v13 = vsel %vm4170_vm10, %v9513_v26, %v9509_v3  ;;  %v8337_v56 = vpop.xlane.xlu0 %8336  ;;  %8543 = vadd.xlane.f32.xlu1 %v8542_v17  ;;  %v16433_v26 = vrot.slane %v5964_v30, %v12591_v36 }
 0xe2a   : > { %v9518_v16 = vrot.slane %v8337_v56, %v18532_v18  ;;  %v8340_v39 = vpop.xlane.xlu1 %8339  ;;  %v11068_v56 = vsel %vm7495_vm11, 1.0, %v18594_v62 }
 0xe2b   : > { %v9523_v58 = vrot.slane %v8340_v39, %v18533_v42  ;;  %v18622_v39 = vld [vmem:[#allocation389_spill] sm:$0xff]  ;;  %v8569_v24 = vsel %vm747_vm0, %v11068_v56, 0.0 }
 0xe2c   : > { %v9519_v45 = vsel %vm4177_vm13, %v9518_v16, %v9514_v13  ;;  %8546 = vadd.xlane.f32.xlu0 %v8545_v8  ;;  %v8566_v13 = vsel %vm747_vm0, %v11067_v27, 0.0  ;;  %v11069_v16 = vsel %vm7496_vm15, 1.0, %v18594_v62  ;;  %vm7498_vm2 = vcmp.gt.f32.partialorder %v16404_v5, %v18622_v39 }
 0xe2d   : > { %v9524_v54 = vsel %vm4184_vm14, %v9523_v58, %v9519_v45  ;;  %v8343_v22 = vpop.xlane.xlu0 %8342  ;;  %8549 = vadd.xlane.f32.xlu1 %v8548_v55  ;;  %v16450_v58 = vrot.slane %v16433_v26, %v12591_v36  ;;  %v11074_v5 = vsel %vm7501_vm7, 1.0, %v18594_v62  ;;  %vm18627_vm15 = vcmask 1042434  }
 0xe2e   : > { %v9528_v6 = vrot.slane %v8343_v22, %v18536_v40  ;;  %v8346_v1 = vpop.xlane.xlu1 %8345  ;;  %v11070_v22 = vsel %vm7497_vm4, 1.0, %v18594_v62  ;;  %v8587_v56 = vsel %vm747_vm0, %v11074_v5, 0.0 }
 0xe2f   : > { %v9533_v41 = vrot.slane %v8346_v1, %v18537_v46  ;;  %v8575_v38 = vsel %vm747_vm0, %v11070_v22, 0.0 }
 0xe30   : > { %v9529_v31 = vsel %vm4191_vm1, %v9528_v6, %v9524_v54  ;;  %8552 = vadd.xlane.f32.xlu0 %v8551_v52  ;;  %v8572_v54 = vsel %vm747_vm0, %v11069_v16, 0.0  ;;  %v16466_v52 = vrot.slane %v16450_v58, %v11859_v4 }
 0xe31   : > { %v9534_v0 = vsel %vm4198_vm3, %v9533_v41, %v9529_v31  ;;  %v8349_v29 = vpop.xlane.xlu0 %8348  ;;  %8555 = vadd.xlane.f32.xlu1 %v8554_v61  ;;  %v11071_v41 = vsel %vm7498_vm2, 1.0, %v18594_v62 }
 0xe32   : > { %v9538_v9 = vrot.slane %v8349_v29, %v18540_v19  ;;  %v8352_v35 = vpop.xlane.xlu1 %8351  ;;  %v8578_v29 = vsel %vm747_vm0, %v11071_v41, 0.0  ;;  %vm7508_vm7 = vcmp.gt.f32.partialorder %v16466_v52, %v15316_v57 }
 0xe33   : > { %v9543_v23 = vrot.slane %v8352_v35, %v18527_v25  ;;  %v18625_v35 = vld [vmem:[#allocation392_spill] sm:$0xff] }
 0xe34   : > { %v9539_v59 = vsel %vm4205_vm5, %v9538_v9, %v9534_v0  ;;  %8558 = vadd.xlane.f32.xlu0 %v8557_v21  ;;  %v11073_v9 = vsel %vm7500_vm12, 1.0, %v18594_v62  ;;  %vm7502_vm11 = vcmp.gt.f32.partialorder %v16466_v52, %v18625_v35  ;;  %v11081_v35 = vsel %vm7508_vm7, 1.0, %v18594_v62 }
 0xe35   : > { %v10412_v33 = vsel %vm18619_vm8, %v9539_v59, %v16367_v11  ;;  %v8355_v12 = vpop.xlane.xlu0 %8354  ;;  %8561 = vadd.xlane.f32.xlu1 %v8560_v37  ;;  %v8581_v37 = vsel %vm747_vm0, %v11072_v53, 0.0  ;;  %v8584_v7 = vsel %vm747_vm0, %v11073_v9, 0.0 }
 0xe36   : > { %v9547_v3 = vrot.slane %v8355_v12, %v18528_v32  ;;  %v8358_v17 = vpop.xlane.xlu1 %8357  ;;  %v18626_v12 = vld [vmem:[#allocation393_spill] sm:$0xff] }
 0xe37   : > { %v9552_v50 = vrot.slane %v8358_v17, %v18529_v2  ;;  %vm7503_vm8 = vcmp.gt.f32.partialorder %v16466_v52, %v18626_v12  ;;  %v5980_v17 = vcombine.high %v16433_v26, %v16433_v26 }
 0xe38   : > { %v9548_v11 = vsel %vm4163_vm9, %v9547_v3, %v9543_v23  ;;  %8564 = vadd.xlane.f32.xlu0 %v8563_v47  ;;  %v11075_v23 = vsel %vm7502_vm11, 1.0, %v18594_v62  ;;  %v18628_v3 = vld [vmem:[#allocation394_spill] sm:$0xff] }
 0xe39   : > { %v9553_v48 = vsel %vm4170_vm10, %v9552_v50, %v9548_v11  ;;  %v8361_v15 = vpop.xlane.xlu0 %8360  ;;  %8567 = vadd.xlane.f32.xlu1 %v8566_v13  ;;  %vm7504_vm4 = vcmp.gt.f32.partialorder %v16466_v52, %v18628_v3  ;;  %v8590_v51 = vsel %vm747_vm0, %v11075_v23, 0.0 }
 0xe3a   : > { %v9557_v8 = vrot.slane %v8361_v15, %v18532_v18  ;;  %v8364_v45 = vpop.xlane.xlu1 %8363  ;;  %v18629_v15 = vld [vmem:[#allocation395_spill] sm:$0xff]  ;;  %v11077_v39 = vsel %vm7504_vm4, 1.0, %v18594_v62  ;;  %vm18635_vm4 = vcmask 1043459  }
 0xe3b   : > { %v9562_v55 = vrot.slane %v8364_v45, %v18533_v42  ;;  %vm7505_vm2 = vcmp.gt.f32.partialorder %v16466_v52, %v18629_v15  ;;  %v16507_v45 = vrot.slane %v5980_v17, %v12591_v36  ;;  %v8596_v10 = vsel %vm747_vm0, %v11077_v39, 0.0 }
 0xe3c   : > { %v9558_v63 = vsel %vm4177_vm13, %v9557_v8, %v9553_v48  ;;  %8570 = vadd.xlane.f32.xlu0 %v8569_v24  ;;  %v11076_v48 = vsel %vm7503_vm8, 1.0, %v18594_v62  ;;  %v18630_v8 = vld [vmem:[#allocation396_spill] sm:$0xff]  ;;  %v6010_v15 = vcombine.high %v16450_v58, %v16450_v58 }
 0xe3d   : > { %v9563_v6 = vsel %vm4184_vm14, %v9562_v55, %v9558_v63  ;;  %v8367_v1 = vpop.xlane.xlu0 %8366  ;;  %8573 = vadd.xlane.f32.xlu1 %v8572_v54  ;;  %vm7506_vm6 = vcmp.gt.f32.partialorder %v16466_v52, %v18630_v8  ;;  %v8593_v54 = vsel %vm747_vm0, %v11076_v48, 0.0  ;;  %v18638_v48 = vld [vmem:[#allocation403_spill] sm:$0xff] }
 0xe3e   : > { %v9567_v31 = vrot.slane %v8367_v1, %v18536_v40  ;;  %v8370_v61 = vpop.xlane.xlu1 %8369  ;;  %v18631_v1 = vld [vmem:[#allocation397_spill] sm:$0xff]  ;;  %v7273_v58 = vrot.slane %v6010_v15, %v11859_v4 }
 0xe3f   : > { %v9572_v28 = vrot.slane %v8370_v61, %v18537_v46  ;;  %vm7507_vm12 = vcmp.gt.f32.partialorder %v16466_v52, %v18631_v1  ;;  %v16522_v61 = vrot.slane %v16507_v45, %v11859_v4  ;;  %v18640_v1 = vld [vmem:[#allocation405_spill] sm:$0xff] }
 0xe40   : > { %v9568_v0 = vsel %vm4191_vm1, %v9567_v31, %v9563_v6  ;;  %8576 = vadd.xlane.f32.xlu0 %v8575_v38  ;;  %v11078_v6 = vsel %vm7505_vm2, 1.0, %v18594_v62  ;;  %v11079_v31 = vsel %vm7506_vm6, 1.0, %v18594_v62  ;;  %v11080_v57 = vsel %vm7507_vm12, 1.0, %v18594_v62 }
 0xe41   : > { %v9573_v34 = vsel %vm4198_vm3, %v9572_v28, %v9568_v0  ;;  %v8373_v30 = vpop.xlane.xlu0 %8372  ;;  %8579 = vadd.xlane.f32.xlu1 %v8578_v29  ;;  %v8599_v53 = vsel %vm747_vm0, %v11078_v6, 0.0  ;;  %vm7514_vm12 = vcmp.gt.f32.partialorder %v16522_v61, %v18638_v48 }
 0xe42   : > { %v9577_v21 = vrot.slane %v8373_v30, %v18540_v19  ;;  %v8376_v59 = vpop.xlane.xlu1 %8375  ;;  %v18632_v30 = vld [vmem:[#allocation398_spill] sm:$0xff] }
 0xe43   : > { %v9582_v50 = vrot.slane %v8376_v59, %v18527_v25  ;;  %vm7509_vm11 = vcmp.gt.f32.partialorder %v16466_v52, %v18632_v30  ;;  %v8608_v52 = vsel %vm747_vm0, %v11081_v35, 0.0 }
 0xe44   : > { %v9578_v49 = vsel %vm4205_vm5, %v9577_v21, %v9573_v34  ;;  %8582 = vadd.xlane.f32.xlu0 %v8581_v37  ;;  %v8602_v34 = vsel %vm747_vm0, %v11079_v31, 0.0  ;;  %v18633_v21 = vld [vmem:[#allocation399_spill] sm:$0xff]  ;;  %v11082_v12 = vsel %vm7509_vm11, 1.0, %v18594_v62  ;;  %vm7516_vm11 = vcmp.gt.f32.partialorder %v16522_v61, %v15334_v14  ;;  %v18641_v14 = vld [vmem:[#allocation406_spill] sm:$0xff] }
 0xe45   : > { %v10413_v27 = vsel %vm18627_vm15, %v9578_v49, %v10412_v33  ;;  %v8379_v44 = vpop.xlane.xlu0 %8378  ;;  %8585 = vadd.xlane.f32.xlu1 %v8584_v7  ;;  %vm7510_vm8 = vcmp.gt.f32.partialorder %v16522_v61, %v18633_v21  ;;  %v8605_v7 = vsel %vm747_vm0, %v11080_v57, 0.0  ;;  %v11089_v31 = vsel %vm7516_vm11, 1.0, %v18594_v62  ;;  %v18644_v21 = vld [vmem:[#allocation409_spill] sm:$0xff] }
 0xe46   : > { %v9586_v47 = vrot.slane %v8379_v44, %v18528_v32  ;;  %v8382_v11 = vpop.xlane.xlu1 %8381  ;;  %v18634_v44 = vld [vmem:[#allocation400_spill] sm:$0xff]  ;;  %v11083_v17 = vsel %vm7510_vm8, 1.0, %v18594_v62  ;;  %vm7517_vm8 = vcmp.gt.f32.partialorder %v16522_v61, %v18640_v1  ;;  %vm7524_vm11 = vcmp.gt.f32.partialorder %v7273_v58, %v15352_v60 }
 0xe47   : > { %v9591_v13 = vrot.slane %v8382_v11, %v18529_v2  ;;  %vm7511_vm15 = vcmp.gt.f32.partialorder %v16522_v61, %v18634_v44  ;;  %v8611_v11 = vsel %vm747_vm0, %v11082_v12, 0.0  ;;  %v11097_v60 = vsel %vm7524_vm11, 1.0, %v18594_v62 }
 0xe48   : > { %v9587_v33 = vsel %vm4163_vm9, %v9586_v47, %v9582_v50  ;;  %8588 = vadd.xlane.f32.xlu0 %v8587_v56  ;;  %v18636_v50 = vld [vmem:[#allocation401_spill] sm:$0xff]  ;;  %v11084_v56 = vsel %vm7511_vm15, 1.0, %v18594_v62  ;;  %vm7518_vm15 = vcmp.gt.f32.partialorder %v7273_v58, %v18641_v14  ;;  %v8656_v1 = vsel %vm747_vm0, %v11097_v60, 0.0  ;;  %v18658_v60 = vld [vmem:[#allocation423_spill] sm:$0xff] }
 0xe49   : > { %v9592_v26 = vsel %vm4170_vm10, %v9591_v13, %v9587_v33  ;;  %v8385_v16 = vpop.xlane.xlu0 %8384  ;;  %8591 = vadd.xlane.f32.xlu1 %v8590_v51  ;;  %vm7512_vm2 = vcmp.gt.f32.partialorder %v16522_v61, %v18636_v50  ;;  %v8614_v13 = vsel %vm747_vm0, %v11083_v17, 0.0  ;;  %v18637_v33 = vld [vmem:[#allocation402_spill] sm:$0xff]  ;;  %v18646_v50 = vld [vmem:[#allocation411_spill] sm:$0xff] }
 0xe4a   : > { %v9596_v55 = vrot.slane %v8385_v16, %v18532_v18  ;;  %v8388_v24 = vpop.xlane.xlu1 %8387  ;;  %vm7513_vm6 = vcmp.gt.f32.partialorder %v16522_v61, %v18637_v33  ;;  %v11085_v51 = vsel %vm7512_vm2, 1.0, %v18594_v62  ;;  %v8617_v16 = vsel %vm747_vm0, %v11084_v56, 0.0  ;;  %v16628_v33 = vld [vmem:[%s14912_s17 + $0x18] sm:$0xff] }
 0xe4b   : > { %v9601_v63 = vrot.slane %v8388_v24, %v18533_v42  ;;  %v8620_v39 = vsel %vm747_vm0, %v11085_v51, 0.0  ;;  %v11086_v8 = vsel %vm7513_vm6, 1.0, %v18594_v62  ;;  %vm7521_vm6 = vcmp.gt.f32.partialorder %v7273_v58, %v18644_v21 }
 0xe4c   : > { %v9597_v22 = vsel %vm4177_vm13, %v9596_v55, %v9592_v26  ;;  %8594 = vadd.xlane.f32.xlu0 %v8593_v54  ;;  %v18639_v55 = vld [vmem:[#allocation404_spill] sm:$0xff]  ;;  %v11094_v17 = vsel %vm7521_vm6, 1.0, %v18594_v62  ;;  %v6020_v51 = vrot.slane %v16628_v33, %v12591_v36 }
 0xe4d   : > { %v8391_v41 = vpop.xlane.xlu0 %8390  ;;  %8597 = vadd.xlane.f32.xlu1 %v8596_v10  ;;  %v9602_v0 = vsel %vm4184_vm14, %v9601_v63, %v9597_v22  ;;  %vm7515_vm7 = vcmp.gt.f32.partialorder %v16522_v61, %v18639_v55  ;;  %v11087_v63 = vsel %vm7514_vm12, 1.0, %v18594_v62  ;;  %v8623_v22 = vsel %vm747_vm0, %v11086_v8, 0.0  ;;  %v18648_v55 = vld [vmem:[#allocation413_spill] sm:$0xff] }
 0xe4e   : > { %v9606_v28 = vrot.slane %v8391_v41, %v18536_v40  ;;  %v8394_v38 = vpop.xlane.xlu1 %8393  ;;  %v8626_v10 = vsel %vm747_vm0, %v11087_v63, 0.0  ;;  %v11088_v6 = vsel %vm7515_vm7, 1.0, %v18594_v62  ;;  %v11091_v61 = vsel %vm7518_vm15, 1.0, %v18594_v62 }
 0xe4f   : > { %v9611_v29 = vrot.slane %v8394_v38, %v18537_v46  ;;  %v8629_v38 = vsel %vm747_vm0, %v11088_v6, 0.0  ;;  %vm7523_vm7 = vcmp.gt.f32.partialorder %v7273_v58, %v18646_v50  ;;  %v8647_v48 = vsel %vm747_vm0, %v11094_v17, 0.0  ;;  %v18649_v6 = vld [vmem:[#allocation414_spill] sm:$0xff]  ;;  %v18655_v50 = vld [vmem:[#allocation420_spill] sm:$0xff] }
 0xe50   : > { %v9607_v20 = vsel %vm4191_vm1, %v9606_v28, %v9602_v0  ;;  %8600 = vadd.xlane.f32.xlu0 %v8599_v53  ;;  %v8632_v0 = vsel %vm747_vm0, %v11089_v31, 0.0  ;;  %v18642_v53 = vld [vmem:[#allocation407_spill] sm:$0xff]  ;;  %v6028_v31 = vcombine.high %v6020_v51, %v6020_v51 }
 0xe51   : > { %v8397_v9 = vpop.xlane.xlu0 %8396  ;;  %8603 = vadd.xlane.f32.xlu1 %v8602_v34  ;;  %v9612_v49 = vsel %vm4198_vm3, %v9611_v29, %v9607_v20  ;;  %v11090_v29 = vsel %vm7517_vm8, 1.0, %v18594_v62  ;;  %v18643_v34 = vld [vmem:[#allocation408_spill] sm:$0xff] }
 0xe52   : > { %v9616_v59 = vrot.slane %v8397_v9, %v18540_v19  ;;  %v16537_v37 = vpop.xlane.xlu1 %8399  ;;  %vm7520_vm2 = vcmp.gt.f32.partialorder %v7273_v58, %v18643_v34  ;;  %v8635_v30 = vsel %vm747_vm0, %v11090_v29, 0.0  ;;  %v8638_v9 = vsel %vm747_vm0, %v11091_v61, 0.0 }
 0xe54   : > { %v9617_v5 = vsel %vm4205_vm5, %v9616_v59, %v9612_v49  ;;  %8606 = vadd.xlane.f32.xlu0 %v8605_v7  ;;  %v11093_v49 = vsel %vm7520_vm2, 1.0, %v18594_v62  ;;  %v18645_v7 = vld [vmem:[#allocation410_spill] sm:$0xff] }
 0xe55   : > { %v16547_v23 = vsel %vm18635_vm4, %v9617_v5, %v10413_v27  ;;  %v16549_v3 = vpop.xlane.xlu0 %8402  ;;  %8609 = vadd.xlane.f32.xlu1 %v8608_v52  ;;  %vm7519_vm4 = vcmp.gt.f32.partialorder %v7273_v58, %v18642_v53  ;;  %vm7522_vm12 = vcmp.gt.f32.partialorder %v7273_v58, %v18645_v7  ;;  %v6012_v5 = vcombine.high %v16507_v45, %v16507_v45 }
 0xe56   : > { %v16554_v47 = vpop.xlane.xlu1 %8405  ;;  %v11092_v35 = vsel %vm7519_vm4, 1.0, %v18594_v62  ;;  %v8644_v44 = vsel %vm747_vm0, %v11093_v49, 0.0  ;;  %v16666_v49 = vrot.slane %v6028_v31, %v12591_v36 }
 0xe57   : > { %v8641_v12 = vsel %vm747_vm0, %v11092_v35, 0.0  ;;  %v7277_v45 = vrot.slane %v6012_v5, %v11859_v4  ;;  %v18653_v35 = vld [vmem:[#allocation418_spill] sm:$0xff] }
 0xe58   : > { %8612 = vadd.xlane.f32.xlu0 %v8611_v11 }
 0xe59   : > { %v16561_v27 = vpop.xlane.xlu0 %8408  ;;  %8615 = vadd.xlane.f32.xlu1 %v8614_v13  ;;  %v11095_v13 = vsel %vm7522_vm12, 1.0, %v18594_v62  ;;  %vm7526_vm15 = vcmp.gt.f32.partialorder %v7277_v45, %v18648_v55  ;;  %vm7527_vm4 = vcmp.gt.f32.partialorder %v7277_v45, %v18649_v6  ;;  %v16688_v55 = vrot.slane %v16666_v49, %v11859_v4 }
 0xe5a   : > { %v16568_v26 = vpop.xlane.xlu1 %8411  ;;  %v8650_v15 = vsel %vm747_vm0, %v11095_v13, 0.0  ;;  %v11100_v34 = vsel %vm7527_vm4, 1.0, %v18594_v62 }
 0xe5b   : > { %v8665_v17 = vsel %vm747_vm0, %v11100_v34, 0.0 }
 0xe5c   : > { %8618 = vadd.xlane.f32.xlu0 %v8617_v16  ;;  %v11096_v16 = vsel %vm7523_vm7, 1.0, %v18594_v62  ;;  %vm7531_vm7 = vcmp.gt.f32.partialorder %v7277_v45, %v18653_v35  ;;  %v18659_v35 = vld [vmem:[#allocation424_spill] sm:$0xff] }
 0xe5d   : > { %v16575_v24 = vpop.xlane.xlu0 %8414  ;;  %8621 = vadd.xlane.f32.xlu1 %v8620_v39  ;;  %v18647_v39 = vld [vmem:[#allocation412_spill] sm:$0xff] }
 0xe5e   : > { %v16581_v54 = vpop.xlane.xlu1 %8417  ;;  %vm7525_vm8 = vcmp.gt.f32.partialorder %v7273_v58, %v18647_v39 }
 0xe5f   : > { %v11098_v58 = vsel %vm7525_vm8, 1.0, %v18594_v62  ;;  %vm7533_vm8 = vcmp.gt.f32.partialorder %v7277_v45, %v18655_v50 }
 0xe60   : > { %8624 = vadd.xlane.f32.xlu0 %v8623_v22  ;;  %v16643_v22 = vrot.slane %v6020_v51, %v12591_v36  ;;  %v8659_v61 = vsel %vm747_vm0, %v11098_v58, 0.0 }
 0xe61   : > { %v16588_v41 = vpop.xlane.xlu0 %8420  ;;  %8627 = vadd.xlane.f32.xlu1 %v8626_v10  ;;  %v8653_v10 = vsel %vm747_vm0, %v11096_v16, 0.0  ;;  %v18657_v16 = vld [vmem:[#allocation422_spill] sm:$0xff] }
 0xe62   : > { %v16592_v28 = vpop.xlane.xlu1 %8423  ;;  %v16657_v53 = vrot.slane %v16643_v22, %v11859_v4 }
 0xe64   : > { %8630 = vadd.xlane.f32.xlu0 %v8629_v38  ;;  %v11099_v38 = vsel %vm7526_vm15, 1.0, %v18594_v62  ;;  %vm7535_vm4 = vcmp.gt.f32.partialorder %v16657_v53, %v18657_v16 }
 0xe65   : > { %v16598_v20 = vpop.xlane.xlu0 %8426  ;;  %8633 = vadd.xlane.f32.xlu1 %v8632_v0  ;;  %v18650_v0 = vld [vmem:[#allocation415_spill] sm:$0xff]  ;;  %v8662_v21 = vsel %vm747_vm0, %v11099_v38, 0.0 }
 0xe66   : > { %v16602_v57 = vpop.xlane.xlu1 %8429  ;;  %vm7528_vm2 = vcmp.gt.f32.partialorder %v7277_v45, %v18650_v0  ;;  %v9664_v34 = vrot.slane %v16598_v20, %v18528_v32 }
 0xe67   : > { %v11101_v5 = vsel %vm7528_vm2, 1.0, %v18594_v62  ;;  %vm7536_vm2 = vcmp.gt.f32.partialorder %v16657_v53, %v18658_v60  ;;  %v9669_v50 = vrot.slane %v16602_v57, %v18529_v2 }
 0xe68   : > { %8636 = vadd.xlane.f32.xlu0 %v8635_v30  ;;  %v18651_v30 = vld [vmem:[#allocation416_spill] sm:$0xff]  ;;  %v8668_v39 = vsel %vm747_vm0, %v11101_v5, 0.0  ;;  %v11109_v20 = vsel %vm7536_vm2, 1.0, %v18594_v62  ;;  %v9635_v5 = vrot.slane %v16561_v27, %v18532_v18  ;;  %vm18666_vm2 = vcmask 1045509  }
 0xe69   : > { %v16608_v59 = vpop.xlane.xlu0 %8432  ;;  %8639 = vadd.xlane.f32.xlu1 %v8638_v9  ;;  %vm7529_vm6 = vcmp.gt.f32.partialorder %v7277_v45, %v18651_v30  ;;  %v18652_v9 = vld [vmem:[#allocation417_spill] sm:$0xff] }
 0xe6a   : > { %v16614_v52 = vpop.xlane.xlu1 %8435  ;;  %vm7530_vm12 = vcmp.gt.f32.partialorder %v7277_v45, %v18652_v9  ;;  %v11102_v13 = vsel %vm7529_vm6, 1.0, %v18594_v62  ;;  %v11108_v9 = vsel %vm7535_vm4, 1.0, %v18594_v62  ;;  %vm7537_vm6 = vcmp.gt.f32.partialorder %v16657_v53, %v18659_v35 }
 0xe6b   : > { %v11103_v51 = vsel %vm7530_vm12, 1.0, %v18594_v62  ;;  %v8671_v31 = vsel %vm747_vm0, %v11102_v13, 0.0  ;;  %v11110_v57 = vsel %vm7537_vm6, 1.0, %v18594_v62  ;;  %vm18665_vm4 = vcmask 1044484  }
 0xe6c   : > { %8642 = vadd.xlane.f32.xlu0 %v8641_v12  ;;  %v18654_v12 = vld [vmem:[#allocation419_spill] sm:$0xff]  ;;  %v8674_v38 = vsel %vm747_vm0, %v11103_v51, 0.0  ;;  %vm18667_vm6 = vcmask 1046534  }
 0xe6d   : > { %v16620_v11 = vpop.xlane.xlu0 %8438  ;;  %8645 = vadd.xlane.f32.xlu1 %v8644_v44  ;;  %vm7532_vm11 = vcmp.gt.f32.partialorder %v7277_v45, %v18654_v12  ;;  %v9630_v45 = vrot.slane %v16554_v47, %v18529_v2  ;;  %v9660_v12 = vrot.slane %v16592_v28, %v18527_v25  ;;  %v9674_v28 = vrot.slane %v16608_v59, %v18532_v18 }
 0xe6e   : > { %v16625_v56 = vpop.xlane.xlu1 %8441 }
 0xe6f   : > { %v9665_v27 = vsel %vm4163_vm9, %v9664_v34, %v9660_v12  ;;  %v18660_v34 = vld [vmem:[#allocation425_spill] sm:$0xff] }
 0xe70   : > { %8648 = vadd.xlane.f32.xlu0 %v8647_v48  ;;  %v11104_v48 = vsel %vm7531_vm7, 1.0, %v18594_v62  ;;  %vm7538_vm12 = vcmp.gt.f32.partialorder %v16657_v53, %v18660_v34 }
 0xe71   : > { %v16636_v8 = vpop.xlane.xlu0 %8444  ;;  %8651 = vadd.xlane.f32.xlu1 %v8650_v15  ;;  %v18656_v15 = vld [vmem:[#allocation421_spill] sm:$0xff]  ;;  %v8677_v0 = vsel %vm747_vm0, %v11104_v48, 0.0 }
 0xe72   : > { %v16640_v63 = vpop.xlane.xlu1 %8447  ;;  %vm7534_vm15 = vcmp.gt.f32.partialorder %v16657_v53, %v18656_v15  ;;  %v8689_v15 = vsel %vm747_vm0, %v11108_v9, 0.0  ;;  %v18661_v9 = vld [vmem:[#allocation426_spill] sm:$0xff] }
 0xe73   : > { %v11107_v30 = vsel %vm7534_vm15, 1.0, %v18594_v62  ;;  %vm7539_vm7 = vcmp.gt.f32.partialorder %v16657_v53, %v18661_v9 }
 0xe74   : > { %8654 = vadd.xlane.f32.xlu0 %v8653_v10  ;;  %v9625_v10 = vrot.slane %v16549_v3, %v18528_v32  ;;  %v9621_v3 = vrot.slane %v16537_v37, %v18527_v25  ;;  %v8686_v48 = vsel %vm747_vm0, %v11107_v30, 0.0 }
 0xe75   : > { %v16649_v14 = vpop.xlane.xlu0 %8450  ;;  %8657 = vadd.xlane.f32.xlu1 %v8656_v1  ;;  %v11105_v1 = vsel %vm7532_vm11, 1.0, %v18594_v62 }
 0xe76   : > { %v16653_v29 = vpop.xlane.xlu1 %8453  ;;  %v8680_v37 = vsel %vm747_vm0, %v11105_v1, 0.0 }
 0xe77   : > { %v9708_v60 = vrot.slane %v16653_v29, %v18529_v2  ;;  %v9679_v29 = vrot.slane %v16614_v52, %v18533_v42 }
 0xe78   : > { %8660 = vadd.xlane.f32.xlu0 %v8659_v61  ;;  %v11106_v61 = vsel %vm7533_vm8, 1.0, %v18594_v62 }
 0xe79   : > { %v16668_v7 = vpop.xlane.xlu0 %8456  ;;  %8663 = vadd.xlane.f32.xlu1 %v8662_v21  ;;  %v9626_v21 = vsel %vm4163_vm9, %v9625_v10, %v9621_v3  ;;  %v8683_v51 = vsel %vm747_vm0, %v11106_v61, 0.0  ;;  %v8692_v10 = vsel %vm747_vm0, %v11109_v20, 0.0  ;;  %v9650_v20 = vrot.slane %v16581_v54, %v18537_v46 }
 0xe7a   : > { %v16672_v44 = vpop.xlane.xlu1 %8459  ;;  %v9631_v16 = vsel %vm4170_vm10, %v9630_v45, %v9626_v21  ;;  %v9689_v54 = vrot.slane %v16625_v56, %v18537_v46 }
 0xe7b   : > { %v9636_v59 = vsel %vm4177_vm13, %v9635_v5, %v9631_v16  ;;  %v9718_v35 = vrot.slane %v16672_v44, %v18533_v42  ;;  %v9655_v44 = vrot.slane %v16588_v41, %v18540_v19 }
 0xe7c   : > { %8666 = vadd.xlane.f32.xlu0 %v8665_v17  ;;  %v9703_v17 = vrot.slane %v16649_v14, %v18528_v32  ;;  %v9699_v14 = vrot.slane %v16640_v63, %v18527_v25  ;;  %v9645_v63 = vrot.slane %v16575_v24, %v18536_v40 }
 0xe7d   : > { %v16692_v6 = vpop.xlane.xlu0 %8462  ;;  %8669 = vadd.xlane.f32.xlu1 %v8668_v39  ;;  %v9640_v39 = vrot.slane %v16568_v26, %v18533_v42  ;;  %v9670_v26 = vsel %vm4170_vm10, %v9669_v50, %v9665_v27 }
 0xe7e   : > { %v16697_v58 = vpop.xlane.xlu1 %8465  ;;  %v9704_v1 = vsel %vm4163_vm9, %v9703_v17, %v9699_v14  ;;  %v9675_v24 = vsel %vm4177_vm13, %v9674_v28, %v9670_v26  ;;  %v9723_v21 = vrot.slane %v16692_v6, %v18536_v40 }
 0xe7f   : > { %v9709_v52 = vsel %vm4170_vm10, %v9708_v60, %v9704_v1  ;;  %v9680_v17 = vsel %vm4184_vm14, %v9679_v29, %v9675_v24  ;;  %v9728_v41 = vrot.slane %v16697_v58, %v18537_v46  ;;  %v8695_v60 = vsel %vm747_vm0, %v11110_v57, 0.0 }
 0xe80   : > { %8672 = vadd.xlane.f32.xlu0 %v8671_v31  ;;  %v9713_v31 = vrot.slane %v16668_v7, %v18532_v18  ;;  %v9684_v7 = vrot.slane %v16620_v11, %v18536_v40 }
 0xe81   : > { %v16733_v47 = vpop.xlane.xlu0 %8468  ;;  %8675 = vadd.xlane.f32.xlu1 %v8674_v38 }
 0xe82   : > { %v8472_v13 = vpop.xlane.xlu1 %8471  ;;  %v9714_v11 = vsel %vm4177_vm13, %v9713_v31, %v9709_v52  ;;  %v9733_v56 = vrot.slane %v16733_v47, %v18540_v19  ;;  %v11112_v47 = vsel %vm7539_vm7, 1.0, %v18594_v62  ;;  %vm18669_vm7 = vcmask 1047559  }
 0xe83   : > { %v9719_v28 = vsel %vm4184_vm14, %v9718_v35, %v9714_v11 }
 0xe84   : > { %8678 = vadd.xlane.f32.xlu0 %v8677_v0  ;;  %v9738_v0 = vrot.slane %v8472_v13, %v18527_v25  ;;  %v9724_v16 = vsel %vm4191_vm1, %v9723_v21, %v9719_v28 }
 0xe85   : > { %v8475_v38 = vpop.xlane.xlu0 %8474  ;;  %8681 = vadd.xlane.f32.xlu1 %v8680_v37  ;;  %v9641_v37 = vsel %vm4184_vm14, %v9640_v39, %v9636_v59  ;;  %v18662_v59 = vld [vmem:[#allocation427_spill] sm:$0xff]  ;;  %v9729_v26 = vsel %vm4198_vm3, %v9728_v41, %v9724_v16  ;;  %v18671_v41 = vld [vmem:[#allocation432_spill] sm:$0xff] }
 0xe86   : > { %v9742_v61 = vrot.slane %v8475_v38, %v18528_v32  ;;  %v8478_v3 = vpop.xlane.xlu1 %8477  ;;  %v9646_v12 = vsel %vm4191_vm1, %v9645_v63, %v9641_v37  ;;  %vm7540_vm11 = vcmp.gt.f32.partialorder %v16657_v53, %v18662_v59  ;;  %v8701_v37 = vsel %vm747_vm0, %v11112_v47, 0.0 }
 0xe87   : > { %v9747_v30 = vrot.slane %v8478_v3, %v18529_v2  ;;  %v9651_v58 = vsel %vm4198_vm3, %v9650_v20, %v9646_v12  ;;  %v9734_v3 = vsel %vm4205_vm5, %v9733_v56, %v9729_v26  ;;  %v11113_v24 = vsel %vm7540_vm11, 1.0, %v18594_v62 }
 0xe88   : > { %v9743_v45 = vsel %vm4163_vm9, %v9742_v61, %v9738_v0  ;;  %8684 = vadd.xlane.f32.xlu0 %v8683_v51  ;;  %v9685_v51 = vsel %vm4191_vm1, %v9684_v7, %v9680_v17  ;;  %v9656_v57 = vsel %vm4205_vm5, %v9655_v44, %v9651_v58  ;;  %v18663_v61 = vld [vmem:[#allocation428_spill] sm:$0xff]  ;;  %v18664_v7 = vld [vmem:[#allocation429_spill] sm:$0xff]  ;;  %v8704_v21 = vsel %vm747_vm0, %v11113_v24, 0.0 }
 0xe89   : > { %v8481_v5 = vpop.xlane.xlu0 %8480  ;;  %8687 = vadd.xlane.f32.xlu1 %v8686_v48  ;;  %v9748_v27 = vsel %vm4170_vm10, %v9747_v30, %v9743_v45  ;;  %v9694_v48 = vrot.slane %v16636_v8, %v18540_v19  ;;  %v11111_v8 = vsel %vm7538_vm12, 1.0, %v18594_v62  ;;  %vm7541_vm8 = vcmp.gt.f32.partialorder %v16657_v53, %v18663_v61 }
 0xe8a   : > { %v9752_v50 = vrot.slane %v8481_v5, %v18532_v18  ;;  %v8484_v13 = vpop.xlane.xlu1 %8483  ;;  %v8698_v0 = vsel %vm747_vm0, %v11111_v8, 0.0  ;;  %vm7542_vm15 = vcmp.gt.f32.partialorder %v16688_v55, %v18664_v7  ;;  %v10415_v30 = vsel %vm18665_vm4, %v9656_v57, %v16547_v23  ;;  %v18668_v5 = vld [vmem:[#allocation430_spill] sm:$0xff] }
 0xe8b   : > { %v9757_v6 = vrot.slane %v8484_v13, %v18533_v42  ;;  %v11114_v23 = vsel %vm7541_vm8, 1.0, %v18594_v62  ;;  %vm7543_vm12 = vcmp.gt.f32.partialorder %v16688_v55, %v18668_v5  ;;  %v11115_v17 = vsel %vm7542_vm15, 1.0, %v18594_v62 }
 0xe8c   : > { %v9753_v14 = vsel %vm4177_vm13, %v9752_v50, %v9748_v27  ;;  %8690 = vadd.xlane.f32.xlu0 %v8689_v15  ;;  %v18670_v50 = vld [vmem:[#allocation431_spill] sm:$0xff]  ;;  %v8707_v27 = vsel %vm747_vm0, %v11114_v23, 0.0  ;;  %v11116_v28 = vsel %vm7543_vm12, 1.0, %v18594_v62  ;;  %vm7545_vm8 = vcmp.gt.f32.partialorder %v16688_v55, %v18671_v41  ;;  %v18676_v23 = vld [vmem:[#allocation437_spill] sm:$0xff] }
 0xe8d   : > { %v8487_v39 = vpop.xlane.xlu0 %8486  ;;  %8693 = vadd.xlane.f32.xlu1 %v8692_v10  ;;  %v9690_v10 = vsel %vm4198_vm3, %v9689_v54, %v9685_v51  ;;  %v9758_v1 = vsel %vm4184_vm14, %v9757_v6, %v9753_v14  ;;  %vm7544_vm11 = vcmp.gt.f32.partialorder %v16688_v55, %v18670_v50  ;;  %v11118_v57 = vsel %vm7545_vm8, 1.0, %v18594_v62 }
 0xe8e   : > { %v9762_v15 = vrot.slane %v8487_v39, %v18536_v40  ;;  %v8490_v63 = vpop.xlane.xlu1 %8489  ;;  %v9695_v38 = vsel %vm4205_vm5, %v9694_v48, %v9690_v10  ;;  %v8710_v48 = vsel %vm747_vm0, %v11115_v17, 0.0  ;;  %v11117_v56 = vsel %vm7544_vm11, 1.0, %v18594_v62  ;;  %v18672_v39 = vld [vmem:[#allocation433_spill] sm:$0xff]  ;;  %v18673_v10 = vld [vmem:[#allocation434_spill] sm:$0xff] }
 0xe8f   : > { %v9767_v31 = vrot.slane %v8490_v63, %v18537_v46  ;;  %v10416_v35 = vsel %vm18666_vm2, %v9695_v38, %v10415_v30  ;;  %vm7546_vm15 = vcmp.gt.f32.partialorder %v16688_v55, %v18672_v39  ;;  %v8716_v47 = vsel %vm747_vm0, %v11117_v56, 0.0  ;;  %v18674_v38 = vld [vmem:[#allocation435_spill] sm:$0xff] }
 0xe90   : > { %v9763_v29 = vsel %vm4191_vm1, %v9762_v15, %v9758_v1  ;;  %8696 = vadd.xlane.f32.xlu0 %v8695_v60  ;;  %v10417_v20 = vsel %vm18667_vm6, %v9734_v3, %v10416_v35  ;;  %v6058_v60 = vcombine.high %v16643_v22, %v16643_v22  ;;  %v8713_v15 = vsel %vm747_vm0, %v11116_v28, 0.0  ;;  %v18675_v35 = vld [vmem:[#allocation436_spill] sm:$0xff]  ;;  %v18678_v28 = vld [vmem:[#allocation439_spill] sm:$0xff] }
 0xe91   : > { %v8493_v34 = vpop.xlane.xlu0 %8492  ;;  %8699 = vadd.xlane.f32.xlu1 %v8698_v0  ;;  %v9768_v45 = vsel %vm4198_vm3, %v9767_v31, %v9763_v29  ;;  %vm7547_vm4 = vcmp.gt.f32.partialorder %v16688_v55, %v18673_v10  ;;  %v11119_v31 = vsel %vm7546_vm15, 1.0, %v18594_v62  ;;  %vm7548_vm2 = vcmp.gt.f32.partialorder %v16688_v55, %v18674_v38 }
 0xe92   : > { %v9772_v9 = vrot.slane %v8493_v34, %v18540_v19  ;;  %v8496_v52 = vpop.xlane.xlu1 %8495  ;;  %v16885_v26 = vrot.slane %v6058_v60, %v11859_v4  ;;  %v8719_v3 = vsel %vm747_vm0, %v11118_v57, 0.0  ;;  %v8722_v24 = vsel %vm747_vm0, %v11119_v31, 0.0  ;;  %v18680_v57 = vld [vmem:[#allocation441_spill] sm:$0xff]  ;;  %v18681_v31 = vld [vmem:[#allocation444_spill] sm:$0xff] }
 0xe93   : > { %v9777_v53 = vrot.slane %v8496_v52, %v18527_v25  ;;  %v11120_v7 = vsel %vm7547_vm4, 1.0, %v18594_v62  ;;  %vm7549_vm6 = vcmp.gt.f32.partialorder %v16688_v55, %v15412_v43  ;;  %v11121_v52 = vsel %vm7548_vm2, 1.0, %v18594_v62 }
 0xe94   : > { %v9773_v11 = vsel %vm4205_vm5, %v9772_v9, %v9768_v45  ;;  %8702 = vadd.xlane.f32.xlu0 %v8701_v37  ;;  %vm7550_vm12 = vcmp.gt.f32.partialorder %v16885_v26, %v18675_v35  ;;  %v8728_v43 = vsel %vm747_vm0, %v11121_v52, 0.0  ;;  %v11122_v55 = vsel %vm7549_vm6, 1.0, %v18594_v62 }
 0xe95   : > { %v10418_v12 = vsel %vm18669_vm7, %v9773_v11, %v10417_v20  ;;  %v8499_v44 = vpop.xlane.xlu0 %8498  ;;  %8705 = vadd.xlane.f32.xlu1 %v8704_v21  ;;  %v8725_v20 = vsel %vm747_vm0, %v11120_v7, 0.0  ;;  %v6013_v11 = vcombine.high %v16628_v33, %v16628_v33  ;;  %vm7551_vm7 = vcmp.gt.f32.partialorder %v16885_v26, %v18676_v23 }
 0xe96   : > { %10439 = vst.msk [vmem:[%s16312_s18 + $0x8] sm:$0xff] %vm747_vm0, %v10418_v12  ;;  %v9781_v13 = vrot.slane %v8499_v44, %v18528_v32  ;;  %v8502_v51 = vpop.xlane.xlu1 %8501  ;;  %v11123_v12 = vsel %vm7550_vm12, 1.0, %v18594_v62  ;;  %v18677_v44 = vld [vmem:[#allocation438_spill] sm:$0xff]  ;;  %v6060_v33 = vcombine.high %v16666_v49, %v16666_v49  ;;  %vm7553_vm8 = vcmp.gt.f32.partialorder %v16885_v26, %v18678_v28 }
 0xe97   : > { %v9786_v54 = vrot.slane %v8502_v51, %v18529_v2  ;;  %vm7552_vm11 = vcmp.gt.f32.partialorder %v16885_v26, %v18677_v44  ;;  %v8731_v51 = vsel %vm747_vm0, %v11122_v55, 0.0  ;;  %vm7555_vm4 = vcmp.gt.f32.partialorder %v16885_v26, %v18680_v57 }
 0xe98   : > { %v9782_v6 = vsel %vm4163_vm9, %v9781_v13, %v9777_v53  ;;  %8708 = vadd.xlane.f32.xlu0 %v8707_v27  ;;  %v16933_v56 = vrot.slane %v6060_v33, %v11859_v4  ;;  %v11128_v7 = vsel %vm7555_vm4, 1.0, %v18594_v62 }
 0xe99   : > { %v9787_v14 = vsel %vm4170_vm10, %v9786_v54, %v9782_v6  ;;  %v8505_v16 = vpop.xlane.xlu0 %8504  ;;  %8711 = vadd.xlane.f32.xlu1 %v8710_v48  ;;  %v6027_v54 = vrot.slane %v6013_v11, %v12591_v36  ;;  %v8734_v6 = vsel %vm747_vm0, %v11123_v12, 0.0  ;;  %v11124_v48 = vsel %vm7551_vm7, 1.0, %v18594_v62  ;;  %v18684_v12 = vld [vmem:[#allocation452_spill] sm:$0xff] }
 0xe9a   : > { %v9791_v8 = vrot.slane %v8505_v16, %v18532_v18  ;;  %v8508_v59 = vpop.xlane.xlu1 %8507  ;;  %v18679_v16 = vld [vmem:[#allocation440_spill] sm:$0xff]  ;;  %vm7558_vm2 = vcmp.gt.f32.partialorder %v16933_v56, %v18681_v31 }
 0xe9b   : > { %v9796_v58 = vrot.slane %v8508_v59, %v18533_v42  ;;  %vm7554_vm15 = vcmp.gt.f32.partialorder %v16885_v26, %v18679_v16  ;;  %v8737_v59 = vsel %vm747_vm0, %v11124_v48, 0.0 }
 0xe9c   : > { %v9792_v63 = vsel %vm4177_vm13, %v9791_v8, %v9787_v14  ;;  %8714 = vadd.xlane.f32.xlu0 %v8713_v15  ;;  %v11125_v14 = vsel %vm7552_vm11, 1.0, %v18594_v62  ;;  %vm18685_vm11 = vcmask 1041409  }
 0xe9d   : > { %v9797_v1 = vsel %vm4184_vm14, %v9796_v58, %v9792_v63  ;;  %v8511_v22 = vpop.xlane.xlu0 %8510  ;;  %8717 = vadd.xlane.f32.xlu1 %v8716_v47  ;;  %v16939_v58 = vrot.slane %v6027_v54, %v12591_v36  ;;  %v8740_v63 = vsel %vm747_vm0, %v11125_v14, 0.0  ;;  %v11126_v47 = vsel %vm7553_vm8, 1.0, %v18594_v62 }
 0xe9e   : > { %v9801_v29 = vrot.slane %v8511_v22, %v18536_v40  ;;  %v8514_v0 = vpop.xlane.xlu1 %8513  ;;  %v11127_v22 = vsel %vm7554_vm15, 1.0, %v18594_v62 }
 0xe9f   : > { %v9806_v61 = vrot.slane %v8514_v0, %v18537_v46 }
 0xea0   : > { %v9802_v34 = vsel %vm4191_vm1, %v9801_v29, %v9797_v1  ;;  %8720 = vadd.xlane.f32.xlu0 %v8719_v3  ;;  %v16955_v3 = vrot.slane %v16939_v58, %v11859_v4 }
 0xea1   : > { %v9807_v30 = vsel %vm4198_vm3, %v9806_v61, %v9802_v34  ;;  %v8517_v9 = vpop.xlane.xlu0 %8516  ;;  %8723 = vadd.xlane.f32.xlu1 %v8722_v24  ;;  %v8743_v61 = vsel %vm747_vm0, %v11126_v47, 0.0  ;;  %v8746_v24 = vsel %vm747_vm0, %v11127_v22, 0.0 }
 0xea2   : > { %v9811_v45 = vrot.slane %v8517_v9, %v18540_v19  ;;  %v8520_v37 = vpop.xlane.xlu1 %8519  ;;  %v6029_v9 = vcombine.high %v6027_v54, %v6027_v54  ;;  %vm7566_vm7 = vcmp.gt.f32.partialorder %v16955_v3, %v18684_v12 }
 0xea3   : > { %v9816_v17 = vrot.slane %v8520_v37, %v18527_v25  ;;  %v18683_v37 = vld [vmem:[#allocation446_spill] sm:$0xff]  ;;  %v11139_v28 = vsel %vm7566_vm7, 1.0, %v18594_v62 }
 0xea4   : > { %v16904_v21 = vsel %vm4205_vm5, %v9811_v45, %v9807_v30  ;;  %8726 = vadd.xlane.f32.xlu0 %v8725_v20  ;;  %v18682_v30 = vld [vmem:[#allocation445_spill] sm:$0xff]  ;;  %v11131_v45 = vsel %vm7558_vm2, 1.0, %v18594_v62  ;;  %vm7560_vm12 = vcmp.gt.f32.partialorder %v16933_v56, %v18683_v37  ;;  %v16974_v44 = vrot.slane %v6029_v9, %v12591_v36 }
 0xea5   : > { %v8523_v5 = vpop.xlane.xlu0 %8522  ;;  %8729 = vadd.xlane.f32.xlu1 %v8728_v43  ;;  %vm7559_vm6 = vcmp.gt.f32.partialorder %v16933_v56, %v18682_v30  ;;  %v8749_v43 = vsel %vm747_vm0, %v11128_v7, 0.0  ;;  %v8758_v23 = vsel %vm747_vm0, %v11131_v45, 0.0 }
 0xea6   : > { %v9820_v50 = vrot.slane %v8523_v5, %v18528_v32  ;;  %v8526_v53 = vpop.xlane.xlu1 %8525  ;;  %v11132_v5 = vsel %vm7559_vm6, 1.0, %v18594_v62 }
 0xea7   : > { %v9825_v13 = vrot.slane %v8526_v53, %v18529_v2  ;;  %v18686_v53 = vld [vmem:[#allocation453_spill] sm:$0xff] }
 0xea8   : > { %v9821_v27 = vsel %vm4163_vm9, %v9820_v50, %v9816_v17  ;;  %8732 = vadd.xlane.f32.xlu0 %v8731_v51  ;;  %v11133_v50 = vsel %vm7560_vm12, 1.0, %v18594_v62  ;;  %vm7567_vm8 = vcmp.gt.f32.partialorder %v16955_v3, %v18686_v53 }
 0xea9   : > { %v9826_v49 = vsel %vm4170_vm10, %v9825_v13, %v9821_v27  ;;  %v8529_v41 = vpop.xlane.xlu0 %8528  ;;  %8735 = vadd.xlane.f32.xlu1 %v8734_v6  ;;  %v8761_v6 = vsel %vm747_vm0, %v11132_v5, 0.0 }
 0xeaa   : > { %v9830_v39 = vrot.slane %v8529_v41, %v18532_v18  ;;  %v8532_v60 = vpop.xlane.xlu1 %8531  ;;  %v16994_v41 = vrot.slane %v16974_v44, %v11859_v4 }
 0xeab   : > { %v9835_v8 = vrot.slane %v8532_v60, %v18533_v42  ;;  %v18688_v60 = vld [vmem:[#allocation454_spill] sm:$0xff] }
 0xeac   : > { %v9831_v15 = vsel %vm4177_vm13, %v9830_v39, %v9826_v49  ;;  %8738 = vadd.xlane.f32.xlu0 %v8737_v59  ;;  %v18687_v49 = vld [vmem:[#allocation447_spill] sm:$0xff]  ;;  %v11140_v39 = vsel %vm7567_vm8, 1.0, %v18594_v62  ;;  %vm7568_vm4 = vcmp.gt.f32.partialorder %v16955_v3, %v18688_v60  ;;  %vm18694_vm8 = vcmask 1042434  }
 0xead   : > { %v9836_v10 = vsel %vm4184_vm14, %v9835_v8, %v9831_v15  ;;  %v8535_v1 = vpop.xlane.xlu0 %8534  ;;  %8741 = vadd.xlane.f32.xlu1 %v8740_v63  ;;  %vm7561_vm15 = vcmp.gt.f32.partialorder %v16933_v56, %v18687_v49  ;;  %v8782_v63 = vsel %vm747_vm0, %v11139_v28, 0.0  ;;  %v8785_v57 = vsel %vm747_vm0, %v11140_v39, 0.0 }
 0xeae   : > { %v9840_v38 = vrot.slane %v8535_v1, %v18536_v40  ;;  %v8538_v29 = vpop.xlane.xlu1 %8537  ;;  %v18689_v1 = vld [vmem:[#allocation460_spill] sm:$0xff] }
 0xeaf   : > { %v9845_v0 = vrot.slane %v8538_v29, %v18537_v46  ;;  %vm7574_vm2 = vcmp.gt.f32.partialorder %v16994_v41, %v18689_v1  ;;  %v18690_v29 = vld [vmem:[#allocation461_spill] sm:$0xff] }
 0xeb0   : > { %v9841_v34 = vsel %vm4191_vm1, %v9840_v38, %v9836_v10  ;;  %8744 = vadd.xlane.f32.xlu0 %v8743_v61  ;;  %v11134_v10 = vsel %vm7561_vm15, 1.0, %v18594_v62  ;;  %v11141_v38 = vsel %vm7568_vm4, 1.0, %v18594_v62  ;;  %vm7575_vm6 = vcmp.gt.f32.partialorder %v16994_v41, %v18690_v29 }
 0xeb1   : > { %v9846_v52 = vsel %vm4198_vm3, %v9845_v0, %v9841_v34  ;;  %v8541_v35 = vpop.xlane.xlu0 %8540  ;;  %8747 = vadd.xlane.f32.xlu1 %v8746_v24  ;;  %v6059_v0 = vcombine.high %v16939_v58, %v16939_v58  ;;  %v8767_v7 = vsel %vm747_vm0, %v11134_v10, 0.0  ;;  %v8788_v9 = vsel %vm747_vm0, %v11141_v38, 0.0 }
 0xeb2   : > { %v9850_v20 = vrot.slane %v8541_v35, %v18540_v19  ;;  %v8544_v11 = vpop.xlane.xlu1 %8543  ;;  %v18691_v35 = vld [vmem:[#allocation448_spill] sm:$0xff]  ;;  %v11148_v37 = vsel %vm7575_vm6, 1.0, %v18594_v62  ;;  %v6061_v38 = vcombine.high %v16974_v44, %v16974_v44 }
 0xeb3   : > { %v9855_v13 = vrot.slane %v8544_v11, %v18527_v25  ;;  %vm7562_vm12 = vcmp.gt.f32.partialorder %v16933_v56, %v18691_v35  ;;  %v17027_v11 = vrot.slane %v6059_v0, %v11859_v4  ;;  %v8809_v12 = vsel %vm747_vm0, %v11148_v37, 0.0 }
 0xeb4   : > { %v9851_v55 = vsel %vm4205_vm5, %v9850_v20, %v9846_v52  ;;  %8750 = vadd.xlane.f32.xlu0 %v8749_v43  ;;  %v11147_v52 = vsel %vm7574_vm2, 1.0, %v18594_v62  ;;  %v18692_v20 = vld [vmem:[#allocation455_spill] sm:$0xff] }
 0xeb5   : > { %v16978_v33 = vsel %vm18685_vm11, %v9851_v55, %v16904_v21  ;;  %v8547_v17 = vpop.xlane.xlu0 %8546  ;;  %8759 = vadd.xlane.f32.xlu1 %v8758_v23  ;;  %v8764_v21 = vsel %vm747_vm0, %v11133_v50, 0.0  ;;  %vm7569_vm7 = vcmp.gt.f32.partialorder %v16955_v3, %v18692_v20  ;;  %v8806_v23 = vsel %vm747_vm0, %v11147_v52, 0.0  ;;  %v18693_v50 = vld [vmem:[#allocation462_spill] sm:$0xff] }
 0xeb6   : > { %v9859_v51 = vrot.slane %v8547_v17, %v18528_v32  ;;  %v8550_v54 = vpop.xlane.xlu1 %8549  ;;  %v11135_v17 = vsel %vm7562_vm12, 1.0, %v18594_v62  ;;  %vm7576_vm11 = vcmp.gt.f32.partialorder %v16994_v41, %v18693_v50 }
 0xeb7   : > { %v9864_v27 = vrot.slane %v8550_v54, %v18529_v2  ;;  %v18695_v54 = vld [vmem:[#allocation283_spill] sm:$0xff]  ;;  %v8770_v28 = vsel %vm747_vm0, %v11135_v17, 0.0 }
 0xeb8   : > { %v9860_v48 = vsel %vm4163_vm9, %v9859_v51, %v9855_v13  ;;  %8762 = vadd.xlane.f32.xlu0 %v8761_v6  ;;  %v11142_v13 = vsel %vm7569_vm7, 1.0, %v18594_v62  ;;  %vm7582_vm15 = vcmp.gt.f32.partialorder %v17027_v11, %v18695_v54 }
 0xeb9   : > { %v9865_v14 = vsel %vm4170_vm10, %v9864_v27, %v9860_v48  ;;  %v8553_v16 = vpop.xlane.xlu0 %8552  ;;  %8765 = vadd.xlane.f32.xlu1 %v8764_v21 }
 0xeba   : > { %v9869_v8 = vrot.slane %v8553_v16, %v18532_v18  ;;  %v8556_v59 = vpop.xlane.xlu1 %8555  ;;  %v11149_v16 = vsel %vm7576_vm11, 1.0, %v18594_v62 }
 0xebb   : > { %v9874_v15 = vrot.slane %v8556_v59, %v18533_v42  ;;  %v18697_v59 = vld [vmem:[#allocation442_spill] sm:$0xff] }
 0xebc   : > { %v9870_v47 = vsel %vm4177_vm13, %v9869_v8, %v9865_v14  ;;  %8783 = vadd.xlane.f32.xlu0 %v8782_v63  ;;  %v8791_v14 = vsel %vm747_vm0, %v11142_v13, 0.0  ;;  %v11155_v8 = vsel %vm7582_vm15, 1.0, %v18594_v62  ;;  %vm7556_vm2 = vcmp.gt.f32.partialorder %v16885_v26, %v18697_v59  ;;  %v18702_v13 = vld [vmem:[#allocation291_spill] sm:$0xff] }
 0xebd   : > { %v9875_v22 = vsel %vm4184_vm14, %v9874_v15, %v9870_v47  ;;  %v8559_v31 = vpop.xlane.xlu0 %8558  ;;  %8786 = vadd.xlane.f32.xlu1 %v8785_v57  ;;  %v8812_v57 = vsel %vm747_vm0, %v11149_v16, 0.0  ;;  %v8830_v1 = vsel %vm747_vm0, %v11155_v8, 0.0  ;;  %v11129_v0 = vsel %vm7556_vm2, 1.0, %v18594_v62  ;;  %v18705_v16 = vld [vmem:[#allocation443_spill] sm:$0xff] }
 0xebe   : > { %v9879_v61 = vrot.slane %v8559_v31, %v18536_v40  ;;  %v8562_v34 = vpop.xlane.xlu1 %8561  ;;  %v18698_v31 = vld [vmem:[#allocation449_spill] sm:$0xff]  ;;  %v8752_v44 = vsel %vm747_vm0, %v11129_v0, 0.0  ;;  %vm18703_vm15 = vcmask 1043459   ;;  %vm7557_vm2 = vcmp.gt.f32.partialorder %v16885_v26, %v18705_v16 }
 0xebf   : > { %v9884_v24 = vrot.slane %v8562_v34, %v18537_v46  ;;  %vm7563_vm6 = vcmp.gt.f32.partialorder %v16933_v56, %v18698_v31 }
 0xec0   : > { %v9880_v30 = vsel %vm4191_vm1, %v9879_v61, %v9875_v22  ;;  %8768 = vadd.xlane.f32.xlu0 %v8767_v7  ;;  %v18699_v61 = vld [vmem:[#allocation456_spill] sm:$0xff]  ;;  %v11136_v35 = vsel %vm7563_vm6, 1.0, %v18594_v62 }
 0xec1   : > { %v9885_v45 = vsel %vm4198_vm3, %v9884_v24, %v9880_v30  ;;  %v8565_v58 = vpop.xlane.xlu0 %8564  ;;  %8789 = vadd.xlane.f32.xlu1 %v8788_v9  ;;  %vm7570_vm12 = vcmp.gt.f32.partialorder %v16955_v3, %v18699_v61  ;;  %v18710_v61 = vld [vmem:[#allocation293_spill] sm:$0xff] }
 0xec2   : > { %v9889_v43 = vrot.slane %v8565_v58, %v18540_v19  ;;  %v8568_v55 = vpop.xlane.xlu1 %8567  ;;  %v17077_v58 = vrot.slane %v6061_v38, %v11859_v4  ;;  %v11143_v20 = vsel %vm7570_vm12, 1.0, %v18594_v62  ;;  %v18709_v38 = vld [vmem:[#allocation286_spill] sm:$0xff]  ;;  %v18746_v4 = vld [vmem:[#allocation30_spill] sm:$0xff] (%p5852_p2) }
 0xec3   : > { %v9894_v27 = vrot.slane %v8568_v55, %v18527_v25  ;;  %v8794_v50 = vsel %vm747_vm0, %v11143_v20, 0.0  ;;  %v10483_v36 = vsub.f32 (%p5852_p2), 1.0, %v18746_v4 }
 0xec4   : > { %v9890_v5 = vsel %vm4205_vm5, %v9889_v43, %v9885_v45  ;;  %8807 = vadd.xlane.f32.xlu0 %v8806_v23  ;;  %v18700_v45 = vld [vmem:[#allocation463_spill] sm:$0xff]  ;;  %v18701_v43 = vld [vmem:[#allocation285_spill] sm:$0xff] }
 0xec5   : > { %v8571_v53 = vpop.xlane.xlu0 %8570  ;;  %8810 = vadd.xlane.f32.xlu1 %v8809_v12  ;;  %v10420_v51 = vsel %vm18694_vm8, %v9890_v5, %v16978_v33  ;;  %v18696_v33 = vld [vmem:[#allocation284_spill] sm:$0xff]  ;;  %vm7577_vm7 = vcmp.gt.f32.partialorder %v16994_v41, %v18700_v45  ;;  %vm7584_vm11 = vcmp.gt.f32.partialorder %v17027_v11, %v18701_v43  ;;  %v8773_v12 = vsel %vm747_vm0, %v11136_v35, 0.0  ;;  %v18712_v35 = vld [vmem:[#allocation458_spill] sm:$0xff] }
 0xec6   : > { %v9898_v6 = vrot.slane %v8571_v53, %v18528_v32  ;;  %v8574_v48 = vpop.xlane.xlu1 %8573  ;;  %vm7583_vm4 = vcmp.gt.f32.partialorder %v17027_v11, %v18696_v33  ;;  %v11150_v53 = vsel %vm7577_vm7, 1.0, %v18594_v62  ;;  %vm7590_vm8 = vcmp.gt.f32.partialorder %v17077_v58, %v18702_v13 }
 0xec7   : > { %v9903_v21 = vrot.slane %v8574_v48, %v18529_v2  ;;  %v11156_v22 = vsel %vm7583_vm4, 1.0, %v18594_v62  ;;  %v18704_v48 = vld [vmem:[#allocation292_spill] sm:$0xff] }
 0xec8   : > { %v9899_v49 = vsel %vm4163_vm9, %v9898_v6, %v9894_v27  ;;  %8771 = vadd.xlane.f32.xlu0 %v8770_v28  ;;  %v8833_v9 = vsel %vm747_vm0, %v11156_v22, 0.0  ;;  %v11157_v6 = vsel %vm7584_vm11, 1.0, %v18594_v62  ;;  %vm7591_vm4 = vcmp.gt.f32.partialorder %v17077_v58, %v18704_v48 }
 0xec9   : > { %v9904_v39 = vsel %vm4170_vm10, %v9903_v21, %v9899_v49  ;;  %v8577_v60 = vpop.xlane.xlu0 %8576  ;;  %8792 = vadd.xlane.f32.xlu1 %v8791_v14  ;;  %v8815_v28 = vsel %vm747_vm0, %v11150_v53, 0.0  ;;  %v8836_v49 = vsel %vm747_vm0, %v11157_v6, 0.0  ;;  %v11163_v14 = vsel %vm7590_vm8, 1.0, %v18594_v62  ;;  %v18715_v6 = vld [vmem:[#allocation294_spill] sm:$0xff] }
 0xeca   : > { %v9908_v15 = vrot.slane %v8577_v60, %v18532_v18  ;;  %v8580_v63 = vpop.xlane.xlu1 %8579  ;;  %v11164_v33 = vsel %vm7591_vm4, 1.0, %v18594_v62  ;;  %v8854_v8 = vsel %vm747_vm0, %v11163_v14, 0.0  ;;  %vm7585_vm11 = vcmp.gt.f32.partialorder %v17027_v11, %v18709_v38 }
 0xecb   : > { %v9913_v47 = vrot.slane %v8580_v63, %v18533_v42  ;;  %v8857_v59 = vsel %vm747_vm0, %v11164_v33, 0.0  ;;  %v18707_v63 = vld [vmem:[#allocation457_spill] sm:$0xff]  ;;  %vm7592_vm8 = vcmp.gt.f32.partialorder %v17077_v58, %v18710_v61  ;;  %vm7572_vm4 = vcmp.gt.f32.partialorder %v16955_v3, %v18712_v35 }
 0xecc   : > { %v9909_v10 = vsel %vm4177_vm13, %v9908_v15, %v9904_v39  ;;  %8813 = vadd.xlane.f32.xlu0 %v8812_v57  ;;  %v18706_v39 = vld [vmem:[#allocation450_spill] sm:$0xff]  ;;  %v11130_v15 = vsel %vm7557_vm2, 1.0, %v18594_v62  ;;  %vm7571_vm12 = vcmp.gt.f32.partialorder %v16955_v3, %v18707_v63  ;;  %v18708_v57 = vld [vmem:[#allocation464_spill] sm:$0xff] }
 0xecd   : > { %v8583_v29 = vpop.xlane.xlu0 %8582  ;;  %8831 = vadd.xlane.f32.xlu1 %v8830_v1  ;;  %v9914_v7 = vsel %vm4184_vm14, %v9913_v47, %v9909_v10  ;;  %vm7564_vm6 = vcmp.gt.f32.partialorder %v16933_v56, %v18706_v39  ;;  %vm7578_vm7 = vcmp.gt.f32.partialorder %v16994_v41, %v18708_v57  ;;  %v8755_v1 = vsel %vm747_vm0, %v11130_v15, 0.0  ;;  %v18718_v63 = vld [vmem:[#allocation288_spill] sm:$0xff] }
 0xece   : > { %v9918_v34 = vrot.slane %v8583_v29, %v18536_v40  ;;  %v8586_v24 = vpop.xlane.xlu1 %8585  ;;  %v11137_v47 = vsel %vm7564_vm6, 1.0, %v18594_v62  ;;  %v11144_v31 = vsel %vm7571_vm12, 1.0, %v18594_v62  ;;  %v11151_v0 = vsel %vm7578_vm7, 1.0, %v18594_v62 }
 0xecf   : > { %v9923_v30 = vrot.slane %v8586_v24, %v18537_v46  ;;  %v8776_v22 = vsel %vm747_vm0, %v11137_v47, 0.0  ;;  %v8797_v24 = vsel %vm747_vm0, %v11144_v31, 0.0  ;;  %vm7593_vm12 = vcmp.gt.f32.partialorder %v17077_v58, %v18715_v6 }
 0xed0   : > { %v9919_v52 = vsel %vm4191_vm1, %v9918_v34, %v9914_v7  ;;  %8834 = vadd.xlane.f32.xlu0 %v8833_v9  ;;  %v8818_v7 = vsel %vm747_vm0, %v11151_v0, 0.0  ;;  %v18711_v9 = vld [vmem:[#allocation451_spill] sm:$0xff]  ;;  %v11166_v39 = vsel %vm7593_vm12, 1.0, %v18594_v62  ;;  %v18720_v0 = vld [vmem:[#allocation282_spill] sm:$0xff] }
 0xed1   : > { %v8589_v37 = vpop.xlane.xlu0 %8588  ;;  %8753 = vadd.xlane.f32.xlu1 %v8752_v44  ;;  %v9924_v5 = vsel %vm4198_vm3, %v9923_v30, %v9919_v52  ;;  %v11158_v30 = vsel %vm7585_vm11, 1.0, %v18594_v62  ;;  %v11165_v44 = vsel %vm7592_vm8, 1.0, %v18594_v62  ;;  %vm7587_vm8 = vcmp.gt.f32.partialorder %v17027_v11, %v18718_v63 }
 0xed2   : > { %v9928_v55 = vrot.slane %v8589_v37, %v18540_v19  ;;  %v17083_v23 = vpop.xlane.xlu1 %8591  ;;  %v8839_v37 = vsel %vm747_vm0, %v11158_v30, 0.0  ;;  %v8860_v20 = vsel %vm747_vm0, %v11165_v44, 0.0  ;;  %v8863_v47 = vsel %vm747_vm0, %v11166_v39, 0.0 }
 0xed3   : > { %v11160_v38 = vsel %vm7587_vm8, 1.0, %v18594_v62  ;;  %vm18726_vm8 = vcmask 1044484  }
 0xed4   : > { %v9929_v17 = vsel %vm4205_vm5, %v9928_v55, %v9924_v5  ;;  %8774 = vadd.xlane.f32.xlu0 %v8773_v12  ;;  %v18713_v55 = vld [vmem:[#allocation280_spill] sm:$0xff]  ;;  %v11145_v5 = vsel %vm7572_vm4, 1.0, %v18594_v62  ;;  %v18714_v12 = vld [vmem:[#allocation287_spill] sm:$0xff]  ;;  %vm7581_vm4 = vcmp.gt.f32.partialorder %v16994_v41, %v18720_v0 }
 0xed5   : > { %v17093_v54 = vsel %vm18703_vm15, %v9929_v17, %v10420_v51  ;;  %v17095_v27 = vpop.xlane.xlu0 %8594  ;;  %8795 = vadd.xlane.f32.xlu1 %v8794_v50  ;;  %vm7565_vm15 = vcmp.gt.f32.partialorder %v16933_v56, %v18711_v9  ;;  %vm7579_vm2 = vcmp.gt.f32.partialorder %v16994_v41, %v18713_v55  ;;  %vm7586_vm6 = vcmp.gt.f32.partialorder %v17027_v11, %v18714_v12  ;;  %v18721_v9 = vld [vmem:[#allocation289_spill] sm:$0xff] }
 0xed6   : > { %v17100_v21 = vpop.xlane.xlu1 %8597  ;;  %v11138_v43 = vsel %vm7565_vm15, 1.0, %v18594_v62  ;;  %v8800_v53 = vsel %vm747_vm0, %v11145_v5, 0.0  ;;  %v11152_v13 = vsel %vm7579_vm2, 1.0, %v18594_v62  ;;  %vm7588_vm2 = vcmp.gt.f32.partialorder %v17027_v11, %v18721_v9  ;;  %v18724_v12 = vld [vmem:[#allocation297_spill] sm:$0xff] }
 0xed7   : > { %v8779_v50 = vsel %vm747_vm0, %v11138_v43, 0.0  ;;  %v8821_v16 = vsel %vm747_vm0, %v11152_v13, 0.0  ;;  %v11154_v35 = vsel %vm7581_vm4, 1.0, %v18594_v62  ;;  %v18723_v43 = vld [vmem:[#allocation290_spill] sm:$0xff]  ;;  %v11161_v5 = vsel %vm7588_vm2, 1.0, %v18594_v62 }
 0xed8   : > { %8816 = vadd.xlane.f32.xlu0 %v8815_v28  ;;  %v11159_v28 = vsel %vm7586_vm6, 1.0, %v18594_v62  ;;  %vm7589_vm12 = vcmp.gt.f32.partialorder %v17027_v11, %v18723_v43  ;;  %v8827_v55 = vsel %vm747_vm0, %v11154_v35, 0.0  ;;  %v9933_v11 = vrot.slane %v17083_v23, %v18527_v25 }
 0xed9   : > { %v17107_v51 = vpop.xlane.xlu0 %8600  ;;  %8837 = vadd.xlane.f32.xlu1 %v8836_v49  ;;  %v18716_v49 = vld [vmem:[#allocation459_spill] sm:$0xff]  ;;  %v8842_v33 = vsel %vm747_vm0, %v11159_v28, 0.0  ;;  %vm18728_vm4 = vcmask 1046534   ;;  %vm18729_vm2 = vcmask 1047559  }
 0xeda   : > { %v17112_v60 = vpop.xlane.xlu1 %8603  ;;  %vm7573_vm7 = vcmp.gt.f32.partialorder %v16955_v3, %v18716_v49  ;;  %v8848_v49 = vsel %vm747_vm0, %v11161_v5, 0.0 }
 0xedb   : > { %v11146_v15 = vsel %vm7573_vm7, 1.0, %v18594_v62  ;;  %vm7596_vm7 = vcmp.gt.f32.partialorder %v17077_v58, %v18724_v12 }
 0xedc   : > { %8855 = vadd.xlane.f32.xlu0 %v8854_v8  ;;  %v18717_v8 = vld [vmem:[#allocation281_spill] sm:$0xff]  ;;  %v8803_v57 = vsel %vm747_vm0, %v11146_v15, 0.0 }
 0xedd   : > { %v17119_v26 = vpop.xlane.xlu0 %8606  ;;  %8858 = vadd.xlane.f32.xlu1 %v8857_v59  ;;  %vm7580_vm11 = vcmp.gt.f32.partialorder %v16994_v41, %v18717_v8  ;;  %v11169_v8 = vsel %vm7596_vm7, 1.0, %v18594_v62  ;;  %vm18732_vm7 = vcmask 1043459  }
 0xede   : > { %v17124_v10 = vpop.xlane.xlu1 %8609 }
 0xedf   : > { %v9962_v12 = vrot.slane %v17124_v10, %v18537_v46 }
 0xee0   : > { %8756 = vadd.xlane.f32.xlu0 %v8755_v1  ;;  %v11153_v1 = vsel %vm7580_vm11, 1.0, %v18594_v62 }
 0xee1   : > { %v17131_v29 = vpop.xlane.xlu0 %8612  ;;  %8777 = vadd.xlane.f32.xlu1 %v8776_v22  ;;  %v18719_v22 = vld [vmem:[#allocation295_spill] sm:$0xff] }
 0xee2   : > { %v17136_v34 = vpop.xlane.xlu1 %8615  ;;  %vm7594_vm15 = vcmp.gt.f32.partialorder %v17077_v58, %v18719_v22 }
 0xee3   : > { %v11167_v30 = vsel %vm7594_vm15, 1.0, %v18594_v62  ;;  %v9972_v15 = vrot.slane %v17136_v34, %v18527_v25  ;;  %vm18727_vm15 = vcmask 1045509  }
 0xee4   : > { %8798 = vadd.xlane.f32.xlu0 %v8797_v24  ;;  %v8824_v24 = vsel %vm747_vm0, %v11153_v1, 0.0 }
 0xee5   : > { %v17143_v52 = vpop.xlane.xlu0 %8618  ;;  %8819 = vadd.xlane.f32.xlu1 %v8818_v7  ;;  %v8845_v7 = vsel %vm747_vm0, %v11160_v38, 0.0 }
 0xee6   : > { %v17148_v45 = vpop.xlane.xlu1 %8621  ;;  %v9976_v28 = vrot.slane %v17143_v52, %v18528_v32  ;;  %v9947_v52 = vrot.slane %v17107_v51, %v18532_v18 }
 0xee8   : > { %8840 = vadd.xlane.f32.xlu0 %v8839_v37  ;;  %v18722_v37 = vld [vmem:[#allocation296_spill] sm:$0xff]  ;;  %v9977_v22 = vsel %vm4163_vm9, %v9976_v28, %v9972_v15  ;;  %v9967_v28 = vrot.slane %v17131_v29, %v18540_v19 }
 0xee9   : > { %v17155_v56 = vpop.xlane.xlu0 %8624  ;;  %8861 = vadd.xlane.f32.xlu1 %v8860_v20  ;;  %vm7595_vm6 = vcmp.gt.f32.partialorder %v17077_v58, %v18722_v37  ;;  %v8866_v20 = vsel %vm747_vm0, %v11167_v30, 0.0 }
 0xeea   : > { %v17160_v17 = vpop.xlane.xlu1 %8627  ;;  %v11168_v13 = vsel %vm7595_vm6, 1.0, %v18594_v62  ;;  %v9986_v38 = vrot.slane %v17155_v56, %v18532_v18  ;;  %vm18730_vm6 = vcmask 1041409  }
 0xeeb   : > { %v8869_v39 = vsel %vm747_vm0, %v11168_v13, 0.0 }
 0xeec   : > { %8780 = vadd.xlane.f32.xlu0 %v8779_v50  ;;  %v9937_v50 = vrot.slane %v17095_v27, %v18528_v32  ;;  %v9942_v27 = vrot.slane %v17100_v21, %v18529_v2  ;;  %v9981_v21 = vrot.slane %v17148_v45, %v18529_v2  ;;  %v9952_v45 = vrot.slane %v17112_v60, %v18533_v42 }
 0xeed   : > { %v17167_v48 = vpop.xlane.xlu0 %8630  ;;  %8801 = vadd.xlane.f32.xlu1 %v8800_v53 }
 0xeee   : > { %v17172_v14 = vpop.xlane.xlu1 %8633  ;;  %v9938_v23 = vsel %vm4163_vm9, %v9937_v50, %v9933_v11  ;;  %v9982_v60 = vsel %vm4170_vm10, %v9981_v21, %v9977_v22 }
 0xeef   : > { %v9987_v37 = vsel %vm4177_vm13, %v9986_v38, %v9982_v60  ;;  %v10001_v10 = vrot.slane %v17172_v14, %v18537_v46 }
 0xef0   : > { %8822 = vadd.xlane.f32.xlu0 %v8821_v16  ;;  %v11162_v16 = vsel %vm7589_vm12, 1.0, %v18594_v62  ;;  %vm18731_vm12 = vcmask 1042434  }
 0xef1   : > { %v17179_v59 = vpop.xlane.xlu0 %8636  ;;  %8843 = vadd.xlane.f32.xlu1 %v8842_v33  ;;  %v18725_v33 = vld [vmem:[#allocation298_spill] sm:$0xff]  ;;  %v8851_v1 = vsel %vm747_vm0, %v11162_v16, 0.0 }
 0xef2   : > { %v17184_v3 = vpop.xlane.xlu1 %8639  ;;  %vm7597_vm11 = vcmp.gt.f32.partialorder %v17077_v58, %v18725_v33 }
 0xef3   : > { %v10011_v51 = vrot.slane %v17184_v3, %v18527_v25  ;;  %v11170_v34 = vsel %vm7597_vm11, 1.0, %v18594_v62  ;;  %v9957_v3 = vrot.slane %v17119_v26, %v18536_v40  ;;  %v9996_v26 = vrot.slane %v17167_v48, %v18536_v40  ;;  %vm18733_vm11 = vmmov %vm18726_vm8 }
 0xef4   : > { %8864 = vadd.xlane.f32.xlu0 %v8863_v47 }
 0xef5   : > { %v8643_v31 = vpop.xlane.xlu0 %8642  ;;  %8804 = vadd.xlane.f32.xlu1 %v8803_v57 }
 0xef6   : > { %v17194_v61 = vpop.xlane.xlu1 %8645  ;;  %v10015_v63 = vrot.slane %v8643_v31, %v18528_v32  ;;  %v9943_v31 = vsel %vm4170_vm10, %v9942_v27, %v9938_v23 }
 0xef7   : > { %v10020_v0 = vrot.slane %v17194_v61, %v18529_v2  ;;  %v9948_v56 = vsel %vm4177_vm13, %v9947_v52, %v9943_v31  ;;  %v9991_v61 = vrot.slane %v17160_v17, %v18533_v42 }
 0xef8   : > { %8825 = vadd.xlane.f32.xlu0 %v8824_v24  ;;  %v8872_v24 = vsel %vm747_vm0, %v11169_v8, 0.0  ;;  %v9953_v5 = vsel %vm4184_vm14, %v9952_v45, %v9948_v56 }
 0xef9   : > { %v17201_v44 = vpop.xlane.xlu0 %8648  ;;  %8846 = vadd.xlane.f32.xlu1 %v8845_v7  ;;  %v10016_v7 = vsel %vm4163_vm9, %v10015_v63, %v10011_v51  ;;  %v9958_v11 = vsel %vm4191_vm1, %v9957_v3, %v9953_v5 }
 0xefa   : > { %v17206_v41 = vpop.xlane.xlu1 %8651  ;;  %v10025_v62 = vrot.slane %v17201_v44, %v18532_v18  ;;  %v8875_v44 = vsel %vm747_vm0, %v11170_v34, 0.0  ;;  %v10021_v43 = vsel %vm4170_vm10, %v10020_v0, %v10016_v7  ;;  %v9963_v63 = vsel %vm4198_vm3, %v9962_v12, %v9958_v11 }
 0xefc   : > { %8867 = vadd.xlane.f32.xlu0 %v8866_v20  ;;  %v10026_v50 = vsel %vm4177_vm13, %v10025_v62, %v10021_v43 }
 0xefd   : > { %v17217_v53 = vpop.xlane.xlu0 %8654  ;;  %8828 = vadd.xlane.f32.xlu1 %v8827_v55  ;;  %v10030_v55 = vrot.slane %v17206_v41, %v18533_v42  ;;  %v9992_v41 = vsel %vm4184_vm14, %v9991_v61, %v9987_v37 }
 0xefe   : > { %v17220_v6 = vpop.xlane.xlu1 %8657  ;;  %v10035_v48 = vrot.slane %v17217_v53, %v18536_v40  ;;  %v9997_v33 = vsel %vm4191_vm1, %v9996_v26, %v9992_v41 }
 0xeff   : > { %v10031_v8 = vsel %vm4184_vm14, %v10030_v55, %v10026_v50  ;;  %v10040_v29 = vrot.slane %v17220_v6, %v18537_v46 }
 0xf00   : > { %8849 = vadd.xlane.f32.xlu0 %v8848_v49  ;;  %v10036_v52 = vsel %vm4191_vm1, %v10035_v48, %v10031_v8 }
 0xf01   : > { %v17240_v47 = vpop.xlane.xlu0 %8660  ;;  %8870 = vadd.xlane.f32.xlu1 %v8869_v39  ;;  %v10006_v39 = vrot.slane %v17179_v59, %v18540_v19  ;;  %v9968_v59 = vsel %vm4205_vm5, %v9967_v28, %v9963_v63  ;;  %v10041_v51 = vsel %vm4198_vm3, %v10040_v29, %v10036_v52 }
 0xf02   : > { %v8664_v57 = vpop.xlane.xlu1 %8663  ;;  %v10045_v15 = vrot.slane %v17240_v47, %v18540_v19  ;;  %v10422_v45 = vsel %vm18726_vm8, %v9968_v59, %v17093_v54  ;;  %vm18734_vm8 = vmmov %vm18727_vm15 }
 0xf03   : > { %v10050_v30 = vrot.slane %v8664_v57, %v18527_v25 }
 0xf04   : > { %8852 = vadd.xlane.f32.xlu0 %v8851_v1  ;;  %v10002_v1 = vsel %vm4198_vm3, %v10001_v10, %v9997_v33  ;;  %v10046_v34 = vsel %vm4205_vm5, %v10045_v15, %v10041_v51 }
 0xf05   : > { %v8667_v58 = vpop.xlane.xlu0 %8666  ;;  %8873 = vadd.xlane.f32.xlu1 %v8872_v24  ;;  %v10007_v38 = vsel %vm4205_vm5, %v10006_v39, %v10002_v1 }
 0xf06   : > { %v10054_v9 = vrot.slane %v8667_v58, %v18528_v32  ;;  %v8670_v35 = vpop.xlane.xlu1 %8669  ;;  %v10423_v56 = vsel %vm18727_vm15, %v10007_v38, %v10422_v45  ;;  %vm18735_vm15 = vmmov %vm18728_vm4 }
 0xf07   : > { %v10059_v20 = vrot.slane %v8670_v35, %v18529_v2  ;;  %v10424_v7 = vsel %vm18728_vm4, %v10046_v34, %v10423_v56  ;;  %vm18736_vm4 = vmmov %vm18729_vm2 }
 0xf08   : > { %v10055_v17 = vsel %vm4163_vm9, %v10054_v9, %v10050_v30  ;;  %8876 = vadd.xlane.f32.xlu0 %v8875_v44 }
 0xf09   : > { %v8673_v13 = vpop.xlane.xlu0 %8672  ;;  %v10060_v27 = vsel %vm4170_vm10, %v10059_v20, %v10055_v17 }
 0xf0a   : > { %v10064_v49 = vrot.slane %v8673_v13, %v18532_v18  ;;  %v8676_v16 = vpop.xlane.xlu1 %8675 }
 0xf0b   : > { %v10069_v53 = vrot.slane %v8676_v16, %v18533_v42 }
 0xf0c   : > { %v10065_v23 = vsel %vm4177_vm13, %v10064_v49, %v10060_v27 }
 0xf0d   : > { %v8679_v14 = vpop.xlane.xlu0 %8678  ;;  %v10070_v22 = vsel %vm4184_vm14, %v10069_v53, %v10065_v23 }
 0xf0e   : > { %v10074_v21 = vrot.slane %v8679_v14, %v18536_v40  ;;  %v8682_v57 = vpop.xlane.xlu1 %8681 }
 0xf0f   : > { %v10079_v6 = vrot.slane %v8682_v57, %v18537_v46 }
 0xf10   : > { %v10075_v47 = vsel %vm4191_vm1, %v10074_v21, %v10070_v22 }
 0xf11   : > { %v8685_v31 = vpop.xlane.xlu0 %8684  ;;  %v10080_v3 = vsel %vm4198_vm3, %v10079_v6, %v10075_v47 }
 0xf12   : > { %v10084_v0 = vrot.slane %v8685_v31, %v18540_v19  ;;  %v8688_v24 = vpop.xlane.xlu1 %8687 }
 0xf13   : > { %v10089_v61 = vrot.slane %v8688_v24, %v18527_v25 }
 0xf14   : > { %v10085_v62 = vsel %vm4205_vm5, %v10084_v0, %v10080_v3 }
 0xf15   : > { %v10425_v58 = vsel %vm18729_vm2, %v10085_v62, %v10424_v7  ;;  %v8691_v60 = vpop.xlane.xlu0 %8690 }
 0xf16   : > { %10440 = vst.msk [vmem:[%s16312_s18 + $0x10] sm:$0xff] %vm747_vm0, %v10425_v58  ;;  %v10093_v54 = vrot.slane %v8691_v60, %v18528_v32  ;;  %v8694_v30 = vpop.xlane.xlu1 %8693 }
 0xf17   : > { %v10098_v9 = vrot.slane %v8694_v30, %v18529_v2 }
 0xf18   : > { %v10094_v35 = vsel %vm4163_vm9, %v10093_v54, %v10089_v61 }
 0xf19   : > { %v10099_v37 = vsel %vm4170_vm10, %v10098_v9, %v10094_v35  ;;  %v8697_v26 = vpop.xlane.xlu0 %8696 }
 0xf1a   : > { %v10103_v20 = vrot.slane %v8697_v26, %v18532_v18  ;;  %v8700_v44 = vpop.xlane.xlu1 %8699 }
 0xf1b   : > { %v10108_v43 = vrot.slane %v8700_v44, %v18533_v42 }
 0xf1c   : > { %v10104_v55 = vsel %vm4177_vm13, %v10103_v20, %v10099_v37 }
 0xf1d   : > { %v10109_v17 = vsel %vm4184_vm14, %v10108_v43, %v10104_v55  ;;  %v8703_v5 = vpop.xlane.xlu0 %8702 }
 0xf1e   : > { %v10113_v12 = vrot.slane %v8703_v5, %v18536_v40  ;;  %v8706_v50 = vpop.xlane.xlu1 %8705 }
 0xf1f   : > { %v10118_v48 = vrot.slane %v8706_v50, %v18537_v46 }
 0xf20   : > { %v10114_v13 = vsel %vm4191_vm1, %v10113_v12, %v10109_v17 }
 0xf21   : > { %v10119_v11 = vsel %vm4198_vm3, %v10118_v48, %v10114_v13  ;;  %v8709_v28 = vpop.xlane.xlu0 %8708 }
 0xf22   : > { %v10123_v41 = vrot.slane %v8709_v28, %v18540_v19  ;;  %v8712_v49 = vpop.xlane.xlu1 %8711 }
 0xf23   : > { %v10128_v10 = vrot.slane %v8712_v49, %v18527_v25 }
 0xf24   : > { %v10124_v16 = vsel %vm4205_vm5, %v10123_v41, %v10119_v11 }
 0xf25   : > { %v8715_v33 = vpop.xlane.xlu0 %8714 }
 0xf26   : > { %v10132_v27 = vrot.slane %v8715_v33, %v18528_v32  ;;  %v8718_v53 = vpop.xlane.xlu1 %8717 }
 0xf27   : > { %v10137_v39 = vrot.slane %v8718_v53, %v18529_v2 }
 0xf28   : > { %v10133_v8 = vsel %vm4163_vm9, %v10132_v27, %v10128_v10 }
 0xf29   : > { %v10138_v29 = vsel %vm4170_vm10, %v10137_v39, %v10133_v8  ;;  %v8721_v23 = vpop.xlane.xlu0 %8720 }
 0xf2a   : > { %v10142_v52 = vrot.slane %v8721_v23, %v18532_v18  ;;  %v8724_v15 = vpop.xlane.xlu1 %8723 }
 0xf2b   : > { %v10147_v14 = vrot.slane %v8724_v15, %v18533_v42 }
 0xf2c   : > { %v10143_v63 = vsel %vm4177_vm13, %v10142_v52, %v10138_v29 }
 0xf2d   : > { %v10148_v21 = vsel %vm4184_vm14, %v10147_v14, %v10143_v63  ;;  %v8727_v57 = vpop.xlane.xlu0 %8726 }
 0xf2e   : > { %v10152_v59 = vrot.slane %v8727_v57, %v18536_v40  ;;  %v8730_v1 = vpop.xlane.xlu1 %8729 }
 0xf2f   : > { %v10157_v22 = vrot.slane %v8730_v1, %v18537_v46 }
 0xf30   : > { %v10153_v6 = vsel %vm4191_vm1, %v10152_v59, %v10148_v21 }
 0xf31   : > { %v10158_v38 = vsel %vm4198_vm3, %v10157_v22, %v10153_v6  ;;  %v8733_v51 = vpop.xlane.xlu0 %8732 }
 0xf32   : > { %v10162_v47 = vrot.slane %v8733_v51, %v18540_v19  ;;  %v8736_v34 = vpop.xlane.xlu1 %8735 }
 0xf33   : > { %v10167_v24 = vrot.slane %v8736_v34, %v18527_v25 }
 0xf34   : > { %v10163_v31 = vsel %vm4205_vm5, %v10162_v47, %v10158_v38 }
 0xf35   : > { %v10426_v45 = vsel %vm18730_vm6, %v10163_v31, %v10124_v16  ;;  %v8739_v0 = vpop.xlane.xlu0 %8738 }
 0xf36   : > { %v10171_v56 = vrot.slane %v8739_v0, %v18528_v32  ;;  %v8742_v3 = vpop.xlane.xlu1 %8741 }
 0xf37   : > { %v10176_v7 = vrot.slane %v8742_v3, %v18529_v2 }
 0xf38   : > { %v10172_v62 = vsel %vm4163_vm9, %v10171_v56, %v10167_v24 }
 0xf39   : > { %v10177_v58 = vsel %vm4170_vm10, %v10176_v7, %v10172_v62  ;;  %v8745_v60 = vpop.xlane.xlu0 %8744 }
 0xf3a   : > { %v10181_v61 = vrot.slane %v8745_v60, %v18532_v18  ;;  %v8748_v54 = vpop.xlane.xlu1 %8747 }
 0xf3b   : > { %v10186_v30 = vrot.slane %v8748_v54, %v18533_v42 }
 0xf3c   : > { %v10182_v9 = vsel %vm4177_vm13, %v10181_v61, %v10177_v58 }
 0xf3d   : > { %v10187_v35 = vsel %vm4184_vm14, %v10186_v30, %v10182_v9  ;;  %v8751_v37 = vpop.xlane.xlu0 %8750 }
 0xf3e   : > { %v10191_v26 = vrot.slane %v8751_v37, %v18536_v40  ;;  %v8760_v20 = vpop.xlane.xlu1 %8759 }
 0xf3f   : > { %v10206_v55 = vrot.slane %v8760_v20, %v18527_v25 }
 0xf40   : > { %v10192_v44 = vsel %vm4191_vm1, %v10191_v26, %v10187_v35 }
 0xf41   : > { %v8763_v43 = vpop.xlane.xlu0 %8762 }
 0xf42   : > { %v10210_v17 = vrot.slane %v8763_v43, %v18528_v32  ;;  %v8766_v5 = vpop.xlane.xlu1 %8765 }
 0xf43   : > { %v10215_v12 = vrot.slane %v8766_v5, %v18529_v2 }
 0xf44   : > { %v10211_v50 = vsel %vm4163_vm9, %v10210_v17, %v10206_v55 }
 0xf45   : > { %v10216_v48 = vsel %vm4170_vm10, %v10215_v12, %v10211_v50  ;;  %v8784_v13 = vpop.xlane.xlu0 %8783 }
 0xf46   : > { %v10245_v11 = vrot.slane %v8784_v13, %v18527_v25  ;;  %v8787_v28 = vpop.xlane.xlu1 %8786 }
 0xf47   : > { %v10249_v41 = vrot.slane %v8787_v28, %v18528_v32 }
 0xf49   : > { %v10250_v49 = vsel %vm4163_vm9, %v10249_v41, %v10245_v11  ;;  %v8769_v16 = vpop.xlane.xlu0 %8768 }
 0xf4a   : > { %v10220_v33 = vrot.slane %v8769_v16, %v18532_v18  ;;  %v8790_v10 = vpop.xlane.xlu1 %8789 }
 0xf4b   : > { %v10254_v37 = vrot.slane %v8790_v10, %v18529_v2 }
 0xf4c   : > { %v10221_v27 = vsel %vm4177_vm13, %v10220_v33, %v10216_v48 }
 0xf4d   : > { %v17377_v53 = vpop.xlane.xlu0 %8807  ;;  %v10255_v12 = vsel %vm4170_vm10, %v10254_v37, %v10250_v49 }
 0xf4e   : > { %v17379_v39 = vpop.xlane.xlu1 %8810 }
 0xf51   : > { %v8772_v8 = vpop.xlane.xlu0 %8771 }
 0xf52   : > { %v8793_v29 = vpop.xlane.xlu1 %8792  ;;  %v10225_v3 = vrot.slane %v8772_v8, %v18533_v42 }
 0xf53   : > { %v10259_v20 = vrot.slane %v8793_v29, %v18532_v18  ;;  %v10284_v29 = vrot.slane %v17377_v53, %v18527_v25 }
 0xf54   : > { %v10226_v61 = vsel %vm4184_vm14, %v10225_v3, %v10221_v27 }
 0xf55   : > { %v17381_v23 = vpop.xlane.xlu0 %8813  ;;  %v10260_v48 = vsel %vm4177_vm13, %v10259_v20, %v10255_v12 }
 0xf56   : > { %v17383_v52 = vpop.xlane.xlu1 %8831 }
 0xf59   : > { %v17385_v15 = vpop.xlane.xlu0 %8834 }
 0xf5a   : > { %v8754_v14 = vpop.xlane.xlu1 %8753 }
 0xf5b   : > { %v10196_v6 = vrot.slane %v8754_v14, %v18537_v46  ;;  %v10288_v14 = vrot.slane %v17379_v39, %v18528_v32 }
 0xf5d   : > { %v8775_v63 = vpop.xlane.xlu0 %8774  ;;  %v10197_v34 = vsel %vm4198_vm3, %v10196_v6, %v10192_v44  ;;  %v10327_v6 = vrot.slane %v17385_v15, %v18528_v32 }
 0xf5e   : > { %v8796_v21 = vpop.xlane.xlu1 %8795  ;;  %v10230_v62 = vrot.slane %v8775_v63, %v18536_v40 }
 0xf5f   : > { %v10264_v55 = vrot.slane %v8796_v21, %v18533_v42  ;;  %v10293_v21 = vrot.slane %v17381_v23, %v18529_v2 }
 0xf60   : > { %v10231_v30 = vsel %vm4191_vm1, %v10230_v62, %v10226_v61 }
 0xf61   : > { %v17387_v57 = vpop.xlane.xlu0 %8816  ;;  %v10265_v11 = vsel %vm4184_vm14, %v10264_v55, %v10260_v48 }
 0xf62   : > { %v17389_v59 = vpop.xlane.xlu1 %8837 }
 0xf63   : > { %v10332_v53 = vrot.slane %v17389_v59, %v18529_v2 }
 0xf65   : > { %v17391_v1 = vpop.xlane.xlu0 %8855 }
 0xf66   : > { %v17393_v22 = vpop.xlane.xlu1 %8858  ;;  %v10362_v39 = vrot.slane %v17391_v1, %v18527_v25 }
 0xf67   : > { %v10366_v23 = vrot.slane %v17393_v22, %v18528_v32 }
 0xf69   : > { %v8757_v38 = vpop.xlane.xlu0 %8756 }
 0xf6a   : > { %v10201_v51 = vrot.slane %v8757_v38, %v18540_v19  ;;  %v8778_v47 = vpop.xlane.xlu1 %8777 }
 0xf6b   : > { %v10235_v60 = vrot.slane %v8778_v47, %v18537_v46  ;;  %v10289_v47 = vsel %vm4163_vm9, %v10288_v14, %v10284_v29 }
 0xf6c   : > { %v10202_v31 = vsel %vm4205_vm5, %v10201_v51, %v10197_v34  ;;  %v10298_v51 = vrot.slane %v17387_v57, %v18532_v18  ;;  %v10323_v34 = vrot.slane %v17383_v52, %v18527_v25 }
 0xf6d   : > { %v10427_v0 = vsel %vm18731_vm12, %v10202_v31, %v10426_v45  ;;  %v8799_v24 = vpop.xlane.xlu0 %8798  ;;  %v10236_v35 = vsel %vm4198_vm3, %v10235_v60, %v10231_v30  ;;  %v10367_v30 = vsel %vm4163_vm9, %v10366_v23, %v10362_v39  ;;  %v18743_v39 = vld [vmem:[#allocation41_spill] sm:$0xff] (%p5852_p2)  ;;  %v18744_v23 = vld [vmem:[#allocation40_spill] sm:$0xff] (%p5852_p2) }
 0xf6e   : > { %v17400_v56 = vpop.xlane.xlu1 %8819  ;;  %v10269_v5 = vrot.slane %v8799_v24, %v18536_v40  ;;  %v10328_v52 = vsel %vm4163_vm9, %v10327_v6, %v10323_v34  ;;  %v18742_v34 = vld [vmem:[#allocation42_spill] sm:$0xff] (%p5852_p2) }
 0xf6f   : > { %v10303_v15 = vrot.slane %v17400_v56, %v18533_v42 }
 0xf70   : > { %v10270_v41 = vsel %vm4191_vm1, %v10269_v5, %v10265_v11 }
 0xf71   : > { %v17403_v7 = vpop.xlane.xlu0 %8840 }
 0xf72   : > { %v17406_v58 = vpop.xlane.xlu1 %8861  ;;  %v10337_v57 = vrot.slane %v17403_v7, %v18532_v18  ;;  %v10333_v7 = vsel %vm4170_vm10, %v10332_v53, %v10328_v52 }
 0xf73   : > { %v10371_v22 = vrot.slane %v17406_v58, %v18529_v2 }
 0xf75   : > { %v8781_v54 = vpop.xlane.xlu0 %8780  ;;  %v10372_v55 = vsel %vm4170_vm10, %v10371_v22, %v10367_v30 }
 0xf76   : > { %v10240_v45 = vrot.slane %v8781_v54, %v18540_v19  ;;  %v8802_v9 = vpop.xlane.xlu1 %8801 }
 0xf77   : > { %v10274_v50 = vrot.slane %v8802_v9, %v18537_v46  ;;  %v10338_v9 = vsel %vm4177_vm13, %v10337_v57, %v10333_v7 }
 0xf78   : > { %v10241_v26 = vsel %vm4205_vm5, %v10240_v45, %v10236_v35 }
 0xf79   : > { %v10428_v44 = vsel %vm18732_vm7, %v10241_v26, %v10427_v0  ;;  %v8823_v43 = vpop.xlane.xlu0 %8822  ;;  %v10275_v33 = vsel %vm4198_vm3, %v10274_v50, %v10270_v41  ;;  %v10294_v0 = vsel %vm4170_vm10, %v10293_v21, %v10289_v47  ;;  %v18738_v21 = vld [vmem:[#allocation60_spill] sm:$0xff] (%p5852_p2)  ;;  %v18741_v47 = vld [vmem:[#allocation43_spill] sm:$0xff] (%p5852_p2) }
 0xf7a   : > { %v8844_v17 = vpop.xlane.xlu1 %8843  ;;  %v10308_v24 = vrot.slane %v8823_v43, %v18536_v40  ;;  %v10299_v1 = vsel %vm4177_vm13, %v10298_v51, %v10294_v0  ;;  %v10511_v53 = vpack.c.bf16 (%p5852_p2), %v18742_v34, %v18741_v47 }
 0xf7b   : > { %v10342_v59 = vrot.slane %v8844_v17, %v18533_v42  ;;  %v10304_v45 = vsel %vm4184_vm14, %v10303_v15, %v10299_v1  ;;  %v17501_v15 = vpack.c.bf16 (%p5852_p2), %v18744_v23, %v18743_v39  ;;  %v18753_v39 = vld [vmem:[#allocation51_spill] sm:$0xff] (%p5852_p2) }
 0xf7c   : > { %v10309_v37 = vsel %vm4191_vm1, %v10308_v24, %v10304_v45  ;;  %v18749_v45 = vld [vmem:[#allocation56_spill] sm:$0xff] (%p5852_p2) }
 0xf7d   : > { %v8865_v13 = vpop.xlane.xlu0 %8864  ;;  %v10343_v26 = vsel %vm4184_vm14, %v10342_v59, %v10338_v9  ;;  %v18745_v59 = vld [vmem:[#allocation64_spill] sm:$0xff] (%p5852_p2)  ;;  %v10486_v9 = vsub.f32 (%p5852_p2), 1.0, %v18749_v45 }
 0xf7e   : > { %v8805_v28 = vpop.xlane.xlu1 %8804  ;;  %v10376_v60 = vrot.slane %v8865_v13, %v18532_v18  ;;  %v18747_v18 = vld [vmem:[#allocation61_spill] sm:$0xff] (%p5852_p2) }
 0xf7f   : > { %v10279_v16 = vrot.slane %v8805_v28, %v18540_v19 }
 0xf80   : > { %v10377_v50 = vsel %vm4177_vm13, %v10376_v60, %v10372_v55 }
 0xf81   : > { %v10280_v10 = vsel %vm4205_vm5, %v10279_v16, %v10275_v33  ;;  %v8826_v27 = vpop.xlane.xlu0 %8825 }
 0xf82   : > { %v10429_v8 = vsel %vm18733_vm11, %v10280_v10, %v10428_v44  ;;  %v8847_v49 = vpop.xlane.xlu1 %8846  ;;  %v10313_v56 = vrot.slane %v8826_v27, %v18537_v46 }
 0xf83   : > { %v10347_v62 = vrot.slane %v8847_v49, %v18536_v40 }
 0xf84   : > { %v10314_v17 = vsel %vm4198_vm3, %v10313_v56, %v10309_v37 }
 0xf85   : > { %v8868_v63 = vpop.xlane.xlu0 %8867  ;;  %v10348_v5 = vsel %vm4191_vm1, %v10347_v62, %v10343_v26 }
 0xf86   : > { %v8829_v38 = vpop.xlane.xlu1 %8828  ;;  %v10381_v58 = vrot.slane %v8868_v63, %v18533_v42  ;;  %v18737_v63 = vld [vmem:[#allocation62_spill] sm:$0xff] (%p5852_p2) }
 0xf87   : > { %v10318_v61 = vrot.slane %v8829_v38, %v18540_v19  ;;  %v10513_v6 = vpack.c.bf16 (%p5852_p2), %v18738_v21, %v18737_v63  ;;  %v18740_v38 = vld [vmem:[#allocation45_spill] sm:$0xff] (%p5852_p2) }
 0xf88   : > { %v10382_v11 = vsel %vm4184_vm14, %v10381_v58, %v10377_v50  ;;  %v18750_v58 = vld [vmem:[#allocation58_spill] sm:$0xff] (%p5852_p2) }
 0xf89   : > { %v8850_v31 = vpop.xlane.xlu0 %8849  ;;  %v10319_v48 = vsel %vm4205_vm5, %v10318_v61, %v10314_v17  ;;  %11471 = vmatprep.subr.bf16.mxu1 (%p5852_p2), %v10513_v6 }
 0xf8a   : > { %v8871_v3 = vpop.xlane.xlu1 %8870  ;;  %v10352_v54 = vrot.slane %v8850_v31, %v18537_v46  ;;  %v10430_v10 = vsel %vm18734_vm8, %v10319_v48, %v10429_v8  ;;  %v18739_v8 = vld [vmem:[#allocation46_spill] sm:$0xff] (%p5852_p2)  ;;  %11472 = vmatpush3.bf16.msra.mxu1 (%p5852_p2), %v10513_v6  ;;  %v18751_v6 = vld [vmem:[#allocation48_spill] sm:$0xff] (%p5852_p2) }
 0xf8b   : > { %v10386_v20 = vrot.slane %v8871_v3, %v18536_v40  ;;  %v10512_v51 = vpack.c.bf16 (%p5852_p2), %v18740_v38, %v18739_v8  ;;  %v10482_v3 = vsub.f32 (%p5852_p2), 1.0, %v18745_v59  ;;  %v10484_v40 = vsub.f32 (%p5852_p2), 1.0, %v18747_v18  ;;  %v18752_v38 = vld [vmem:[#allocation50_spill] sm:$0xff] (%p5852_p2) }
 0xf8c   : > { %v10353_v13 = vsel %vm4198_vm3, %v10352_v54, %v10348_v5 }
 0xf8d   : > { %v8853_v35 = vpop.xlane.xlu0 %8852  ;;  %v10387_v16 = vsel %vm4191_vm1, %v10386_v20, %v10382_v11  ;;  %11473 = vmatprep.subr.bf16.mxu1 (%p5852_p2), %v10512_v51 }
 0xf8e   : > { %v10357_v44 = vrot.slane %v8853_v35, %v18540_v19  ;;  %v8874_v43 = vpop.xlane.xlu1 %8873  ;;  %v10487_v35 = vsub.f32 (%p5852_p2), 1.0, %v18750_v58  ;;  %11474 = vmatpush3.bf16.msra.mxu1 (%p5852_p2), %v10512_v51 }
 0xf8f   : > { %v10391_v12 = vrot.slane %v8874_v43, %v18537_v46  ;;  %v18748_v46 = vld [vmem:[#allocation47_spill] sm:$0xff] (%p5852_p2)  ;;  %11475 = vmatprep.subr.bf16.mxu1 (%p5852_p2), %v10511_v53 }
 0xf90   : > { %v10358_v28 = vsel %vm4205_vm5, %v10357_v44, %v10353_v13 }
 0xf91   : > { %v8877_v41 = vpop.xlane.xlu0 %8876  ;;  %v10392_v27 = vsel %vm4198_vm3, %v10391_v12, %v10387_v16  ;;  %v10431_v49 = vsel %vm18735_vm15, %v10358_v28, %v10430_v10 }
 0xf92   : > { %v10396_v33 = vrot.slane %v8877_v41, %v18540_v19  ;;  %5854 = sbr.rel (!%p5852_p2) target bundleno = 2792 (0xae8), region = 82  ;;  %v10485_v19 = vsub.f32 (%p5852_p2), 1.0, %v18748_v46  ;;  %11476 = vmatpush3.bf16.msra.mxu1 (%p5852_p2), %v10511_v53  ;;  %v18758_v53 = vld [vmem:[#allocation53_spill] sm:$0xff] (%p5852_p2) }
 0xf93   :  { %11477 = vmatprep.subr.bf16.mxu1 (%p5852_p2), %v17501_v15 }
 0xf94   : > { %v10397_v29 = vsel %vm4205_vm5, %v10396_v33, %v10392_v27 }
 0xf95   : > { %v10432_v14 = vsel %vm18736_vm4, %v10397_v29, %v10431_v49 }
 0xf96   : > { %10441 = vst.msk [vmem:[%s16312_s18 + $0x18] sm:$0xff] %vm747_vm0, %v10432_v14  ;;  %11478 = vmatpush3.bf16.msra.mxu1 (%p5852_p2), %v17501_v15 }
 0xf9d   :  { %v10442_v57 = vld [vmem:[#allocation3] sm:$0xff]  ;;  %v10443_v31 = vld [vmem:[#allocation3 + $0x8] sm:$0xff]  ;;  %v10444_v0 = vld [vmem:[#allocation3 + $0x10] sm:$0xff] }
 0xf9e   :  { %v10450_v52 = vadd.f32 1.0, %v10442_v57  ;;  %v10451_v24 = vadd.f32 1.0, %v10443_v31  ;;  %v10445_v25 = vld [vmem:[#allocation3 + $0x18] sm:$0xff]  ;;  %v10446_v42 = vld [vmem:[#allocation3 + $0x20] sm:$0xff]  ;;  %v10452_v32 = vadd.f32 1.0, %v10444_v0  ;;  %v10447_v1 = vld [vmem:[#allocation3 + $0x28] sm:$0xff] }
 0xf9f   :  { %v10453_v2 = vadd.f32 1.0, %v10445_v25  ;;  %v10454_v62 = vadd.f32 1.0, %v10446_v42  ;;  %v10455_v7 = vadd.f32 1.0, %v10447_v1  ;;  %v10448_v60 = vld [vmem:[#allocation3 + $0x30] sm:$0xff]  ;;  %v10449_v61 = vld [vmem:[#allocation3 + $0x38] sm:$0xff] }
 0xfa0   :  { %v10458_v22 = vmul.f32 %v10450_v52, %v10450_v52  ;;  %v10459_v56 = vmul.f32 %v10451_v24, %v10451_v24  ;;  %v10460_v54 = vmul.f32 %v10452_v32, %v10452_v32  ;;  %v10456_v17 = vadd.f32 1.0, %v10448_v60  ;;  %v18754_v57 = vld [vmem:[#allocation49_spill] sm:$0xff]  ;;  %v18755_v0 = vld [vmem:[#allocation52_spill] sm:$0xff] }
 0xfa1   :  { %v10461_v30 = vmul.f32 %v10453_v2, %v10453_v2  ;;  %v10462_v20 = vmul.f32 %v10454_v62, %v10454_v62  ;;  %v10463_v44 = vmul.f32 %v10455_v7, %v10455_v7  ;;  %v10457_v5 = vadd.f32 1.0, %v10449_v61  ;;  %v18761_v60 = vld [vmem:[#allocation25_spill] sm:$0xff] }
 0xfa2   :  { %v10466_v37 = vmul.f32 %v10458_v22, %v10450_v52  ;;  %v10467_v26 = vmul.f32 %v10459_v56, %v10451_v24  ;;  %v10468_v43 = vmul.f32 %v10460_v54, %v10452_v32  ;;  %v10464_v41 = vmul.f32 %v10456_v17, %v10456_v17  ;;  %v18756_v24 = vld [vmem:[#allocation54_spill] sm:$0xff]  ;;  %v18760_v22 = vld [vmem:[#allocation57_spill] sm:$0xff]  ;;  %v18762_v54 = vld [vmem:[#allocation23_spill] sm:$0xff] }
 0xfa3   :  { %v10469_v55 = vmul.f32 %v10461_v30, %v10453_v2  ;;  %v10470_v48 = vmul.f32 %v10462_v20, %v10454_v62  ;;  %v10471_v13 = vmul.f32 %v10463_v44, %v10455_v7  ;;  %v10465_v16 = vmul.f32 %v10457_v5, %v10457_v5  ;;  %v18765_v44 = vld [vmem:[#allocation29_spill] sm:$0xff] }
 0xfa4   :  { %v10474_v12 = vmul.f32 %v18745_v59, %v10466_v37  ;;  %v10475_v50 = vmul.f32 %v18746_v4, %v10467_v26  ;;  %v10476_v11 = vmul.f32 %v18747_v18, %v10468_v43  ;;  %v10472_v63 = vmul.f32 %v10464_v41, %v10456_v17  ;;  %v18757_v4 = vld [vmem:[#allocation55_spill] sm:$0xff]  ;;  %v18764_v37 = vld [vmem:[#allocation22_spill] sm:$0xff] }
 0xfa5   :  { %v10477_v28 = vmul.f32 %v18748_v46, %v10469_v55  ;;  %v10478_v27 = vmul.f32 %v18749_v45, %v10470_v48  ;;  %v10479_v49 = vmul.f32 %v18750_v58, %v10471_v13  ;;  %v10473_v21 = vmul.f32 %v10465_v16, %v10457_v5  ;;  %v18766_v17 = vld [vmem:[#allocation27_spill] sm:$0xff] }
 0xfa6   :  { %v10490_v33 = vadd.f32 %v10482_v3, %v10474_v12  ;;  %v10491_v10 = vadd.f32 %v10483_v36, %v10475_v50  ;;  %v10492_v29 = vadd.f32 %v10484_v40, %v10476_v11  ;;  %v10480_v52 = vmul.f32 %v18755_v0, %v10472_v63  ;;  %v18767_v50 = vld [vmem:[#allocation28_spill] sm:$0xff]  ;;  %v18768_v11 = vld [vmem:[#allocation26_spill] sm:$0xff] }
 0xfa7   :  { %v10493_v14 = vadd.f32 %v10485_v19, %v10477_v28  ;;  %v10494_v47 = vadd.f32 %v10486_v9, %v10478_v27  ;;  %v10495_v34 = vadd.f32 %v10487_v35, %v10479_v49  ;;  %v10481_v59 = vmul.f32 %v18756_v24, %v10473_v21  ;;  %v18759_v19 = vld [vmem:[#allocation59_spill] sm:$0xff]  ;;  %v18763_v9 = vld [vmem:[#allocation24_spill] sm:$0xff] }
 0xfa8   :  { %v10498_v8 = vmul.f32 %v10490_v33, %v18751_v6  ;;  %v10499_v51 = vmul.f32 %v10491_v10, %v18752_v38  ;;  %v10500_v23 = vmul.f32 %v10492_v29, %v18753_v39  ;;  %v10488_v42 = vsub.f32 1.0, %v18755_v0 }
 0xfa9   :  { %v10501_v31 = vmul.f32 %v10493_v14, %v18754_v57  ;;  %v10502_v36 = vmul.f32 %v10494_v47, %v18757_v4  ;;  %v10503_v25 = vmul.f32 %v10495_v34, %v18758_v53  ;;  %v10489_v2 = vsub.f32 1.0, %v18756_v24 }
 0xfaa   :  { %v10506_v3 = vpack.c.bf16 %v10499_v51, %v10498_v8  ;;  %v10496_v40 = vadd.f32 %v10488_v42, %v10480_v52 }
 0xfab   :  { %v10507_v32 = vpack.c.bf16 %v10501_v31, %v10500_v23  ;;  %v10508_v18 = vpack.c.bf16 %v10503_v25, %v10502_v36  ;;  %v10497_v46 = vadd.f32 %v10489_v2, %v10481_v59 }
 0xfac   :  { %11479 = vmatprep.mubr.msk.bf16.mxu1 %vm747_vm0, %v10506_v3  ;;  %v10504_v1 = vmul.f32 %v10496_v40, %v18759_v19 }
 0xfad   :  { %11480 = vmatmul.mubr.msk.bf16.vlgmr.msra.gmra.mxu1 %vm747_vm0, %v10507_v32  ;;  %v10505_v56 = vmul.f32 %v10497_v46, %v18760_v22 }
 0xfae   :  { %11483 = vmatprep.mubr.msk.bf16.mxu1 %vm747_vm0, %v10508_v18 }
 0xfaf   :  { %v10509_v62 = vpack.c.bf16 %v10505_v56, %v10504_v1 }
 0xfb5   :  { %11484 = vmatmul.mubr.msk.bf16.gmra.mxu1 %vm747_vm0, %v10509_v62 }
0x106d   :  { %v11481_v7 = vpop.f32.mrf.mxu1 }
0x106e   :  { %v10569_v61 = vadd.f32 %v11481_v7, %v18761_v60 }
0x106f   :  { %v10560_v15 = vpop.f32.mrf.mxu1 }
0x1070   :  { %10594 = vst [vmem:[#allocation10 + $0x50] sm:$0xff] %v10569_v61  ;;  %v10561_v30 = vadd.f32 %v10560_v15, %v18762_v54 }
0x1071   :  { %v11482_v45 = vpop.f32.mrf.mxu1 }
0x1072   :  { %10592 = vst [vmem:[#allocation10 + $0x40] sm:$0xff] %v10561_v30  ;;  %v10572_v58 = vadd.f32 %v11482_v45, %v18763_v9 }
0x1073   :  { %v10563_v35 = vpop.f32.mrf.mxu1 }
0x1074   :  { %10595 = vst [vmem:[#allocation10 + $0x58] sm:$0xff] %v10572_v58  ;;  %v10564_v26 = vadd.f32 %v10563_v35, %v18764_v37 }
0x1075   :  { %v11485_v20 = vpop.f32.mrf.mxu1 }
0x1076   :  { %10593 = vst [vmem:[#allocation10 + $0x48] sm:$0xff] %v10564_v26  ;;  %v10585_v43 = vadd.f32 %v11485_v20, %v18765_v44 }
0x1077   :  { %v10576_v55 = vpop.f32.mrf.mxu1 }
0x1078   :  { %10598 = vst [vmem:[#allocation10 + $0x70] sm:$0xff] %v10585_v43  ;;  %v10577_v5 = vadd.f32 %v10576_v55, %v18766_v17 }
0x1079   :  { %v11486_v12 = vpop.f32.mrf.mxu1 }
0x107a   :  { %10596 = vst [vmem:[#allocation10 + $0x60] sm:$0xff] %v10577_v5  ;;  %v10588_v48 = vadd.f32 %v11486_v12, %v18767_v50 }
0x107b   :  { %v10579_v13 = vpop.f32.mrf.mxu1 }
0x107c   :  { %10599 = vst [vmem:[#allocation10 + $0x78] sm:$0xff] %v10588_v48  ;;  %v10580_v28 = vadd.f32 %v10579_v13, %v18768_v11 }
0x107e   :  { %10597 = vst [vmem:[#allocation10 + $0x68] sm:$0xff] %v10580_v28 }
0x107f   :  { %11666 = shalt.err (!%p11663_p7)
}
0x1080   :  { %10611 = dma.vmem_to_hbm [thread:$0]  %s10606_s20, 2048, %s17552_s5, [#allocation6], %s11699_s23, %s11699_s23, %s11700_s24  }
0x1081   :  { %11687 = dma.done.wait [#allocation6], 2048  }
0x1082   :  { %11688 = vsyncadd [#allocation6], 4294965248 }
0x1083   :  { %10615 = vsyncpa [#allocation5], 1 }
0x1084   :  { %10616 = vsyncpa [#allocation8], 1 }
0x1085   :  { %10617 = vsyncpa [#allocation6], 1 }

</bundles_post_ra>
